<compile_context>
chip_gen: v5e
topology: v5e:2x2
jax: 0.10.0
libtpu: 0.0.40
codegen_flags: <defaults>
</compile_context>

<pallas_src>
import numpy as np
import jax
import jax.numpy as jnp
from jax import lax
from jax.experimental import pallas as pl
from jax.experimental.pallas import tpu as pltpu

INPUT_DIM = 30
IN_PAD = 32          # 30 -> 32 (sublane-friendly K)
HIDDEN = 128
LINEAR_HID = 84
LIN_PAD = 128        # 84 -> 128 (lane-dense)
OUT_DIM = 63
OUT_PAD = 128        # 63 -> 128 (lane-dense)
SUBLANE = 8


def _round_up(n, m):
    return ((n + m - 1) // m) * m


def _gates(g, c):
    """LSTM cell update with gate columns pre-ordered [i, f, o, g]."""
    H = c.shape[-1]
    s = jax.nn.sigmoid(g[:, :3 * H])          # one contiguous EUP call
    i = s[:, 0 * H:1 * H]
    f = s[:, 1 * H:2 * H]
    o = s[:, 2 * H:3 * H]
    gg = jnp.tanh(g[:, 3 * H:4 * H])
    c_new = f * c + i * gg
    h_new = o * jnp.tanh(c_new)
    return h_new, c_new


def _lstm_kernel(x_ref,
                 wih0_ref, b0_ref,
                 wbig_ref, b1_ref,
                 wl_ref, bl_ref, wo_ref, bo_ref,
                 out_ref,
                 h1_ref, c1_ref, h2_ref, c2_ref,
                 xg0_ref, h2s_ref):
    """One time chunk.  x_ref: (T*B, 32) bf16; out_ref: (T*B, 128) f32."""
    B, H = c1_ref.shape
    G = 4 * H
    TB = xg0_ref.shape[0]
    T = TB // B

    # Zero the carried LSTM state on the first chunk of the sequence.
    @pl.when(pl.program_id(0) == 0)
    def _():
        h1_ref[...] = jnp.zeros_like(h1_ref)
        c1_ref[...] = jnp.zeros_like(c1_ref)
        h2_ref[...] = jnp.zeros_like(h2_ref)
        c2_ref[...] = jnp.zeros_like(c2_ref)

    # ---- layer-0 input projection, whole chunk in one GEMM: (T*B,32)@(32,512)
    xg0_ref[...] = (
        jnp.dot(x_ref[...], wih0_ref[...], preferred_element_type=jnp.float32)
        + b0_ref[...])

    def fused(h1, h2):
        # [h1|h2] @ [[whh0|wih1],[0|whh1]]  -> (B, 8H)
        lhs = jnp.concatenate([h1, h2], axis=-1)            # (B, 2H) bf16
        return jnp.dot(lhs, wbig_ref[...], preferred_element_type=jnp.float32)

    # ---- prologue: layer-0 step 0 of this chunk (uses carried h1/c1).
    # NOTE: bf16 h carry compounds rounding over timesteps; validated against
    # the f32 reference at the shapes below (keep LHS f32 if drift appears).
    big = fused(h1_ref[...], h2_ref[...])
    g0 = xg0_ref[pl.ds(0, B), :] + big[:, :G]
    h1f, c1 = _gates(g0, c1_ref[...])
    h1 = h1f.astype(jnp.bfloat16)
    h2 = h2_ref[...]
    c2 = c2_ref[...]

    # ---- wavefront loop: iteration t does layer-0 step t AND layer-1 step t-1
    def body(t, carry):
        h1, c1, h2, c2 = carry                               # h bf16, c f32
        big = fused(h1, h2)                                  # one K=256 matmul
        row = pl.multiple_of(t * B, B)
        g0 = xg0_ref[pl.ds(row, B), :] + big[:, :G]          # layer-0 gates
        g1 = b1_ref[...] + big[:, G:]                        # layer-1 gates
        h2f, c2 = _gates(g1, c2)                             # layer-1 step t-1
        prev = pl.multiple_of((t - 1) * B, B)
        h2s_ref[pl.ds(prev, B), :] = h2f                     # f32 stash (1 vreg)
        h1f, c1 = _gates(g0, c1)                             # layer-0 step t
        return (h1f.astype(jnp.bfloat16), c1,
                h2f.astype(jnp.bfloat16), c2)

    unroll = True if T <= 32 else 8
    h1, c1, h2, c2 = lax.fori_loop(1, T, body, (h1, c1, h2, c2), unroll=unroll)

    # ---- epilogue: layer-1 step T-1 (drain the one-step lag)
    big = fused(h1, h2)
    g1 = b1_ref[...] + big[:, G:]
    h2f, c2 = _gates(g1, c2)
    h2s_ref[pl.ds((T - 1) * B, B), :] = h2f
    h2 = h2f.astype(jnp.bfloat16)

    # carry state into the next chunk
    h1_ref[...] = h1
    c1_ref[...] = c1
    h2_ref[...] = h2
    c2_ref[...] = c2

    # ---- output Linear layers hoisted out of the loop; single lane-dense store
    y = (jnp.dot(h2s_ref[...].astype(jnp.bfloat16), wl_ref[...],
                 preferred_element_type=jnp.float32) + bl_ref[...])
    z = (jnp.dot(y.astype(jnp.bfloat16), wo_ref[...],
                 preferred_element_type=jnp.float32) + bo_ref[...])
    out_ref[...] = z.astype(out_ref.dtype)


def hand_lstm_forward(x, kparams, *, t_chunk=32):
    """x: (B, S, 30) float32 batch-first. Returns (B, S, 63) float32."""
    B, S, D = x.shape
    assert D == INPUT_DIM
    H = HIDDEN
    t_chunk = max(1, min(t_chunk, S))
    B_pad = _round_up(max(B, 1), SUBLANE)
    S_pad = _round_up(S, t_chunk)
    TB = t_chunk * B_pad

    # time-major, padded, flattened to 2-D, cast to bf16 (MXU input dtype)
    x_tm = jnp.transpose(x, (1, 0, 2))                      # (S, B, 30)
    x_tm = jnp.pad(x_tm, ((0, S_pad - S), (0, B_pad - B), (0, IN_PAD - D)))
    x2d = x_tm.reshape(S_pad * B_pad, IN_PAD).astype(jnp.bfloat16)

    grid = (S_pad // t_chunk,)

    out2d = pl.pallas_call(
        _lstm_kernel,
        out_shape=jax.ShapeDtypeStruct((S_pad * B_pad, OUT_PAD), jnp.float32),
        grid_spec=pltpu.PrefetchScalarGridSpec(
            num_scalar_prefetch=0,
            grid=grid,
            in_specs=[
                pl.BlockSpec((TB, IN_PAD), lambda t: (t, 0)),            # x chunk
                pl.BlockSpec((IN_PAD, 4 * H), lambda t: (0, 0)),         # wih0
                pl.BlockSpec((1, 4 * H), lambda t: (0, 0)),              # b0
                pl.BlockSpec((2 * H, 8 * H), lambda t: (0, 0)),          # fused W_big
                pl.BlockSpec((1, 4 * H), lambda t: (0, 0)),              # b1
                pl.BlockSpec((H, LIN_PAD), lambda t: (0, 0)),            # wl
                pl.BlockSpec((1, LIN_PAD), lambda t: (0, 0)),            # bl
                pl.BlockSpec((LIN_PAD, OUT_PAD), lambda t: (0, 0)),      # wo
                pl.BlockSpec((1, OUT_PAD), lambda t: (0, 0)),            # bo
            ],
            out_specs=pl.BlockSpec((TB, OUT_PAD), lambda t: (t, 0)),
            scratch_shapes=[
                pltpu.VMEM((B_pad, H), jnp.bfloat16),   # h1 state (carried)
                pltpu.VMEM((B_pad, H), jnp.float32),    # c1 state (carried)
                pltpu.VMEM((B_pad, H), jnp.bfloat16),   # h2 state (carried)
                pltpu.VMEM((B_pad, H), jnp.float32),    # c2 state (carried)
                pltpu.VMEM((TB, 4 * H), jnp.float32),   # layer-0 input-proj gates
                pltpu.VMEM((TB, H), jnp.float32),       # h2 stash for whole chunk
            ],
        ),
        compiler_params=pltpu.CompilerParams(
            dimension_semantics=("arbitrary",),          # time chunks are sequential
            vmem_limit_bytes=32 * 1024 * 1024,
        ),
    )(
        x2d,
        kparams["wih0"], kparams["b0"],
        kparams["wbig"], kparams["b1"],
        kparams["wl"], kparams["bl"], kparams["wo"], kparams["bo"],
    )

    out = out2d.reshape(S_pad, B_pad, OUT_PAD)[:S, :B, :OUT_DIM]
    return jnp.transpose(out, (1, 0, 2))                   # (B, S, 63)


def init_params(key):
    """PyTorch-shaped float32 parameters (nn.LSTM + two nn.Linear)."""
    ks = jax.random.split(key, 12)
    stdv = 1.0 / np.sqrt(HIDDEN)

    def u(k, shape, bound):
        return jax.random.uniform(k, shape, jnp.float32, -bound, bound)

    return {
        "wih0": u(ks[0], (4 * HIDDEN, INPUT_DIM), stdv),
        "whh0": u(ks[1], (4 * HIDDEN, HIDDEN), stdv),
        "bih0": u(ks[2], (4 * HIDDEN,), stdv),
        "bhh0": u(ks[3], (4 * HIDDEN,), stdv),
        "wih1": u(ks[4], (4 * HIDDEN, HIDDEN), stdv),
        "whh1": u(ks[5], (4 * HIDDEN, HIDDEN), stdv),
        "bih1": u(ks[6], (4 * HIDDEN,), stdv),
        "bhh1": u(ks[7], (4 * HIDDEN,), stdv),
        "wl": u(ks[8], (LINEAR_HID, HIDDEN), 1.0 / np.sqrt(HIDDEN)),
        "bl": u(ks[9], (LINEAR_HID,), 1.0 / np.sqrt(HIDDEN)),
        "wo": u(ks[10], (OUT_DIM, LINEAR_HID), 1.0 / np.sqrt(LINEAR_HID)),
        "bo": u(ks[11], (OUT_DIM,), 1.0 / np.sqrt(LINEAR_HID)),
    }


def _reorder_gates(w):
    """PyTorch gate order [i, f, g, o] (along axis 0) -> kernel order [i, f, o, g]."""
    H = HIDDEN
    return jnp.concatenate([w[0:H], w[H:2 * H], w[3 * H:4 * H], w[2 * H:3 * H]],
                           axis=0)


def prepare_kernel_params(p):
    """Reorder gates, transpose, zero-pad, cast and fuse weights for the kernel."""
    H = HIDDEN
    ro = _reorder_gates

    # layer-0 input projection weight (bias folded: bih0+bhh0)
    wih0 = ro(p["wih0"]).T                                          # (30, 512)
    wih0 = jnp.pad(wih0, ((0, IN_PAD - INPUT_DIM), (0, 0))).astype(jnp.bfloat16)
    b0 = ro(p["bih0"] + p["bhh0"])[None, :].astype(jnp.float32)     # (1, 512)

    # fused per-timestep weight: [h1|h2] @ [[whh0|wih1],[0|whh1]] -> (B, 1024)
    whh0_t = ro(p["whh0"]).T                                        # (128, 512)
    wih1_t = ro(p["wih1"]).T                                        # (128, 512)
    whh1_t = ro(p["whh1"]).T                                        # (128, 512)
    top = jnp.concatenate([whh0_t, wih1_t], axis=1)                 # (128, 1024)
    bot = jnp.concatenate([jnp.zeros((H, 4 * H), jnp.float32), whh1_t], axis=1)
    wbig = jnp.concatenate([top, bot], axis=0).astype(jnp.bfloat16)  # (256, 1024)
    b1 = ro(p["bih1"] + p["bhh1"])[None, :].astype(jnp.float32)     # (1, 512)

    wl = jnp.pad(p["wl"].T, ((0, 0), (0, LIN_PAD - LINEAR_HID))).astype(jnp.bfloat16)
    bl = jnp.pad(p["bl"], (0, LIN_PAD - LINEAR_HID))[None, :].astype(jnp.float32)
    wo = jnp.pad(p["wo"].T, ((0, LIN_PAD - LINEAR_HID),
                             (0, OUT_PAD - OUT_DIM))).astype(jnp.bfloat16)
    bo = jnp.pad(p["bo"], (0, OUT_PAD - OUT_DIM))[None, :].astype(jnp.float32)

    return {"wih0": wih0, "b0": b0, "wbig": wbig, "b1": b1,
            "wl": wl, "bl": bl, "wo": wo, "bo": bo}


def _reference_forward(x, p):
    """Pure-JAX float32 reference matching PyTorch eval-mode semantics."""
    B, S, _ = x.shape
    H = HIDDEN

    def cell(x_t, h, c, wih, whh, bih, bhh):
        g = x_t @ wih.T + h @ whh.T + bih + bhh
        i = jax.nn.sigmoid(g[:, 0:H])
        f = jax.nn.sigmoid(g[:, H:2 * H])
        gg = jnp.tanh(g[:, 2 * H:3 * H])
        o = jax.nn.sigmoid(g[:, 3 * H:4 * H])
        c = f * c + i * gg
        return o * jnp.tanh(c), c

    h1 = c1 = h2 = c2 = jnp.zeros((B, H), jnp.float32)
    outs = []
    for t in range(S):
        h1, c1 = cell(x[:, t], h1, c1, p["wih0"], p["whh0"], p["bih0"], p["bhh0"])
        h2, c2 = cell(h1, h2, c2, p["wih1"], p["whh1"], p["bih1"], p["bhh1"])
        y = h2 @ p["wl"].T + p["bl"]
        outs.append(y @ p["wo"].T + p["bo"])
    return jnp.stack(outs, axis=1)


if __name__ == "__main__":
    key = jax.random.PRNGKey(0)
    k_param, k_x1, k_x2 = jax.random.split(key, 3)

    params = init_params(k_param)
    kparams = prepare_kernel_params(params)

    # Case 1: small single-chunk sequence (default t_chunk clamps to S=8).
    B, S = 2, 8
    x = jax.random.normal(k_x1, (B, S, INPUT_DIM), jnp.float32)
    out = jax.block_until_ready(hand_lstm_forward(x, kparams))
    assert out.shape == (B, S, OUT_DIM), out.shape
    ref = _reference_forward(x, params)
    np.testing.assert_allclose(np.asarray(out), np.asarray(ref), rtol=3e-2, atol=3e-2)

    # Case 2: multi-chunk sequence — exercises cross-chunk h/c carry + time padding.
    B2, S2 = 2, 20
    x2 = jax.random.normal(k_x2, (B2, S2, INPUT_DIM), jnp.float32)
    out2 = jax.block_until_ready(hand_lstm_forward(x2, kparams, t_chunk=8))
    assert out2.shape == (B2, S2, OUT_DIM), out2.shape
    ref2 = _reference_forward(x2, params)
    np.testing.assert_allclose(np.asarray(out2), np.asarray(ref2), rtol=5e-2, atol=5e-2)

    print("KERNEL_OK")
</pallas_src>

<mosaic_0001>
module attributes {stable_mosaic.version = 11 : i64} {
  func.func @_lstm_kernel(%arg0: i32, %arg1: memref<64x32xbf16, #tpu.memory_space<vmem>>, %arg2: memref<32x512xbf16, #tpu.memory_space<vmem>>, %arg3: memref<1x512xf32, #tpu.memory_space<vmem>>, %arg4: memref<256x1024xbf16, #tpu.memory_space<vmem>>, %arg5: memref<1x512xf32, #tpu.memory_space<vmem>>, %arg6: memref<128x128xbf16, #tpu.memory_space<vmem>>, %arg7: memref<1x128xf32, #tpu.memory_space<vmem>>, %arg8: memref<128x128xbf16, #tpu.memory_space<vmem>>, %arg9: memref<1x128xf32, #tpu.memory_space<vmem>>, %arg10: memref<64x128xf32, #tpu.memory_space<vmem>>, %arg11: memref<8x128xbf16, #tpu.memory_space<vmem>>, %arg12: memref<8x128xf32, #tpu.memory_space<vmem>>, %arg13: memref<8x128xbf16, #tpu.memory_space<vmem>>, %arg14: memref<8x128xf32, #tpu.memory_space<vmem>>, %arg15: memref<64x512xf32, #tpu.memory_space<vmem>>, %arg16: memref<64x128xf32, #tpu.memory_space<vmem>>) attributes {dimension_semantics = [#tpu.dimension_semantics<arbitrary>], iteration_bounds = array<i64: 1>, scalar_prefetch = 0 : i64, scratch_operands = 6 : i64, tpu.core_type = #tpu.core_type<tc>, window_params = [{transform_indices = @transform_0, window_bounds = array<i64: 64, 32>}, {pipeline_mode = #tpu.pipeline_mode<synchronous>, transform_indices = @transform_1, window_bounds = array<i64: 32, 512>}, {pipeline_mode = #tpu.pipeline_mode<synchronous>, transform_indices = @transform_2, window_bounds = array<i64: 1, 512>}, {pipeline_mode = #tpu.pipeline_mode<synchronous>, transform_indices = @transform_3, window_bounds = array<i64: 256, 1024>}, {pipeline_mode = #tpu.pipeline_mode<synchronous>, transform_indices = @transform_4, window_bounds = array<i64: 1, 512>}, {pipeline_mode = #tpu.pipeline_mode<synchronous>, transform_indices = @transform_5, window_bounds = array<i64: 128, 128>}, {pipeline_mode = #tpu.pipeline_mode<synchronous>, transform_indices = @transform_6, window_bounds = array<i64: 1, 128>}, {pipeline_mode = #tpu.pipeline_mode<synchronous>, transform_indices = @transform_7, window_bounds = array<i64: 128, 128>}, {pipeline_mode = #tpu.pipeline_mode<synchronous>, transform_indices = @transform_8, window_bounds = array<i64: 1, 128>}, {transform_indices = @transform_9, window_bounds = array<i64: 64, 128>}]} {
    %c0_i32 = arith.constant 0 : i32
    %0 = arith.cmpi eq, %arg0, %c0_i32 : i32
    %1 = arith.extui %0 : i1 to i32
    %c0_i32_0 = arith.constant 0 : i32
    %2 = arith.cmpi ne, %1, %c0_i32_0 : i32
    scf.if %2 {
      %cst_137 = arith.constant 0.000000e+00 : bf16
      %445 = vector.broadcast %cst_137 : bf16 to vector<8x128xbf16>
      %c0_138 = arith.constant 0 : index
      %c0_139 = arith.constant 0 : index
      %446 = vector.load %arg11[%c0_138, %c0_139] : memref<8x128xbf16, #tpu.memory_space<vmem>>, vector<8x128xbf16>
      tpu.vector_store %arg11[%c0_138, %c0_139], %445 {strides = array<i32>} : memref<8x128xbf16, #tpu.memory_space<vmem>>, vector<8x128xbf16>,
      %cst_140 = arith.constant 0.000000e+00 : f32
      %447 = vector.broadcast %cst_140 : f32 to vector<8x128xf32>
      %c0_141 = arith.constant 0 : index
      %c0_142 = arith.constant 0 : index
      %448 = vector.load %arg12[%c0_141, %c0_142] : memref<8x128xf32, #tpu.memory_space<vmem>>, vector<8x128xf32>
      tpu.vector_store %arg12[%c0_141, %c0_142], %447 {strides = array<i32>} : memref<8x128xf32, #tpu.memory_space<vmem>>, vector<8x128xf32>,
      %cst_143 = arith.constant 0.000000e+00 : bf16
      %449 = vector.broadcast %cst_143 : bf16 to vector<8x128xbf16>
      %c0_144 = arith.constant 0 : index
      %c0_145 = arith.constant 0 : index
      %450 = vector.load %arg13[%c0_144, %c0_145] : memref<8x128xbf16, #tpu.memory_space<vmem>>, vector<8x128xbf16>
      tpu.vector_store %arg13[%c0_144, %c0_145], %449 {strides = array<i32>} : memref<8x128xbf16, #tpu.memory_space<vmem>>, vector<8x128xbf16>,
      %cst_146 = arith.constant 0.000000e+00 : f32
      %451 = vector.broadcast %cst_146 : f32 to vector<8x128xf32>
      %c0_147 = arith.constant 0 : index
      %c0_148 = arith.constant 0 : index
      %452 = vector.load %arg14[%c0_147, %c0_148] : memref<8x128xf32, #tpu.memory_space<vmem>>, vector<8x128xf32>
      tpu.vector_store %arg14[%c0_147, %c0_148], %451 {strides = array<i32>} : memref<8x128xf32, #tpu.memory_space<vmem>>, vector<8x128xf32>,
    } else {
    }
    %c0 = arith.constant 0 : index
    %c0_1 = arith.constant 0 : index
    %3 = vector.load %arg1[%c0, %c0_1] : memref<64x32xbf16, #tpu.memory_space<vmem>>, vector<64x32xbf16>
    %c0_2 = arith.constant 0 : index
    %c0_3 = arith.constant 0 : index
    %4 = vector.load %arg2[%c0_2, %c0_3] : memref<32x512xbf16, #tpu.memory_space<vmem>>, vector<32x512xbf16>
    %cst = arith.constant dense<0.000000e+00> : vector<64x512xf32>
    %5 = tpu.matmul %3, %4, %cst {dimension_numbers = #tpu.dot_dimension_numbers<[1], [0], [0], [1], [0, 0, 1, 1], [], []>} : vector<64x32xbf16>, vector<32x512xbf16>, vector<64x512xf32> -> vector<64x512xf32>
    %c0_4 = arith.constant 0 : index
    %c0_5 = arith.constant 0 : index
    %6 = vector.load %arg3[%c0_4, %c0_5] : memref<1x512xf32, #tpu.memory_space<vmem>>, vector<1x512xf32>
    %7 = vector.broadcast %6 : vector<1x512xf32> to vector<64x512xf32>
    %8 = arith.addf %5, %7 : vector<64x512xf32>
    %c0_6 = arith.constant 0 : index
    %c0_7 = arith.constant 0 : index
    %9 = vector.load %arg15[%c0_6, %c0_7] : memref<64x512xf32, #tpu.memory_space<vmem>>, vector<64x512xf32>
    tpu.vector_store %arg15[%c0_6, %c0_7], %8 {strides = array<i32>} : memref<64x512xf32, #tpu.memory_space<vmem>>, vector<64x512xf32>,
    %c0_8 = arith.constant 0 : index
    %c0_9 = arith.constant 0 : index
    %10 = vector.load %arg11[%c0_8, %c0_9] : memref<8x128xbf16, #tpu.memory_space<vmem>>, vector<8x128xbf16>
    %c0_10 = arith.constant 0 : index
    %c0_11 = arith.constant 0 : index
    %11 = vector.load %arg13[%c0_10, %c0_11] : memref<8x128xbf16, #tpu.memory_space<vmem>>, vector<8x128xbf16>
    %12 = tpu.concatenate %10, %11 in 1 : vector<8x128xbf16>, vector<8x128xbf16> -> vector<8x256xbf16>
    %c0_12 = arith.constant 0 : index
    %c0_13 = arith.constant 0 : index
    %13 = vector.load %arg4[%c0_12, %c0_13] : memref<256x1024xbf16, #tpu.memory_space<vmem>>, vector<256x1024xbf16>
    %cst_14 = arith.constant dense<0.000000e+00> : vector<8x1024xf32>
    %14 = tpu.matmul %12, %13, %cst_14 {dimension_numbers = #tpu.dot_dimension_numbers<[1], [0], [0], [1], [0, 0, 1, 1], [], []>} : vector<8x256xbf16>, vector<256x1024xbf16>, vector<8x1024xf32> -> vector<8x1024xf32>
    %c0_15 = arith.constant 0 : index
    %c0_16 = arith.constant 0 : index
    %15 = vector.load %arg15[%c0_15, %c0_16] : memref<64x512xf32, #tpu.memory_space<vmem>>, vector<8x512xf32>
    %16 = vector.extract_strided_slice %14 {offsets = [0, 0], sizes = [8, 512], strides = [1, 1]} : vector<8x1024xf32> to vector<8x512xf32>
    %17 = arith.addf %15, %16 : vector<8x512xf32>
    %c0_17 = arith.constant 0 : index
    %c0_18 = arith.constant 0 : index
    %18 = vector.load %arg12[%c0_17, %c0_18] : memref<8x128xf32, #tpu.memory_space<vmem>>, vector<8x128xf32>
    %19 = vector.extract_strided_slice %17 {offsets = [0, 0], sizes = [8, 384], strides = [1, 1]} : vector<8x512xf32> to vector<8x384xf32>
    %20 = arith.negf %19 : vector<8x384xf32>
    %21 = math.exp %20 : vector<8x384xf32>
    %cst_19 = arith.constant 1.000000e+00 : f32
    %22 = vector.broadcast %cst_19 : f32 to vector<8x384xf32>
    %23 = arith.addf %22, %21 : vector<8x384xf32>
    %24 = arith.divf %22, %23 : vector<8x384xf32>
    %25 = vector.extract_strided_slice %24 {offsets = [0, 0], sizes = [8, 128], strides = [1, 1]} : vector<8x384xf32> to vector<8x128xf32>
    %26 = vector.extract_strided_slice %24 {offsets = [0, 128], sizes = [8, 128], strides = [1, 1]} : vector<8x384xf32> to vector<8x128xf32>
    %27 = vector.extract_strided_slice %24 {offsets = [0, 256], sizes = [8, 128], strides = [1, 1]} : vector<8x384xf32> to vector<8x128xf32>
    %28 = vector.extract_strided_slice %17 {offsets = [0, 384], sizes = [8, 128], strides = [1, 1]} : vector<8x512xf32> to vector<8x128xf32>
    %29 = math.tanh %28 : vector<8x128xf32>
    %30 = arith.mulf %26, %18 : vector<8x128xf32>
    %31 = arith.mulf %25, %29 : vector<8x128xf32>
    %32 = arith.addf %30, %31 : vector<8x128xf32>
    %33 = math.tanh %32 : vector<8x128xf32>
    %34 = arith.mulf %27, %33 : vector<8x128xf32>
    %35 = arith.truncf %34 : vector<8x128xf32> to vector<8x128xbf16>
    %c0_20 = arith.constant 0 : index
    %c0_21 = arith.constant 0 : index
    %36 = vector.load %arg13[%c0_20, %c0_21] : memref<8x128xbf16, #tpu.memory_space<vmem>>, vector<8x128xbf16>
    %c0_22 = arith.constant 0 : index
    %c0_23 = arith.constant 0 : index
    %37 = vector.load %arg14[%c0_22, %c0_23] : memref<8x128xf32, #tpu.memory_space<vmem>>, vector<8x128xf32>
    %c1_i32 = arith.constant 1 : i32
    %38 = tpu.concatenate %35, %36 in 1 : vector<8x128xbf16>, vector<8x128xbf16> -> vector<8x256xbf16>
    %c0_24 = arith.constant 0 : index
    %c0_25 = arith.constant 0 : index
    %39 = vector.load %arg4[%c0_24, %c0_25] : memref<256x1024xbf16, #tpu.memory_space<vmem>>, vector<256x1024xbf16>
    %cst_26 = arith.constant dense<0.000000e+00> : vector<8x1024xf32>
    %40 = tpu.matmul %38, %39, %cst_26 {dimension_numbers = #tpu.dot_dimension_numbers<[1], [0], [0], [1], [0, 0, 1, 1], [], []>} : vector<8x256xbf16>, vector<256x1024xbf16>, vector<8x1024xf32> -> vector<8x1024xf32>
    %c8_i32 = arith.constant 8 : i32
    %41 = arith.muli %c1_i32, %c8_i32 : i32
    %42 = tpu.assume_multiple %41, 8 : i32
    %43 = arith.index_cast %42 : i32 to index
    %c0_27 = arith.constant 0 : index
    %44 = vector.load %arg15[%43, %c0_27] : memref<64x512xf32, #tpu.memory_space<vmem>>, vector<8x512xf32>
    %45 = vector.extract_strided_slice %40 {offsets = [0, 0], sizes = [8, 512], strides = [1, 1]} : vector<8x1024xf32> to vector<8x512xf32>
    %46 = arith.addf %44, %45 : vector<8x512xf32>
    %c0_28 = arith.constant 0 : index
    %c0_29 = arith.constant 0 : index
    %47 = vector.load %arg5[%c0_28, %c0_29] : memref<1x512xf32, #tpu.memory_space<vmem>>, vector<1x512xf32>
    %48 = vector.extract_strided_slice %40 {offsets = [0, 512], sizes = [8, 512], strides = [1, 1]} : vector<8x1024xf32> to vector<8x512xf32>
    %49 = vector.broadcast %47 : vector<1x512xf32> to vector<8x512xf32>
    %50 = arith.addf %49, %48 : vector<8x512xf32>
    %51 = vector.extract_strided_slice %50 {offsets = [0, 0], sizes = [8, 384], strides = [1, 1]} : vector<8x512xf32> to vector<8x384xf32>
    %52 = arith.negf %51 : vector<8x384xf32>
    %53 = math.exp %52 : vector<8x384xf32>
    %cst_30 = arith.constant 1.000000e+00 : f32
    %54 = vector.broadcast %cst_30 : f32 to vector<8x384xf32>
    %55 = arith.addf %54, %53 : vector<8x384xf32>
    %56 = arith.divf %54, %55 : vector<8x384xf32>
    %57 = vector.extract_strided_slice %56 {offsets = [0, 0], sizes = [8, 128], strides = [1, 1]} : vector<8x384xf32> to vector<8x128xf32>
    %58 = vector.extract_strided_slice %56 {offsets = [0, 128], sizes = [8, 128], strides = [1, 1]} : vector<8x384xf32> to vector<8x128xf32>
    %59 = vector.extract_strided_slice %56 {offsets = [0, 256], sizes = [8, 128], strides = [1, 1]} : vector<8x384xf32> to vector<8x128xf32>
    %60 = vector.extract_strided_slice %50 {offsets = [0, 384], sizes = [8, 128], strides = [1, 1]} : vector<8x512xf32> to vector<8x128xf32>
    %61 = math.tanh %60 : vector<8x128xf32>
    %62 = arith.mulf %58, %37 : vector<8x128xf32>
    %63 = arith.mulf %57, %61 : vector<8x128xf32>
    %64 = arith.addf %62, %63 : vector<8x128xf32>
    %65 = math.tanh %64 : vector<8x128xf32>
    %66 = arith.mulf %59, %65 : vector<8x128xf32>
    %c1_i32_31 = arith.constant 1 : i32
    %67 = arith.subi %c1_i32, %c1_i32_31 : i32
    %c8_i32_32 = arith.constant 8 : i32
    %68 = arith.muli %67, %c8_i32_32 : i32
    %69 = tpu.assume_multiple %68, 8 : i32
    %70 = arith.index_cast %69 : i32 to index
    %c0_33 = arith.constant 0 : index
    %71 = vector.load %arg16[%70, %c0_33] : memref<64x128xf32, #tpu.memory_space<vmem>>, vector<8x128xf32>
    tpu.vector_store %arg16[%70, %c0_33], %66 {strides = array<i32>} : memref<64x128xf32, #tpu.memory_space<vmem>>, vector<8x128xf32>,
    %72 = vector.extract_strided_slice %46 {offsets = [0, 0], sizes = [8, 384], strides = [1, 1]} : vector<8x512xf32> to vector<8x384xf32>
    %73 = arith.negf %72 : vector<8x384xf32>
    %74 = math.exp %73 : vector<8x384xf32>
    %cst_34 = arith.constant 1.000000e+00 : f32
    %75 = vector.broadcast %cst_34 : f32 to vector<8x384xf32>
    %76 = arith.addf %75, %74 : vector<8x384xf32>
    %77 = arith.divf %75, %76 : vector<8x384xf32>
    %78 = vector.extract_strided_slice %77 {offsets = [0, 0], sizes = [8, 128], strides = [1, 1]} : vector<8x384xf32> to vector<8x128xf32>
    %79 = vector.extract_strided_slice %77 {offsets = [0, 128], sizes = [8, 128], strides = [1, 1]} : vector<8x384xf32> to vector<8x128xf32>
    %80 = vector.extract_strided_slice %77 {offsets = [0, 256], sizes = [8, 128], strides = [1, 1]} : vector<8x384xf32> to vector<8x128xf32>
    %81 = vector.extract_strided_slice %46 {offsets = [0, 384], sizes = [8, 128], strides = [1, 1]} : vector<8x512xf32> to vector<8x128xf32>
    %82 = math.tanh %81 : vector<8x128xf32>
    %83 = arith.mulf %79, %32 : vector<8x128xf32>
    %84 = arith.mulf %78, %82 : vector<8x128xf32>
    %85 = arith.addf %83, %84 : vector<8x128xf32>
    %86 = math.tanh %85 : vector<8x128xf32>
    %87 = arith.mulf %80, %86 : vector<8x128xf32>
    %88 = arith.truncf %87 : vector<8x128xf32> to vector<8x128xbf16>
    %89 = arith.truncf %66 : vector<8x128xf32> to vector<8x128xbf16>
    %c2_i32 = arith.constant 2 : i32
    %90 = tpu.concatenate %88, %89 in 1 : vector<8x128xbf16>, vector<8x128xbf16> -> vector<8x256xbf16>
    %c0_35 = arith.constant 0 : index
    %c0_36 = arith.constant 0 : index
    %91 = vector.load %arg4[%c0_35, %c0_36] : memref<256x1024xbf16, #tpu.memory_space<vmem>>, vector<256x1024xbf16>
    %cst_37 = arith.constant dense<0.000000e+00> : vector<8x1024xf32>
    %92 = tpu.matmul %90, %91, %cst_37 {dimension_numbers = #tpu.dot_dimension_numbers<[1], [0], [0], [1], [0, 0, 1, 1], [], []>} : vector<8x256xbf16>, vector<256x1024xbf16>, vector<8x1024xf32> -> vector<8x1024xf32>
    %c8_i32_38 = arith.constant 8 : i32
    %93 = arith.muli %c2_i32, %c8_i32_38 : i32
    %94 = tpu.assume_multiple %93, 8 : i32
    %95 = arith.index_cast %94 : i32 to index
    %c0_39 = arith.constant 0 : index
    %96 = vector.load %arg15[%95, %c0_39] : memref<64x512xf32, #tpu.memory_space<vmem>>, vector<8x512xf32>
    %97 = vector.extract_strided_slice %92 {offsets = [0, 0], sizes = [8, 512], strides = [1, 1]} : vector<8x1024xf32> to vector<8x512xf32>
    %98 = arith.addf %96, %97 : vector<8x512xf32>
    %c0_40 = arith.constant 0 : index
    %c0_41 = arith.constant 0 : index
    %99 = vector.load %arg5[%c0_40, %c0_41] : memref<1x512xf32, #tpu.memory_space<vmem>>, vector<1x512xf32>
    %100 = vector.extract_strided_slice %92 {offsets = [0, 512], sizes = [8, 512], strides = [1, 1]} : vector<8x1024xf32> to vector<8x512xf32>
    %101 = vector.broadcast %99 : vector<1x512xf32> to vector<8x512xf32>
    %102 = arith.addf %101, %100 : vector<8x512xf32>
    %103 = vector.extract_strided_slice %102 {offsets = [0, 0], sizes = [8, 384], strides = [1, 1]} : vector<8x512xf32> to vector<8x384xf32>
    %104 = arith.negf %103 : vector<8x384xf32>
    %105 = math.exp %104 : vector<8x384xf32>
    %cst_42 = arith.constant 1.000000e+00 : f32
    %106 = vector.broadcast %cst_42 : f32 to vector<8x384xf32>
    %107 = arith.addf %106, %105 : vector<8x384xf32>
    %108 = arith.divf %106, %107 : vector<8x384xf32>
    %109 = vector.extract_strided_slice %108 {offsets = [0, 0], sizes = [8, 128], strides = [1, 1]} : vector<8x384xf32> to vector<8x128xf32>
    %110 = vector.extract_strided_slice %108 {offsets = [0, 128], sizes = [8, 128], strides = [1, 1]} : vector<8x384xf32> to vector<8x128xf32>
    %111 = vector.extract_strided_slice %108 {offsets = [0, 256], sizes = [8, 128], strides = [1, 1]} : vector<8x384xf32> to vector<8x128xf32>
    %112 = vector.extract_strided_slice %102 {offsets = [0, 384], sizes = [8, 128], strides = [1, 1]} : vector<8x512xf32> to vector<8x128xf32>
    %113 = math.tanh %112 : vector<8x128xf32>
    %114 = arith.mulf %110, %64 : vector<8x128xf32>
    %115 = arith.mulf %109, %113 : vector<8x128xf32>
    %116 = arith.addf %114, %115 : vector<8x128xf32>
    %117 = math.tanh %116 : vector<8x128xf32>
    %118 = arith.mulf %111, %117 : vector<8x128xf32>
    %c1_i32_43 = arith.constant 1 : i32
    %119 = arith.subi %c2_i32, %c1_i32_43 : i32
    %c8_i32_44 = arith.constant 8 : i32
    %120 = arith.muli %119, %c8_i32_44 : i32
    %121 = tpu.assume_multiple %120, 8 : i32
    %122 = arith.index_cast %121 : i32 to index
    %c0_45 = arith.constant 0 : index
    %123 = vector.load %arg16[%122, %c0_45] : memref<64x128xf32, #tpu.memory_space<vmem>>, vector<8x128xf32>
    tpu.vector_store %arg16[%122, %c0_45], %118 {strides = array<i32>} : memref<64x128xf32, #tpu.memory_space<vmem>>, vector<8x128xf32>,
    %124 = vector.extract_strided_slice %98 {offsets = [0, 0], sizes = [8, 384], strides = [1, 1]} : vector<8x512xf32> to vector<8x384xf32>
    %125 = arith.negf %124 : vector<8x384xf32>
    %126 = math.exp %125 : vector<8x384xf32>
    %cst_46 = arith.constant 1.000000e+00 : f32
    %127 = vector.broadcast %cst_46 : f32 to vector<8x384xf32>
    %128 = arith.addf %127, %126 : vector<8x384xf32>
    %129 = arith.divf %127, %128 : vector<8x384xf32>
    %130 = vector.extract_strided_slice %129 {offsets = [0, 0], sizes = [8, 128], strides = [1, 1]} : vector<8x384xf32> to vector<8x128xf32>
    %131 = vector.extract_strided_slice %129 {offsets = [0, 128], sizes = [8, 128], strides = [1, 1]} : vector<8x384xf32> to vector<8x128xf32>
    %132 = vector.extract_strided_slice %129 {offsets = [0, 256], sizes = [8, 128], strides = [1, 1]} : vector<8x384xf32> to vector<8x128xf32>
    %133 = vector.extract_strided_slice %98 {offsets = [0, 384], sizes = [8, 128], strides = [1, 1]} : vector<8x512xf32> to vector<8x128xf32>
    %134 = math.tanh %133 : vector<8x128xf32>
    %135 = arith.mulf %131, %85 : vector<8x128xf32>
    %136 = arith.mulf %130, %134 : vector<8x128xf32>
    %137 = arith.addf %135, %136 : vector<8x128xf32>
    %138 = math.tanh %137 : vector<8x128xf32>
    %139 = arith.mulf %132, %138 : vector<8x128xf32>
    %140 = arith.truncf %139 : vector<8x128xf32> to vector<8x128xbf16>
    %141 = arith.truncf %118 : vector<8x128xf32> to vector<8x128xbf16>
    %c3_i32 = arith.constant 3 : i32
    %142 = tpu.concatenate %140, %141 in 1 : vector<8x128xbf16>, vector<8x128xbf16> -> vector<8x256xbf16>
    %c0_47 = arith.constant 0 : index
    %c0_48 = arith.constant 0 : index
    %143 = vector.load %arg4[%c0_47, %c0_48] : memref<256x1024xbf16, #tpu.memory_space<vmem>>, vector<256x1024xbf16>
    %cst_49 = arith.constant dense<0.000000e+00> : vector<8x1024xf32>
    %144 = tpu.matmul %142, %143, %cst_49 {dimension_numbers = #tpu.dot_dimension_numbers<[1], [0], [0], [1], [0, 0, 1, 1], [], []>} : vector<8x256xbf16>, vector<256x1024xbf16>, vector<8x1024xf32> -> vector<8x1024xf32>
    %c8_i32_50 = arith.constant 8 : i32
    %145 = arith.muli %c3_i32, %c8_i32_50 : i32
    %146 = tpu.assume_multiple %145, 8 : i32
    %147 = arith.index_cast %146 : i32 to index
    %c0_51 = arith.constant 0 : index
    %148 = vector.load %arg15[%147, %c0_51] : memref<64x512xf32, #tpu.memory_space<vmem>>, vector<8x512xf32>
    %149 = vector.extract_strided_slice %144 {offsets = [0, 0], sizes = [8, 512], strides = [1, 1]} : vector<8x1024xf32> to vector<8x512xf32>
    %150 = arith.addf %148, %149 : vector<8x512xf32>
    %c0_52 = arith.constant 0 : index
    %c0_53 = arith.constant 0 : index
    %151 = vector.load %arg5[%c0_52, %c0_53] : memref<1x512xf32, #tpu.memory_space<vmem>>, vector<1x512xf32>
    %152 = vector.extract_strided_slice %144 {offsets = [0, 512], sizes = [8, 512], strides = [1, 1]} : vector<8x1024xf32> to vector<8x512xf32>
    %153 = vector.broadcast %151 : vector<1x512xf32> to vector<8x512xf32>
    %154 = arith.addf %153, %152 : vector<8x512xf32>
    %155 = vector.extract_strided_slice %154 {offsets = [0, 0], sizes = [8, 384], strides = [1, 1]} : vector<8x512xf32> to vector<8x384xf32>
    %156 = arith.negf %155 : vector<8x384xf32>
    %157 = math.exp %156 : vector<8x384xf32>
    %cst_54 = arith.constant 1.000000e+00 : f32
    %158 = vector.broadcast %cst_54 : f32 to vector<8x384xf32>
    %159 = arith.addf %158, %157 : vector<8x384xf32>
    %160 = arith.divf %158, %159 : vector<8x384xf32>
    %161 = vector.extract_strided_slice %160 {offsets = [0, 0], sizes = [8, 128], strides = [1, 1]} : vector<8x384xf32> to vector<8x128xf32>
    %162 = vector.extract_strided_slice %160 {offsets = [0, 128], sizes = [8, 128], strides = [1, 1]} : vector<8x384xf32> to vector<8x128xf32>
    %163 = vector.extract_strided_slice %160 {offsets = [0, 256], sizes = [8, 128], strides = [1, 1]} : vector<8x384xf32> to vector<8x128xf32>
    %164 = vector.extract_strided_slice %154 {offsets = [0, 384], sizes = [8, 128], strides = [1, 1]} : vector<8x512xf32> to vector<8x128xf32>
    %165 = math.tanh %164 : vector<8x128xf32>
    %166 = arith.mulf %162, %116 : vector<8x128xf32>
    %167 = arith.mulf %161, %165 : vector<8x128xf32>
    %168 = arith.addf %166, %167 : vector<8x128xf32>
    %169 = math.tanh %168 : vector<8x128xf32>
    %170 = arith.mulf %163, %169 : vector<8x128xf32>
    %c1_i32_55 = arith.constant 1 : i32
    %171 = arith.subi %c3_i32, %c1_i32_55 : i32
    %c8_i32_56 = arith.constant 8 : i32
    %172 = arith.muli %171, %c8_i32_56 : i32
    %173 = tpu.assume_multiple %172, 8 : i32
    %174 = arith.index_cast %173 : i32 to index
    %c0_57 = arith.constant 0 : index
    %175 = vector.load %arg16[%174, %c0_57] : memref<64x128xf32, #tpu.memory_space<vmem>>, vector<8x128xf32>
    tpu.vector_store %arg16[%174, %c0_57], %170 {strides = array<i32>} : memref<64x128xf32, #tpu.memory_space<vmem>>, vector<8x128xf32>,
    %176 = vector.extract_strided_slice %150 {offsets = [0, 0], sizes = [8, 384], strides = [1, 1]} : vector<8x512xf32> to vector<8x384xf32>
    %177 = arith.negf %176 : vector<8x384xf32>
    %178 = math.exp %177 : vector<8x384xf32>
    %cst_58 = arith.constant 1.000000e+00 : f32
    %179 = vector.broadcast %cst_58 : f32 to vector<8x384xf32>
    %180 = arith.addf %179, %178 : vector<8x384xf32>
    %181 = arith.divf %179, %180 : vector<8x384xf32>
    %182 = vector.extract_strided_slice %181 {offsets = [0, 0], sizes = [8, 128], strides = [1, 1]} : vector<8x384xf32> to vector<8x128xf32>
    %183 = vector.extract_strided_slice %181 {offsets = [0, 128], sizes = [8, 128], strides = [1, 1]} : vector<8x384xf32> to vector<8x128xf32>
    %184 = vector.extract_strided_slice %181 {offsets = [0, 256], sizes = [8, 128], strides = [1, 1]} : vector<8x384xf32> to vector<8x128xf32>
    %185 = vector.extract_strided_slice %150 {offsets = [0, 384], sizes = [8, 128], strides = [1, 1]} : vector<8x512xf32> to vector<8x128xf32>
    %186 = math.tanh %185 : vector<8x128xf32>
    %187 = arith.mulf %183, %137 : vector<8x128xf32>
    %188 = arith.mulf %182, %186 : vector<8x128xf32>
    %189 = arith.addf %187, %188 : vector<8x128xf32>
    %190 = math.tanh %189 : vector<8x128xf32>
    %191 = arith.mulf %184, %190 : vector<8x128xf32>
    %192 = arith.truncf %191 : vector<8x128xf32> to vector<8x128xbf16>
    %193 = arith.truncf %170 : vector<8x128xf32> to vector<8x128xbf16>
    %c4_i32 = arith.constant 4 : i32
    %194 = tpu.concatenate %192, %193 in 1 : vector<8x128xbf16>, vector<8x128xbf16> -> vector<8x256xbf16>
    %c0_59 = arith.constant 0 : index
    %c0_60 = arith.constant 0 : index
    %195 = vector.load %arg4[%c0_59, %c0_60] : memref<256x1024xbf16, #tpu.memory_space<vmem>>, vector<256x1024xbf16>
    %cst_61 = arith.constant dense<0.000000e+00> : vector<8x1024xf32>
    %196 = tpu.matmul %194, %195, %cst_61 {dimension_numbers = #tpu.dot_dimension_numbers<[1], [0], [0], [1], [0, 0, 1, 1], [], []>} : vector<8x256xbf16>, vector<256x1024xbf16>, vector<8x1024xf32> -> vector<8x1024xf32>
    %c8_i32_62 = arith.constant 8 : i32
    %197 = arith.muli %c4_i32, %c8_i32_62 : i32
    %198 = tpu.assume_multiple %197, 8 : i32
    %199 = arith.index_cast %198 : i32 to index
    %c0_63 = arith.constant 0 : index
    %200 = vector.load %arg15[%199, %c0_63] : memref<64x512xf32, #tpu.memory_space<vmem>>, vector<8x512xf32>
    %201 = vector.extract_strided_slice %196 {offsets = [0, 0], sizes = [8, 512], strides = [1, 1]} : vector<8x1024xf32> to vector<8x512xf32>
    %202 = arith.addf %200, %201 : vector<8x512xf32>
    %c0_64 = arith.constant 0 : index
    %c0_65 = arith.constant 0 : index
    %203 = vector.load %arg5[%c0_64, %c0_65] : memref<1x512xf32, #tpu.memory_space<vmem>>, vector<1x512xf32>
    %204 = vector.extract_strided_slice %196 {offsets = [0, 512], sizes = [8, 512], strides = [1, 1]} : vector<8x1024xf32> to vector<8x512xf32>
    %205 = vector.broadcast %203 : vector<1x512xf32> to vector<8x512xf32>
    %206 = arith.addf %205, %204 : vector<8x512xf32>
    %207 = vector.extract_strided_slice %206 {offsets = [0, 0], sizes = [8, 384], strides = [1, 1]} : vector<8x512xf32> to vector<8x384xf32>
    %208 = arith.negf %207 : vector<8x384xf32>
    %209 = math.exp %208 : vector<8x384xf32>
    %cst_66 = arith.constant 1.000000e+00 : f32
    %210 = vector.broadcast %cst_66 : f32 to vector<8x384xf32>
    %211 = arith.addf %210, %209 : vector<8x384xf32>
    %212 = arith.divf %210, %211 : vector<8x384xf32>
    %213 = vector.extract_strided_slice %212 {offsets = [0, 0], sizes = [8, 128], strides = [1, 1]} : vector<8x384xf32> to vector<8x128xf32>
    %214 = vector.extract_strided_slice %212 {offsets = [0, 128], sizes = [8, 128], strides = [1, 1]} : vector<8x384xf32> to vector<8x128xf32>
    %215 = vector.extract_strided_slice %212 {offsets = [0, 256], sizes = [8, 128], strides = [1, 1]} : vector<8x384xf32> to vector<8x128xf32>
    %216 = vector.extract_strided_slice %206 {offsets = [0, 384], sizes = [8, 128], strides = [1, 1]} : vector<8x512xf32> to vector<8x128xf32>
    %217 = math.tanh %216 : vector<8x128xf32>
    %218 = arith.mulf %214, %168 : vector<8x128xf32>
    %219 = arith.mulf %213, %217 : vector<8x128xf32>
    %220 = arith.addf %218, %219 : vector<8x128xf32>
    %221 = math.tanh %220 : vector<8x128xf32>
    %222 = arith.mulf %215, %221 : vector<8x128xf32>
    %c1_i32_67 = arith.constant 1 : i32
    %223 = arith.subi %c4_i32, %c1_i32_67 : i32
    %c8_i32_68 = arith.constant 8 : i32
    %224 = arith.muli %223, %c8_i32_68 : i32
    %225 = tpu.assume_multiple %224, 8 : i32
    %226 = arith.index_cast %225 : i32 to index
    %c0_69 = arith.constant 0 : index
    %227 = vector.load %arg16[%226, %c0_69] : memref<64x128xf32, #tpu.memory_space<vmem>>, vector<8x128xf32>
    tpu.vector_store %arg16[%226, %c0_69], %222 {strides = array<i32>} : memref<64x128xf32, #tpu.memory_space<vmem>>, vector<8x128xf32>,
    %228 = vector.extract_strided_slice %202 {offsets = [0, 0], sizes = [8, 384], strides = [1, 1]} : vector<8x512xf32> to vector<8x384xf32>
    %229 = arith.negf %228 : vector<8x384xf32>
    %230 = math.exp %229 : vector<8x384xf32>
    %cst_70 = arith.constant 1.000000e+00 : f32
    %231 = vector.broadcast %cst_70 : f32 to vector<8x384xf32>
    %232 = arith.addf %231, %230 : vector<8x384xf32>
    %233 = arith.divf %231, %232 : vector<8x384xf32>
    %234 = vector.extract_strided_slice %233 {offsets = [0, 0], sizes = [8, 128], strides = [1, 1]} : vector<8x384xf32> to vector<8x128xf32>
    %235 = vector.extract_strided_slice %233 {offsets = [0, 128], sizes = [8, 128], strides = [1, 1]} : vector<8x384xf32> to vector<8x128xf32>
    %236 = vector.extract_strided_slice %233 {offsets = [0, 256], sizes = [8, 128], strides = [1, 1]} : vector<8x384xf32> to vector<8x128xf32>
    %237 = vector.extract_strided_slice %202 {offsets = [0, 384], sizes = [8, 128], strides = [1, 1]} : vector<8x512xf32> to vector<8x128xf32>
    %238 = math.tanh %237 : vector<8x128xf32>
    %239 = arith.mulf %235, %189 : vector<8x128xf32>
    %240 = arith.mulf %234, %238 : vector<8x128xf32>
    %241 = arith.addf %239, %240 : vector<8x128xf32>
    %242 = math.tanh %241 : vector<8x128xf32>
    %243 = arith.mulf %236, %242 : vector<8x128xf32>
    %244 = arith.truncf %243 : vector<8x128xf32> to vector<8x128xbf16>
    %245 = arith.truncf %222 : vector<8x128xf32> to vector<8x128xbf16>
    %c5_i32 = arith.constant 5 : i32
    %246 = tpu.concatenate %244, %245 in 1 : vector<8x128xbf16>, vector<8x128xbf16> -> vector<8x256xbf16>
    %c0_71 = arith.constant 0 : index
    %c0_72 = arith.constant 0 : index
    %247 = vector.load %arg4[%c0_71, %c0_72] : memref<256x1024xbf16, #tpu.memory_space<vmem>>, vector<256x1024xbf16>
    %cst_73 = arith.constant dense<0.000000e+00> : vector<8x1024xf32>
    %248 = tpu.matmul %246, %247, %cst_73 {dimension_numbers = #tpu.dot_dimension_numbers<[1], [0], [0], [1], [0, 0, 1, 1], [], []>} : vector<8x256xbf16>, vector<256x1024xbf16>, vector<8x1024xf32> -> vector<8x1024xf32>
    %c8_i32_74 = arith.constant 8 : i32
    %249 = arith.muli %c5_i32, %c8_i32_74 : i32
    %250 = tpu.assume_multiple %249, 8 : i32
    %251 = arith.index_cast %250 : i32 to index
    %c0_75 = arith.constant 0 : index
    %252 = vector.load %arg15[%251, %c0_75] : memref<64x512xf32, #tpu.memory_space<vmem>>, vector<8x512xf32>
    %253 = vector.extract_strided_slice %248 {offsets = [0, 0], sizes = [8, 512], strides = [1, 1]} : vector<8x1024xf32> to vector<8x512xf32>
    %254 = arith.addf %252, %253 : vector<8x512xf32>
    %c0_76 = arith.constant 0 : index
    %c0_77 = arith.constant 0 : index
    %255 = vector.load %arg5[%c0_76, %c0_77] : memref<1x512xf32, #tpu.memory_space<vmem>>, vector<1x512xf32>
    %256 = vector.extract_strided_slice %248 {offsets = [0, 512], sizes = [8, 512], strides = [1, 1]} : vector<8x1024xf32> to vector<8x512xf32>
    %257 = vector.broadcast %255 : vector<1x512xf32> to vector<8x512xf32>
    %258 = arith.addf %257, %256 : vector<8x512xf32>
    %259 = vector.extract_strided_slice %258 {offsets = [0, 0], sizes = [8, 384], strides = [1, 1]} : vector<8x512xf32> to vector<8x384xf32>
    %260 = arith.negf %259 : vector<8x384xf32>
    %261 = math.exp %260 : vector<8x384xf32>
    %cst_78 = arith.constant 1.000000e+00 : f32
    %262 = vector.broadcast %cst_78 : f32 to vector<8x384xf32>
    %263 = arith.addf %262, %261 : vector<8x384xf32>
    %264 = arith.divf %262, %263 : vector<8x384xf32>
    %265 = vector.extract_strided_slice %264 {offsets = [0, 0], sizes = [8, 128], strides = [1, 1]} : vector<8x384xf32> to vector<8x128xf32>
    %266 = vector.extract_strided_slice %264 {offsets = [0, 128], sizes = [8, 128], strides = [1, 1]} : vector<8x384xf32> to vector<8x128xf32>
    %267 = vector.extract_strided_slice %264 {offsets = [0, 256], sizes = [8, 128], strides = [1, 1]} : vector<8x384xf32> to vector<8x128xf32>
    %268 = vector.extract_strided_slice %258 {offsets = [0, 384], sizes = [8, 128], strides = [1, 1]} : vector<8x512xf32> to vector<8x128xf32>
    %269 = math.tanh %268 : vector<8x128xf32>
    %270 = arith.mulf %266, %220 : vector<8x128xf32>
    %271 = arith.mulf %265, %269 : vector<8x128xf32>
    %272 = arith.addf %270, %271 : vector<8x128xf32>
    %273 = math.tanh %272 : vector<8x128xf32>
    %274 = arith.mulf %267, %273 : vector<8x128xf32>
    %c1_i32_79 = arith.constant 1 : i32
    %275 = arith.subi %c5_i32, %c1_i32_79 : i32
    %c8_i32_80 = arith.constant 8 : i32
    %276 = arith.muli %275, %c8_i32_80 : i32
    %277 = tpu.assume_multiple %276, 8 : i32
    %278 = arith.index_cast %277 : i32 to index
    %c0_81 = arith.constant 0 : index
    %279 = vector.load %arg16[%278, %c0_81] : memref<64x128xf32, #tpu.memory_space<vmem>>, vector<8x128xf32>
    tpu.vector_store %arg16[%278, %c0_81], %274 {strides = array<i32>} : memref<64x128xf32, #tpu.memory_space<vmem>>, vector<8x128xf32>,
    %280 = vector.extract_strided_slice %254 {offsets = [0, 0], sizes = [8, 384], strides = [1, 1]} : vector<8x512xf32> to vector<8x384xf32>
    %281 = arith.negf %280 : vector<8x384xf32>
    %282 = math.exp %281 : vector<8x384xf32>
    %cst_82 = arith.constant 1.000000e+00 : f32
    %283 = vector.broadcast %cst_82 : f32 to vector<8x384xf32>
    %284 = arith.addf %283, %282 : vector<8x384xf32>
    %285 = arith.divf %283, %284 : vector<8x384xf32>
    %286 = vector.extract_strided_slice %285 {offsets = [0, 0], sizes = [8, 128], strides = [1, 1]} : vector<8x384xf32> to vector<8x128xf32>
    %287 = vector.extract_strided_slice %285 {offsets = [0, 128], sizes = [8, 128], strides = [1, 1]} : vector<8x384xf32> to vector<8x128xf32>
    %288 = vector.extract_strided_slice %285 {offsets = [0, 256], sizes = [8, 128], strides = [1, 1]} : vector<8x384xf32> to vector<8x128xf32>
    %289 = vector.extract_strided_slice %254 {offsets = [0, 384], sizes = [8, 128], strides = [1, 1]} : vector<8x512xf32> to vector<8x128xf32>
    %290 = math.tanh %289 : vector<8x128xf32>
    %291 = arith.mulf %287, %241 : vector<8x128xf32>
    %292 = arith.mulf %286, %290 : vector<8x128xf32>
    %293 = arith.addf %291, %292 : vector<8x128xf32>
    %294 = math.tanh %293 : vector<8x128xf32>
    %295 = arith.mulf %288, %294 : vector<8x128xf32>
    %296 = arith.truncf %295 : vector<8x128xf32> to vector<8x128xbf16>
    %297 = arith.truncf %274 : vector<8x128xf32> to vector<8x128xbf16>
    %c6_i32 = arith.constant 6 : i32
    %298 = tpu.concatenate %296, %297 in 1 : vector<8x128xbf16>, vector<8x128xbf16> -> vector<8x256xbf16>
    %c0_83 = arith.constant 0 : index
    %c0_84 = arith.constant 0 : index
    %299 = vector.load %arg4[%c0_83, %c0_84] : memref<256x1024xbf16, #tpu.memory_space<vmem>>, vector<256x1024xbf16>
    %cst_85 = arith.constant dense<0.000000e+00> : vector<8x1024xf32>
    %300 = tpu.matmul %298, %299, %cst_85 {dimension_numbers = #tpu.dot_dimension_numbers<[1], [0], [0], [1], [0, 0, 1, 1], [], []>} : vector<8x256xbf16>, vector<256x1024xbf16>, vector<8x1024xf32> -> vector<8x1024xf32>
    %c8_i32_86 = arith.constant 8 : i32
    %301 = arith.muli %c6_i32, %c8_i32_86 : i32
    %302 = tpu.assume_multiple %301, 8 : i32
    %303 = arith.index_cast %302 : i32 to index
    %c0_87 = arith.constant 0 : index
    %304 = vector.load %arg15[%303, %c0_87] : memref<64x512xf32, #tpu.memory_space<vmem>>, vector<8x512xf32>
    %305 = vector.extract_strided_slice %300 {offsets = [0, 0], sizes = [8, 512], strides = [1, 1]} : vector<8x1024xf32> to vector<8x512xf32>
    %306 = arith.addf %304, %305 : vector<8x512xf32>
    %c0_88 = arith.constant 0 : index
    %c0_89 = arith.constant 0 : index
    %307 = vector.load %arg5[%c0_88, %c0_89] : memref<1x512xf32, #tpu.memory_space<vmem>>, vector<1x512xf32>
    %308 = vector.extract_strided_slice %300 {offsets = [0, 512], sizes = [8, 512], strides = [1, 1]} : vector<8x1024xf32> to vector<8x512xf32>
    %309 = vector.broadcast %307 : vector<1x512xf32> to vector<8x512xf32>
    %310 = arith.addf %309, %308 : vector<8x512xf32>
    %311 = vector.extract_strided_slice %310 {offsets = [0, 0], sizes = [8, 384], strides = [1, 1]} : vector<8x512xf32> to vector<8x384xf32>
    %312 = arith.negf %311 : vector<8x384xf32>
    %313 = math.exp %312 : vector<8x384xf32>
    %cst_90 = arith.constant 1.000000e+00 : f32
    %314 = vector.broadcast %cst_90 : f32 to vector<8x384xf32>
    %315 = arith.addf %314, %313 : vector<8x384xf32>
    %316 = arith.divf %314, %315 : vector<8x384xf32>
    %317 = vector.extract_strided_slice %316 {offsets = [0, 0], sizes = [8, 128], strides = [1, 1]} : vector<8x384xf32> to vector<8x128xf32>
    %318 = vector.extract_strided_slice %316 {offsets = [0, 128], sizes = [8, 128], strides = [1, 1]} : vector<8x384xf32> to vector<8x128xf32>
    %319 = vector.extract_strided_slice %316 {offsets = [0, 256], sizes = [8, 128], strides = [1, 1]} : vector<8x384xf32> to vector<8x128xf32>
    %320 = vector.extract_strided_slice %310 {offsets = [0, 384], sizes = [8, 128], strides = [1, 1]} : vector<8x512xf32> to vector<8x128xf32>
    %321 = math.tanh %320 : vector<8x128xf32>
    %322 = arith.mulf %318, %272 : vector<8x128xf32>
    %323 = arith.mulf %317, %321 : vector<8x128xf32>
    %324 = arith.addf %322, %323 : vector<8x128xf32>
    %325 = math.tanh %324 : vector<8x128xf32>
    %326 = arith.mulf %319, %325 : vector<8x128xf32>
    %c1_i32_91 = arith.constant 1 : i32
    %327 = arith.subi %c6_i32, %c1_i32_91 : i32
    %c8_i32_92 = arith.constant 8 : i32
    %328 = arith.muli %327, %c8_i32_92 : i32
    %329 = tpu.assume_multiple %328, 8 : i32
    %330 = arith.index_cast %329 : i32 to index
    %c0_93 = arith.constant 0 : index
    %331 = vector.load %arg16[%330, %c0_93] : memref<64x128xf32, #tpu.memory_space<vmem>>, vector<8x128xf32>
    tpu.vector_store %arg16[%330, %c0_93], %326 {strides = array<i32>} : memref<64x128xf32, #tpu.memory_space<vmem>>, vector<8x128xf32>,
    %332 = vector.extract_strided_slice %306 {offsets = [0, 0], sizes = [8, 384], strides = [1, 1]} : vector<8x512xf32> to vector<8x384xf32>
    %333 = arith.negf %332 : vector<8x384xf32>
    %334 = math.exp %333 : vector<8x384xf32>
    %cst_94 = arith.constant 1.000000e+00 : f32
    %335 = vector.broadcast %cst_94 : f32 to vector<8x384xf32>
    %336 = arith.addf %335, %334 : vector<8x384xf32>
    %337 = arith.divf %335, %336 : vector<8x384xf32>
    %338 = vector.extract_strided_slice %337 {offsets = [0, 0], sizes = [8, 128], strides = [1, 1]} : vector<8x384xf32> to vector<8x128xf32>
    %339 = vector.extract_strided_slice %337 {offsets = [0, 128], sizes = [8, 128], strides = [1, 1]} : vector<8x384xf32> to vector<8x128xf32>
    %340 = vector.extract_strided_slice %337 {offsets = [0, 256], sizes = [8, 128], strides = [1, 1]} : vector<8x384xf32> to vector<8x128xf32>
    %341 = vector.extract_strided_slice %306 {offsets = [0, 384], sizes = [8, 128], strides = [1, 1]} : vector<8x512xf32> to vector<8x128xf32>
    %342 = math.tanh %341 : vector<8x128xf32>
    %343 = arith.mulf %339, %293 : vector<8x128xf32>
    %344 = arith.mulf %338, %342 : vector<8x128xf32>
    %345 = arith.addf %343, %344 : vector<8x128xf32>
    %346 = math.tanh %345 : vector<8x128xf32>
    %347 = arith.mulf %340, %346 : vector<8x128xf32>
    %348 = arith.truncf %347 : vector<8x128xf32> to vector<8x128xbf16>
    %349 = arith.truncf %326 : vector<8x128xf32> to vector<8x128xbf16>
    %c7_i32 = arith.constant 7 : i32
    %350 = tpu.concatenate %348, %349 in 1 : vector<8x128xbf16>, vector<8x128xbf16> -> vector<8x256xbf16>
    %c0_95 = arith.constant 0 : index
    %c0_96 = arith.constant 0 : index
    %351 = vector.load %arg4[%c0_95, %c0_96] : memref<256x1024xbf16, #tpu.memory_space<vmem>>, vector<256x1024xbf16>
    %cst_97 = arith.constant dense<0.000000e+00> : vector<8x1024xf32>
    %352 = tpu.matmul %350, %351, %cst_97 {dimension_numbers = #tpu.dot_dimension_numbers<[1], [0], [0], [1], [0, 0, 1, 1], [], []>} : vector<8x256xbf16>, vector<256x1024xbf16>, vector<8x1024xf32> -> vector<8x1024xf32>
    %c8_i32_98 = arith.constant 8 : i32
    %353 = arith.muli %c7_i32, %c8_i32_98 : i32
    %354 = tpu.assume_multiple %353, 8 : i32
    %355 = arith.index_cast %354 : i32 to index
    %c0_99 = arith.constant 0 : index
    %356 = vector.load %arg15[%355, %c0_99] : memref<64x512xf32, #tpu.memory_space<vmem>>, vector<8x512xf32>
    %357 = vector.extract_strided_slice %352 {offsets = [0, 0], sizes = [8, 512], strides = [1, 1]} : vector<8x1024xf32> to vector<8x512xf32>
    %358 = arith.addf %356, %357 : vector<8x512xf32>
    %c0_100 = arith.constant 0 : index
    %c0_101 = arith.constant 0 : index
    %359 = vector.load %arg5[%c0_100, %c0_101] : memref<1x512xf32, #tpu.memory_space<vmem>>, vector<1x512xf32>
    %360 = vector.extract_strided_slice %352 {offsets = [0, 512], sizes = [8, 512], strides = [1, 1]} : vector<8x1024xf32> to vector<8x512xf32>
    %361 = vector.broadcast %359 : vector<1x512xf32> to vector<8x512xf32>
    %362 = arith.addf %361, %360 : vector<8x512xf32>
    %363 = vector.extract_strided_slice %362 {offsets = [0, 0], sizes = [8, 384], strides = [1, 1]} : vector<8x512xf32> to vector<8x384xf32>
    %364 = arith.negf %363 : vector<8x384xf32>
    %365 = math.exp %364 : vector<8x384xf32>
    %cst_102 = arith.constant 1.000000e+00 : f32
    %366 = vector.broadcast %cst_102 : f32 to vector<8x384xf32>
    %367 = arith.addf %366, %365 : vector<8x384xf32>
    %368 = arith.divf %366, %367 : vector<8x384xf32>
    %369 = vector.extract_strided_slice %368 {offsets = [0, 0], sizes = [8, 128], strides = [1, 1]} : vector<8x384xf32> to vector<8x128xf32>
    %370 = vector.extract_strided_slice %368 {offsets = [0, 128], sizes = [8, 128], strides = [1, 1]} : vector<8x384xf32> to vector<8x128xf32>
    %371 = vector.extract_strided_slice %368 {offsets = [0, 256], sizes = [8, 128], strides = [1, 1]} : vector<8x384xf32> to vector<8x128xf32>
    %372 = vector.extract_strided_slice %362 {offsets = [0, 384], sizes = [8, 128], strides = [1, 1]} : vector<8x512xf32> to vector<8x128xf32>
    %373 = math.tanh %372 : vector<8x128xf32>
    %374 = arith.mulf %370, %324 : vector<8x128xf32>
    %375 = arith.mulf %369, %373 : vector<8x128xf32>
    %376 = arith.addf %374, %375 : vector<8x128xf32>
    %377 = math.tanh %376 : vector<8x128xf32>
    %378 = arith.mulf %371, %377 : vector<8x128xf32>
    %c1_i32_103 = arith.constant 1 : i32
    %379 = arith.subi %c7_i32, %c1_i32_103 : i32
    %c8_i32_104 = arith.constant 8 : i32
    %380 = arith.muli %379, %c8_i32_104 : i32
    %381 = tpu.assume_multiple %380, 8 : i32
    %382 = arith.index_cast %381 : i32 to index
    %c0_105 = arith.constant 0 : index
    %383 = vector.load %arg16[%382, %c0_105] : memref<64x128xf32, #tpu.memory_space<vmem>>, vector<8x128xf32>
    tpu.vector_store %arg16[%382, %c0_105], %378 {strides = array<i32>} : memref<64x128xf32, #tpu.memory_space<vmem>>, vector<8x128xf32>,
    %384 = vector.extract_strided_slice %358 {offsets = [0, 0], sizes = [8, 384], strides = [1, 1]} : vector<8x512xf32> to vector<8x384xf32>
    %385 = arith.negf %384 : vector<8x384xf32>
    %386 = math.exp %385 : vector<8x384xf32>
    %cst_106 = arith.constant 1.000000e+00 : f32
    %387 = vector.broadcast %cst_106 : f32 to vector<8x384xf32>
    %388 = arith.addf %387, %386 : vector<8x384xf32>
    %389 = arith.divf %387, %388 : vector<8x384xf32>
    %390 = vector.extract_strided_slice %389 {offsets = [0, 0], sizes = [8, 128], strides = [1, 1]} : vector<8x384xf32> to vector<8x128xf32>
    %391 = vector.extract_strided_slice %389 {offsets = [0, 128], sizes = [8, 128], strides = [1, 1]} : vector<8x384xf32> to vector<8x128xf32>
    %392 = vector.extract_strided_slice %389 {offsets = [0, 256], sizes = [8, 128], strides = [1, 1]} : vector<8x384xf32> to vector<8x128xf32>
    %393 = vector.extract_strided_slice %358 {offsets = [0, 384], sizes = [8, 128], strides = [1, 1]} : vector<8x512xf32> to vector<8x128xf32>
    %394 = math.tanh %393 : vector<8x128xf32>
    %395 = arith.mulf %391, %345 : vector<8x128xf32>
    %396 = arith.mulf %390, %394 : vector<8x128xf32>
    %397 = arith.addf %395, %396 : vector<8x128xf32>
    %398 = math.tanh %397 : vector<8x128xf32>
    %399 = arith.mulf %392, %398 : vector<8x128xf32>
    %400 = arith.truncf %399 : vector<8x128xf32> to vector<8x128xbf16>
    %401 = arith.truncf %378 : vector<8x128xf32> to vector<8x128xbf16>
    %c7_i32_107 = arith.constant 7 : i32
    %402 = tpu.concatenate %400, %401 in 1 : vector<8x128xbf16>, vector<8x128xbf16> -> vector<8x256xbf16>
    %c0_108 = arith.constant 0 : index
    %c0_109 = arith.constant 0 : index
    %403 = vector.load %arg4[%c0_108, %c0_109] : memref<256x1024xbf16, #tpu.memory_space<vmem>>, vector<256x1024xbf16>
    %cst_110 = arith.constant dense<0.000000e+00> : vector<8x1024xf32>
    %404 = tpu.matmul %402, %403, %cst_110 {dimension_numbers = #tpu.dot_dimension_numbers<[1], [0], [0], [1], [0, 0, 1, 1], [], []>} : vector<8x256xbf16>, vector<256x1024xbf16>, vector<8x1024xf32> -> vector<8x1024xf32>
    %c0_111 = arith.constant 0 : index
    %c0_112 = arith.constant 0 : index
    %405 = vector.load %arg5[%c0_111, %c0_112] : memref<1x512xf32, #tpu.memory_space<vmem>>, vector<1x512xf32>
    %406 = vector.extract_strided_slice %404 {offsets = [0, 512], sizes = [8, 512], strides = [1, 1]} : vector<8x1024xf32> to vector<8x512xf32>
    %407 = vector.broadcast %405 : vector<1x512xf32> to vector<8x512xf32>
    %408 = arith.addf %407, %406 : vector<8x512xf32>
    %409 = vector.extract_strided_slice %408 {offsets = [0, 0], sizes = [8, 384], strides = [1, 1]} : vector<8x512xf32> to vector<8x384xf32>
    %410 = arith.negf %409 : vector<8x384xf32>
    %411 = math.exp %410 : vector<8x384xf32>
    %cst_113 = arith.constant 1.000000e+00 : f32
    %412 = vector.broadcast %cst_113 : f32 to vector<8x384xf32>
    %413 = arith.addf %412, %411 : vector<8x384xf32>
    %414 = arith.divf %412, %413 : vector<8x384xf32>
    %415 = vector.extract_strided_slice %414 {offsets = [0, 0], sizes = [8, 128], strides = [1, 1]} : vector<8x384xf32> to vector<8x128xf32>
    %416 = vector.extract_strided_slice %414 {offsets = [0, 128], sizes = [8, 128], strides = [1, 1]} : vector<8x384xf32> to vector<8x128xf32>
    %417 = vector.extract_strided_slice %414 {offsets = [0, 256], sizes = [8, 128], strides = [1, 1]} : vector<8x384xf32> to vector<8x128xf32>
    %418 = vector.extract_strided_slice %408 {offsets = [0, 384], sizes = [8, 128], strides = [1, 1]} : vector<8x512xf32> to vector<8x128xf32>
    %419 = math.tanh %418 : vector<8x128xf32>
    %420 = arith.mulf %416, %376 : vector<8x128xf32>
    %421 = arith.mulf %415, %419 : vector<8x128xf32>
    %422 = arith.addf %420, %421 : vector<8x128xf32>
    %423 = math.tanh %422 : vector<8x128xf32>
    %424 = arith.mulf %417, %423 : vector<8x128xf32>
    %c56 = arith.constant 56 : index
    %c0_114 = arith.constant 0 : index
    %425 = vector.load %arg16[%c56, %c0_114] : memref<64x128xf32, #tpu.memory_space<vmem>>, vector<8x128xf32>
    tpu.vector_store %arg16[%c56, %c0_114], %424 {strides = array<i32>} : memref<64x128xf32, #tpu.memory_space<vmem>>, vector<8x128xf32>,
    %426 = arith.truncf %424 : vector<8x128xf32> to vector<8x128xbf16>
    %c0_115 = arith.constant 0 : index
    %c0_116 = arith.constant 0 : index
    %427 = vector.load %arg11[%c0_115, %c0_116] : memref<8x128xbf16, #tpu.memory_space<vmem>>, vector<8x128xbf16>
    tpu.vector_store %arg11[%c0_115, %c0_116], %400 {strides = array<i32>} : memref<8x128xbf16, #tpu.memory_space<vmem>>, vector<8x128xbf16>,
    %c0_117 = arith.constant 0 : index
    %c0_118 = arith.constant 0 : index
    %428 = vector.load %arg12[%c0_117, %c0_118] : memref<8x128xf32, #tpu.memory_space<vmem>>, vector<8x128xf32>
    tpu.vector_store %arg12[%c0_117, %c0_118], %397 {strides = array<i32>} : memref<8x128xf32, #tpu.memory_space<vmem>>, vector<8x128xf32>,
    %c0_119 = arith.constant 0 : index
    %c0_120 = arith.constant 0 : index
    %429 = vector.load %arg13[%c0_119, %c0_120] : memref<8x128xbf16, #tpu.memory_space<vmem>>, vector<8x128xbf16>
    tpu.vector_store %arg13[%c0_119, %c0_120], %426 {strides = array<i32>} : memref<8x128xbf16, #tpu.memory_space<vmem>>, vector<8x128xbf16>,
    %c0_121 = arith.constant 0 : index
    %c0_122 = arith.constant 0 : index
    %430 = vector.load %arg14[%c0_121, %c0_122] : memref<8x128xf32, #tpu.memory_space<vmem>>, vector<8x128xf32>
    tpu.vector_store %arg14[%c0_121, %c0_122], %422 {strides = array<i32>} : memref<8x128xf32, #tpu.memory_space<vmem>>, vector<8x128xf32>,
    %c0_123 = arith.constant 0 : index
    %c0_124 = arith.constant 0 : index
    %431 = vector.load %arg16[%c0_123, %c0_124] : memref<64x128xf32, #tpu.memory_space<vmem>>, vector<64x128xf32>
    %432 = arith.truncf %431 : vector<64x128xf32> to vector<64x128xbf16>
    %c0_125 = arith.constant 0 : index
    %c0_126 = arith.constant 0 : index
    %433 = vector.load %arg6[%c0_125, %c0_126] : memref<128x128xbf16, #tpu.memory_space<vmem>>, vector<128x128xbf16>
    %cst_127 = arith.constant dense<0.000000e+00> : vector<64x128xf32>
    %434 = tpu.matmul %432, %433, %cst_127 {dimension_numbers = #tpu.dot_dimension_numbers<[1], [0], [0], [1], [0, 0, 1, 1], [], []>} : vector<64x128xbf16>, vector<128x128xbf16>, vector<64x128xf32> -> vector<64x128xf32>
    %c0_128 = arith.constant 0 : index
    %c0_129 = arith.constant 0 : index
    %435 = vector.load %arg7[%c0_128, %c0_129] : memref<1x128xf32, #tpu.memory_space<vmem>>, vector<1x128xf32>
    %436 = vector.broadcast %435 : vector<1x128xf32> to vector<64x128xf32>
    %437 = arith.addf %434, %436 : vector<64x128xf32>
    %438 = arith.truncf %437 : vector<64x128xf32> to vector<64x128xbf16>
    %c0_130 = arith.constant 0 : index
    %c0_131 = arith.constant 0 : index
    %439 = vector.load %arg8[%c0_130, %c0_131] : memref<128x128xbf16, #tpu.memory_space<vmem>>, vector<128x128xbf16>
    %cst_132 = arith.constant dense<0.000000e+00> : vector<64x128xf32>
    %440 = tpu.matmul %438, %439, %cst_132 {dimension_numbers = #tpu.dot_dimension_numbers<[1], [0], [0], [1], [0, 0, 1, 1], [], []>} : vector<64x128xbf16>, vector<128x128xbf16>, vector<64x128xf32> -> vector<64x128xf32>
    %c0_133 = arith.constant 0 : index
    %c0_134 = arith.constant 0 : index
    %441 = vector.load %arg9[%c0_133, %c0_134] : memref<1x128xf32, #tpu.memory_space<vmem>>, vector<1x128xf32>
    %442 = vector.broadcast %441 : vector<1x128xf32> to vector<64x128xf32>
    %443 = arith.addf %440, %442 : vector<64x128xf32>
    %c0_135 = arith.constant 0 : index
    %c0_136 = arith.constant 0 : index
    %444 = vector.load %arg10[%c0_135, %c0_136] : memref<64x128xf32, #tpu.memory_space<vmem>>, vector<64x128xf32>
    tpu.vector_store %arg10[%c0_135, %c0_136], %443 {strides = array<i32>} : memref<64x128xf32, #tpu.memory_space<vmem>>, vector<64x128xf32>,
    return
  }
  func.func @transform_0(%arg0: i32) -> (i32, i32) {
    %c0_i32 = arith.constant 0 : i32
    %c0_i32_0 = arith.constant 0 : i32
    return %arg0, %c0_i32 : i32, i32
  }
  func.func @transform_1(%arg0: i32) -> (i32, i32) {
    %c0_i32 = arith.constant 0 : i32
    %c0_i32_0 = arith.constant 0 : i32
    %c0_i32_1 = arith.constant 0 : i32
    return %c0_i32, %c0_i32_0 : i32, i32
  }
  func.func @transform_2(%arg0: i32) -> (i32, i32) {
    %c0_i32 = arith.constant 0 : i32
    %c0_i32_0 = arith.constant 0 : i32
    %c0_i32_1 = arith.constant 0 : i32
    return %c0_i32, %c0_i32_0 : i32, i32
  }
  func.func @transform_3(%arg0: i32) -> (i32, i32) {
    %c0_i32 = arith.constant 0 : i32
    %c0_i32_0 = arith.constant 0 : i32
    %c0_i32_1 = arith.constant 0 : i32
    return %c0_i32, %c0_i32_0 : i32, i32
  }
  func.func @transform_4(%arg0: i32) -> (i32, i32) {
    %c0_i32 = arith.constant 0 : i32
    %c0_i32_0 = arith.constant 0 : i32
    %c0_i32_1 = arith.constant 0 : i32
    return %c0_i32, %c0_i32_0 : i32, i32
  }
  func.func @transform_5(%arg0: i32) -> (i32, i32) {
    %c0_i32 = arith.constant 0 : i32
    %c0_i32_0 = arith.constant 0 : i32
    %c0_i32_1 = arith.constant 0 : i32
    return %c0_i32, %c0_i32_0 : i32, i32
  }
  func.func @transform_6(%arg0: i32) -> (i32, i32) {
    %c0_i32 = arith.constant 0 : i32
    %c0_i32_0 = arith.constant 0 : i32
    %c0_i32_1 = arith.constant 0 : i32
    return %c0_i32, %c0_i32_0 : i32, i32
  }
  func.func @transform_7(%arg0: i32) -> (i32, i32) {
    %c0_i32 = arith.constant 0 : i32
    %c0_i32_0 = arith.constant 0 : i32
    %c0_i32_1 = arith.constant 0 : i32
    return %c0_i32, %c0_i32_0 : i32, i32
  }
  func.func @transform_8(%arg0: i32) -> (i32, i32) {
    %c0_i32 = arith.constant 0 : i32
    %c0_i32_0 = arith.constant 0 : i32
    %c0_i32_1 = arith.constant 0 : i32
    return %c0_i32, %c0_i32_0 : i32, i32
  }
  func.func @transform_9(%arg0: i32) -> (i32, i32) {
    %c0_i32 = arith.constant 0 : i32
    %c0_i32_0 = arith.constant 0 : i32
    return %arg0, %c0_i32 : i32, i32
  }
}

</mosaic_0001>

<bundles_post_ra>
// kernel: tpu_custom_call.1
= control target key start
LH: loop header
LB: loop body
LE: loop exit
PB: predicated region body
PF: predicated region fallthrough
CT: control target
= control target key end

     0   :  { %14 = vsyncpa [#allocation9], 0  ;;  %s16348_s0 = inlined_call_operand.vmem [shape: bf16[64,32], index: 0, kind: input, shape index: {}]   ;;  %s16349_s1 = inlined_call_operand.hbm [shape: bf16[32,512], index: 1, kind: input, shape index: {}]   ;;  %s16350_s2 = inlined_call_operand.vmem [shape: f32[1,512], index: 2, kind: input, shape index: {}]   ;;  %s16351_s3 = inlined_call_operand.hbm [shape: bf16[256,1024], index: 3, kind: input, shape index: {}]   ;;  %s16352_s4 = inlined_call_operand.vmem [shape: f32[1,512], index: 4, kind: input, shape index: {}]   ;;  %s16353_s5 = inlined_call_operand.hbm [shape: bf16[128,128], index: 5, kind: input, shape index: {}]   ;;  %s16354_s6 = inlined_call_operand.vmem [shape: f32[1,128], index: 6, kind: input, shape index: {}]   ;;  %s16355_s7 = inlined_call_operand.hbm [shape: bf16[128,128], index: 7, kind: input, shape index: {}]   ;;  %s16356_s8 = inlined_call_operand.vmem [shape: f32[1,128], index: 8, kind: input, shape index: {}]   ;;  %s16357_s9 = inlined_call_operand.hbm [shape: f32[64,128], index: 9, kind: output, shape index: {}]  }
   0x1   :  { %15 = vsyncpa [#allocation12], 0 }
   0x2   :  { %16 = vsyncpa [#allocation15], 0  ;;  %s39_s11 = sshll.u32 %s16351_s3, 4  ;;  %s40_s11 = int_to_ptr.hbm [resolvable:$true] %s39_s11 }
   0x3   :  { %17 = vsyncpa [#allocation10], 0  ;;  %s14674_s12 = smov [#allocation11]   ;;  %s24_s16 = sshll.u32 %s16349_s1, 4  ;;  %s25_s16 = int_to_ptr.hbm [resolvable:$true] %s24_s16 }
   0x4   :  { %s41_s13 = sshll.u32 %s14674_s12, 4  ;;  %s14675_s17 = smov 512   ;;  %s42_s13 = int_to_ptr.vmem [resolvable:$true] %s41_s13 }
   0x5   :  { %s14676_s18 = smov 32   ;;  %s14677_s19 = smov [#allocation8]  }
   0x6   :  { %47 = dma.hbm_to_vmem [thread:$0]  %s40_s11, 16384, %s42_s13, [#allocation12], %s14675_s17, %s14675_s17, %s14676_s18  }
   0x7   :  { %s26_s20 = sshll.u32 %s14677_s19, 4  ;;  %s14678_s21 = smov 256   ;;  %s27_s20 = int_to_ptr.vmem [resolvable:$true] %s26_s20 }
   0x8   :  { %s14679_s22 = smov 16   ;;  %s54_s24 = sshll.u32 %s16353_s5, 4  ;;  %s55_s24 = int_to_ptr.hbm [resolvable:$true] %s54_s24 }
   0x9   :  { %32 = dma.hbm_to_vmem [thread:$0]  %s25_s16, 1024, %s27_s20, [#allocation9], %s14678_s21, %s14678_s21, %s14679_s22  }
   0xa   :  { %s14680_s25 = smov [#allocation13]   ;;  %s69_s28 = sshll.u32 %s16355_s7, 4  ;;  %s70_s28 = int_to_ptr.hbm [resolvable:$true] %s69_s28 }
   0xb   :  { %s56_s26 = sshll.u32 %s14680_s25, 4  ;;  %s14681_s29 = smov 64   ;;  %s57_s26 = int_to_ptr.vmem [resolvable:$true] %s56_s26 }
   0xc   :  { %s14682_s30 = smov 4   ;;  %s14683_s10 = smov [#allocation14]  }
   0xd   :  { %62 = dma.hbm_to_vmem [thread:$0]  %s55_s24, 1024, %s57_s26, [#allocation12], %s14681_s29, %s14681_s29, %s14682_s30  }
   0xe   :  { %s71_s11 = sshll.u32 %s14683_s10, 4  ;;  %s72_s11 = int_to_ptr.vmem [resolvable:$true] %s71_s11 }
   0xf   :  { %77 = dma.hbm_to_vmem [thread:$0]  %s70_s28, 1024, %s72_s11, [#allocation15], %s14681_s29, %s14681_s29, %s14682_s30  }
  0x10   :  { %14666 = dma.done.wait [#allocation9], 1024  }
  0x11   :  { %14667 = vsyncadd [#allocation9], 4294966272 }
  0x12   :  { %14668 = dma.done.wait [#allocation12], 17408  }
  0x13   :  { %14669 = vsyncadd [#allocation12], 4294949888 }
  0x14   :  { %14670 = dma.done.wait [#allocation15], 1024  }
  0x15   :  { %14671 = vsyncadd [#allocation15], 4294966272  ;;  %v9299_v0 = vld [vmem:[#allocation8 + $0x20] sm:$0xf]  ;;  %v13291_v1 = vld [vmem:[#allocation8 + $0x2c] sm:$0xf0] }
  0x16   :  { %v13289_v2 = vld [vmem:[#allocation8 + $0x24] sm:$0xf]  ;;  %v9300_v3 = vor.u32 %v13291_v1, %v9299_v0  ;;  %v9301_v4 = vld [vmem:[#allocation8 + $0x30] sm:$0xf0]  ;;  %v9283_v5 = vld [vmem:[#allocation8] sm:$0xf] }
  0x17   :  { %v13287_v6 = vld [vmem:[#allocation8 + $0xc] sm:$0xf0]  ;;  %v9304_v7 = vor.u32 %v13289_v2, %v9301_v4  ;;  %v13285_v8 = vld [vmem:[#allocation8 + $0x4] sm:$0xf]  ;;  %v9285_v9 = vld [vmem:[#allocation8 + $0x10] sm:$0xf0] }
  0x18   :  { %v9443_v10 = vld [vmem:[#allocation11 + $0x1c0] sm:$0xf]  ;;  %210 = vmatpush.bf16.msra.mxu0 %v9300_v3  ;;  %14269 = vmatpush.bf16.msra.mxu2 %v9300_v3  ;;  %v9284_v11 = vor.u32 %v13287_v6, %v9283_v5  ;;  %v9288_v15 = vor.u32 %v13285_v8, %v9285_v9  ;;  %v14757_v18 = vld [vmem:[%s16348_s0 + $0x10] sm:$0xff]  ;;  %vm191_vm0 = vcmask 261120   ;;  %v14762_v23 = vld [vmem:[%s16348_s0] sm:$0xff]  ;;  %v14684_v62 = vmov 0  }
  0x19   :  { %v13353_v12 = vld [vmem:[#allocation11 + $0x1dc] sm:$0xf0]  ;;  %239 = vmatpush.bf16.msra.mxu1 %v9304_v7  ;;  %14271 = vmatpush.bf16.msra.mxu3 %v9304_v7  ;;  %v9307_v34 = vld [vmem:[#allocation8 + $0x28] sm:$0xf]  ;;  %v13292_v35 = vld [vmem:[#allocation8 + $0x34] sm:$0xf0] }
  0x1a   :  { %v9571_v13 = vld [vmem:[#allocation11 + $0x3c0] sm:$0xf]  ;;  %v14750_v16 = vor.u32 %v13353_v12, %v9443_v10  ;;  %v13290_v36 = vld [vmem:[#allocation8 + $0x2c] sm:$0xf]  ;;  %v9308_v39 = vor.u32 %v13292_v35, %v9307_v34  ;;  %v9309_v40 = vld [vmem:[#allocation8 + $0x38] sm:$0xf0] }
  0x1b   :  { %v13417_v14 = vld [vmem:[#allocation11 + $0x3dc] sm:$0xf0]  ;;  %v9312_v41 = vor.u32 %v13290_v36, %v9309_v40  ;;  %v9291_v47 = vld [vmem:[#allocation8 + $0x8] sm:$0xf]  ;;  %v13288_v48 = vld [vmem:[#allocation8 + $0x14] sm:$0xf0] }
  0x1c   :  { %v14752_v17 = vor.u32 %v13417_v14, %v9571_v13  ;;  %v9427_v19 = vld [vmem:[#allocation11 + $0x180] sm:$0xf]  ;;  %211 = vmatpush.bf16.msra.mxu0 %v9284_v11  ;;  %14270 = vmatpush.bf16.msra.mxu2 %v9284_v11  ;;  %v9292_v50 = vor.u32 %v13288_v48, %v9291_v47  ;;  %v13286_v51 = vld [vmem:[#allocation8 + $0xc] sm:$0xf]  ;;  %v9293_v52 = vld [vmem:[#allocation8 + $0x18] sm:$0xf0] }
  0x1d   :  { %v13345_v20 = vld [vmem:[#allocation11 + $0x19c] sm:$0xf0]  ;;  %240 = vmatpush.bf16.msra.mxu1 %v9288_v15  ;;  %14272 = vmatpush.bf16.msra.mxu3 %v9288_v15  ;;  %v9296_v53 = vor.u32 %v13286_v51, %v9293_v52  ;;  %v14799_v59 = vld [vmem:[%s16348_s0 + $0x18] sm:$0xff]  ;;  %101 = vst [vmem:[#allocation2] sm:$0xf] %v14684_v62  ;;  %s9243_s14 = sshll.u32 %s16357_s9, 4  ;;  %s9244_s14 = int_to_ptr.hbm [resolvable:$true] %s9243_s14 }
  0x1e   :  { %v9555_v21 = vld [vmem:[#allocation11 + $0x380] sm:$0xf]  ;;  %v14766_v24 = vor.u32 %v13345_v20, %v9427_v19  ;;  %103 = vst [vmem:[#allocation4] sm:$0xf] %v14684_v62  ;;  %v13349_v6 = vld [vmem:[#allocation11 + $0x1c4] sm:$0xf] }
  0x1f   :  { %v13409_v22 = vld [vmem:[#allocation11 + $0x39c] sm:$0xf0]  ;;  %9315 = vmatmul.msk.bf16.vlgmr.msra.gmra.mxu2 %vm191_vm0, %v14757_v18  ;;  %9313 = vmatmul.msk.bf16.vlgmr.msra.gmra.mxu0 %vm191_vm0, %v14762_v23  ;;  %v9445_v7 = vld [vmem:[#allocation11 + $0x1e0] sm:$0xf0]  ;;  %v9451_v19 = vld [vmem:[#allocation11 + $0x1c8] sm:$0xf] }
  0x20   :  { %802 = vmatpush.bf16.msrb.mxu0 %v14750_v16  ;;  %v14768_v25 = vor.u32 %v13409_v22, %v9555_v21  ;;  %v9411_v26 = vld [vmem:[#allocation11 + $0x140] sm:$0xf]  ;;  %9319 = vmatmul.msk.bf16.vlgmr.msra.gmra.mxu3 %vm191_vm0, %v14757_v18  ;;  %v14826_v11 = vor.u32 %v13349_v6, %v9445_v7  ;;  %v13413_v12 = vld [vmem:[#allocation11 + $0x3c4] sm:$0xf]  ;;  %v13354_v21 = vld [vmem:[#allocation11 + $0x1e4] sm:$0xf0] }
  0x21   :  { %815 = vmatpush.bf16.msrb.mxu1 %v14752_v17  ;;  %v13337_v27 = vld [vmem:[#allocation11 + $0x15c] sm:$0xf0]  ;;  %268 = vmatpush.bf16.msrb.mxu2 %v9308_v39  ;;  %v9573_v13 = vld [vmem:[#allocation11 + $0x3e0] sm:$0xf0]  ;;  %v9579_v22 = vld [vmem:[#allocation11 + $0x3c8] sm:$0xf]  ;;  %v14840_v36 = vor.u32 %v13354_v21, %v9451_v19 }
  0x22   :  { %v9539_v28 = vld [vmem:[#allocation11 + $0x340] sm:$0xf]  ;;  %9317 = vmatmul.msk.bf16.vlgmr.msra.gmra.mxu1 %vm191_vm0, %v14762_v23  ;;  %v14780_v32 = vor.u32 %v13337_v27, %v9411_v26  ;;  %297 = vmatpush.bf16.msrb.mxu3 %v9312_v41  ;;  %v14828_v20 = vor.u32 %v13413_v12, %v9573_v13  ;;  %v13418_v26 = vld [vmem:[#allocation11 + $0x3e4] sm:$0xf0]  ;;  %v13341_v27 = vld [vmem:[#allocation11 + $0x184] sm:$0xf] }
  0x23   :  { %v13401_v29 = vld [vmem:[#allocation11 + $0x35c] sm:$0xf0]  ;;  %v9557_v35 = vld [vmem:[#allocation11 + $0x3a0] sm:$0xf0]  ;;  %v13346_v40 = vld [vmem:[#allocation11 + $0x1a4] sm:$0xf0] }
  0x24   :  { %v9395_v30 = vld [vmem:[#allocation11 + $0x100] sm:$0xf]  ;;  %803 = vmatpush.bf16.msrb.mxu0 %v14766_v24  ;;  %v14782_v33 = vor.u32 %v13401_v29, %v9539_v28  ;;  %v9429_v28 = vld [vmem:[#allocation11 + $0x1a0] sm:$0xf0]  ;;  %v9563_v41 = vld [vmem:[#allocation11 + $0x388] sm:$0xf] }
  0x25   :  { %v13329_v31 = vld [vmem:[#allocation11 + $0x11c] sm:$0xf0]  ;;  %816 = vmatpush.bf16.msrb.mxu1 %v14768_v25  ;;  %269 = vmatpush.bf16.msrb.mxu2 %v9292_v50  ;;  %v13405_v29 = vld [vmem:[#allocation11 + $0x384] sm:$0xf]  ;;  %v14838_v34 = vor.u32 %v13341_v27, %v9429_v28  ;;  %v9419_v52 = vld [vmem:[#allocation11 + $0x148] sm:$0xf] }
  0x26   :  { %v9523_v37 = vld [vmem:[#allocation11 + $0x300] sm:$0xf]  ;;  %v14786_v44 = vor.u32 %v13329_v31, %v9395_v30  ;;  %298 = vmatpush.bf16.msrb.mxu3 %v9296_v53  ;;  %v14844_v39 = vor.u32 %v13405_v29, %v9557_v35  ;;  %v13397_v47 = vld [vmem:[#allocation11 + $0x344] sm:$0xf]  ;;  %v13330_v12 = vld [vmem:[#allocation11 + $0x124] sm:$0xf0] }
  0x27   :  { %v13393_v38 = vld [vmem:[#allocation11 + $0x31c] sm:$0xf0]  ;;  %v9397_v62 = vld [vmem:[#allocation11 + $0x120] sm:$0xf0]  ;;  %v9531_v13 = vld [vmem:[#allocation11 + $0x308] sm:$0xf] }
  0x28   :  { %v9379_v42 = vld [vmem:[#allocation11 + $0xc0] sm:$0xf]  ;;  %804 = vmatpush.bf16.msrb.mxu0 %v14780_v32  ;;  %v14788_v45 = vor.u32 %v13393_v38, %v9523_v37  ;;  %v14842_v37 = vor.u32 %v13418_v26, %v9579_v22  ;;  %v9435_v38 = vld [vmem:[#allocation11 + $0x188] sm:$0xf]  ;;  %v9525_v6 = vld [vmem:[#allocation11 + $0x320] sm:$0xf0] }
  0x29   :  { %v13321_v43 = vld [vmem:[#allocation11 + $0xdc] sm:$0xf0]  ;;  %817 = vmatpush.bf16.msrb.mxu1 %v14782_v33  ;;  %828 = vmatpush.bf16.msra.mxu2 %v14826_v11  ;;  %v14854_v50 = vor.u32 %v13346_v40, %v9435_v38  ;;  %v13317_v19 = vld [vmem:[#allocation11 + $0xc4] sm:$0xf]  ;;  %v9387_v27 = vld [vmem:[#allocation11 + $0xc8] sm:$0xf] }
  0x2a   :  { %v9507_v46 = vld [vmem:[#allocation11 + $0x2c0] sm:$0xf]  ;;  %v14792_v54 = vor.u32 %v13321_v43, %v9379_v42  ;;  %841 = vmatpush.bf16.msra.mxu3 %v14828_v20  ;;  %v13410_v42 = vld [vmem:[#allocation11 + $0x3a4] sm:$0xf0]  ;;  %v13333_v43 = vld [vmem:[#allocation11 + $0x144] sm:$0xf] }
  0x2b   :  { %v13385_v49 = vld [vmem:[#allocation11 + $0x2dc] sm:$0xf0]  ;;  %v14856_v51 = vor.u32 %v13410_v42, %v9563_v41  ;;  %v9381_v21 = vld [vmem:[#allocation11 + $0xe0] sm:$0xf0]  ;;  %s14686_s15 = smov 128   ;;  %s14687_s16 = smov 8  }
  0x2c   :  { %805 = vmatpush.bf16.msrb.mxu0 %v14786_v44  ;;  %v14794_v55 = vor.u32 %v13385_v49, %v9507_v46  ;;  %v9363_v56 = vld [vmem:[#allocation11 + $0x80] sm:$0xf]  ;;  %v9413_v46 = vld [vmem:[#allocation11 + $0x160] sm:$0xf0]  ;;  %v14884_v28 = vor.u32 %v13317_v19, %v9381_v21 }
  0x2d   :  { %818 = vmatpush.bf16.msrb.mxu1 %v14788_v45  ;;  %v13313_v57 = vld [vmem:[#allocation11 + $0x9c] sm:$0xf0]  ;;  %829 = vmatpush.bf16.msra.mxu2 %v14838_v34  ;;  %v14850_v48 = vor.u32 %v13333_v43, %v9413_v46  ;;  %v9541_v49 = vld [vmem:[#allocation11 + $0x360] sm:$0xf0]  ;;  %v13322_v43 = vld [vmem:[#allocation11 + $0xe4] sm:$0xf0] }
  0x2e   :  { %v9491_v58 = vld [vmem:[#allocation11 + $0x280] sm:$0xf]  ;;  %v14808_v63 = vor.u32 %v13313_v57, %v9363_v56  ;;  %842 = vmatpush.bf16.msra.mxu3 %v14844_v39  ;;  %v14858_v53 = vor.u32 %v13397_v47, %v9541_v49  ;;  %v13338_v56 = vld [vmem:[#allocation11 + $0x164] sm:$0xf0]  ;;  %v13381_v22 = vld [vmem:[#allocation11 + $0x2c4] sm:$0xf] }
  0x2f   :  { %v13377_v60 = vld [vmem:[#allocation11 + $0x29c] sm:$0xf0]  ;;  %9316 = vmatmul.msk.bf16.gmra.mxu2 %vm191_vm0, %v14799_v59  ;;  %v9547_v57 = vld [vmem:[#allocation11 + $0x348] sm:$0xf]  ;;  %v14870_v7 = vor.u32 %v13338_v56, %v9419_v52  ;;  %v9509_v26 = vld [vmem:[#allocation11 + $0x2e0] sm:$0xf0] }
  0x30   :  { %v14804_v61 = vld [vmem:[%s16348_s0 + $0x8] sm:$0xff]  ;;  %806 = vmatpush.bf16.msrb.mxu0 %v14792_v54  ;;  %v14810_v0 = vor.u32 %v13377_v60, %v9491_v58  ;;  %9320 = vmatmul.msk.bf16.gmra.mxu3 %vm191_vm0, %v14799_v59  ;;  %v13402_v58 = vld [vmem:[#allocation11 + $0x364] sm:$0xf0]  ;;  %v14886_v29 = vor.u32 %v13381_v22, %v9509_v26 }
  0x31   :  { %819 = vmatpush.bf16.msrb.mxu1 %v14794_v55  ;;  %v9347_v1 = vld [vmem:[#allocation11 + $0x40] sm:$0xf]  ;;  %9314 = vmatmul.msk.bf16.gmra.mxu0 %vm191_vm0, %v14804_v61  ;;  %v13325_v60 = vld [vmem:[#allocation11 + $0x104] sm:$0xf]  ;;  %v9515_v46 = vld [vmem:[#allocation11 + $0x2c8] sm:$0xf] }
  0x32   :  { %v13305_v2 = vld [vmem:[#allocation11 + $0x5c] sm:$0xf0]  ;;  %9318 = vmatmul.msk.bf16.gmra.mxu1 %vm191_vm0, %v14804_v61  ;;  %830 = vmatpush.bf16.msra.mxu2 %v14850_v48  ;;  %v13309_v35 = vld [vmem:[#allocation11 + $0x84] sm:$0xf]  ;;  %v13386_v47 = vld [vmem:[#allocation11 + $0x2e4] sm:$0xf0] }
  0x33   :  { %v9475_v3 = vld [vmem:[#allocation11 + $0x240] sm:$0xf]  ;;  %v14822_v8 = vor.u32 %v13305_v2, %v9347_v1  ;;  %843 = vmatpush.bf16.msra.mxu3 %v14858_v53  ;;  %v13389_v1 = vld [vmem:[#allocation11 + $0x304] sm:$0xf]  ;;  %v9403_v2 = vld [vmem:[#allocation11 + $0x108] sm:$0xf] }
  0x34   :  { %v13369_v4 = vld [vmem:[#allocation11 + $0x25c] sm:$0xf0]  ;;  %807 = vmatpush.bf16.msrb.mxu0 %v14808_v63  ;;  %v9365_v40 = vld [vmem:[#allocation11 + $0xa0] sm:$0xf0]  ;;  %v9371_v49 = vld [vmem:[#allocation11 + $0x88] sm:$0xf] }
  0x35   :  { %v9331_v5 = vld [vmem:[#allocation11] sm:$0xf]  ;;  %820 = vmatpush.bf16.msrb.mxu1 %v14810_v0  ;;  %v14824_v9 = vor.u32 %v13369_v4, %v9475_v3  ;;  %v14862_v3 = vld [vmem:[#allocation2] sm:$0xf]  ;;  %v14864_v4 = vld [vmem:[#allocation4] sm:$0xf]  ;;  %v14896_v52 = vor.u32 %v13309_v35, %v9365_v40 }
  0x36   :  { %v13297_v10 = vld [vmem:[#allocation11 + $0x1c] sm:$0xf0]  ;;  %v13373_v41 = vld [vmem:[#allocation11 + $0x284] sm:$0xf]  ;;  %v9355_v26 = vld [vmem:[#allocation11 + $0x48] sm:$0xf] }
  0x37   :  { %v9459_v14 = vld [vmem:[#allocation11 + $0x200] sm:$0xf]  ;;  %v14834_v30 = vor.u32 %v13297_v10, %v9331_v5  ;;  %v14866_v5 = vor.u32 %v13325_v60, %v9397_v62  ;;  %v14872_v10 = vor.u32 %v13402_v58, %v9547_v57  ;;  %v9493_v42 = vld [vmem:[#allocation11 + $0x2a0] sm:$0xf0]  ;;  %16362 = vst [vmem:[#allocation21_spill] sm:$0xff] %v14896_v52  ;;  %v14902_v58 = vor.u32 %v13322_v43, %v9387_v27 }
  0x38   :  { %v13361_v15 = vld [vmem:[#allocation11 + $0x21c] sm:$0xf0]  ;;  %808 = vmatpush.bf16.msrb.mxu0 %v14822_v8  ;;  %v14898_v56 = vor.u32 %v13373_v41, %v9493_v42  ;;  %v13301_v57 = vld [vmem:[#allocation11 + $0x44] sm:$0xf]  ;;  %v14904_v60 = vor.u32 %v13386_v47, %v9515_v46  ;;  %v13306_v27 = vld [vmem:[#allocation11 + $0x64] sm:$0xf0] }
  0x39   :  { %821 = vmatpush.bf16.msrb.mxu1 %v14824_v9  ;;  %v14836_v31 = vor.u32 %v13361_v15, %v9459_v14  ;;  %v13394_v14 = vld [vmem:[#allocation11 + $0x324] sm:$0xf0]  ;;  %v14874_v15 = vor.u32 %v13389_v1, %v9525_v6  ;;  %831 = vmatpush.bf16.msra.mxu2 %v14866_v5  ;;  %v9349_v62 = vld [vmem:[#allocation11 + $0x60] sm:$0xf0] }
  0x3a   :  { %v14892_v38 = vor.u32 %v13394_v14, %v9531_v13  ;;  %v13365_v1 = vld [vmem:[#allocation11 + $0x244] sm:$0xf]  ;;  %v13314_v6 = vld [vmem:[#allocation11 + $0xa4] sm:$0xf0]  ;;  %v14908_v14 = vor.u32 %v13301_v57, %v9349_v62  ;;  %v13350_v62 = vld [vmem:[#allocation11 + $0x1cc] sm:$0xf] }
  0x3b   :  { %844 = vmatpush.bf16.msra.mxu3 %v14874_v15  ;;  %v13378_v13 = vld [vmem:[#allocation11 + $0x2a4] sm:$0xf0]  ;;  %v14914_v21 = vor.u32 %v13314_v6, %v9371_v49  ;;  %v13293_v41 = vld [vmem:[#allocation11 + $0x4] sm:$0xf]  ;;  %v9453_v49 = vld [vmem:[#allocation11 + $0x1e8] sm:$0xf0] }
  0x3c   :  { %809 = vmatpush.bf16.msrb.mxu0 %v14834_v30  ;;  %16363 = vst [vmem:[#allocation22_spill] sm:$0xff] %v14908_v14  ;;  %v9483_v35 = vld [vmem:[#allocation11 + $0x248] sm:$0xf]  ;;  %v9333_v42 = vld [vmem:[#allocation11 + $0x20] sm:$0xf0] }
  0x3d   :  { %822 = vmatpush.bf16.msrb.mxu1 %v14836_v31  ;;  %832 = vmatpush.bf16.msra.mxu2 %v14884_v28  ;;  %v13370_v40 = vld [vmem:[#allocation11 + $0x264] sm:$0xf0]  ;;  %v13357_v43 = vld [vmem:[#allocation11 + $0x204] sm:$0xf]  ;;  %v14920_v47 = vor.u32 %v13293_v41, %v9333_v42 }
  0x3e   :  { %v9339_v46 = vld [vmem:[#allocation11 + $0x8] sm:$0xf]  ;;  %v9461_v57 = vld [vmem:[#allocation11 + $0x220] sm:$0xf0] }
  0x3f   :  { %9321 = vmatmul.msk.bf16.vlgmr.msrb.gmra.mxu2 %vm191_vm0, %v14762_v23  ;;  %845 = vmatpush.bf16.msra.mxu3 %v14886_v29  ;;  %16365 = vst [vmem:[#allocation24_spill] sm:$0xff] %v14920_v47  ;;  %v13298_v6 = vld [vmem:[#allocation11 + $0x24] sm:$0xf0] }
  0x40   :  { %854 = vmatpush.bf16.msra.mxu0 %v14840_v36  ;;  %9325 = vmatmul.msk.bf16.vlgmr.msrb.gmra.mxu3 %vm191_vm0, %v14762_v23  ;;  %v14890_v23 = vor.u32 %v13330_v12, %v9403_v2  ;;  %v9477_v2 = vld [vmem:[#allocation11 + $0x260] sm:$0xf0]  ;;  %v9499_v12 = vld [vmem:[#allocation11 + $0x288] sm:$0xf] }
  0x41   :  { %867 = vmatpush.bf16.msra.mxu1 %v14842_v37  ;;  %810 = vmatmul.bf16.vlgmr.msrb.gmra.mxu0 %v14862_v3  ;;  %v14910_v19 = vor.u32 %v13365_v1, %v9477_v2  ;;  %v14916_v22 = vor.u32 %v13378_v13, %v9499_v12  ;;  %v14924_v1 = vor.u32 %v13306_v27, %v9355_v26  ;;  %v13414_v13 = vld [vmem:[#allocation11 + $0x3cc] sm:$0xf]  ;;  %v9467_v41 = vld [vmem:[#allocation11 + $0x208] sm:$0xf] }
  0x42   :  { %823 = vmatmul.bf16.vlgmr.msrb.gmra.mxu1 %v14864_v4  ;;  %833 = vmatpush.bf16.msra.mxu2 %v14896_v52  ;;  %v14926_v2 = vor.u32 %v13370_v40, %v9483_v35  ;;  %v14928_v12 = vor.u32 %v13357_v43, %v9461_v57  ;;  %v13362_v42 = vld [vmem:[#allocation11 + $0x224] sm:$0xf0]  ;;  %v13342_v26 = vld [vmem:[#allocation11 + $0x18c] sm:$0xf]  ;;  %v14942_v43 = vor.u32 %v13298_v6, %v9339_v46 }
  0x43   :  { %846 = vmatpush.bf16.msra.mxu3 %v14898_v56  ;;  %16364 = vst [vmem:[#allocation23_spill] sm:$0xff] %v14910_v19  ;;  %v9437_v27 = vld [vmem:[#allocation11 + $0x1a8] sm:$0xf0] }
  0x44   :  { %855 = vmatpush.bf16.msra.mxu0 %v14854_v50  ;;  %v13406_v35 = vld [vmem:[#allocation11 + $0x38c] sm:$0xf] }
  0x45   :  { %868 = vmatpush.bf16.msra.mxu1 %v14856_v51  ;;  %v9565_v40 = vld [vmem:[#allocation11 + $0x3a8] sm:$0xf0] }
  0x46   :  { %834 = vmatpush.bf16.msra.mxu2 %v14908_v14  ;;  %v9581_v14 = vld [vmem:[#allocation11 + $0x3e8] sm:$0xf0]  ;;  %v14950_v57 = vor.u32 %v13406_v35, %v9565_v40 }
  0x47   :  { %847 = vmatpush.bf16.msra.mxu3 %v14910_v19  ;;  %v14934_v19 = vor.u32 %v13350_v62, %v9453_v49  ;;  %v14936_v52 = vor.u32 %v13414_v13, %v9581_v14  ;;  %v14948_v14 = vor.u32 %v13342_v26, %v9437_v27  ;;  %v13334_v62 = vld [vmem:[#allocation11 + $0x14c] sm:$0xf] }
  0x48   :  { %856 = vmatpush.bf16.msra.mxu0 %v14870_v7  ;;  %v9421_v49 = vld [vmem:[#allocation11 + $0x168] sm:$0xf0] }
  0x49   :  { %869 = vmatpush.bf16.msra.mxu1 %v14872_v10  ;;  %v13398_v13 = vld [vmem:[#allocation11 + $0x34c] sm:$0xf]  ;;  %v14956_v46 = vor.u32 %v13334_v62, %v9421_v49 }
  0x4a   :  { %835 = vmatpush.bf16.msra.mxu2 %v14920_v47  ;;  %v9549_v47 = vld [vmem:[#allocation11 + $0x368] sm:$0xf0] }
  0x4b   :  { %848 = vmatpush.bf16.msra.mxu3 %v14928_v12  ;;  %v14958_v6 = vor.u32 %v13398_v13, %v9549_v47  ;;  %v13390_v26 = vld [vmem:[#allocation11 + $0x30c] sm:$0xf] }
  0x4c   :  { %857 = vmatpush.bf16.msra.mxu0 %v14890_v23  ;;  %v9533_v27 = vld [vmem:[#allocation11 + $0x328] sm:$0xf0] }
  0x4d   :  { %870 = vmatpush.bf16.msra.mxu1 %v14892_v38  ;;  %v14968_v47 = vor.u32 %v13390_v26, %v9533_v27  ;;  %v13382_v40 = vld [vmem:[#allocation11 + $0x2cc] sm:$0xf] }
  0x4e   :  { %880 = vmatpush.bf16.msrb.mxu2 %v14934_v19  ;;  %v9517_v62 = vld [vmem:[#allocation11 + $0x2e8] sm:$0xf0] }
  0x4f   :  { %9322 = vmatmul.msk.bf16.gmra.mxu2 %vm191_vm0, %v14804_v61  ;;  %893 = vmatpush.bf16.msrb.mxu3 %v14936_v52  ;;  %v14980_v13 = vor.u32 %v13382_v40, %v9517_v62  ;;  %v13302_v27 = vld [vmem:[#allocation11 + $0x4c] sm:$0xf] }
  0x50   :  { %858 = vmatpush.bf16.msra.mxu0 %v14902_v58  ;;  %9326 = vmatmul.msk.bf16.gmra.mxu3 %vm191_vm0, %v14804_v61  ;;  %v14944_v61 = vor.u32 %v13362_v42, %v9467_v41  ;;  %v13326_v41 = vld [vmem:[#allocation11 + $0x10c] sm:$0xf] }
  0x51   :  { %871 = vmatpush.bf16.msra.mxu1 %v14904_v60  ;;  %v9405_v42 = vld [vmem:[#allocation11 + $0x128] sm:$0xf0] }
  0x52   :  { %881 = vmatpush.bf16.msrb.mxu2 %v14948_v14  ;;  %v14966_v35 = vor.u32 %v13326_v41, %v9405_v42  ;;  %v13374_v41 = vld [vmem:[#allocation11 + $0x28c] sm:$0xf] }
  0x53   :  { %894 = vmatpush.bf16.msrb.mxu3 %v14950_v57  ;;  %v9501_v42 = vld [vmem:[#allocation11 + $0x2a8] sm:$0xf0] }
  0x54   :  { %859 = vmatpush.bf16.msra.mxu0 %v14914_v21  ;;  %v14988_v26 = vor.u32 %v13374_v41, %v9501_v42  ;;  %v9485_v40 = vld [vmem:[#allocation11 + $0x268] sm:$0xf0] }
  0x55   :  { %872 = vmatpush.bf16.msra.mxu1 %v14916_v22  ;;  %v13294_v62 = vld [vmem:[#allocation11 + $0xc] sm:$0xf] }
  0x56   :  { %882 = vmatpush.bf16.msrb.mxu2 %v14956_v46  ;;  %v9469_v41 = vld [vmem:[#allocation11 + $0x228] sm:$0xf0] }
  0x57   :  { %895 = vmatpush.bf16.msrb.mxu3 %v14958_v6 }
  0x58   :  { %860 = vmatpush.bf16.msra.mxu0 %v14924_v1 }
  0x59   :  { %873 = vmatpush.bf16.msra.mxu1 %v14926_v2 }
  0x5a   :  { %883 = vmatpush.bf16.msrb.mxu2 %v14966_v35 }
  0x5b   :  { %896 = vmatpush.bf16.msrb.mxu3 %v14968_v47 }
  0x5c   :  { %861 = vmatpush.bf16.msra.mxu0 %v14942_v43 }
  0x5d   :  { %874 = vmatpush.bf16.msra.mxu1 %v14944_v61 }
  0x5f   :  { %862 = vmatmul.bf16.vlgmr.msra.gmra.mxu0 %v14862_v3  ;;  %9323 = vmatmul.msk.bf16.gmra.mxu2 %vm191_vm0, %v14757_v18 }
  0x60   :  { %1300 = vmatpush.bf16.msrb.mxu0 %v14750_v16  ;;  %875 = vmatmul.bf16.vlgmr.msra.gmra.mxu1 %v14864_v4  ;;  %v13318_v16 = vld [vmem:[#allocation11 + $0xcc] sm:$0xf] }
  0x61   :  { %1313 = vmatpush.bf16.msrb.mxu1 %v14752_v17  ;;  %v9389_v17 = vld [vmem:[#allocation11 + $0xe8] sm:$0xf0]  ;;  %9327 = vmatmul.msk.bf16.gmra.mxu3 %vm191_vm0, %v14757_v18 }
  0x62   :  { %v14978_v49 = vor.u32 %v13318_v16, %v9389_v17  ;;  %897 = vmatpush.bf16.msrb.mxu3 %v14980_v13  ;;  %v9357_v16 = vld [vmem:[#allocation11 + $0x68] sm:$0xf0] }
  0x63   :  { %v13366_v17 = vld [vmem:[#allocation11 + $0x24c] sm:$0xf] }
  0x64   :  { %1301 = vmatpush.bf16.msrb.mxu0 %v14766_v24  ;;  %v9373_v24 = vld [vmem:[#allocation11 + $0xa8] sm:$0xf0]  ;;  %884 = vmatpush.bf16.msrb.mxu2 %v14978_v49 }
  0x65   :  { %1314 = vmatpush.bf16.msrb.mxu1 %v14768_v25  ;;  %v13310_v25 = vld [vmem:[#allocation11 + $0x8c] sm:$0xf] }
  0x66   :  { %v14986_v18 = vor.u32 %v13310_v25, %v9373_v24  ;;  %898 = vmatpush.bf16.msrb.mxu3 %v14988_v26  ;;  %v9341_v25 = vld [vmem:[#allocation11 + $0x28] sm:$0xf0] }
  0x67   :  { %v13358_v24 = vld [vmem:[#allocation11 + $0x20c] sm:$0xf] }
  0x68   :  { %1302 = vmatpush.bf16.msrb.mxu0 %v14780_v32  ;;  %885 = vmatpush.bf16.msrb.mxu2 %v14986_v18  ;;  %v14994_v32 = vor.u32 %v13302_v27, %v9357_v16 }
  0x69   :  { %1315 = vmatpush.bf16.msrb.mxu1 %v14782_v33  ;;  %v14996_v33 = vor.u32 %v13366_v17, %v9485_v40 }
  0x6b   :  { %899 = vmatpush.bf16.msrb.mxu3 %v14996_v33 }
  0x6c   :  { %1303 = vmatpush.bf16.msrb.mxu0 %v14786_v44  ;;  %886 = vmatpush.bf16.msrb.mxu2 %v14994_v32  ;;  %v15002_v44 = vor.u32 %v13294_v62, %v9341_v25 }
  0x6d   :  { %1316 = vmatpush.bf16.msrb.mxu1 %v14788_v45  ;;  %v15004_v45 = vor.u32 %v13358_v24, %v9469_v41 }
  0x6f   :  { %9324 = vmatmul.msk.bf16.gmra.mxu2 %vm191_vm0, %v14799_v59  ;;  %900 = vmatpush.bf16.msrb.mxu3 %v15004_v45 }
  0x70   :  { %1304 = vmatpush.bf16.msrb.mxu0 %v14792_v54  ;;  %887 = vmatpush.bf16.msrb.mxu2 %v15002_v44  ;;  %v16366_v54 = vld [vmem:[#allocation21_spill] sm:$0xff] }
  0x71   :  { %1317 = vmatpush.bf16.msrb.mxu1 %v14794_v55  ;;  %9328 = vmatmul.msk.bf16.gmra.mxu3 %vm191_vm0, %v14799_v59  ;;  %v16367_v55 = vld [vmem:[#allocation23_spill] sm:$0xff]  ;;  %v16368_v59 = vld [vmem:[#allocation22_spill] sm:$0xff] }
  0x74   :  { %1305 = vmatpush.bf16.msrb.mxu0 %v14808_v63  ;;  %v121_v63 = vld [vmem:[%s16350_s2] sm:$0xf] }
  0x75   :  { %1318 = vmatpush.bf16.msrb.mxu1 %v14810_v0 }
  0x78   :  { %1306 = vmatpush.bf16.msrb.mxu0 %v14822_v8 }
  0x79   :  { %1319 = vmatpush.bf16.msrb.mxu1 %v14824_v9  ;;  %v16369_v9 = vld [vmem:[#allocation24_spill] sm:$0xff] }
  0x7c   :  { %1307 = vmatpush.bf16.msrb.mxu0 %v14834_v30 }
  0x7d   :  { %1320 = vmatpush.bf16.msrb.mxu1 %v14836_v31 }
  0x7f   :  { %836 = vmatmul.bf16.vlgmr.msra.gmra.mxu2 %v14862_v3 }
  0x80   :  { %1352 = vmatpush.bf16.msra.mxu0 %v14840_v36  ;;  %1321 = vmatmul.bf16.vlgmr.msrb.gmra.mxu1 %v14864_v4 }
  0x81   :  { %1365 = vmatpush.bf16.msra.mxu1 %v14842_v37  ;;  %849 = vmatmul.bf16.vlgmr.msra.gmra.mxu3 %v14864_v4 }
  0x82   :  { %1339 = vmatpush.bf16.msra.mxu3 %v14828_v20  ;;  %1326 = vmatpush.bf16.msra.mxu2 %v14826_v11  ;;  %v15063_v11 = vperm.slane %v121_v63, 0  ;;  %v15065_v20 = vperm.slane %v121_v63, 1 }
  0x84   :  { %1353 = vmatpush.bf16.msra.mxu0 %v14854_v50 }
  0x85   :  { %1366 = vmatpush.bf16.msra.mxu1 %v14856_v51 }
  0x86   :  { %1340 = vmatpush.bf16.msra.mxu3 %v14844_v39  ;;  %1327 = vmatpush.bf16.msra.mxu2 %v14838_v34 }
  0x88   :  { %1354 = vmatpush.bf16.msra.mxu0 %v14870_v7 }
  0x89   :  { %1367 = vmatpush.bf16.msra.mxu1 %v14872_v10 }
  0x8a   :  { %1341 = vmatpush.bf16.msra.mxu3 %v14858_v53  ;;  %1328 = vmatpush.bf16.msra.mxu2 %v14850_v48 }
  0x8c   :  { %1355 = vmatpush.bf16.msra.mxu0 %v14890_v23 }
  0x8d   :  { %1368 = vmatpush.bf16.msra.mxu1 %v14892_v38 }
  0x8e   :  { %1342 = vmatpush.bf16.msra.mxu3 %v14874_v15  ;;  %1329 = vmatpush.bf16.msra.mxu2 %v14866_v5 }
  0x8f   :  { %888 = vmatmul.bf16.vlgmr.msrb.gmra.mxu2 %v14862_v3 }
  0x90   :  { %1356 = vmatpush.bf16.msra.mxu0 %v14902_v58 }
  0x91   :  { %1369 = vmatpush.bf16.msra.mxu1 %v14904_v60  ;;  %901 = vmatmul.bf16.vlgmr.msrb.gmra.mxu3 %v14864_v4 }
  0x92   :  { %1343 = vmatpush.bf16.msra.mxu3 %v14886_v29  ;;  %1330 = vmatpush.bf16.msra.mxu2 %v14884_v28 }
  0x94   :  { %1357 = vmatpush.bf16.msra.mxu0 %v14914_v21 }
  0x95   :  { %1370 = vmatpush.bf16.msra.mxu1 %v14916_v22 }
  0x96   :  { %1344 = vmatpush.bf16.msra.mxu3 %v14898_v56  ;;  %1331 = vmatpush.bf16.msra.mxu2 %v16366_v54 }
  0x98   :  { %1358 = vmatpush.bf16.msra.mxu0 %v14924_v1 }
  0x99   :  { %1371 = vmatpush.bf16.msra.mxu1 %v14926_v2 }
  0x9a   :  { %1345 = vmatpush.bf16.msra.mxu3 %v16367_v55  ;;  %1332 = vmatpush.bf16.msra.mxu2 %v16368_v59 }
  0x9c   :  { %1359 = vmatpush.bf16.msra.mxu0 %v14942_v43  ;;  %v213_v0 = vpop.f32.mrf.mxu0 }
  0x9d   :  { %1372 = vmatpush.bf16.msra.mxu1 %v14944_v61  ;;  %v214_v56 = vadd.f32 %v213_v0, %v15063_v11 }
  0x9e   :  { %1346 = vmatpush.bf16.msra.mxu3 %v14928_v12  ;;  %1333 = vmatpush.bf16.msra.mxu2 %v16369_v9 }
  0x9f   :  { %v15057_v8 = vpop.f32.mrf.mxu1 }
  0xa0   :  { %1373 = vmatmul.bf16.vlgmr.msra.gmra.mxu1 %v14864_v4 }
  0xa1   :  { %1347 = vmatmul.bf16.vlgmr.msra.gmra.mxu3 %v14864_v4 }
  0xa2   :  { %1391 = vmatpush.bf16.msrb.mxu3 %v14936_v52  ;;  %1378 = vmatpush.bf16.msrb.mxu2 %v14934_v19  ;;  %v223_v30 = vpop.f32.mrf.mxu2 }
  0xa3   :  { %v15071_v31 = vadd.f32 %v223_v30, %v15063_v11  ;;  %v252_v34 = vpop.f32.mrf.mxu3 }
  0xa4   :  { %v15074_v36 = vadd.f32 %v252_v34, %v15065_v20  ;;  %v15076_v37 = vpop.f32.mrf.mxu0 }
  0xa6   :  { %1392 = vmatpush.bf16.msrb.mxu3 %v14950_v57  ;;  %1379 = vmatpush.bf16.msrb.mxu2 %v14948_v14  ;;  %v15124_v14 = vperm.slane %v121_v63, 2  ;;  %v15126_v57 = vperm.slane %v121_v63, 3 }
  0xa7   :  { %v15078_v39 = vpop.f32.mrf.mxu1 }
  0xaa   :  { %1393 = vmatpush.bf16.msrb.mxu3 %v14958_v6  ;;  %1380 = vmatpush.bf16.msrb.mxu2 %v14956_v46  ;;  %v15082_v48 = vpop.f32.mrf.mxu2 }
  0xab   :  { %v15086_v50 = vpop.f32.mrf.mxu3 }
  0xae   :  { %1394 = vmatpush.bf16.msrb.mxu3 %v14968_v47  ;;  %1381 = vmatpush.bf16.msrb.mxu2 %v14966_v35  ;;  %v218_v51 = vpop.f32.mrf.mxu0 }
  0xaf   :  { %v15089_v53 = vadd.f32 %v218_v51, %v15063_v11  ;;  %v247_v3 = vpop.f32.mrf.mxu1 }
  0xb0   :  { %v15092_v5 = vadd.f32 %v247_v3, %v15065_v20 }
  0xb2   :  { %1395 = vmatpush.bf16.msrb.mxu3 %v14980_v13  ;;  %1382 = vmatpush.bf16.msrb.mxu2 %v14978_v49  ;;  %v228_v7 = vpop.f32.mrf.mxu2 }
  0xb3   :  { %v15099_v10 = vadd.f32 %v228_v7, %v15063_v11  ;;  %v257_v15 = vpop.f32.mrf.mxu3  ;;  %v243_v7 = vadd.f32 %v15057_v8, %v15065_v20  ;;  %v13415_v8 = vld [vmem:[#allocation11 + $0x3d4] sm:$0xf] }
  0xb4   :  { %v15102_v28 = vadd.f32 %v257_v15, %v15065_v20 }
  0xb6   :  { %1396 = vmatpush.bf16.msrb.mxu3 %v14988_v26  ;;  %1383 = vmatpush.bf16.msrb.mxu2 %v14986_v18  ;;  %v15104_v29 = vpop.f32.mrf.mxu0 }
  0xb7   :  { %v15106_v23 = vpop.f32.mrf.mxu1 }
  0xba   :  { %1397 = vmatpush.bf16.msrb.mxu3 %v14996_v33  ;;  %1384 = vmatpush.bf16.msrb.mxu2 %v14994_v32  ;;  %v15110_v38 = vpop.f32.mrf.mxu2 }
  0xbb   :  { %v15114_v52 = vpop.f32.mrf.mxu3 }
  0xbc   :  { %16370 = vst [vmem:[#allocation21_spill] sm:$0xff] %v15114_v52  ;;  %v10118_v52 = vld [vmem:[#allocation11 + $0x228] sm:$0xf0] }
  0xbe   :  { %1398 = vmatpush.bf16.msrb.mxu3 %v15004_v45  ;;  %1385 = vmatpush.bf16.msrb.mxu2 %v15002_v44  ;;  %v811_v58 = vpop.f32.mrf.mxu0 }
  0xbf   :  { %v824_v60 = vpop.f32.mrf.mxu1 }
  0xc0   :  { %v825_v19 = vadd.f32 %v824_v60, %v811_v58 }
  0xc1   :  { %1399 = vmatmul.bf16.vlgmr.msrb.gmra.mxu3 %v14864_v4 }
  0xc2   :  { %v910_v21 = vadd.f32 %v825_v19, %v214_v56  ;;  %v271_v22 = vpop.f32.mrf.mxu2  ;;  %v9830_v19 = vld [vmem:[#allocation11 + $0x3d0] sm:$0xf] }
  0xc3   :  { %v15118_v1 = vpop.f32.mrf.mxu3  ;;  %v272_v59 = vadd.f32 %v271_v22, %v15124_v14 }
  0xc4   :  { %v9585_v25 = vmul.f32 -1.442695, %v910_v21  ;;  %v13419_v21 = vld [vmem:[#allocation11 + $0x3ec] sm:$0xf0] }
  0xc5   :  { %v9831_v22 = vor.u32 %v13419_v21, %v9830_v19  ;;  %v9782_v21 = vld [vmem:[#allocation11 + $0x310] sm:$0xf] }
  0xc6   :  { %v813_v2 = vpop.f32.mrf.mxu0  ;;  %14289 = vpow2.f32 %v9585_v25 }
  0xc7   :  { %v826_v12 = vpop.f32.mrf.mxu1  ;;  %1417 = vmatpush.bf16.msrb.mxu1 %v9831_v22  ;;  %v13395_v22 = vld [vmem:[#allocation11 + $0x32c] sm:$0xf0] }
  0xca   :  { %v15120_v43 = vpop.f32.mrf.mxu2 }
  0xcb   :  { %v15122_v61 = vpop.f32.mrf.mxu3 }
  0xcc   :  { %v14290_v55 = vpop.eup %14289 }
  0xcd   :  { %v15159_v9 = vadd.f32 1.0, %v14290_v55  ;;  %v13403_v55 = vld [vmem:[#allocation11 + $0x36c] sm:$0xf0] }
  0xcf   :  { %14291 = vrcp.f32 %v15159_v9  ;;  %vm932_vm1 = vweird.f32 %v15159_v9  ;;  %v938_v19 = vand.u32 2147483648, %v15159_v9 }
  0xd2   :  { %v276_v46 = vpop.f32.mrf.mxu2 }
  0xd3   :  { %v305_v6 = vpop.f32.mrf.mxu3  ;;  %v15129_v35 = vadd.f32 %v276_v46, %v15124_v14 }
  0xd4   :  { %v15132_v47 = vadd.f32 %v305_v6, %v15126_v57 }
  0xd5   :  { %v15164_v58 = vpop.eup %14291 }
  0xd6   :  { %v928_v2 = vmul.f32 %v15164_v58, %v15159_v9  ;;  %vm933_vm2 = vweird.f32 %v15164_v58 }
  0xd7   :  { %vm15182_vm3 = vmor %vm932_vm1, %vm933_vm2 }
  0xda   :  { %v15134_v42 = vpop.f32.mrf.mxu2 }
  0xdb   :  { %v15136_v18 = vpop.f32.mrf.mxu3 }
  0xdc   :  { %v863_v49 = vpop.f32.mrf.mxu0 }
  0xdd   :  { %v876_v13 = vpop.f32.mrf.mxu1 }
  0xde   :  { %v877_v54 = vadd.f32 %v876_v13, %v863_v49  ;;  %v9814_v49 = vld [vmem:[#allocation11 + $0x390] sm:$0xf] }
  0xdf   :  { %v13411_v13 = vld [vmem:[#allocation11 + $0x3ac] sm:$0xf0] }
  0xe0   :  { %v912_v30 = vadd.f32 %v877_v54, %v272_v59  ;;  %v9798_v54 = vld [vmem:[#allocation11 + $0x350] sm:$0xf] }
  0xe2   :  { %v281_v16 = vpop.f32.mrf.mxu2  ;;  %v9587_v34 = vmul.f32 -1.442695, %v912_v30  ;;  %v9799_v30 = vor.u32 %v13403_v55, %v9798_v54 }
  0xe3   :  { %v15139_v40 = vadd.f32 %v281_v16, %v15124_v14  ;;  %v929_v16 = vsub.f32 1.0, %v928_v2 }
  0xe4   :  { %v865_v26 = vpop.f32.mrf.mxu0  ;;  %v310_v17 = vpop.f32.mrf.mxu3  ;;  %14293 = vpow2.f32 %v9587_v34  ;;  %v13407_v34 = vld [vmem:[#allocation11 + $0x394] sm:$0xf] }
  0xe5   :  { %v878_v27 = vpop.f32.mrf.mxu1  ;;  %v15142_v32 = vadd.f32 %v310_v17, %v15126_v57  ;;  %v9815_v26 = vor.u32 %v13411_v13, %v9814_v49  ;;  %v930_v59 = vmul.f32 %v15164_v58, %v929_v16  ;;  %v9800_v13 = vld [vmem:[#allocation11 + $0x370] sm:$0xf0]  ;;  %v939_v16 = vor.u32 1.1754944e-38, %v938_v19  ;;  %v9750_v19 = vld [vmem:[#allocation11 + $0x290] sm:$0xf] }
  0xe6   :  { %v9832_v27 = vld [vmem:[#allocation11 + $0x3f0] sm:$0xf0] }
  0xe7   :  { %v9835_v25 = vor.u32 %v13415_v8, %v9832_v27  ;;  %1418 = vmatpush.bf16.msrb.mxu1 %v9815_v26 }
  0xe9   :  { %1443 = vmatpush.bf16.msra.mxu3 %v9835_v25  ;;  %v9766_v25 = vld [vmem:[#allocation11 + $0x2d0] sm:$0xf] }
  0xea   :  { %v15144_v33 = vpop.f32.mrf.mxu2  ;;  %v14294_v12 = vpop.eup %14293 }
  0xeb   :  { %v15168_v17 = vadd.f32 1.0, %v14294_v12  ;;  %1419 = vmatpush.bf16.msrb.mxu1 %v9799_v30  ;;  %v931_v12 = vadd.f32 %v15164_v58, %v930_v59  ;;  %v13391_v59 = vld [vmem:[#allocation11 + $0x314] sm:$0xf] }
  0xec   :  { %v15146_v62 = vpop.f32.mrf.mxu3  ;;  %v9784_v30 = vld [vmem:[#allocation11 + $0x330] sm:$0xf0] }
  0xed   :  { %vm962_vm10 = vweird.f32 %v15168_v17 }
  0xf2   :  { %v286_v24 = vpop.f32.mrf.mxu2 }
  0xf3   :  { %v15149_v44 = vadd.f32 %v286_v24, %v15124_v14 }
  0xf4   :  { %v315_v41 = vpop.f32.mrf.mxu3 }
  0xf5   :  { %v15152_v45 = vadd.f32 %v315_v41, %v15126_v57 }
  0xfa   :  { %v15155_v63 = vpop.f32.mrf.mxu2 }
  0xfb   :  { %16371 = vst [vmem:[#allocation23_spill] sm:$0xff] %v15155_v63  ;;  %v13486_v63 = vld [vmem:[#allocation11 + $0x20c] sm:$0xf] }
  0xfc   :  { %v15157_v0 = vpop.f32.mrf.mxu3 }
  0xfd   :  { %16372 = vst [vmem:[#allocation22_spill] sm:$0xff] %v15157_v0  ;;  %v9966_v0 = vld [vmem:[#allocation11 + $0xf0] sm:$0xf0] }
 0x102   :  { %v837_v51 = vpop.f32.mrf.mxu2 }
 0x104   :  { %v850_v3 = vpop.f32.mrf.mxu3 }
 0x105   :  { %v851_v15 = vadd.f32 %v850_v3, %v837_v51  ;;  %v301_v51 = vadd.f32 %v15118_v1, %v15126_v57  ;;  %v936_v1 = vand.u32 2147483647, %v15159_v9  ;;  %v935_v9 = vsel %vm15182_vm3, %v15164_v58, %v931_v12 }
 0x107   :  { %v911_v56 = vadd.f32 %v851_v15, %v243_v7  ;;  %v9816_v15 = vld [vmem:[#allocation11 + $0x3b0] sm:$0xf0]  ;;  %vm937_vm4 = vcmp.eq.f32.partialorder %v936_v1, 8.507059e+37 }
 0x108   :  { %v13383_v1 = vld [vmem:[#allocation11 + $0x2d4] sm:$0xf] }
 0x109   :  { %v9586_v60 = vmul.f32 -1.442695, %v911_v56 }
 0x10a   :  { %v839_v46 = vpop.f32.mrf.mxu2 }
 0x10b   :  { %14295 = vpow2.f32 %v9586_v60  ;;  %v9819_v60 = vor.u32 %v13407_v34, %v9816_v15  ;;  %v9783_v46 = vor.u32 %v13395_v22, %v9782_v21  ;;  %v13379_v21 = vld [vmem:[#allocation11 + $0x2ac] sm:$0xf0] }
 0x10c   :  { %v852_v6 = vpop.f32.mrf.mxu3  ;;  %14297 = vrcp.f32 %v15168_v17  ;;  %v9751_v12 = vor.u32 %v13379_v21, %v9750_v19 }
 0x10d   :  { %1444 = vmatpush.bf16.msra.mxu3 %v9819_v60  ;;  %v13399_v6 = vld [vmem:[#allocation11 + $0x354] sm:$0xf]  ;;  %1420 = vmatpush.bf16.msrb.mxu1 %v9783_v46  ;;  %v940_v60 = vsel %vm937_vm4, %v939_v16, %v935_v9  ;;  %v9734_v16 = vld [vmem:[#allocation11 + $0x250] sm:$0xf] }
 0x10e   :  { %v9803_v26 = vor.u32 %v13399_v6, %v9800_v13  ;;  %v9768_v46 = vld [vmem:[#allocation11 + $0x2f0] sm:$0xf0] }
 0x10f   :  { %v9771_v13 = vor.u32 %v13383_v1, %v9768_v46  ;;  %v9688_v46 = vld [vmem:[#allocation11 + $0x1b0] sm:$0xf0] }
 0x111   :  { %v14296_v24 = vpop.eup %14295  ;;  %1445 = vmatpush.bf16.msra.mxu3 %v9803_v26 }
 0x112   :  { %v15170_v41 = vadd.f32 1.0, %v14296_v24  ;;  %v889_v3 = vpop.f32.mrf.mxu2  ;;  %v15186_v8 = vpop.eup %14297  ;;  %v13387_v24 = vld [vmem:[#allocation11 + $0x2ec] sm:$0xf0] }
 0x113   :  { %v9767_v55 = vor.u32 %v13387_v24, %v9766_v25  ;;  %v958_v34 = vmul.f32 %v15186_v8, %v15168_v17  ;;  %vm963_vm9 = vweird.f32 %v15186_v8 }
 0x114   :  { %14299 = vrcp.f32 %v15170_v41  ;;  %v902_v7 = vpop.f32.mrf.mxu3  ;;  %vm947_vm6 = vweird.f32 %v15170_v41  ;;  %vm15208_vm11 = vmor %vm962_vm10, %vm963_vm9 }
 0x115   :  { %v903_v56 = vadd.f32 %v902_v7, %v889_v3  ;;  %v9787_v7 = vor.u32 %v13391_v59, %v9784_v30  ;;  %1421 = vmatpush.bf16.msrb.mxu1 %v9767_v55  ;;  %v959_v6 = vsub.f32 1.0, %v958_v34  ;;  %v13375_v30 = vld [vmem:[#allocation11 + $0x294] sm:$0xf] }
 0x117   :  { %v913_v2 = vadd.f32 %v903_v56, %v301_v51  ;;  %v953_v56 = vand.u32 2147483648, %v15170_v41  ;;  %1446 = vmatpush.bf16.msra.mxu3 %v9787_v7  ;;  %v960_v9 = vmul.f32 %v15186_v8, %v959_v6  ;;  %v9718_v7 = vld [vmem:[#allocation11 + $0x210] sm:$0xf]  ;;  %v13359_v6 = vld [vmem:[#allocation11 + $0x214] sm:$0xf] }
 0x119   :  { %14301 = vtanh.f32 %v913_v2  ;;  %v951_v2 = vand.u32 2147483647, %v15170_v41  ;;  %1422 = vmatpush.bf16.msrb.mxu1 %v9751_v12  ;;  %v954_v25 = vor.u32 1.1754944e-38, %v953_v56  ;;  %v13367_v56 = vld [vmem:[#allocation11 + $0x254] sm:$0xf]  ;;  %v961_v19 = vadd.f32 %v15186_v8, %v960_v9 }
 0x11a   :  { %v14300_v27 = vpop.eup %14299  ;;  %v891_v51 = vpop.f32.mrf.mxu2  ;;  %v968_v12 = vand.u32 2147483648, %v15168_v17 }
 0x11b   :  { %v943_v54 = vmul.f32 %v14300_v27, %v15170_v41  ;;  %vm948_vm5 = vweird.f32 %v14300_v27  ;;  %vm952_vm8 = vcmp.eq.f32.partialorder %v951_v2, 8.507059e+37  ;;  %1447 = vmatpush.bf16.msra.mxu3 %v9771_v13  ;;  %v9752_v51 = vld [vmem:[#allocation11 + $0x2b0] sm:$0xf0]  ;;  %v13363_v41 = vld [vmem:[#allocation11 + $0x22c] sm:$0xf0] }
 0x11c   :  { %v904_v3 = vpop.f32.mrf.mxu3  ;;  %vm949_vm7 = vmor %vm947_vm6, %vm948_vm5  ;;  %v966_v2 = vand.u32 2147483647, %v15168_v17  ;;  %v9822_v13 = vld [vmem:[#allocation11 + $0x398] sm:$0xf]  ;;  %v965_v17 = vsel %vm15208_vm11, %v15186_v8, %v961_v19  ;;  %v969_v9 = vor.u32 1.1754944e-38, %v968_v12 }
 0x11d   :  { %v944_v15 = vsub.f32 1.0, %v943_v54  ;;  %v13371_v54 = vld [vmem:[#allocation11 + $0x26c] sm:$0xf0]  ;;  %v9755_v3 = vor.u32 %v13375_v30, %v9752_v51  ;;  %v13351_v51 = vld [vmem:[#allocation11 + $0x1d4] sm:$0xf] }
 0x11e   :  { %v9735_v59 = vor.u32 %v13371_v54, %v9734_v16  ;;  %v9840_v54 = vld [vmem:[#allocation11 + $0x3f8] sm:$0xf0]  ;;  %vm967_vm12 = vcmp.eq.f32.partialorder %v966_v2, 8.507059e+37  ;;  %v13355_v30 = vld [vmem:[#allocation11 + $0x1ec] sm:$0xf0] }
 0x11f   :  { %v14302_v22 = vpop.eup %14301  ;;  %v945_v58 = vmul.f32 %v14300_v27, %v944_v15  ;;  %1448 = vmatpush.bf16.msra.mxu3 %v9755_v3  ;;  %v13404_v8 = vld [vmem:[#allocation11 + $0x374] sm:$0xf0]  ;;  %v9686_v19 = vld [vmem:[#allocation11 + $0x190] sm:$0xf] }
 0x120   :  { %v974_v49 = vmul.f32 %v14302_v22, %v940_v60  ;;  %1423 = vmatpush.bf16.msrb.mxu1 %v9735_v59  ;;  %v9736_v60 = vld [vmem:[#allocation11 + $0x270] sm:$0xf0]  ;;  %v9838_v22 = vld [vmem:[#allocation11 + $0x3d8] sm:$0xf]  ;;  %v13347_v12 = vld [vmem:[#allocation11 + $0x1ac] sm:$0xf0] }
 0x121   :  { %v946_v26 = vadd.f32 %v14300_v27, %v945_v58  ;;  %v9739_v21 = vor.u32 %v13367_v56, %v9736_v60  ;;  %v13420_v58 = vld [vmem:[#allocation11 + $0x3f4] sm:$0xf0] }
 0x122   :  { %v9839_v1 = vor.u32 %v13420_v58, %v9838_v22  ;;  %v13408_v22 = vld [vmem:[#allocation11 + $0x39c] sm:$0xf] }
 0x123   :  { %v950_v24 = vsel %vm949_vm7, %v14300_v27, %v946_v26  ;;  %v9719_v27 = vor.u32 %v13363_v41, %v9718_v7  ;;  %1449 = vmatpush.bf16.msra.mxu3 %v9739_v21  ;;  %v13412_v26 = vld [vmem:[#allocation11 + $0x3b4] sm:$0xf0]  ;;  %v970_v7 = vsel %vm967_vm12, %v969_v9, %v965_v17  ;;  %v9824_v58 = vld [vmem:[#allocation11 + $0x3b8] sm:$0xf0]  ;;  %v13339_v9 = vld [vmem:[#allocation11 + $0x16c] sm:$0xf0] }
 0x124   :  { %v955_v55 = vsel %vm952_vm8, %v954_v25, %v950_v24  ;;  %v9823_v16 = vor.u32 %v13412_v26, %v9822_v13  ;;  %v13416_v24 = vld [vmem:[#allocation11 + $0x3dc] sm:$0xf]  ;;  %v9806_v41 = vld [vmem:[#allocation11 + $0x358] sm:$0xf]  ;;  %v9687_v26 = vor.u32 %v13347_v12, %v9686_v19  ;;  %v9656_v19 = vld [vmem:[#allocation11 + $0x130] sm:$0xf0] }
 0x125   :  { %v973_v34 = vmul.f32 0.0, %v955_v55  ;;  %1424 = vmatpush.bf16.msrb.mxu1 %v9719_v27  ;;  %v9702_v55 = vld [vmem:[#allocation11 + $0x1d0] sm:$0xf]  ;;  %v9843_v59 = vor.u32 %v13416_v24, %v9840_v54  ;;  %v9807_v21 = vor.u32 %v13404_v8, %v9806_v41  ;;  %v13396_v13 = vld [vmem:[#allocation11 + $0x334] sm:$0xf0] }
 0x126   :  { %v9703_v56 = vor.u32 %v13355_v30, %v9702_v55  ;;  %v13400_v24 = vld [vmem:[#allocation11 + $0x35c] sm:$0xf]  ;;  %v13335_v55 = vld [vmem:[#allocation11 + $0x154] sm:$0xf]  ;;  %v9774_v30 = vld [vmem:[#allocation11 + $0x2d8] sm:$0xf] }
 0x127   :  { %v15199_v15 = vadd.f32 %v974_v49, %v973_v34  ;;  %v9720_v49 = vld [vmem:[#allocation11 + $0x230] sm:$0xf0]  ;;  %v9808_v54 = vld [vmem:[#allocation11 + $0x378] sm:$0xf0]  ;;  %v9654_v8 = vld [vmem:[#allocation11 + $0x110] sm:$0xf] }
 0x128   :  { %v9723_v25 = vor.u32 %v13359_v6, %v9720_v49  ;;  %1425 = vmatmul.bf16.vlgmr.msrb.gmra.mxu1 %v14864_v4  ;;  %v9704_v34 = vld [vmem:[#allocation11 + $0x1f0] sm:$0xf0]  ;;  %v9827_v6 = vor.u32 %v13408_v22, %v9824_v58  ;;  %v9790_v49 = vld [vmem:[#allocation11 + $0x318] sm:$0xf] }
 0x129   :  { %14303 = vtanh.f32 %v15199_v15  ;;  %1469 = vmatpush.bf16.msra.mxu1 %v9839_v1  ;;  %v9707_v60 = vor.u32 %v13351_v51, %v9704_v34  ;;  %v13343_v1 = vld [vmem:[#allocation11 + $0x194] sm:$0xf]  ;;  %v13388_v51 = vld [vmem:[#allocation11 + $0x2f4] sm:$0xf0] }
 0x12a   :  { %1450 = vmatpush.bf16.msra.mxu3 %v9723_v25  ;;  %v9691_v17 = vor.u32 %v13343_v1, %v9688_v46  ;;  %v9670_v25 = vld [vmem:[#allocation11 + $0x150] sm:$0xf]  ;;  %v9775_v34 = vor.u32 %v13388_v51, %v9774_v30  ;;  %v9758_v22 = vld [vmem:[#allocation11 + $0x298] sm:$0xf]  ;;  %v13384_v1 = vld [vmem:[#allocation11 + $0x2dc] sm:$0xf] }
 0x12b   :  { %v9671_v41 = vor.u32 %v13339_v9, %v9670_v25  ;;  %v13380_v58 = vld [vmem:[#allocation11 + $0x2b4] sm:$0xf0]  ;;  %v9776_v46 = vld [vmem:[#allocation11 + $0x2f8] sm:$0xf0]  ;;  %v9640_v25 = vld [vmem:[#allocation11 + $0xf0] sm:$0xf0] }
 0x12c   :  { %v9759_v12 = vor.u32 %v13380_v58, %v9758_v22  ;;  %v9622_v51 = vld [vmem:[#allocation11 + $0x90] sm:$0xf] }
 0x12d   :  { %1470 = vmatpush.bf16.msra.mxu1 %v9823_v16  ;;  %1451 = vmatmul.bf16.vlgmr.msra.gmra.mxu3 %v14864_v4  ;;  %v9791_v16 = vor.u32 %v13396_v13, %v9790_v49  ;;  %v9811_v4 = vor.u32 %v13400_v24, %v9808_v54  ;;  %v9638_v13 = vld [vmem:[#allocation11 + $0xd0] sm:$0xf]  ;;  %v9742_v24 = vld [vmem:[#allocation11 + $0x258] sm:$0xf] }
 0x12e   :  { %1495 = vmatpush.bf16.msrb.mxu3 %v9843_v59  ;;  %v9672_v59 = vld [vmem:[#allocation11 + $0x170] sm:$0xf0]  ;;  %v13372_v54 = vld [vmem:[#allocation11 + $0x274] sm:$0xf0]  ;;  %v9606_v58 = vld [vmem:[#allocation11 + $0x50] sm:$0xf] }
 0x12f   :  { %v14304_v3 = vpop.eup %14303  ;;  %v9743_v9 = vor.u32 %v13372_v54, %v9742_v24  ;;  %v13295_v24 = vld [vmem:[#allocation11 + $0x14] sm:$0xf] }
 0x130   :  { %v977_v27 = vmul.f32 %v14304_v3, %v970_v7  ;;  %v13392_v3 = vld [vmem:[#allocation11 + $0x31c] sm:$0xf]  ;;  %v9592_v54 = vld [vmem:[#allocation11 + $0x30] sm:$0xf0] }
 0x131   :  { %1471 = vmatpush.bf16.msra.mxu1 %v9807_v21  ;;  %v9792_v7 = vld [vmem:[#allocation11 + $0x338] sm:$0xf0] }
 0x132   :  { %v15216_v2 = vpack.c.bf16 %v977_v27, %v977_v27  ;;  %1496 = vmatpush.bf16.msrb.mxu3 %v9827_v6  ;;  %v9675_v27 = vor.u32 %v13335_v55, %v9672_v59  ;;  %v9795_v21 = vor.u32 %v13392_v3, %v9792_v7  ;;  %v13376_v55 = vld [vmem:[#allocation11 + $0x29c] sm:$0xf]  ;;  %v13311_v3 = vld [vmem:[#allocation11 + $0x94] sm:$0xf] }
 0x133   :  { %v9760_v59 = vld [vmem:[#allocation11 + $0x2b8] sm:$0xf0]  ;;  %v9624_v7 = vld [vmem:[#allocation11 + $0xb0] sm:$0xf0] }
 0x134   :  { %1308 = vmatmul.bf16.vlgmr.msrb.gmra.mxu0 %v15216_v2  ;;  %1334 = vmatmul.bf16.vlgmr.msra.gmra.mxu2 %v15216_v2  ;;  %v9627_v22 = vor.u32 %v13311_v3, %v9624_v7  ;;  %v9595_v3 = vor.u32 %v13295_v24, %v9592_v54 }
 0x135   :  { %1404 = vmatpush.bf16.msrb.mxu0 %v9703_v56  ;;  %1430 = vmatpush.bf16.msra.mxu2 %v9707_v60  ;;  %v13331_v56 = vld [vmem:[#allocation11 + $0x12c] sm:$0xf0]  ;;  %v13327_v60 = vld [vmem:[#allocation11 + $0x114] sm:$0xf] }
 0x136   :  { %1472 = vmatpush.bf16.msra.mxu1 %v9791_v16  ;;  %1497 = vmatpush.bf16.msrb.mxu3 %v9811_v4  ;;  %v9655_v6 = vor.u32 %v13331_v56, %v9654_v8  ;;  %v9659_v49 = vor.u32 %v13327_v60, %v9656_v19  ;;  %v9779_v16 = vor.u32 %v13384_v1, %v9776_v46  ;;  %v13364_v8 = vld [vmem:[#allocation11 + $0x234] sm:$0xf0]  ;;  %v13368_v60 = vld [vmem:[#allocation11 + $0x25c] sm:$0xf]  ;;  %v13303_v1 = vld [vmem:[#allocation11 + $0x54] sm:$0xf] }
 0x137   :  { %v9744_v19 = vld [vmem:[#allocation11 + $0x278] sm:$0xf0]  ;;  %v9608_v46 = vld [vmem:[#allocation11 + $0x70] sm:$0xf0] }
 0x139   :  { %1405 = vmatpush.bf16.msrb.mxu0 %v9687_v26  ;;  %1431 = vmatpush.bf16.msra.mxu2 %v9691_v17  ;;  %v13323_v26 = vld [vmem:[#allocation11 + $0xec] sm:$0xf0]  ;;  %v13319_v17 = vld [vmem:[#allocation11 + $0xd4] sm:$0xf] }
 0x13a   :  { %1473 = vmatpush.bf16.msra.mxu1 %v9775_v34  ;;  %1498 = vmatpush.bf16.msrb.mxu3 %v9795_v21  ;;  %v9639_v4 = vor.u32 %v13323_v26, %v9638_v13  ;;  %v9643_v30 = vor.u32 %v13319_v17, %v9640_v25  ;;  %v13315_v34 = vld [vmem:[#allocation11 + $0xac] sm:$0xf0]  ;;  %v9728_v13 = vld [vmem:[#allocation11 + $0x238] sm:$0xf0]  ;;  %v9611_v17 = vor.u32 %v13303_v1, %v9608_v46 }
 0x13b   :  { %v9623_v21 = vor.u32 %v13315_v34, %v9622_v51  ;;  %v9590_v25 = vld [vmem:[#allocation11 + $0x10] sm:$0xf]  ;;  %v9712_v51 = vld [vmem:[#allocation11 + $0x1f8] sm:$0xf0] }
 0x13c   :  { %v13336_v1 = vld [vmem:[#allocation11 + $0x15c] sm:$0xf] }
 0x13d   :  { %1406 = vmatpush.bf16.msrb.mxu0 %v9671_v41  ;;  %1432 = vmatpush.bf16.msra.mxu2 %v9675_v27  ;;  %v9763_v41 = vor.u32 %v13376_v55, %v9760_v59  ;;  %v9726_v27 = vld [vmem:[#allocation11 + $0x218] sm:$0xf]  ;;  %v14545_v55 = vld [vmem:[#allocation4] sm:$0xf] }
 0x13e   :  { %1474 = vmatpush.bf16.msra.mxu1 %v9759_v12  ;;  %1499 = vmatpush.bf16.msrb.mxu3 %v9779_v16  ;;  %v9727_v56 = vor.u32 %v13364_v8, %v9726_v27  ;;  %v13307_v12 = vld [vmem:[#allocation11 + $0x6c] sm:$0xf0]  ;;  %v9694_v27 = vld [vmem:[#allocation11 + $0x198] sm:$0xf]  ;;  %v9680_v46 = vld [vmem:[#allocation11 + $0x178] sm:$0xf0] }
 0x13f   :  { %v9607_v26 = vor.u32 %v13307_v12, %v9606_v58  ;;  %v13299_v16 = vld [vmem:[#allocation11 + $0x2c] sm:$0xf0]  ;;  %v13348_v8 = vld [vmem:[#allocation11 + $0x1b4] sm:$0xf0] }
 0x140   :  { %v9591_v34 = vor.u32 %v13299_v16, %v9590_v25  ;;  %v9678_v58 = vld [vmem:[#allocation11 + $0x158] sm:$0xf]  ;;  %v9664_v25 = vld [vmem:[#allocation11 + $0x138] sm:$0xf0] }
 0x141   :  { %1407 = vmatpush.bf16.msrb.mxu0 %v9655_v6  ;;  %1433 = vmatpush.bf16.msra.mxu2 %v9659_v49  ;;  %v9747_v6 = vor.u32 %v13368_v60, %v9744_v19  ;;  %v13360_v49 = vld [vmem:[#allocation11 + $0x21c] sm:$0xf]  ;;  %v15223_v19 = vpop.f32.mrf.mxu1  ;;  %v13340_v12 = vld [vmem:[#allocation11 + $0x174] sm:$0xf0] }
 0x142   :  { %1475 = vmatpush.bf16.msra.mxu1 %v9743_v9  ;;  %1500 = vmatpush.bf16.msrb.mxu3 %v9763_v41  ;;  %v9710_v9 = vld [vmem:[#allocation11 + $0x1d8] sm:$0xf]  ;;  %v9731_v59 = vor.u32 %v13360_v49, %v9728_v13  ;;  %v9696_v60 = vld [vmem:[#allocation11 + $0x1b8] sm:$0xf0]  ;;  %v9683_v49 = vor.u32 %v13336_v1, %v9680_v46 }
 0x143   :  { %v9662_v13 = vld [vmem:[#allocation11 + $0x118] sm:$0xf] }
 0x144   :  { %1360 = vmatmul.bf16.vlgmr.msra.gmra.mxu0 %v15216_v2  ;;  %1386 = vmatmul.bf16.vlgmr.msrb.gmra.mxu2 %v15216_v2  ;;  %v9598_v1 = vld [vmem:[#allocation11 + $0x18] sm:$0xf] }
 0x145   :  { %1408 = vmatpush.bf16.msrb.mxu0 %v9639_v4  ;;  %1434 = vmatpush.bf16.msra.mxu2 %v9643_v30  ;;  %v13356_v4 = vld [vmem:[#allocation11 + $0x1f4] sm:$0xf0]  ;;  %v13352_v30 = vld [vmem:[#allocation11 + $0x1dc] sm:$0xf] }
 0x146   :  { %1476 = vmatpush.bf16.msra.mxu1 %v9727_v56  ;;  %1501 = vmatpush.bf16.msrb.mxu3 %v9747_v6  ;;  %v9711_v7 = vor.u32 %v13356_v4, %v9710_v9  ;;  %v9715_v41 = vor.u32 %v13352_v30, %v9712_v51  ;;  %v13344_v56 = vld [vmem:[#allocation11 + $0x19c] sm:$0xf]  ;;  %v9679_v6 = vor.u32 %v13340_v12, %v9678_v58  ;;  %v9646_v9 = vld [vmem:[#allocation11 + $0xd8] sm:$0xf] }
 0x147   :  { %v9648_v4 = vld [vmem:[#allocation11 + $0xf8] sm:$0xf0]  ;;  %v13300_v46 = vld [vmem:[#allocation11 + $0x34] sm:$0xf0] }
 0x149   :  { %1409 = vmatpush.bf16.msrb.mxu0 %v9623_v21  ;;  %1435 = vmatpush.bf16.msra.mxu2 %v9627_v22  ;;  %v9695_v21 = vor.u32 %v13348_v8, %v9694_v27  ;;  %v9699_v22 = vor.u32 %v13344_v56, %v9696_v60  ;;  %v1324_v16 = vpop.f32.mrf.mxu1  ;;  %v9614_v56 = vld [vmem:[#allocation11 + $0x58] sm:$0xf] }
 0x14a   :  { %1477 = vmatmul.bf16.vlgmr.msra.gmra.mxu1 %v14545_v55  ;;  %1502 = vmatpush.bf16.msrb.mxu3 %v9731_v59  ;;  %v13324_v59 = vld [vmem:[#allocation11 + $0xf4] sm:$0xf0]  ;;  %v9599_v16 = vor.u32 %v13300_v46, %v9598_v1  ;;  %v9948_v46 = vld [vmem:[#allocation11 + $0xc0] sm:$0xf] }
 0x14b   :  { %v9647_v30 = vor.u32 %v13324_v59, %v9646_v9  ;;  %v13308_v60 = vld [vmem:[#allocation11 + $0x74] sm:$0xf0]  ;;  %v10044_v59 = vld [vmem:[#allocation11 + $0x180] sm:$0xf] }
 0x14c   :  { %v9615_v58 = vor.u32 %v13308_v60, %v9614_v56  ;;  %v10014_v56 = vld [vmem:[#allocation11 + $0x160] sm:$0xf0] }
 0x14d   :  { %1410 = vmatpush.bf16.msrb.mxu0 %v9607_v26  ;;  %1436 = vmatpush.bf16.msra.mxu2 %v9611_v17  ;;  %v13332_v26 = vld [vmem:[#allocation11 + $0x134] sm:$0xf0]  ;;  %v13328_v17 = vld [vmem:[#allocation11 + $0x11c] sm:$0xf] }
 0x14e   :  { %1503 = vmatmul.bf16.vlgmr.msrb.gmra.mxu3 %v14545_v55  ;;  %v9663_v24 = vor.u32 %v13332_v26, %v9662_v13  ;;  %v9667_v54 = vor.u32 %v13328_v17, %v9664_v25  ;;  %v13320_v55 = vld [vmem:[#allocation11 + $0xdc] sm:$0xf]  ;;  %v10076_v13 = vld [vmem:[#allocation11 + $0x1c0] sm:$0xf]  ;;  %v13477_v17 = vld [vmem:[#allocation11 + $0x1c4] sm:$0xf] }
 0x14f   :  { %v9651_v51 = vor.u32 %v13320_v55, %v9648_v4  ;;  %v13481_v26 = vld [vmem:[#allocation11 + $0x1dc] sm:$0xf0]  ;;  %v10078_v25 = vld [vmem:[#allocation11 + $0x1e0] sm:$0xf0] }
 0x150   :  { %v10081_v9 = vor.u32 %v13477_v17, %v10078_v25  ;;  %v13473_v55 = vld [vmem:[#allocation11 + $0x19c] sm:$0xf0]  ;;  %v13469_v4 = vld [vmem:[#allocation11 + $0x184] sm:$0xf] }
 0x151   :  { %1411 = vmatpush.bf16.msrb.mxu0 %v9591_v34  ;;  %1437 = vmatpush.bf16.msra.mxu2 %v9595_v3  ;;  %v9630_v34 = vld [vmem:[#allocation11 + $0x98] sm:$0xf]  ;;  %v9950_v17 = vld [vmem:[#allocation11 + $0xe0] sm:$0xf0] }
 0x152   :  { %v13316_v3 = vld [vmem:[#allocation11 + $0xb4] sm:$0xf0] }
 0x153   :  { %v9631_v27 = vor.u32 %v13316_v3, %v9630_v34  ;;  %v10012_v3 = vld [vmem:[#allocation11 + $0x140] sm:$0xf] }
 0x154   :  { %1412 = vmatmul.bf16.vlgmr.msrb.gmra.mxu0 %v15216_v2  ;;  %1438 = vmatmul.bf16.vlgmr.msra.gmra.mxu2 %v15216_v2 }
 0x155   :  { %1456 = vmatpush.bf16.msra.mxu0 %v9711_v7  ;;  %1482 = vmatpush.bf16.msrb.mxu2 %v9715_v41  ;;  %v13312_v7 = vld [vmem:[#allocation11 + $0x9c] sm:$0xf] }
 0x156   :  { %v9632_v41 = vld [vmem:[#allocation11 + $0xb8] sm:$0xf0] }
 0x157   :  { %v9635_v8 = vor.u32 %v13312_v7, %v9632_v41  ;;  %v13465_v7 = vld [vmem:[#allocation11 + $0x15c] sm:$0xf0]  ;;  %v13461_v41 = vld [vmem:[#allocation11 + $0x144] sm:$0xf] }
 0x158   :  { %v10017_v60 = vor.u32 %v13461_v41, %v10014_v56  ;;  %v13425_v56 = vld [vmem:[#allocation11 + $0x1c] sm:$0xf0] }
 0x159   :  { %1457 = vmatpush.bf16.msra.mxu0 %v9695_v21  ;;  %1483 = vmatpush.bf16.msrb.mxu2 %v9699_v22  ;;  %v13304_v21 = vld [vmem:[#allocation11 + $0x5c] sm:$0xf] }
 0x15a   :  { %v9616_v22 = vld [vmem:[#allocation11 + $0x78] sm:$0xf0] }
 0x15b   :  { %v9619_v12 = vor.u32 %v13304_v21, %v9616_v22  ;;  %v9980_v21 = vld [vmem:[#allocation11 + $0x100] sm:$0xf]  ;;  %v13453_v22 = vld [vmem:[#allocation11 + $0x104] sm:$0xf] }
 0x15d   :  { %1458 = vmatpush.bf16.msra.mxu0 %v9679_v6  ;;  %1484 = vmatpush.bf16.msrb.mxu2 %v9683_v49  ;;  %v13296_v6 = vld [vmem:[#allocation11 + $0x1c] sm:$0xf] }
 0x15e   :  { %v9600_v49 = vld [vmem:[#allocation11 + $0x38] sm:$0xf0] }
 0x161   :  { %1459 = vmatpush.bf16.msra.mxu0 %v9663_v24  ;;  %1485 = vmatpush.bf16.msrb.mxu2 %v9667_v54  ;;  %v9603_v24 = vor.u32 %v13296_v6, %v9600_v49  ;;  %v10077_v54 = vor.u32 %v13481_v26, %v10076_v13  ;;  %v13449_v6 = vld [vmem:[#allocation11 + $0xdc] sm:$0xf0]  ;;  %v13445_v49 = vld [vmem:[#allocation11 + $0xc4] sm:$0xf] }
 0x162   :  { %v9949_v26 = vor.u32 %v13449_v6, %v9948_v46  ;;  %v9953_v25 = vor.u32 %v13445_v49, %v9950_v17  ;;  %v13478_v6 = vld [vmem:[#allocation11 + $0x1cc] sm:$0xf]  ;;  %v10052_v17 = vld [vmem:[#allocation11 + $0x188] sm:$0xf] }
 0x163   :  { %v10086_v49 = vld [vmem:[#allocation11 + $0x1e8] sm:$0xf0] }
 0x165   :  { %1460 = vmatpush.bf16.msra.mxu0 %v9647_v30  ;;  %1486 = vmatpush.bf16.msrb.mxu2 %v9651_v51  ;;  %v10045_v30 = vor.u32 %v13473_v55, %v10044_v59  ;;  %v10046_v51 = vld [vmem:[#allocation11 + $0x1a0] sm:$0xf0] }
 0x166   :  { %v10049_v34 = vor.u32 %v13469_v4, %v10046_v51  ;;  %v9918_v59 = vld [vmem:[#allocation11 + $0xa0] sm:$0xf0]  ;;  %v15231_v4 = vpop.f32.mrf.mxu1  ;;  %v13433_v51 = vld [vmem:[#allocation11 + $0x5c] sm:$0xf0] }
 0x169   :  { %1461 = vmatpush.bf16.msra.mxu0 %v9631_v27  ;;  %1487 = vmatpush.bf16.msrb.mxu2 %v9635_v8  ;;  %v15229_v27 = vpop.f32.mrf.mxu3  ;;  %v10013_v8 = vor.u32 %v13465_v7, %v10012_v3  ;;  %v9886_v7 = vld [vmem:[#allocation11 + $0x60] sm:$0xf0] }
 0x16d   :  { %1462 = vmatpush.bf16.msra.mxu0 %v9615_v58  ;;  %1488 = vmatpush.bf16.msrb.mxu2 %v9619_v12  ;;  %v9982_v12 = vld [vmem:[#allocation11 + $0x120] sm:$0xf0] }
 0x16e   :  { %v9985_v1 = vor.u32 %v13453_v22, %v9982_v12  ;;  %v9854_v22 = vld [vmem:[#allocation11 + $0x20] sm:$0xf0]  ;;  %v13482_v12 = vld [vmem:[#allocation11 + $0x1e4] sm:$0xf0] }
 0x171   :  { %1463 = vmatpush.bf16.msra.mxu0 %v9599_v16  ;;  %1489 = vmatpush.bf16.msrb.mxu2 %v9603_v24  ;;  %v1350_v13 = vpop.f32.mrf.mxu3  ;;  %v9916_v16 = vld [vmem:[#allocation11 + $0x80] sm:$0xf] }
 0x172   :  { %v13441_v24 = vld [vmem:[#allocation11 + $0x9c] sm:$0xf0]  ;;  %v1376_v13 = vpop.f32.mrf.mxu1 }
 0x173   :  { %v10332_v13 = vld [vmem:[#allocation11 + $0x3c0] sm:$0xf] }
 0x174   :  { %1464 = vmatmul.bf16.vlgmr.msra.gmra.mxu0 %v15216_v2  ;;  %1490 = vmatmul.bf16.vlgmr.msrb.gmra.mxu2 %v15216_v2  ;;  %v13457_v2 = vld [vmem:[#allocation11 + $0x11c] sm:$0xf0] }
 0x175   :  { %2430 = vmatpush.bf16.msrb.mxu0 %v10077_v54  ;;  %2456 = vmatpush.bf16.msra.mxu2 %v10081_v9  ;;  %v9981_v58 = vor.u32 %v13457_v2, %v9980_v21  ;;  %v13437_v54 = vld [vmem:[#allocation11 + $0x84] sm:$0xf]  ;;  %v9917_v9 = vor.u32 %v13441_v24, %v9916_v16  ;;  %v13470_v16 = vld [vmem:[#allocation11 + $0x18c] sm:$0xf] }
 0x176   :  { %v9921_v55 = vor.u32 %v13437_v54, %v9918_v59  ;;  %v10054_v54 = vld [vmem:[#allocation11 + $0x1a8] sm:$0xf0] }
 0x179   :  { %2431 = vmatpush.bf16.msrb.mxu0 %v10045_v30  ;;  %2457 = vmatpush.bf16.msra.mxu2 %v10049_v34  ;;  %v9884_v30 = vld [vmem:[#allocation11 + $0x40] sm:$0xf]  ;;  %v13429_v34 = vld [vmem:[#allocation11 + $0x44] sm:$0xf]  ;;  %v15233_v21 = vpop.f32.mrf.mxu3 }
 0x17a   :  { %v9885_v3 = vor.u32 %v13433_v51, %v9884_v30  ;;  %v9889_v41 = vor.u32 %v13429_v34, %v9886_v7  ;;  %v13466_v30 = vld [vmem:[#allocation11 + $0x164] sm:$0xf0]  ;;  %v13462_v51 = vld [vmem:[#allocation11 + $0x14c] sm:$0xf] }
 0x17b   :  { %v10022_v7 = vld [vmem:[#allocation11 + $0x168] sm:$0xf0] }
 0x17d   :  { %2432 = vmatpush.bf16.msrb.mxu0 %v10013_v8  ;;  %2458 = vmatpush.bf16.msra.mxu2 %v10017_v60  ;;  %v9852_v8 = vld [vmem:[#allocation11] sm:$0xf]  ;;  %v13421_v60 = vld [vmem:[#allocation11 + $0x4] sm:$0xf] }
 0x17e   :  { %v9853_v2 = vor.u32 %v13425_v56, %v9852_v8 }
 0x181   :  { %2433 = vmatpush.bf16.msrb.mxu0 %v9981_v58  ;;  %2459 = vmatpush.bf16.msra.mxu2 %v9985_v1  ;;  %v10084_v58 = vld [vmem:[#allocation11 + $0x1c8] sm:$0xf]  ;;  %v9857_v1 = vor.u32 %v13421_v60, %v9854_v22  ;;  %v1402_v59 = vpop.f32.mrf.mxu3  ;;  %v10025_v60 = vor.u32 %v13462_v51, %v10022_v7 }
 0x182   :  { %v10085_v46 = vor.u32 %v13482_v12, %v10084_v58  ;;  %v9988_v22 = vld [vmem:[#allocation11 + $0x108] sm:$0xf]  ;;  %v13454_v12 = vld [vmem:[#allocation11 + $0x10c] sm:$0xf] }
 0x183   :  { %v13458_v58 = vld [vmem:[#allocation11 + $0x124] sm:$0xf0] }
 0x184   :  { %v9956_v59 = vld [vmem:[#allocation11 + $0xc8] sm:$0xf] }
 0x185   :  { %2434 = vmatpush.bf16.msrb.mxu0 %v9949_v26  ;;  %2460 = vmatpush.bf16.msra.mxu2 %v9953_v25  ;;  %v10089_v26 = vor.u32 %v13478_v6, %v10086_v49  ;;  %v13474_v25 = vld [vmem:[#allocation11 + $0x1a4] sm:$0xf0] }
 0x186   :  { %v10053_v24 = vor.u32 %v13474_v25, %v10052_v17  ;;  %v13541_v25 = vld [vmem:[#allocation11 + $0x3c4] sm:$0xf] }
 0x189   :  { %2435 = vmatpush.bf16.msrb.mxu0 %v9917_v9  ;;  %2461 = vmatpush.bf16.msra.mxu2 %v9921_v55  ;;  %v10057_v9 = vor.u32 %v13470_v16, %v10054_v54  ;;  %v10020_v55 = vld [vmem:[#allocation11 + $0x148] sm:$0xf]  ;;  %v245_v16 = vadd.f32 %v15078_v39, %v15065_v20  ;;  %v13533_v39 = vld [vmem:[#allocation11 + $0x384] sm:$0xf] }
 0x18d   :  { %2436 = vmatpush.bf16.msrb.mxu0 %v9885_v3  ;;  %2462 = vmatpush.bf16.msra.mxu2 %v9889_v41  ;;  %v10021_v3 = vor.u32 %v13466_v30, %v10020_v55  ;;  %v216_v41 = vadd.f32 %v15076_v37, %v15063_v11  ;;  %v13450_v55 = vld [vmem:[#allocation11 + $0xe4] sm:$0xf0]  ;;  %v13446_v30 = vld [vmem:[#allocation11 + $0xcc] sm:$0xf] }
 0x191   :  { %2437 = vmatpush.bf16.msrb.mxu0 %v9853_v2  ;;  %2463 = vmatpush.bf16.msra.mxu2 %v9857_v1  ;;  %v9989_v1 = vor.u32 %v13458_v58, %v9988_v22  ;;  %v10302_v22 = vld [vmem:[#allocation11 + $0x3a0] sm:$0xf0] }
 0x195   :  { %2482 = vmatpush.bf16.msra.mxu0 %v10085_v46  ;;  %2508 = vmatpush.bf16.msrb.mxu2 %v10089_v26  ;;  %v9990_v46 = vld [vmem:[#allocation11 + $0x128] sm:$0xf0]  ;;  %v13545_v26 = vld [vmem:[#allocation11 + $0x3dc] sm:$0xf0] }
 0x196   :  { %v9993_v49 = vor.u32 %v13454_v12, %v9990_v46  ;;  %v10333_v37 = vor.u32 %v13545_v26, %v10332_v13  ;;  %v10305_v12 = vor.u32 %v13533_v39, %v10302_v22  ;;  %v13442_v46 = vld [vmem:[#allocation11 + $0xa4] sm:$0xf0]  ;;  %v9926_v13 = vld [vmem:[#allocation11 + $0xa8] sm:$0xf0]  ;;  %v13521_v22 = vld [vmem:[#allocation11 + $0x31c] sm:$0xf0] }
 0x198   :  { %2443 = vmatpush.bf16.msrb.mxu1 %v10333_v37  ;;  %v10268_v37 = vld [vmem:[#allocation11 + $0x340] sm:$0xf] }
 0x199   :  { %2483 = vmatpush.bf16.msra.mxu0 %v10053_v24  ;;  %2509 = vmatpush.bf16.msrb.mxu2 %v10057_v9 }
 0x19d   :  { %2484 = vmatpush.bf16.msra.mxu0 %v10021_v3  ;;  %2510 = vmatpush.bf16.msrb.mxu2 %v10025_v60  ;;  %v9958_v3 = vld [vmem:[#allocation11 + $0xe8] sm:$0xf0]  ;;  %v13537_v60 = vld [vmem:[#allocation11 + $0x39c] sm:$0xf0] }
 0x1a1   :  { %2485 = vmatpush.bf16.msra.mxu0 %v9989_v1  ;;  %2511 = vmatpush.bf16.msrb.mxu2 %v9993_v49  ;;  %v9924_v1 = vld [vmem:[#allocation11 + $0x88] sm:$0xf]  ;;  %v13438_v49 = vld [vmem:[#allocation11 + $0x8c] sm:$0xf] }
 0x1a5   :  { %v15238_v56 = vpop.f32.mrf.mxu1 }
 0x1b0   :  { %v15243_v54 = vpop.f32.mrf.mxu3 }
 0x1b1   :  { %v1309_v34 = vpop.f32.mrf.mxu0 }
 0x1b2   :  { %v1323_v8 = vadd.f32 %v15223_v19, %v1309_v34  ;;  %v10334_v19 = vld [vmem:[#allocation11 + $0x3e0] sm:$0xf0]  ;;  %v9957_v34 = vor.u32 %v13450_v55, %v9956_v59 }
 0x1b3   :  { %v10337_v9 = vor.u32 %v13541_v25, %v10334_v19  ;;  %v13529_v25 = vld [vmem:[#allocation11 + $0x35c] sm:$0xf0]  ;;  %v13525_v19 = vld [vmem:[#allocation11 + $0x344] sm:$0xf] }
 0x1b4   :  { %v1515_v2 = vadd.f32 %v1323_v8, %v216_v41  ;;  %v9961_v41 = vor.u32 %v13446_v30, %v9958_v3  ;;  %v10300_v8 = vld [vmem:[#allocation11 + $0x380] sm:$0xf]  ;;  %2486 = vmatpush.bf16.msra.mxu0 %v9957_v34  ;;  %v10270_v59 = vld [vmem:[#allocation11 + $0x360] sm:$0xf0]  ;;  %v13434_v34 = vld [vmem:[#allocation11 + $0x64] sm:$0xf0] }
 0x1b5   :  { %2469 = vmatpush.bf16.msra.mxu3 %v10337_v9  ;;  %v10269_v9 = vor.u32 %v13529_v25, %v10268_v37  ;;  %v10273_v55 = vor.u32 %v13525_v19, %v10270_v59  ;;  %v13430_v3 = vld [vmem:[#allocation11 + $0x4c] sm:$0xf] }
 0x1b6   :  { %v9847_v6 = vmul.f32 -1.442695, %v1515_v2  ;;  %v1428_v2 = vpop.f32.mrf.mxu1  ;;  %2512 = vmatpush.bf16.msrb.mxu2 %v9961_v41  ;;  %v9894_v41 = vld [vmem:[#allocation11 + $0x68] sm:$0xf0] }
 0x1b7   :  { %v1335_v17 = vpop.f32.mrf.mxu2  ;;  %v9897_v2 = vor.u32 %v13430_v3, %v9894_v41  ;;  %v13513_v3 = vld [vmem:[#allocation11 + $0x2dc] sm:$0xf0] }
 0x1b8   :  { %14305 = vpow2.f32 %v9847_v6  ;;  %v1349_v24 = vadd.f32 %v15229_v27, %v1335_v17  ;;  %v10301_v27 = vor.u32 %v13537_v60, %v10300_v8  ;;  %v9925_v6 = vor.u32 %v13442_v46, %v9924_v1  ;;  %v1454_v30 = vpop.f32.mrf.mxu3  ;;  %v10238_v1 = vld [vmem:[#allocation11 + $0x320] sm:$0xf0] }
 0x1b9   :  { %v1311_v51 = vpop.f32.mrf.mxu0  ;;  %2470 = vmatpush.bf16.msra.mxu3 %v10305_v12  ;;  %v9929_v17 = vor.u32 %v13438_v49, %v9926_v13  ;;  %v274_v8 = vadd.f32 %v15120_v43, %v15124_v14  ;;  %v9860_v13 = vld [vmem:[#allocation11 + $0x8] sm:$0xf] }
 0x1ba   :  { %v1516_v7 = vadd.f32 %v1349_v24, %v245_v16  ;;  %2444 = vmatpush.bf16.msrb.mxu1 %v10301_v27  ;;  %2487 = vmatpush.bf16.msra.mxu0 %v9925_v6  ;;  %v9892_v51 = vld [vmem:[#allocation11 + $0x48] sm:$0xf]  ;;  %v10236_v27 = vld [vmem:[#allocation11 + $0x300] sm:$0xf] }
 0x1bb   :  { %2513 = vmatpush.bf16.msrb.mxu2 %v9929_v17  ;;  %v9893_v39 = vor.u32 %v13434_v34, %v9892_v51  ;;  %v10237_v12 = vor.u32 %v13521_v22, %v10236_v27  ;;  %v13422_v17 = vld [vmem:[#allocation11 + $0xc] sm:$0xf]  ;;  %v10204_v34 = vld [vmem:[#allocation11 + $0x2c0] sm:$0xf] }
 0x1bc   :  { %v9848_v58 = vmul.f32 -1.442695, %v1516_v7 }
 0x1bd   :  { %2471 = vmatpush.bf16.msra.mxu3 %v10273_v55  ;;  %v303_v55 = vadd.f32 %v15122_v61, %v15126_v57  ;;  %v10205_v61 = vor.u32 %v13513_v3, %v10204_v34 }
 0x1be   :  { %v14306_v26 = vpop.eup %14305  ;;  %14307 = vpow2.f32 %v9848_v58  ;;  %2445 = vmatpush.bf16.msrb.mxu1 %v10269_v9  ;;  %v13517_v58 = vld [vmem:[#allocation11 + $0x304] sm:$0xf]  ;;  %2488 = vmatpush.bf16.msra.mxu0 %v9893_v39 }
 0x1bf   :  { %v15245_v16 = vadd.f32 1.0, %v14306_v26  ;;  %v1337_v24 = vpop.f32.mrf.mxu2  ;;  %2514 = vmatpush.bf16.msrb.mxu2 %v9897_v2  ;;  %v10241_v49 = vor.u32 %v13517_v58, %v10238_v1  ;;  %v13426_v26 = vld [vmem:[#allocation11 + $0x24] sm:$0xf0]  ;;  %v15266_v2 = vld [vmem:[%s16352_s4] sm:$0xf] }
 0x1c0   :  { %v9861_v43 = vor.u32 %v13426_v26, %v9860_v13  ;;  %v10172_v58 = vld [vmem:[#allocation11 + $0x280] sm:$0xf] }
 0x1c1   :  { %14309 = vrcp.f32 %v15245_v16  ;;  %v1361_v7 = vpop.f32.mrf.mxu0  ;;  %2472 = vmatpush.bf16.msra.mxu3 %v10241_v49  ;;  %v1620_v22 = vand.u32 2147483648, %v15245_v16  ;;  %v1618_v13 = vand.u32 2147483647, %v15245_v16  ;;  %vm1614_vm14 = vweird.f32 %v15245_v16 }
 0x1c2   :  { %v1375_v60 = vadd.f32 %v15231_v4, %v1361_v7  ;;  %2446 = vmatpush.bf16.msrb.mxu1 %v10237_v12  ;;  %v9862_v4 = vld [vmem:[#allocation11 + $0x28] sm:$0xf0]  ;;  %2489 = vmatpush.bf16.msra.mxu0 %v9861_v43  ;;  %v13509_v7 = vld [vmem:[#allocation11 + $0x2c4] sm:$0xf] }
 0x1c3   :  { %v9865_v19 = vor.u32 %v13422_v17, %v9862_v4  ;;  %vm1619_vm0 = vcmp.eq.f32.partialorder %v1618_v13, 8.507059e+37  ;;  %v10110_v13 = vld [vmem:[#allocation11 + $0x220] sm:$0xf0] }
 0x1c4   :  { %v14308_v46 = vpop.eup %14307  ;;  %v1517_v6 = vadd.f32 %v1375_v60, %v274_v8  ;;  %v10206_v8 = vld [vmem:[#allocation11 + $0x2e0] sm:$0xf0] }
 0x1c5   :  { %v15251_v37 = vadd.f32 1.0, %v14308_v46  ;;  %2515 = vmatpush.bf16.msrb.mxu2 %v9865_v19  ;;  %v10209_v27 = vor.u32 %v13509_v7, %v10206_v8  ;;  %v13501_v46 = vld [vmem:[#allocation11 + $0x284] sm:$0xf]  ;;  %v10140_v19 = vld [vmem:[#allocation11 + $0x240] sm:$0xf] }
 0x1c6   :  { %v9849_v25 = vmul.f32 -1.442695, %v1517_v6  ;;  %2447 = vmatpush.bf16.msrb.mxu1 %v10205_v61  ;;  %v10174_v6 = vld [vmem:[#allocation11 + $0x2a0] sm:$0xf0] }
 0x1c7   :  { %v15253_v24 = vpop.eup %14309  ;;  %14311 = vrcp.f32 %v15251_v37  ;;  %v1387_v9 = vpop.f32.mrf.mxu2  ;;  %2473 = vmatpush.bf16.msra.mxu3 %v10209_v27  ;;  %v10177_v26 = vor.u32 %v13501_v46, %v10174_v6  ;;  %v13493_v7 = vld [vmem:[#allocation11 + $0x244] sm:$0xf]  ;;  %v1635_v61 = vand.u32 2147483648, %v15251_v37  ;;  %v1633_v27 = vand.u32 2147483647, %v15251_v37 }
 0x1c8   :  { %v15256_v59 = vpop.f32.mrf.mxu1  ;;  %v1610_v30 = vmul.f32 %v15253_v24, %v15245_v16  ;;  %14313 = vpow2.f32 %v9849_v25  ;;  %v1401_v51 = vadd.f32 %v15233_v21, %v1387_v9  ;;  %v13505_v21 = vld [vmem:[#allocation11 + $0x29c] sm:$0xf0]  ;;  %vm1615_vm13 = vweird.f32 %v15253_v24 }
 0x1c9   :  { %v1363_v41 = vpop.f32.mrf.mxu0  ;;  %v10173_v1 = vor.u32 %v13505_v21, %v10172_v58  ;;  %v1521_v25 = vperm.slane %v15266_v2, 0  ;;  %v13497_v9 = vld [vmem:[#allocation11 + $0x25c] sm:$0xf0]  ;;  %vm15280_vm15 = vmor %vm1614_vm14, %vm1615_vm13  ;;  %vm1629_vm2 = vweird.f32 %v15251_v37  ;;  %vm1634_vm4 = vcmp.eq.f32.partialorder %v1633_v27, 8.507059e+37 }
 0x1ca   :  { %v1611_v60 = vsub.f32 1.0, %v1610_v30  ;;  %v1518_v39 = vadd.f32 %v1401_v51, %v303_v55  ;;  %v1621_v51 = vor.u32 1.1754944e-38, %v1620_v22  ;;  %v10142_v41 = vld [vmem:[#allocation11 + $0x260] sm:$0xf0]  ;;  %v10340_v30 = vld [vmem:[#allocation11 + $0x3c8] sm:$0xf] }
 0x1cb   :  { %2448 = vmatpush.bf16.msrb.mxu1 %v10173_v1  ;;  %2474 = vmatpush.bf16.msra.mxu3 %v10177_v26 }
 0x1cc   :  { %v1612_v12 = vmul.f32 %v15253_v24, %v1611_v60  ;;  %14315 = vtanh.f32 %v1518_v39  ;;  %v10141_v60 = vor.u32 %v13497_v9, %v10140_v19  ;;  %v10145_v39 = vor.u32 %v13493_v7, %v10142_v41  ;;  %v10342_v41 = vld [vmem:[#allocation11 + $0x3e8] sm:$0xf0] }
 0x1cd   :  { %v14312_v49 = vpop.eup %14311 }
 0x1ce   :  { %v14314_v17 = vpop.eup %14313  ;;  %v1625_v43 = vmul.f32 %v14312_v49, %v15251_v37  ;;  %v1613_v4 = vadd.f32 %v15253_v24, %v1612_v12  ;;  %vm1630_vm1 = vweird.f32 %v14312_v49  ;;  %v13542_v37 = vld [vmem:[#allocation11 + $0x3cc] sm:$0xf] }
 0x1cf   :  { %v15276_v55 = vadd.f32 1.0, %v14314_v17  ;;  %v1389_v34 = vpop.f32.mrf.mxu2  ;;  %2449 = vmatpush.bf16.msrb.mxu1 %v10141_v60  ;;  %2475 = vmatpush.bf16.msra.mxu3 %v10145_v39  ;;  %v13489_v17 = vld [vmem:[#allocation11 + $0x21c] sm:$0xf0]  ;;  %vm1631_vm3 = vmor %vm1629_vm2, %vm1630_vm1  ;;  %v1522_v60 = vperm.slane %v15266_v2, 1  ;;  %v10345_v39 = vor.u32 %v13542_v37, %v10342_v41 }
 0x1d0   :  { %v1480_v3 = vpop.f32.mrf.mxu1  ;;  %v1626_v8 = vsub.f32 1.0, %v1625_v43  ;;  %v1617_v16 = vsel %vm15280_vm15, %v15253_v24, %v1613_v4  ;;  %v10108_v24 = vld [vmem:[#allocation11 + $0x200] sm:$0xf]  ;;  %v13485_v43 = vld [vmem:[#allocation11 + $0x204] sm:$0xf]  ;;  %v1636_v4 = vor.u32 1.1754944e-38, %v1635_v61 }
 0x1d1   :  { %14317 = vrcp.f32 %v15276_v55  ;;  %v1413_v22 = vpop.f32.mrf.mxu0  ;;  %v1622_v12 = vsel %vm1619_vm0, %v1621_v51, %v1617_v16  ;;  %v10109_v19 = vor.u32 %v13489_v17, %v10108_v24  ;;  %v10113_v9 = vor.u32 %v13485_v43, %v10110_v13  ;;  %v13546_v51 = vld [vmem:[#allocation11 + $0x3e4] sm:$0xf0]  ;;  %v15292_v3 = vpop.f32.mrf.mxu3 }
 0x1d2   :  { %v14316_v58 = vpop.eup %14315  ;;  %v1627_v21 = vmul.f32 %v14312_v49, %v1626_v8  ;;  %v1427_v46 = vadd.f32 %v15238_v56, %v1413_v22  ;;  %v10341_v7 = vor.u32 %v13546_v51, %v10340_v30  ;;  %v13538_v22 = vld [vmem:[#allocation11 + $0x3a4] sm:$0xf0]  ;;  %v1648_v43 = vand.u32 2147483647, %v15276_v55 }
 0x1d3   :  { %v1656_v6 = vmul.f32 %v14316_v58, %v1622_v12  ;;  %2450 = vmatpush.bf16.msrb.mxu1 %v10109_v19  ;;  %2476 = vmatpush.bf16.msra.mxu3 %v10113_v9  ;;  %v13534_v12 = vld [vmem:[#allocation11 + $0x38c] sm:$0xf]  ;;  %v13530_v19 = vld [vmem:[#allocation11 + $0x364] sm:$0xf0]  ;;  %vm1644_vm6 = vweird.f32 %v15276_v55 }
 0x1d4   :  { %v1628_v1 = vadd.f32 %v14312_v49, %v1627_v21  ;;  %v1529_v26 = vadd.f32 %v1521_v25, %v1427_v46  ;;  %v10310_v46 = vld [vmem:[#allocation11 + $0x3a8] sm:$0xf0]  ;;  %vm1649_vm8 = vcmp.eq.f32.partialorder %v1648_v43, 8.507059e+37 }
 0x1d5   :  { %v10313_v17 = vor.u32 %v13534_v12, %v10310_v46  ;;  %v13526_v9 = vld [vmem:[#allocation11 + $0x34c] sm:$0xf]  ;;  %v10094_v12 = vld [vmem:[#allocation11 + $0x1f0] sm:$0xf0] }
 0x1d6   :  { %v1632_v34 = vsel %vm1631_vm3, %v14312_v49, %v1628_v1  ;;  %v9844_v56 = vmul.f32 -1.442695, %v1529_v26  ;;  %v10308_v49 = vld [vmem:[#allocation11 + $0x388] sm:$0xf] }
 0x1d7   :  { %v14318_v25 = vpop.eup %14317  ;;  %v1637_v8 = vsel %vm1634_vm4, %v1636_v4, %v1632_v34  ;;  %v1439_v16 = vpop.f32.mrf.mxu2  ;;  %2495 = vmatpush.bf16.msra.mxu1 %v10341_v7  ;;  %2521 = vmatpush.bf16.msrb.mxu3 %v10345_v39  ;;  %v10309_v26 = vor.u32 %v13538_v22, %v10308_v49  ;;  %v13483_v39 = vld [vmem:[#allocation11 + $0x1ec] sm:$0xf0]  ;;  %v13522_v49 = vld [vmem:[#allocation11 + $0x324] sm:$0xf0]  ;;  %v13518_v22 = vld [vmem:[#allocation11 + $0x30c] sm:$0xf] }
 0x1d8   :  { %v1640_v61 = vmul.f32 %v14318_v25, %v15276_v55  ;;  %v1655_v27 = vmul.f32 %v1637_v8, %v15199_v15  ;;  %14319 = vpow2.f32 %v9844_v56  ;;  %v1453_v58 = vadd.f32 %v15243_v54, %v1439_v16  ;;  %v10276_v54 = vld [vmem:[#allocation11 + $0x348] sm:$0xf] }
 0x1d9   :  { %v1415_v21 = vpop.f32.mrf.mxu0  ;;  %v1650_v15 = vand.u32 2147483648, %v15276_v55  ;;  %vm1645_vm5 = vweird.f32 %v14318_v25  ;;  %v10277_v51 = vor.u32 %v13530_v19, %v10276_v54  ;;  %v1506_v7 = vpop.f32.mrf.mxu3  ;;  %v10246_v55 = vld [vmem:[#allocation11 + $0x328] sm:$0xf0]  ;;  %v13471_v19 = vld [vmem:[#allocation11 + $0x194] sm:$0xf] }
 0x1da   :  { %v1641_v24 = vsub.f32 1.0, %v1640_v61  ;;  %v15298_v1 = vadd.f32 %v1656_v6, %v1655_v27  ;;  %v1530_v13 = vadd.f32 %v1522_v60, %v1453_v58  ;;  %v10278_v6 = vld [vmem:[#allocation11 + $0x368] sm:$0xf0]  ;;  %vm1646_vm7 = vmor %vm1644_vm6, %vm1645_vm5  ;;  %v10092_v60 = vld [vmem:[#allocation11 + $0x1d0] sm:$0xf] }
 0x1db   :  { %2496 = vmatpush.bf16.msra.mxu1 %v10309_v26  ;;  %2522 = vmatpush.bf16.msrb.mxu3 %v10313_v17  ;;  %v10281_v37 = vor.u32 %v13526_v9, %v10278_v6  ;;  %v1651_v41 = vor.u32 1.1754944e-38, %v1650_v15  ;;  %v10244_v27 = vld [vmem:[#allocation11 + $0x308] sm:$0xf]  ;;  %v13479_v21 = vld [vmem:[#allocation11 + $0x1d4] sm:$0xf]  ;;  %v10249_v26 = vor.u32 %v13518_v22, %v10246_v55  ;;  %v10093_v43 = vor.u32 %v13483_v39, %v10092_v60 }
 0x1dc   :  { %v1642_v4 = vmul.f32 %v14318_v25, %v1641_v24  ;;  %14321 = vtanh.f32 %v15298_v1  ;;  %v9845_v30 = vmul.f32 -1.442695, %v1530_v13  ;;  %v10245_v24 = vor.u32 %v13522_v49, %v10244_v27  ;;  %v10060_v13 = vld [vmem:[#allocation11 + $0x190] sm:$0xf]  ;;  %v10062_v9 = vld [vmem:[#allocation11 + $0x1b0] sm:$0xf0] }
 0x1dd   :  { %v10097_v15 = vor.u32 %v13479_v21, %v10094_v12  ;;  %v13514_v6 = vld [vmem:[#allocation11 + $0x2e4] sm:$0xf0]  ;;  %v10214_v7 = vld [vmem:[#allocation11 + $0x2e8] sm:$0xf0]  ;;  %v13467_v60 = vld [vmem:[#allocation11 + $0x16c] sm:$0xf0] }
 0x1de   :  { %v14320_v34 = vpop.eup %14319  ;;  %v1643_v56 = vadd.f32 %v14318_v25, %v1642_v4  ;;  %14323 = vpow2.f32 %v9845_v30  ;;  %v13475_v4 = vld [vmem:[#allocation11 + $0x1ac] sm:$0xf0]  ;;  %v10212_v30 = vld [vmem:[#allocation11 + $0x2c8] sm:$0xf]  ;;  %v13463_v39 = vld [vmem:[#allocation11 + $0x154] sm:$0xf] }
 0x1df   :  { %v15305_v8 = vadd.f32 1.0, %v14320_v34  ;;  %v1441_v16 = vpop.f32.mrf.mxu2  ;;  %2497 = vmatpush.bf16.msra.mxu1 %v10277_v51  ;;  %2523 = vmatpush.bf16.msrb.mxu3 %v10281_v37  ;;  %v13510_v34 = vld [vmem:[#allocation11 + $0x2cc] sm:$0xf]  ;;  %v10061_v37 = vor.u32 %v13475_v4, %v10060_v13  ;;  %v10030_v27 = vld [vmem:[#allocation11 + $0x170] sm:$0xf0] }
 0x1e0   :  { %v1647_v61 = vsel %vm1646_vm7, %v14318_v25, %v1643_v56  ;;  %v10213_v56 = vor.u32 %v13514_v6, %v10212_v30  ;;  %v10028_v16 = vld [vmem:[#allocation11 + $0x150] sm:$0xf]  ;;  %v10217_v49 = vor.u32 %v13510_v34, %v10214_v7  ;;  %v10180_v22 = vld [vmem:[#allocation11 + $0x288] sm:$0xf]  ;;  %v13502_v12 = vld [vmem:[#allocation11 + $0x28c] sm:$0xf]  ;;  %v10033_v13 = vor.u32 %v13463_v39, %v10030_v27 }
 0x1e1   :  { %v1652_v58 = vsel %vm1649_vm8, %v1651_v41, %v1647_v61  ;;  %14325 = vrcp.f32 %v15305_v8  ;;  %v10065_v41 = vor.u32 %v13471_v19, %v10062_v9  ;;  %v10182_v55 = vld [vmem:[#allocation11 + $0x2a8] sm:$0xf0]  ;;  %v13455_v4 = vld [vmem:[#allocation11 + $0x114] sm:$0xf]  ;;  %v10148_v19 = vld [vmem:[#allocation11 + $0x248] sm:$0xf]  ;;  %vm1550_vm11 = vweird.f32 %v15305_v8 }
 0x1e2   :  { %v14322_v46 = vpop.eup %14321  ;;  %v13498_v9 = vld [vmem:[#allocation11 + $0x264] sm:$0xf0]  ;;  %v13494_v30 = vld [vmem:[#allocation11 + $0x24c] sm:$0xf] }
 0x1e3   :  { %v1659_v17 = vmul.f32 %v14322_v46, %v1652_v58  ;;  %2498 = vmatpush.bf16.msra.mxu1 %v10245_v24  ;;  %2524 = vmatpush.bf16.msrb.mxu3 %v10249_v26  ;;  %v13506_v58 = vld [vmem:[#allocation11 + $0x2a4] sm:$0xf0]  ;;  %v1523_v46 = vperm.slane %v15266_v2, 2  ;;  %v9996_v24 = vld [vmem:[#allocation11 + $0x110] sm:$0xf]  ;;  %v10149_v7 = vor.u32 %v13498_v9, %v10148_v19 }
 0x1e4   :  { %v14324_v25 = vpop.eup %14323  ;;  %v10181_v21 = vor.u32 %v13506_v58, %v10180_v22  ;;  %v13459_v26 = vld [vmem:[#allocation11 + $0x12c] sm:$0xf0]  ;;  %v10150_v6 = vld [vmem:[#allocation11 + $0x268] sm:$0xf0]  ;;  %v13447_v58 = vld [vmem:[#allocation11 + $0xd4] sm:$0xf] }
 0x1e5   :  { %v15308_v54 = vpack.c.bf16 %v1659_v17, %v1659_v17  ;;  %v15310_v51 = vadd.f32 1.0, %v14324_v25  ;;  %v10185_v17 = vor.u32 %v13502_v12, %v10182_v55  ;;  %v9998_v25 = vld [vmem:[#allocation11 + $0x130] sm:$0xf0]  ;;  %v9997_v39 = vor.u32 %v13459_v26, %v9996_v24  ;;  %v13490_v19 = vld [vmem:[#allocation11 + $0x224] sm:$0xf0] }
 0x1e6   :  { %v10001_v27 = vor.u32 %v13455_v4, %v9998_v25  ;;  %v9969_v26 = vor.u32 %v13447_v58, %v9966_v0  ;;  %v13439_v25 = vld [vmem:[#allocation11 + $0x94] sm:$0xf] }
 0x1e7   :  { %2438 = vmatmul.bf16.vlgmr.msrb.gmra.mxu0 %v15308_v54  ;;  %2464 = vmatmul.bf16.vlgmr.msra.gmra.mxu2 %v15308_v54  ;;  %14327 = vrcp.f32 %v15310_v51  ;;  %v15315_v61 = vpop.eup %14325  ;;  %vm1565_vm12 = vweird.f32 %v15310_v51  ;;  %v1569_v58 = vand.u32 2147483647, %v15310_v51 }
 0x1e8   :  { %2534 = vmatpush.bf16.msrb.mxu0 %v10093_v43  ;;  %2560 = vmatpush.bf16.msra.mxu2 %v10097_v15  ;;  %v1546_v43 = vmul.f32 %v15315_v61, %v15305_v8  ;;  %v10029_v15 = vor.u32 %v13467_v60, %v10028_v16  ;;  %v10153_v16 = vor.u32 %v13494_v30, %v10150_v6  ;;  %v9934_v30 = vld [vmem:[#allocation11 + $0xb0] sm:$0xf0]  ;;  %vm1551_vm9 = vweird.f32 %v15315_v61 }
 0x1e9   :  { %2499 = vmatpush.bf16.msra.mxu1 %v10213_v56  ;;  %2525 = vmatpush.bf16.msrb.mxu3 %v10217_v49  ;;  %v10121_v6 = vor.u32 %v13486_v63, %v10118_v52  ;;  %v13435_v52 = vld [vmem:[#allocation11 + $0x6c] sm:$0xf0]  ;;  %v1571_v63 = vand.u32 2147483648, %v15310_v51  ;;  %vm15341_vm13 = vmor %vm1550_vm11, %vm1551_vm9  ;;  %vm1570_vm0 = vcmp.eq.f32.partialorder %v1569_v58, 8.507059e+37  ;;  %v10036_v58 = vld [vmem:[#allocation11 + $0x158] sm:$0xf] }
 0x1ea   :  { %v1547_v60 = vsub.f32 1.0, %v1546_v43 }
 0x1ec   :  { %2535 = vmatpush.bf16.msrb.mxu0 %v10061_v37  ;;  %2561 = vmatpush.bf16.msra.mxu2 %v10065_v41  ;;  %v9964_v37 = vld [vmem:[#allocation11 + $0xd0] sm:$0xf]  ;;  %v1548_v24 = vmul.f32 %v15315_v61, %v1547_v60  ;;  %v9902_v60 = vld [vmem:[#allocation11 + $0x70] sm:$0xf0] }
 0x1ed   :  { %2500 = vmatpush.bf16.msra.mxu1 %v10181_v21  ;;  %v15320_v34 = vpop.eup %14327  ;;  %v13451_v41 = vld [vmem:[#allocation11 + $0xec] sm:$0xf0]  ;;  %2526 = vmatpush.bf16.msrb.mxu3 %v10185_v17  ;;  %v10116_v21 = vld [vmem:[#allocation11 + $0x208] sm:$0xf] }
 0x1ee   :  { %v1561_v49 = vmul.f32 %v15320_v34, %v15310_v51  ;;  %v10117_v9 = vor.u32 %v13490_v19, %v10116_v21  ;;  %v9965_v17 = vor.u32 %v13451_v41, %v9964_v37  ;;  %v1549_v0 = vadd.f32 %v15315_v61, %v1548_v24  ;;  %v9900_v37 = vld [vmem:[#allocation11 + $0x50] sm:$0xf] }
 0x1ef   :  { %vm1566_vm10 = vweird.f32 %v15320_v34  ;;  %v1556_v41 = vand.u32 2147483648, %v15305_v8  ;;  %v9868_v19 = vld [vmem:[#allocation11 + $0x10] sm:$0xf]  ;;  %v1572_v24 = vor.u32 1.1754944e-38, %v1571_v63  ;;  %v10070_v63 = vld [vmem:[#allocation11 + $0x1b8] sm:$0xf0] }
 0x1f0   :  { %2536 = vmatpush.bf16.msrb.mxu0 %v10029_v15  ;;  %2562 = vmatpush.bf16.msra.mxu2 %v10033_v13  ;;  %v1562_v12 = vsub.f32 1.0, %v1561_v49  ;;  %v13443_v13 = vld [vmem:[#allocation11 + $0xac] sm:$0xf0]  ;;  %vm15349_vm14 = vmor %vm1565_vm12, %vm1566_vm10 }
 0x1f1   :  { %v1465_v56 = vpop.f32.mrf.mxu0  ;;  %2501 = vmatpush.bf16.msra.mxu1 %v10149_v7  ;;  %2527 = vmatpush.bf16.msrb.mxu3 %v10153_v16  ;;  %v13431_v16 = vld [vmem:[#allocation11 + $0x54] sm:$0xf] }
 0x1f2   :  { %v1479_v22 = vadd.f32 %v15256_v59, %v1465_v56  ;;  %v1524_v56 = vperm.slane %v15266_v2, 3  ;;  %v1563_v43 = vmul.f32 %v15320_v34, %v1562_v12  ;;  %v13464_v12 = vld [vmem:[#allocation11 + $0x15c] sm:$0xf] }
 0x1f4   :  { %v1531_v55 = vadd.f32 %v1523_v46, %v1479_v22  ;;  %2537 = vmatpush.bf16.msrb.mxu0 %v9997_v39  ;;  %2563 = vmatpush.bf16.msra.mxu2 %v10001_v27  ;;  %v9932_v46 = vld [vmem:[#allocation11 + $0x90] sm:$0xf]  ;;  %v1564_v22 = vadd.f32 %v15320_v34, %v1563_v43  ;;  %v1554_v27 = vand.u32 2147483647, %v15305_v8  ;;  %v13423_v43 = vld [vmem:[#allocation11 + $0x14] sm:$0xf] }
 0x1f5   :  { %2502 = vmatpush.bf16.msra.mxu1 %v10117_v9  ;;  %v9933_v49 = vor.u32 %v13443_v13, %v9932_v46  ;;  %2528 = vmatpush.bf16.msrb.mxu3 %v10121_v6  ;;  %v13427_v9 = vld [vmem:[#allocation11 + $0x2c] sm:$0xf0]  ;;  %v10100_v46 = vld [vmem:[#allocation11 + $0x1d8] sm:$0xf] }
 0x1f6   :  { %v9846_v59 = vmul.f32 -1.442695, %v1531_v55  ;;  %v9901_v55 = vor.u32 %v13435_v52, %v9900_v37  ;;  %v1568_v8 = vsel %vm15349_vm14, %v15320_v34, %v1564_v22  ;;  %v13484_v13 = vld [vmem:[#allocation11 + $0x1f4] sm:$0xf0]  ;;  %vm1555_vm15 = vcmp.eq.f32.partialorder %v1554_v27, 8.507059e+37 }
 0x1f7   :  { %v1491_v15 = vpop.f32.mrf.mxu2  ;;  %2490 = vmatmul.bf16.vlgmr.msra.gmra.mxu0 %v15308_v54  ;;  %2516 = vmatmul.bf16.vlgmr.msrb.gmra.mxu2 %v15308_v54  ;;  %v1573_v6 = vsel %vm1570_vm0, %v1572_v24, %v1568_v8  ;;  %v10068_v22 = vld [vmem:[#allocation11 + $0x198] sm:$0xf]  ;;  %v13472_v52 = vld [vmem:[#allocation11 + $0x19c] sm:$0xf] }
 0x1f8   :  { %14329 = vpow2.f32 %v9846_v59  ;;  %v1505_v4 = vadd.f32 %v15292_v3, %v1491_v15  ;;  %2538 = vmatpush.bf16.msrb.mxu0 %v9965_v17  ;;  %2564 = vmatpush.bf16.msra.mxu2 %v9969_v26  ;;  %v9937_v3 = vor.u32 %v13439_v25, %v9934_v30  ;;  %v9905_v17 = vor.u32 %v13431_v16, %v9902_v60  ;;  %v9870_v15 = vld [vmem:[#allocation11 + $0x30] sm:$0xf0]  ;;  %v13456_v24 = vld [vmem:[#allocation11 + $0x11c] sm:$0xf] }
 0x1f9   :  { %v1467_v2 = vpop.f32.mrf.mxu0  ;;  %v1557_v26 = vor.u32 1.1754944e-38, %v1556_v41  ;;  %v1591_v37 = vmul.f32 0.0, %v1573_v6  ;;  %v10073_v27 = vor.u32 %v13472_v52, %v10070_v63 }
 0x1fa   :  { %v1532_v7 = vadd.f32 %v1524_v56, %v1505_v4  ;;  %v1553_v56 = vsel %vm15341_vm13, %v15315_v61, %v1549_v0  ;;  %v13480_v4 = vld [vmem:[#allocation11 + $0x1dc] sm:$0xf]  ;;  %v9869_v2 = vor.u32 %v13427_v9, %v9868_v19 }
 0x1fb   :  { %v10102_v61 = vld [vmem:[#allocation11 + $0x1f8] sm:$0xf0]  ;;  %v1558_v30 = vsel %vm1555_vm15, %v1557_v26, %v1553_v56 }
 0x1fc   :  { %14331 = vtanh.f32 %v1532_v7  ;;  %2539 = vmatpush.bf16.msrb.mxu0 %v9933_v49  ;;  %2565 = vmatpush.bf16.msra.mxu2 %v9937_v3  ;;  %v9873_v7 = vor.u32 %v13423_v43, %v9870_v15  ;;  %v10101_v49 = vor.u32 %v13484_v13, %v10100_v46  ;;  %v10105_v0 = vor.u32 %v13480_v4, %v10102_v61  ;;  %v13476_v3 = vld [vmem:[#allocation11 + $0x1b4] sm:$0xf0]  ;;  %v10006_v26 = vld [vmem:[#allocation11 + $0x138] sm:$0xf0]  ;;  %v10348_v13 = vld [vmem:[#allocation11 + $0x3d0] sm:$0xf] }
 0x1fd   :  { %v10069_v39 = vor.u32 %v13476_v3, %v10068_v22  ;;  %v10004_v43 = vld [vmem:[#allocation11 + $0x118] sm:$0xf]  ;;  %v13547_v61 = vld [vmem:[#allocation11 + $0x3ec] sm:$0xf0]  ;;  %v13448_v3 = vld [vmem:[#allocation11 + $0xdc] sm:$0xf] }
 0x1fe   :  { %v14330_v21 = vpop.eup %14329  ;;  %v13460_v15 = vld [vmem:[#allocation11 + $0x134] sm:$0xf0] }
 0x1ff   :  { %v15353_v59 = vadd.f32 1.0, %v14330_v21  ;;  %v1493_v51 = vpop.f32.mrf.mxu2  ;;  %v13468_v21 = vld [vmem:[#allocation11 + $0x174] sm:$0xf0]  ;;  %v10005_v6 = vor.u32 %v13460_v15, %v10004_v43  ;;  %v13531_v43 = vld [vmem:[#allocation11 + $0x36c] sm:$0xf0] }
 0x200   :  { %2540 = vmatpush.bf16.msrb.mxu0 %v9901_v55  ;;  %2566 = vmatpush.bf16.msra.mxu2 %v9905_v17  ;;  %v10038_v55 = vld [vmem:[#allocation11 + $0x178] sm:$0xf0]  ;;  %v10037_v56 = vor.u32 %v13468_v21, %v10036_v58  ;;  %v13452_v22 = vld [vmem:[#allocation11 + $0xf4] sm:$0xf0]  ;;  %v13535_v21 = vld [vmem:[#allocation11 + $0x394] sm:$0xf] }
 0x201   :  { %14333 = vrcp.f32 %v15353_v59  ;;  %v1586_v9 = vand.u32 2147483648, %v15353_v59  ;;  %v1584_v51 = vand.u32 2147483647, %v15353_v59  ;;  %v10041_v17 = vor.u32 %v13464_v12, %v10038_v55  ;;  %v10318_v12 = vld [vmem:[#allocation11 + $0x3b0] sm:$0xf0] }
 0x202   :  { %v14332_v25 = vpop.eup %14331  ;;  %vm1580_vm2 = vweird.f32 %v15353_v59  ;;  %v9940_v55 = vld [vmem:[#allocation11 + $0x98] sm:$0xf] }
 0x203   :  { %v1592_v34 = vmul.f32 %v14332_v25, %v1558_v30  ;;  %v1587_v4 = vor.u32 1.1754944e-38, %v1586_v9  ;;  %v13543_v25 = vld [vmem:[#allocation11 + $0x3d4] sm:$0xf]  ;;  %vm1585_vm4 = vcmp.eq.f32.partialorder %v1584_v51, 8.507059e+37  ;;  %v13440_v9 = vld [vmem:[#allocation11 + $0x9c] sm:$0xf]  ;;  %v10321_v51 = vor.u32 %v13535_v21, %v10318_v12 }
 0x204   :  { %2541 = vmatpush.bf16.msrb.mxu0 %v9869_v2  ;;  %2567 = vmatpush.bf16.msra.mxu2 %v9873_v7  ;;  %v10350_v2 = vld [vmem:[#allocation11 + $0x3f0] sm:$0xf0]  ;;  %v9972_v7 = vld [vmem:[#allocation11 + $0xd8] sm:$0xf]  ;;  %v13515_v12 = vld [vmem:[#allocation11 + $0x2ec] sm:$0xf0] }
 0x205   :  { %v15362_v16 = vadd.f32 %v1592_v34, %v1591_v37  ;;  %v10009_v34 = vor.u32 %v13456_v24, %v10006_v26  ;;  %v9974_v37 = vld [vmem:[#allocation11 + $0xf8] sm:$0xf0]  ;;  %v10353_v63 = vor.u32 %v13543_v25, %v10350_v2  ;;  %v13527_v26 = vld [vmem:[#allocation11 + $0x354] sm:$0xf]  ;;  %v13523_v2 = vld [vmem:[#allocation11 + $0x32c] sm:$0xf0] }
 0x206   :  { %v9977_v58 = vor.u32 %v13448_v3, %v9974_v37  ;;  %v9910_v25 = vld [vmem:[#allocation11 + $0x78] sm:$0xf0]  ;;  %v9876_v3 = vld [vmem:[#allocation11 + $0x18] sm:$0xf] }
 0x207   :  { %v14334_v41 = vpop.eup %14333  ;;  %2542 = vmatmul.bf16.vlgmr.msrb.gmra.mxu0 %v15308_v54  ;;  %2568 = vmatmul.bf16.vlgmr.msra.gmra.mxu2 %v15308_v54  ;;  %14335 = vtanh.f32 %v15362_v16  ;;  %v13428_v37 = vld [vmem:[#allocation11 + $0x34] sm:$0xf0] }
 0x208   :  { %v1576_v60 = vmul.f32 %v14334_v41, %v15353_v59  ;;  %2586 = vmatpush.bf16.msra.mxu0 %v10101_v49  ;;  %2612 = vmatpush.bf16.msrb.mxu2 %v10105_v0  ;;  %vm1581_vm1 = vweird.f32 %v14334_v41  ;;  %v10349_v59 = vor.u32 %v13547_v61, %v10348_v13  ;;  %v9908_v13 = vld [vmem:[#allocation11 + $0x58] sm:$0xf]  ;;  %v13432_v61 = vld [vmem:[#allocation11 + $0x5c] sm:$0xf] }
 0x209   :  { %vm1582_vm3 = vmor %vm1580_vm2, %vm1581_vm1 }
 0x20a   :  { %v1577_v19 = vsub.f32 1.0, %v1576_v60  ;;  %v10316_v60 = vld [vmem:[#allocation11 + $0x390] sm:$0xf] }
 0x20c   :  { %v1578_v8 = vmul.f32 %v14334_v41, %v1577_v19  ;;  %2587 = vmatpush.bf16.msra.mxu0 %v10069_v39  ;;  %2613 = vmatpush.bf16.msrb.mxu2 %v10073_v27  ;;  %v13539_v39 = vld [vmem:[#allocation11 + $0x3ac] sm:$0xf0]  ;;  %v9973_v27 = vor.u32 %v13452_v22, %v9972_v7  ;;  %v13444_v19 = vld [vmem:[#allocation11 + $0xb4] sm:$0xf0]  ;;  %v10254_v22 = vld [vmem:[#allocation11 + $0x330] sm:$0xf0] }
 0x20d   :  { %v14336_v49 = vpop.eup %14335  ;;  %v9941_v15 = vor.u32 %v13444_v19, %v9940_v55  ;;  %v13511_v55 = vld [vmem:[#allocation11 + $0x2d4] sm:$0xf] }
 0x20e   :  { %v1579_v46 = vadd.f32 %v14334_v41, %v1578_v8  ;;  %v10317_v8 = vor.u32 %v13539_v39, %v10316_v60  ;;  %v10222_v19 = vld [vmem:[#allocation11 + $0x2f0] sm:$0xf0] }
 0x210   :  { %v1583_v30 = vsel %vm1582_vm3, %v14334_v41, %v1579_v46  ;;  %2588 = vmatpush.bf16.msra.mxu0 %v10037_v56  ;;  %2614 = vmatpush.bf16.msrb.mxu2 %v10041_v17  ;;  %v9942_v56 = vld [vmem:[#allocation11 + $0xb8] sm:$0xf0]  ;;  %v10284_v17 = vld [vmem:[#allocation11 + $0x350] sm:$0xf]  ;;  %v10286_v46 = vld [vmem:[#allocation11 + $0x370] sm:$0xf0] }
 0x211   :  { %v1588_v0 = vsel %vm1585_vm4, %v1587_v4, %v1583_v30  ;;  %v9945_v24 = vor.u32 %v13440_v9, %v9942_v56  ;;  %v13436_v4 = vld [vmem:[#allocation11 + $0x74] sm:$0xf0]  ;;  %v10285_v30 = vor.u32 %v13531_v43, %v10284_v17  ;;  %v10225_v56 = vor.u32 %v13511_v55, %v10222_v19  ;;  %v13503_v17 = vld [vmem:[#allocation11 + $0x294] sm:$0xf]  ;;  %v13528_v19 = vld [vmem:[#allocation11 + $0x35c] sm:$0xf] }
 0x212   :  { %v15371_v52 = vmul.f32 %v14336_v49, %v1588_v0  ;;  %v9909_v7 = vor.u32 %v13436_v4, %v9908_v13  ;;  %v9913_v49 = vor.u32 %v13432_v61, %v9910_v25  ;;  %v13519_v0 = vld [vmem:[#allocation11 + $0x314] sm:$0xf]  ;;  %v13532_v55 = vld [vmem:[#allocation11 + $0x374] sm:$0xf0] }
 0x213   :  { %v10257_v39 = vor.u32 %v13519_v0, %v10254_v22  ;;  %v10190_v43 = vld [vmem:[#allocation11 + $0x2b0] sm:$0xf0]  ;;  %v13544_v0 = vld [vmem:[#allocation11 + $0x3dc] sm:$0xf] }
 0x214   :  { %v15375_v41 = vpack.c.bf16 %v15371_v52, %v15371_v52  ;;  %2589 = vmatpush.bf16.msra.mxu0 %v10005_v6  ;;  %2615 = vmatpush.bf16.msrb.mxu2 %v10009_v34  ;;  %v10289_v6 = vor.u32 %v13527_v26, %v10286_v46  ;;  %v10252_v34 = vld [vmem:[#allocation11 + $0x310] sm:$0xf]  ;;  %v13495_v13 = vld [vmem:[#allocation11 + $0x254] sm:$0xf]  ;;  %v10358_v22 = vld [vmem:[#allocation11 + $0x3f8] sm:$0xf0] }
 0x215   :  { %v10253_v60 = vor.u32 %v13523_v2, %v10252_v34  ;;  %v10156_v26 = vld [vmem:[#allocation11 + $0x250] sm:$0xf]  ;;  %v10158_v4 = vld [vmem:[#allocation11 + $0x270] sm:$0xf0] }
 0x216   :  { %2451 = vmatmul.bf16.vlgmr.msrb.gmra.mxu1 %v15375_v41  ;;  %2477 = vmatmul.bf16.vlgmr.msra.gmra.mxu3 %v15375_v41  ;;  %v13499_v46 = vld [vmem:[#allocation11 + $0x26c] sm:$0xf0]  ;;  %v10161_v25 = vor.u32 %v13495_v13, %v10158_v4  ;;  %v13487_v34 = vld [vmem:[#allocation11 + $0x214] sm:$0xf]  ;;  %v13516_v13 = vld [vmem:[#allocation11 + $0x2f4] sm:$0xf0] }
 0x217   :  { %2547 = vmatpush.bf16.msrb.mxu1 %v10349_v59  ;;  %2573 = vmatpush.bf16.msra.mxu3 %v10353_v63  ;;  %v13424_v59 = vld [vmem:[#allocation11 + $0x1c] sm:$0xf]  ;;  %v10157_v61 = vor.u32 %v13499_v46, %v10156_v26  ;;  %v10126_v2 = vld [vmem:[#allocation11 + $0x230] sm:$0xf0]  ;;  %v10228_v46 = vld [vmem:[#allocation11 + $0x2d8] sm:$0xf] }
 0x218   :  { %2590 = vmatpush.bf16.msra.mxu0 %v9973_v27  ;;  %2616 = vmatpush.bf16.msrb.mxu2 %v9977_v58  ;;  %v9878_v63 = vld [vmem:[#allocation11 + $0x38] sm:$0xf0]  ;;  %v10220_v27 = vld [vmem:[#allocation11 + $0x2d0] sm:$0xf]  ;;  %v9877_v58 = vor.u32 %v13428_v37, %v9876_v3  ;;  %v10129_v37 = vor.u32 %v13487_v34, %v10126_v2  ;;  %v13508_v34 = vld [vmem:[#allocation11 + $0x2b4] sm:$0xf0] }
 0x219   :  { %v9881_v21 = vor.u32 %v13424_v59, %v9878_v63  ;;  %v10221_v9 = vor.u32 %v13515_v12, %v10220_v27  ;;  %v10361_v59 = vor.u32 %v13544_v0, %v10358_v22  ;;  %v10324_v63 = vld [vmem:[#allocation11 + $0x398] sm:$0xf]  ;;  %v10326_v27 = vld [vmem:[#allocation11 + $0x3b8] sm:$0xf0] }
 0x21a   :  { %v10292_v12 = vld [vmem:[#allocation11 + $0x358] sm:$0xf]  ;;  %v13512_v4 = vld [vmem:[#allocation11 + $0x2dc] sm:$0xf] }
 0x21b   :  { %2548 = vmatpush.bf16.msrb.mxu1 %v10317_v8  ;;  %2574 = vmatpush.bf16.msra.mxu3 %v10321_v51  ;;  %v10188_v8 = vld [vmem:[#allocation11 + $0x290] sm:$0xf]  ;;  %v13504_v2 = vld [vmem:[#allocation11 + $0x29c] sm:$0xf]  ;;  %v10164_v22 = vld [vmem:[#allocation11 + $0x258] sm:$0xf] }
 0x21c   :  { %2591 = vmatpush.bf16.msra.mxu0 %v9941_v15  ;;  %2617 = vmatpush.bf16.msrb.mxu2 %v9945_v24  ;;  %v13507_v51 = vld [vmem:[#allocation11 + $0x2ac] sm:$0xf0]  ;;  %v10193_v24 = vor.u32 %v13503_v17, %v10190_v43  ;;  %v13524_v17 = vld [vmem:[#allocation11 + $0x334] sm:$0xf0]  ;;  %v13520_v43 = vld [vmem:[#allocation11 + $0x31c] sm:$0xf] }
 0x21d   :  { %v10189_v15 = vor.u32 %v13507_v51, %v10188_v8  ;;  %v10260_v51 = vld [vmem:[#allocation11 + $0x318] sm:$0xf] }
 0x21f   :  { %2549 = vmatpush.bf16.msrb.mxu1 %v10285_v30  ;;  %2575 = vmatpush.bf16.msra.mxu3 %v10289_v6  ;;  %v10124_v30 = vld [vmem:[#allocation11 + $0x210] sm:$0xf] }
 0x220   :  { %2592 = vmatpush.bf16.msra.mxu0 %v9909_v7  ;;  %2618 = vmatpush.bf16.msrb.mxu2 %v9913_v49  ;;  %v13491_v6 = vld [vmem:[#allocation11 + $0x22c] sm:$0xf0]  ;;  %v10356_v7 = vld [vmem:[#allocation11 + $0x3d8] sm:$0xf] }
 0x221   :  { %v13548_v49 = vld [vmem:[#allocation11 + $0x3f4] sm:$0xf0]  ;;  %v10125_v3 = vor.u32 %v13491_v6, %v10124_v30 }
 0x222   :  { %v10196_v6 = vld [vmem:[#allocation11 + $0x298] sm:$0xf] }
 0x223   :  { %2550 = vmatpush.bf16.msrb.mxu1 %v10253_v60  ;;  %2576 = vmatpush.bf16.msra.mxu3 %v10257_v39  ;;  %v13540_v60 = vld [vmem:[#allocation11 + $0x3b4] sm:$0xf0]  ;;  %v13536_v39 = vld [vmem:[#allocation11 + $0x39c] sm:$0xf] }
 0x224   :  { %2593 = vmatpush.bf16.msra.mxu0 %v9877_v58  ;;  %2619 = vmatpush.bf16.msrb.mxu2 %v9881_v21  ;;  %v10325_v58 = vor.u32 %v13540_v60, %v10324_v63  ;;  %v10329_v21 = vor.u32 %v13536_v39, %v10326_v27  ;;  %v10132_v60 = vld [vmem:[#allocation11 + $0x218] sm:$0xf]  ;;  %v13488_v27 = vld [vmem:[#allocation11 + $0x21c] sm:$0xf] }
 0x225   :  { %v13492_v39 = vld [vmem:[#allocation11 + $0x234] sm:$0xf0] }
 0x226   :  { %2503 = vmatmul.bf16.vlgmr.msra.gmra.mxu1 %v15375_v41  ;;  %2529 = vmatmul.bf16.vlgmr.msrb.gmra.mxu3 %v15375_v41 }
 0x227   :  { %2551 = vmatpush.bf16.msrb.mxu1 %v10221_v9  ;;  %2577 = vmatpush.bf16.msra.mxu3 %v10225_v56  ;;  %v10294_v9 = vld [vmem:[#allocation11 + $0x378] sm:$0xf0]  ;;  %v10293_v56 = vor.u32 %v13532_v55, %v10292_v12 }
 0x228   :  { %2594 = vmatmul.bf16.vlgmr.msra.gmra.mxu0 %v15308_v54  ;;  %2620 = vmatmul.bf16.vlgmr.msrb.gmra.mxu2 %v15308_v54  ;;  %v10357_v54 = vor.u32 %v13548_v49, %v10356_v7  ;;  %v10297_v8 = vor.u32 %v13528_v19, %v10294_v9  ;;  %v10198_v7 = vld [vmem:[#allocation11 + $0x2b8] sm:$0xf0]  ;;  %v10197_v49 = vor.u32 %v13508_v34, %v10196_v6  ;;  %v10594_v9 = vld [vmem:[#allocation11 + $0x1c0] sm:$0xf]  ;;  %v13589_v6 = vld [vmem:[#allocation11 + $0x144] sm:$0xf] }
 0x229   :  { %v10201_v0 = vor.u32 %v13504_v2, %v10198_v7  ;;  %v10532_v2 = vld [vmem:[#allocation11 + $0x160] sm:$0xf0] }
 0x22b   :  { %2552 = vmatpush.bf16.msrb.mxu1 %v10189_v15  ;;  %2578 = vmatpush.bf16.msra.mxu3 %v10193_v24  ;;  %v10262_v15 = vld [vmem:[#allocation11 + $0x338] sm:$0xf0]  ;;  %v10261_v24 = vor.u32 %v13524_v17, %v10260_v51  ;;  %v10596_v17 = vld [vmem:[#allocation11 + $0x1e0] sm:$0xf0] }
 0x22c   :  { %v10265_v26 = vor.u32 %v13520_v43, %v10262_v15 }
 0x22f   :  { %2553 = vmatpush.bf16.msrb.mxu1 %v10157_v61  ;;  %2579 = vmatpush.bf16.msra.mxu3 %v10161_v25  ;;  %v10230_v61 = vld [vmem:[#allocation11 + $0x2f8] sm:$0xf0]  ;;  %v10229_v25 = vor.u32 %v13516_v13, %v10228_v46  ;;  %v13597_v46 = vld [vmem:[#allocation11 + $0x184] sm:$0xf] }
 0x230   :  { %v10233_v30 = vor.u32 %v13512_v4, %v10230_v61  ;;  %v10564_v4 = vld [vmem:[#allocation11 + $0x1a0] sm:$0xf0] }
 0x231   :  { %v10567_v61 = vor.u32 %v13597_v46, %v10564_v4  ;;  %v13561_v46 = vld [vmem:[#allocation11 + $0x5c] sm:$0xf0] }
 0x233   :  { %2554 = vmatpush.bf16.msrb.mxu1 %v10125_v3  ;;  %2580 = vmatpush.bf16.msra.mxu3 %v10129_v37  ;;  %v13500_v3 = vld [vmem:[#allocation11 + $0x274] sm:$0xf0]  ;;  %v13496_v37 = vld [vmem:[#allocation11 + $0x25c] sm:$0xf] }
 0x236   :  { %2555 = vmatmul.bf16.vlgmr.msrb.gmra.mxu1 %v15375_v41  ;;  %2581 = vmatmul.bf16.vlgmr.msra.gmra.mxu3 %v15375_v41 }
 0x237   :  { %2599 = vmatpush.bf16.msra.mxu1 %v10357_v54  ;;  %2625 = vmatpush.bf16.msrb.mxu3 %v10361_v59  ;;  %v10166_v54 = vld [vmem:[#allocation11 + $0x278] sm:$0xf0]  ;;  %v10165_v59 = vor.u32 %v13500_v3, %v10164_v22  ;;  %v13585_v22 = vld [vmem:[#allocation11 + $0x11c] sm:$0xf0]  ;;  %v13581_v3 = vld [vmem:[#allocation11 + $0x104] sm:$0xf] }
 0x238   :  { %v10169_v63 = vor.u32 %v13496_v37, %v10166_v54  ;;  %v10500_v54 = vld [vmem:[#allocation11 + $0x120] sm:$0xf0] }
 0x23b   :  { %2600 = vmatpush.bf16.msra.mxu1 %v10325_v58  ;;  %2626 = vmatpush.bf16.msrb.mxu3 %v10329_v21  ;;  %v10134_v58 = vld [vmem:[#allocation11 + $0x238] sm:$0xf0]  ;;  %v10133_v21 = vor.u32 %v13492_v39, %v10132_v60  ;;  %v10466_v60 = vld [vmem:[#allocation11 + $0xc0] sm:$0xf] }
 0x23c   :  { %v10137_v12 = vor.u32 %v13488_v27, %v10134_v58  ;;  %v13577_v39 = vld [vmem:[#allocation11 + $0xdc] sm:$0xf0]  ;;  %v13573_v27 = vld [vmem:[#allocation11 + $0xc4] sm:$0xf] }
 0x23d   :  { %v10467_v58 = vor.u32 %v13577_v39, %v10466_v60 }
 0x23f   :  { %2601 = vmatpush.bf16.msra.mxu1 %v10293_v56  ;;  %2627 = vmatpush.bf16.msrb.mxu3 %v10297_v8  ;;  %v13609_v56 = vld [vmem:[#allocation11 + $0x1dc] sm:$0xf0]  ;;  %v13605_v8 = vld [vmem:[#allocation11 + $0x1c4] sm:$0xf] }
 0x240   :  { %v10595_v51 = vor.u32 %v13609_v56, %v10594_v9  ;;  %v10599_v15 = vor.u32 %v13605_v8, %v10596_v17  ;;  %v10434_v56 = vld [vmem:[#allocation11 + $0x80] sm:$0xf] }
 0x241   :  { %v13569_v8 = vld [vmem:[#allocation11 + $0x9c] sm:$0xf0] }
 0x242   :  { %3561 = vmatpush.bf16.msrb.mxu0 %v10595_v51  ;;  %3587 = vmatpush.bf16.msra.mxu2 %v10599_v15  ;;  %v13565_v51 = vld [vmem:[#allocation11 + $0x84] sm:$0xf]  ;;  %v10435_v17 = vor.u32 %v13569_v8, %v10434_v56  ;;  %v10572_v56 = vld [vmem:[#allocation11 + $0x1a8] sm:$0xf0] }
 0x243   :  { %2602 = vmatpush.bf16.msra.mxu1 %v10261_v24  ;;  %2628 = vmatpush.bf16.msrb.mxu3 %v10265_v26  ;;  %v10562_v24 = vld [vmem:[#allocation11 + $0x180] sm:$0xf] }
 0x244   :  { %v13601_v26 = vld [vmem:[#allocation11 + $0x19c] sm:$0xf0] }
 0x245   :  { %v10563_v13 = vor.u32 %v13601_v26, %v10562_v24  ;;  %v10402_v26 = vld [vmem:[#allocation11 + $0x40] sm:$0xf] }
 0x246   :  { %3588 = vmatpush.bf16.msra.mxu2 %v10567_v61  ;;  %v10403_v4 = vor.u32 %v13561_v46, %v10402_v26  ;;  %v10404_v61 = vld [vmem:[#allocation11 + $0x60] sm:$0xf0]  ;;  %v10540_v26 = vld [vmem:[#allocation11 + $0x168] sm:$0xf0] }
 0x247   :  { %2603 = vmatpush.bf16.msra.mxu1 %v10229_v25  ;;  %2629 = vmatpush.bf16.msrb.mxu3 %v10233_v30  ;;  %v10530_v25 = vld [vmem:[#allocation11 + $0x140] sm:$0xf] }
 0x248   :  { %3562 = vmatpush.bf16.msrb.mxu0 %v10563_v13  ;;  %v13593_v30 = vld [vmem:[#allocation11 + $0x15c] sm:$0xf0]  ;;  %v13557_v13 = vld [vmem:[#allocation11 + $0x44] sm:$0xf] }
 0x249   :  { %v10531_v34 = vor.u32 %v13593_v30, %v10530_v25  ;;  %v10407_v25 = vor.u32 %v13557_v13, %v10404_v61  ;;  %v10370_v30 = vld [vmem:[#allocation11] sm:$0xf] }
 0x24b   :  { %2604 = vmatpush.bf16.msra.mxu1 %v10197_v49  ;;  %2630 = vmatpush.bf16.msrb.mxu3 %v10201_v0  ;;  %v10535_v49 = vor.u32 %v13589_v6, %v10532_v2  ;;  %v10498_v0 = vld [vmem:[#allocation11 + $0x100] sm:$0xf] }
 0x24c   :  { %3563 = vmatpush.bf16.msrb.mxu0 %v10531_v34  ;;  %v10499_v37 = vor.u32 %v13585_v22, %v10498_v0  ;;  %v13553_v6 = vld [vmem:[#allocation11 + $0x1c] sm:$0xf0]  ;;  %v13549_v34 = vld [vmem:[#allocation11 + $0x4] sm:$0xf]  ;;  %v10602_v0 = vld [vmem:[#allocation11 + $0x1c8] sm:$0xf] }
 0x24d   :  { %3589 = vmatpush.bf16.msra.mxu2 %v10535_v49  ;;  %v10371_v2 = vor.u32 %v13553_v6, %v10370_v30  ;;  %v10372_v49 = vld [vmem:[#allocation11 + $0x20] sm:$0xf0]  ;;  %v13610_v22 = vld [vmem:[#allocation11 + $0x1e4] sm:$0xf0]  ;;  %v13582_v6 = vld [vmem:[#allocation11 + $0x10c] sm:$0xf] }
 0x24e   :  { %v13586_v30 = vld [vmem:[#allocation11 + $0x124] sm:$0xf0] }
 0x24f   :  { %2605 = vmatpush.bf16.msra.mxu1 %v10165_v59  ;;  %2631 = vmatpush.bf16.msrb.mxu3 %v10169_v63  ;;  %v10503_v59 = vor.u32 %v13581_v3, %v10500_v54  ;;  %v10375_v3 = vor.u32 %v13549_v34, %v10372_v49  ;;  %v13606_v54 = vld [vmem:[#allocation11 + $0x1cc] sm:$0xf] }
 0x250   :  { %3564 = vmatpush.bf16.msrb.mxu0 %v10499_v37  ;;  %v10603_v37 = vor.u32 %v13610_v22, %v10602_v0  ;;  %v10850_v22 = vld [vmem:[#allocation11 + $0x3c0] sm:$0xf] }
 0x251   :  { %3590 = vmatpush.bf16.msra.mxu2 %v10503_v59  ;;  %v10604_v59 = vld [vmem:[#allocation11 + $0x1e8] sm:$0xf0] }
 0x252   :  { %v10607_v60 = vor.u32 %v13606_v54, %v10604_v59  ;;  %v13669_v59 = vld [vmem:[#allocation11 + $0x3c4] sm:$0xf] }
 0x253   :  { %2606 = vmatpush.bf16.msra.mxu1 %v10133_v21  ;;  %2632 = vmatpush.bf16.msrb.mxu3 %v10137_v12  ;;  %v10468_v21 = vld [vmem:[#allocation11 + $0xe0] sm:$0xf0] }
 0x254   :  { %v10471_v9 = vor.u32 %v13573_v27, %v10468_v21  ;;  %3565 = vmatpush.bf16.msrb.mxu0 %v10467_v58  ;;  %v10570_v27 = vld [vmem:[#allocation11 + $0x188] sm:$0xf]  ;;  %v13598_v21 = vld [vmem:[#allocation11 + $0x18c] sm:$0xf] }
 0x255   :  { %v13602_v58 = vld [vmem:[#allocation11 + $0x1a4] sm:$0xf0]  ;;  %v10575_v8 = vor.u32 %v13598_v21, %v10572_v56  ;;  %v13574_v21 = vld [vmem:[#allocation11 + $0xcc] sm:$0xf] }
 0x256   :  { %2607 = vmatmul.bf16.vlgmr.msra.gmra.mxu1 %v15375_v41  ;;  %2633 = vmatmul.bf16.vlgmr.msrb.gmra.mxu3 %v15375_v41  ;;  %v10476_v56 = vld [vmem:[#allocation11 + $0xe8] sm:$0xf0] }
 0x257   :  { %3591 = vmatpush.bf16.msra.mxu2 %v10471_v9  ;;  %v10571_v9 = vor.u32 %v13602_v58, %v10570_v27  ;;  %v10474_v27 = vld [vmem:[#allocation11 + $0xc8] sm:$0xf] }
 0x258   :  { %3566 = vmatpush.bf16.msrb.mxu0 %v10435_v17  ;;  %v13594_v17 = vld [vmem:[#allocation11 + $0x164] sm:$0xf0] }
 0x259   :  { %v13578_v58 = vld [vmem:[#allocation11 + $0xe4] sm:$0xf0] }
 0x25c   :  { %3567 = vmatpush.bf16.msrb.mxu0 %v10403_v4 }
 0x260   :  { %3568 = vmatpush.bf16.msrb.mxu0 %v10371_v2  ;;  %v10508_v2 = vld [vmem:[#allocation11 + $0x128] sm:$0xf0] }
 0x261   :  { %v10511_v0 = vor.u32 %v13582_v6, %v10508_v2  ;;  %v13657_v2 = vld [vmem:[#allocation11 + $0x35c] sm:$0xf0] }
 0x264   :  { %v15387_v55 = vpop.f32.mrf.mxu0  ;;  %3613 = vmatpush.bf16.msra.mxu0 %v10603_v37 }
 0x268   :  { %3614 = vmatpush.bf16.msra.mxu0 %v10571_v9  ;;  %v10475_v9 = vor.u32 %v13578_v58, %v10474_v27  ;;  %v10412_v27 = vld [vmem:[#allocation11 + $0x68] sm:$0xf0] }
 0x26a   :  { %v15389_v19 = vpop.f32.mrf.mxu2 }
 0x26c   :  { %v2441_v43 = vpop.f32.mrf.mxu0 }
 0x26d   :  { %v10436_v43 = vld [vmem:[#allocation11 + $0xa0] sm:$0xf0] }
 0x26e   :  { %v10439_v15 = vor.u32 %v13565_v51, %v10436_v43  ;;  %v10538_v51 = vld [vmem:[#allocation11 + $0x148] sm:$0xf]  ;;  %v13590_v43 = vld [vmem:[#allocation11 + $0x14c] sm:$0xf] }
 0x26f   :  { %v10543_v13 = vor.u32 %v13590_v43, %v10540_v26  ;;  %v13665_v43 = vld [vmem:[#allocation11 + $0x39c] sm:$0xf0]  ;;  %v10820_v26 = vld [vmem:[#allocation11 + $0x3a0] sm:$0xf0] }
 0x270   :  { %3592 = vmatpush.bf16.msra.mxu2 %v10439_v15 }
 0x272   :  { %v2467_v41 = vpop.f32.mrf.mxu2 }
 0x274   :  { %v15391_v7 = vpop.f32.mrf.mxu0  ;;  %3593 = vmatpush.bf16.msra.mxu2 %v10407_v25  ;;  %v10506_v25 = vld [vmem:[#allocation11 + $0x108] sm:$0xf] }
 0x275   :  { %v10507_v34 = vor.u32 %v13586_v30, %v10506_v25  ;;  %v13566_v25 = vld [vmem:[#allocation11 + $0x8c] sm:$0xf] }
 0x276   :  { %v10444_v30 = vld [vmem:[#allocation11 + $0xa8] sm:$0xf0] }
 0x278   :  { %3594 = vmatpush.bf16.msra.mxu2 %v10375_v3  ;;  %v13673_v3 = vld [vmem:[#allocation11 + $0x3dc] sm:$0xf0] }
 0x279   :  { %v10851_v54 = vor.u32 %v13673_v3, %v10850_v22 }
 0x27a   :  { %v15393_v63 = vpop.f32.mrf.mxu2 }
 0x27b   :  { %3574 = vmatpush.bf16.msrb.mxu1 %v10851_v54 }
 0x27c   :  { %v2493_v12 = vpop.f32.mrf.mxu0  ;;  %3639 = vmatpush.bf16.msrb.mxu2 %v10607_v60 }
 0x280   :  { %3640 = vmatpush.bf16.msrb.mxu2 %v10575_v8 }
 0x282   :  { %v2519_v24 = vpop.f32.mrf.mxu2 }
 0x283   :  { %v10539_v24 = vor.u32 %v13594_v17, %v10538_v51  ;;  %v10479_v51 = vor.u32 %v13574_v21, %v10476_v56  ;;  %v10818_v17 = vld [vmem:[#allocation11 + $0x380] sm:$0xf] }
 0x284   :  { %v15395_v41 = vpop.f32.mrf.mxu0  ;;  %3641 = vmatpush.bf16.msrb.mxu2 %v10543_v13  ;;  %v10442_v13 = vld [vmem:[#allocation11 + $0x88] sm:$0xf]  ;;  %v13649_v56 = vld [vmem:[#allocation11 + $0x31c] sm:$0xf0] }
 0x285   :  { %3615 = vmatpush.bf16.msra.mxu0 %v10539_v24  ;;  %v10819_v24 = vor.u32 %v13665_v43, %v10818_v17  ;;  %v10756_v43 = vld [vmem:[#allocation11 + $0x320] sm:$0xf0] }
 0x287   :  { %3575 = vmatpush.bf16.msrb.mxu1 %v10819_v24 }
 0x288   :  { %3642 = vmatpush.bf16.msrb.mxu2 %v10511_v0 }
 0x289   :  { %3616 = vmatpush.bf16.msra.mxu0 %v10507_v34  ;;  %v10786_v34 = vld [vmem:[#allocation11 + $0x340] sm:$0xf] }
 0x28a   :  { %v15397_v39 = vpop.f32.mrf.mxu2  ;;  %v10787_v3 = vor.u32 %v13657_v2, %v10786_v34  ;;  %v10722_v2 = vld [vmem:[#allocation11 + $0x2c0] sm:$0xf] }
 0x28c   :  { %v2545_v12 = vpop.f32.mrf.mxu0  ;;  %3643 = vmatpush.bf16.msrb.mxu2 %v10479_v51  ;;  %3576 = vmatpush.bf16.msrb.mxu1 %v10787_v3 }
 0x28d   :  { %3617 = vmatpush.bf16.msra.mxu0 %v10475_v9  ;;  %v10754_v9 = vld [vmem:[#allocation11 + $0x300] sm:$0xf] }
 0x28e   :  { %v10755_v17 = vor.u32 %v13649_v56, %v10754_v9  ;;  %v13629_v56 = vld [vmem:[#allocation11 + $0x284] sm:$0xf] }
 0x290   :  { %3577 = vmatpush.bf16.msrb.mxu1 %v10755_v17 }
 0x292   :  { %v2571_v4 = vpop.f32.mrf.mxu2 }
 0x293   :  { %v2452_v15 = vpop.f32.mrf.mxu1  ;;  %v13570_v4 = vld [vmem:[#allocation11 + $0xa4] sm:$0xf0] }
 0x294   :  { %v2453_v46 = vadd.f32 %v2452_v15, %v15387_v55  ;;  %v10852_v55 = vld [vmem:[#allocation11 + $0x3e0] sm:$0xf0] }
 0x295   :  { %v13661_v15 = vld [vmem:[#allocation11 + $0x384] sm:$0xf] }
 0x296   :  { %v2645_v61 = vadd.f32 %v2453_v46, %v15089_v53  ;;  %v10855_v53 = vor.u32 %v13669_v59, %v10852_v55  ;;  %v10823_v46 = vor.u32 %v13661_v15, %v10820_v26  ;;  %v10410_v59 = vld [vmem:[#allocation11 + $0x48] sm:$0xf] }
 0x297   :  { %v13562_v55 = vld [vmem:[#allocation11 + $0x64] sm:$0xf0] }
 0x298   :  { %v10365_v49 = vmul.f32 -1.442695, %v2645_v61  ;;  %3600 = vmatpush.bf16.msra.mxu3 %v10855_v53  ;;  %v10443_v61 = vor.u32 %v13570_v4, %v10442_v13  ;;  %v10411_v21 = vor.u32 %v13562_v55, %v10410_v59  ;;  %v13550_v13 = vld [vmem:[#allocation11 + $0xc] sm:$0xf] }
 0x299   :  { %v2478_v37 = vpop.f32.mrf.mxu3 }
 0x29a   :  { %14337 = vpow2.f32 %v10365_v49  ;;  %v2479_v60 = vadd.f32 %v2478_v37, %v15389_v19  ;;  %v13653_v49 = vld [vmem:[#allocation11 + $0x344] sm:$0xf]  ;;  %3618 = vmatpush.bf16.msra.mxu0 %v10443_v61  ;;  %v10380_v61 = vld [vmem:[#allocation11 + $0x28] sm:$0xf0] }
 0x29b   :  { %v2454_v12 = vpop.f32.mrf.mxu1  ;;  %v10788_v37 = vld [vmem:[#allocation11 + $0x360] sm:$0xf0] }
 0x29c   :  { %v2646_v8 = vadd.f32 %v2479_v60, %v15092_v5  ;;  %3601 = vmatpush.bf16.msra.mxu3 %v10823_v46  ;;  %v10447_v5 = vor.u32 %v13566_v25, %v10444_v30  ;;  %v10791_v54 = vor.u32 %v13653_v49, %v10788_v37  ;;  %v13558_v60 = vld [vmem:[#allocation11 + $0x4c] sm:$0xf]  ;;  %v13554_v46 = vld [vmem:[#allocation11 + $0x24] sm:$0xf0]  ;;  %v10383_v30 = vor.u32 %v13550_v13, %v10380_v61  ;;  %v13641_v49 = vld [vmem:[#allocation11 + $0x2dc] sm:$0xf0] }
 0x29d   :  { %v10415_v12 = vor.u32 %v13558_v60, %v10412_v27  ;;  %v15424_v60 = vld [vmem:[%s16352_s4] sm:$0xf]  ;;  %v10658_v13 = vld [vmem:[#allocation11 + $0x240] sm:$0xf] }
 0x29e   :  { %v10366_v19 = vmul.f32 -1.442695, %v2646_v8  ;;  %3644 = vmatpush.bf16.msrb.mxu2 %v10447_v5  ;;  %v13645_v8 = vld [vmem:[#allocation11 + $0x304] sm:$0xf]  ;;  %3619 = vmatpush.bf16.msra.mxu0 %v10411_v21  ;;  %v10690_v21 = vld [vmem:[#allocation11 + $0x280] sm:$0xf] }
 0x29f   :  { %v10759_v26 = vor.u32 %v13645_v8, %v10756_v43  ;;  %v10692_v8 = vld [vmem:[#allocation11 + $0x2a0] sm:$0xf0] }
 0x2a0   :  { %v14338_v6 = vpop.eup %14337  ;;  %14339 = vpow2.f32 %v10366_v19  ;;  %3602 = vmatpush.bf16.msra.mxu3 %v10791_v54  ;;  %v10378_v19 = vld [vmem:[#allocation11 + $0x8] sm:$0xf]  ;;  %v10724_v54 = vld [vmem:[#allocation11 + $0x2e0] sm:$0xf0] }
 0x2a1   :  { %v15403_v0 = vadd.f32 1.0, %v14338_v6  ;;  %v2480_v22 = vpop.f32.mrf.mxu3  ;;  %v10379_v4 = vor.u32 %v13554_v46, %v10378_v19  ;;  %v2651_v46 = vperm.slane %v15424_v60, 0 }
 0x2a2   :  { %3645 = vmatpush.bf16.msrb.mxu2 %v10415_v12  ;;  %v13637_v22 = vld [vmem:[#allocation11 + $0x2c4] sm:$0xf]  ;;  %v13633_v12 = vld [vmem:[#allocation11 + $0x29c] sm:$0xf0] }
 0x2a3   :  { %14341 = vrcp.f32 %v15403_v0  ;;  %v2504_v53 = vpop.f32.mrf.mxu1  ;;  %3620 = vmatpush.bf16.msra.mxu0 %v10379_v4  ;;  %v10727_v27 = vor.u32 %v13637_v22, %v10724_v54  ;;  %v2749_v43 = vand.u32 2147483647, %v15403_v0  ;;  %vm2745_vm6 = vweird.f32 %v15403_v0  ;;  %v13625_v4 = vld [vmem:[#allocation11 + $0x25c] sm:$0xf0] }
 0x2a4   :  { %v2505_v58 = vadd.f32 %v2504_v53, %v15391_v7  ;;  %3603 = vmatpush.bf16.msra.mxu3 %v10759_v26  ;;  %v10723_v53 = vor.u32 %v13641_v49, %v10722_v2  ;;  %v10659_v49 = vor.u32 %v13625_v4, %v10658_v13 }
 0x2a5   :  { %v15407_v51 = vpop.f32.mrf.mxu0  ;;  %vm2750_vm8 = vcmp.eq.f32.partialorder %v2749_v43, 8.507059e+37 }
 0x2a6   :  { %v14340_v15 = vpop.eup %14339  ;;  %v2647_v24 = vadd.f32 %v2505_v58, %v15129_v35  ;;  %3646 = vmatpush.bf16.msrb.mxu2 %v10383_v30  ;;  %3578 = vmatpush.bf16.msrb.mxu1 %v10723_v53 }
 0x2a7   :  { %v15410_v7 = vadd.f32 1.0, %v14340_v15  ;;  %v10695_v15 = vor.u32 %v13629_v56, %v10692_v8  ;;  %v13613_v56 = vld [vmem:[#allocation11 + $0x204] sm:$0xf] }
 0x2a8   :  { %v10367_v25 = vmul.f32 -1.442695, %v2647_v24  ;;  %3604 = vmatpush.bf16.msra.mxu3 %v10727_v27  ;;  %v10628_v8 = vld [vmem:[#allocation11 + $0x220] sm:$0xf0] }
 0x2a9   :  { %v15412_v6 = vpop.eup %14341  ;;  %14343 = vrcp.f32 %v15410_v7  ;;  %v2530_v5 = vpop.f32.mrf.mxu3  ;;  %v2764_v54 = vand.u32 2147483647, %v15410_v7  ;;  %vm2760_vm10 = vweird.f32 %v15410_v7 }
 0x2aa   :  { %v2741_v35 = vmul.f32 %v15412_v6, %v15403_v0  ;;  %14345 = vpow2.f32 %v10367_v25  ;;  %v2531_v34 = vadd.f32 %v2530_v5, %v15393_v63  ;;  %v2751_v63 = vand.u32 2147483648, %v15403_v0  ;;  %v13670_v25 = vld [vmem:[#allocation11 + $0x3cc] sm:$0xf] }
 0x2ab   :  { %v15418_v3 = vpop.f32.mrf.mxu2  ;;  %v2506_v37 = vpop.f32.mrf.mxu1  ;;  %vm2746_vm5 = vweird.f32 %v15412_v6  ;;  %vm2765_vm12 = vcmp.eq.f32.partialorder %v2764_v54, 8.507059e+37  ;;  %v13662_v54 = vld [vmem:[#allocation11 + $0x38c] sm:$0xf] }
 0x2ac   :  { %v2742_v59 = vsub.f32 1.0, %v2741_v35  ;;  %v2648_v55 = vadd.f32 %v2531_v34, %v15132_v47  ;;  %v10691_v47 = vor.u32 %v13633_v12, %v10690_v21  ;;  %vm15438_vm7 = vmor %vm2745_vm6, %vm2746_vm5  ;;  %v2752_v30 = vor.u32 1.1754944e-38, %v2751_v63  ;;  %v13621_v35 = vld [vmem:[#allocation11 + $0x244] sm:$0xf]  ;;  %3605 = vmatpush.bf16.msra.mxu3 %v10695_v15  ;;  %v10626_v21 = vld [vmem:[#allocation11 + $0x200] sm:$0xf] }
 0x2ad   :  { %v2597_v58 = vpop.f32.mrf.mxu0  ;;  %v10660_v34 = vld [vmem:[#allocation11 + $0x260] sm:$0xf0]  ;;  %v2766_v37 = vand.u32 2147483648, %v15410_v7 }
 0x2ae   :  { %v2743_v9 = vmul.f32 %v15412_v6, %v2742_v59  ;;  %14347 = vtanh.f32 %v2648_v55  ;;  %3579 = vmatpush.bf16.msrb.mxu1 %v10691_v47  ;;  %v10663_v22 = vor.u32 %v13621_v35, %v10660_v34  ;;  %v13617_v47 = vld [vmem:[#allocation11 + $0x21c] sm:$0xf0]  ;;  %v2652_v35 = vperm.slane %v15424_v60, 1 }
 0x2af   :  { %v14344_v17 = vpop.eup %14343  ;;  %v2767_v43 = vor.u32 1.1754944e-38, %v2766_v37  ;;  %v10627_v15 = vor.u32 %v13617_v47, %v10626_v21  ;;  %v13654_v47 = vld [vmem:[#allocation11 + $0x34c] sm:$0xf] }
 0x2b0   :  { %v14346_v24 = vpop.eup %14345  ;;  %v2756_v26 = vmul.f32 %v14344_v17, %v15410_v7  ;;  %v2744_v19 = vadd.f32 %v15412_v6, %v2743_v9  ;;  %vm2761_vm9 = vweird.f32 %v14344_v17  ;;  %3606 = vmatpush.bf16.msra.mxu3 %v10663_v22  ;;  %v13666_v22 = vld [vmem:[#allocation11 + $0x3a4] sm:$0xf0] }
 0x2b1   :  { %v15434_v61 = vadd.f32 1.0, %v14346_v24  ;;  %v2532_v5 = vpop.f32.mrf.mxu3  ;;  %vm2762_vm11 = vmor %vm2760_vm10, %vm2761_vm9  ;;  %v10631_v24 = vor.u32 %v13613_v56, %v10628_v8 }
 0x2b2   :  { %v2757_v2 = vsub.f32 1.0, %v2756_v26  ;;  %v2748_v0 = vsel %vm15438_vm7, %v15412_v6, %v2744_v19  ;;  %3580 = vmatpush.bf16.msrb.mxu1 %v10659_v49  ;;  %v10858_v26 = vld [vmem:[#allocation11 + $0x3c8] sm:$0xf] }
 0x2b3   :  { %14349 = vrcp.f32 %v15434_v61  ;;  %v2623_v59 = vpop.f32.mrf.mxu2  ;;  %v2556_v55 = vpop.f32.mrf.mxu1  ;;  %v2753_v63 = vsel %vm2750_vm8, %v2752_v30, %v2748_v0  ;;  %v13674_v19 = vld [vmem:[#allocation11 + $0x3e4] sm:$0xf0]  ;;  %v10860_v30 = vld [vmem:[#allocation11 + $0x3e8] sm:$0xf0]  ;;  %vm2775_vm14 = vweird.f32 %v15434_v61 }
 0x2b4   :  { %v14348_v53 = vpop.eup %14347  ;;  %v2758_v27 = vmul.f32 %v14344_v17, %v2757_v2  ;;  %v2557_v58 = vadd.f32 %v2556_v55, %v15395_v41  ;;  %v10859_v4 = vor.u32 %v13674_v19, %v10858_v26  ;;  %v10863_v34 = vor.u32 %v13670_v25, %v10860_v30  ;;  %3607 = vmatpush.bf16.msra.mxu3 %v10631_v24  ;;  %v10826_v49 = vld [vmem:[#allocation11 + $0x388] sm:$0xf]  ;;  %v10828_v59 = vld [vmem:[#allocation11 + $0x3a8] sm:$0xf0] }
 0x2b5   :  { %v2787_v6 = vmul.f32 %v14348_v53, %v2753_v63  ;;  %v10831_v63 = vor.u32 %v13662_v54, %v10828_v59  ;;  %v10762_v30 = vld [vmem:[#allocation11 + $0x308] sm:$0xf]  ;;  %v10578_v59 = vld [vmem:[#allocation11 + $0x190] sm:$0xf] }
 0x2b6   :  { %v2759_v12 = vadd.f32 %v14344_v17, %v2758_v27  ;;  %v2659_v9 = vadd.f32 %v2651_v46, %v2557_v58  ;;  %3581 = vmatpush.bf16.msrb.mxu1 %v10627_v15  ;;  %v10827_v27 = vor.u32 %v13666_v22, %v10826_v49  ;;  %v2779_v58 = vand.u32 2147483647, %v15434_v61 }
 0x2b8   :  { %v2763_v13 = vsel %vm2762_vm11, %v14344_v17, %v2759_v12  ;;  %v10362_v41 = vmul.f32 -1.442695, %v2659_v9  ;;  %3652 = vmatpush.bf16.msrb.mxu3 %v10863_v34  ;;  %v13658_v9 = vld [vmem:[#allocation11 + $0x364] sm:$0xf0]  ;;  %vm2780_vm0 = vcmp.eq.f32.partialorder %v2779_v58, 8.507059e+37 }
 0x2b9   :  { %v14350_v7 = vpop.eup %14349  ;;  %v2768_v5 = vsel %vm2765_vm12, %v2767_v43, %v2763_v13  ;;  %v2582_v46 = vpop.f32.mrf.mxu3  ;;  %v13607_v34 = vld [vmem:[#allocation11 + $0x1d4] sm:$0xf] }
 0x2ba   :  { %v2771_v2 = vmul.f32 %v14350_v7, %v15434_v61  ;;  %v2786_v0 = vmul.f32 %v2768_v5, %v15298_v1  ;;  %14351 = vpow2.f32 %v10362_v41  ;;  %v2583_v17 = vadd.f32 %v2582_v46, %v15397_v39  ;;  %3626 = vmatpush.bf16.msra.mxu1 %v10859_v4  ;;  %v10794_v39 = vld [vmem:[#allocation11 + $0x348] sm:$0xf]  ;;  %v10610_v41 = vld [vmem:[#allocation11 + $0x1d0] sm:$0xf]  ;;  %v13646_v46 = vld [vmem:[#allocation11 + $0x30c] sm:$0xf] }
 0x2bb   :  { %v2558_v37 = vpop.f32.mrf.mxu1  ;;  %v2781_v1 = vand.u32 2147483648, %v15434_v61  ;;  %vm2776_vm13 = vweird.f32 %v14350_v7  ;;  %v10795_v8 = vor.u32 %v13658_v9, %v10794_v39  ;;  %v13611_v4 = vld [vmem:[#allocation11 + $0x1ec] sm:$0xf0]  ;;  %v13650_v5 = vld [vmem:[#allocation11 + $0x324] sm:$0xf0] }
 0x2bc   :  { %v2772_v55 = vsub.f32 1.0, %v2771_v2  ;;  %v15454_v53 = vadd.f32 %v2787_v6, %v2786_v0  ;;  %v2660_v21 = vadd.f32 %v2652_v35, %v2583_v17  ;;  %3653 = vmatpush.bf16.msrb.mxu3 %v10831_v63  ;;  %v10796_v6 = vld [vmem:[#allocation11 + $0x368] sm:$0xf0]  ;;  %vm2777_vm15 = vmor %vm2775_vm14, %vm2776_vm13  ;;  %v10612_v2 = vld [vmem:[#allocation11 + $0x1f0] sm:$0xf0]  ;;  %v10763_v49 = vor.u32 %v13650_v5, %v10762_v30 }
 0x2bd   :  { %v10799_v24 = vor.u32 %v13654_v47, %v10796_v6  ;;  %v2782_v26 = vor.u32 1.1754944e-38, %v2781_v1  ;;  %v10764_v61 = vld [vmem:[#allocation11 + $0x328] sm:$0xf0]  ;;  %v10611_v37 = vor.u32 %v13611_v4, %v10610_v41  ;;  %v10615_v54 = vor.u32 %v13607_v34, %v10612_v2  ;;  %v13599_v63 = vld [vmem:[#allocation11 + $0x194] sm:$0xf] }
 0x2be   :  { %v2773_v12 = vmul.f32 %v14350_v7, %v2772_v55  ;;  %14353 = vtanh.f32 %v15454_v53  ;;  %v10363_v56 = vmul.f32 -1.442695, %v2660_v21  ;;  %3627 = vmatpush.bf16.msra.mxu1 %v10827_v27  ;;  %v10767_v22 = vor.u32 %v13646_v46, %v10764_v61  ;;  %v13603_v55 = vld [vmem:[#allocation11 + $0x1ac] sm:$0xf0]  ;;  %v10580_v58 = vld [vmem:[#allocation11 + $0x1b0] sm:$0xf0] }
 0x2bf   :  { %v10730_v1 = vld [vmem:[#allocation11 + $0x2c8] sm:$0xf]  ;;  %v13638_v39 = vld [vmem:[#allocation11 + $0x2cc] sm:$0xf]  ;;  %v10546_v6 = vld [vmem:[#allocation11 + $0x150] sm:$0xf] }
 0x2c0   :  { %v14352_v43 = vpop.eup %14351  ;;  %v2774_v15 = vadd.f32 %v14350_v7, %v2773_v12  ;;  %14355 = vpow2.f32 %v10363_v56  ;;  %3654 = vmatpush.bf16.msrb.mxu3 %v10799_v24  ;;  %v13642_v12 = vld [vmem:[#allocation11 + $0x2e4] sm:$0xf0]  ;;  %v10732_v47 = vld [vmem:[#allocation11 + $0x2e8] sm:$0xf0]  ;;  %v10579_v56 = vor.u32 %v13603_v55, %v10578_v59  ;;  %v2653_v46 = vperm.slane %v15424_v60, 2 }
 0x2c1   :  { %v15460_v19 = vadd.f32 1.0, %v14352_v43  ;;  %v2584_v13 = vpop.f32.mrf.mxu3  ;;  %v10731_v9 = vor.u32 %v13642_v12, %v10730_v1  ;;  %v13595_v43 = vld [vmem:[#allocation11 + $0x16c] sm:$0xf0]  ;;  %v10698_v41 = vld [vmem:[#allocation11 + $0x288] sm:$0xf] }
 0x2c2   :  { %v2778_v25 = vsel %vm2777_vm15, %v14350_v7, %v2774_v15  ;;  %3628 = vmatpush.bf16.msra.mxu1 %v10795_v8  ;;  %v10583_v8 = vor.u32 %v13599_v63, %v10580_v58  ;;  %v13591_v15 = vld [vmem:[#allocation11 + $0x154] sm:$0xf]  ;;  %v10735_v13 = vor.u32 %v13638_v39, %v10732_v47  ;;  %v13634_v4 = vld [vmem:[#allocation11 + $0x2a4] sm:$0xf0]  ;;  %v13630_v30 = vld [vmem:[#allocation11 + $0x28c] sm:$0xf] }
 0x2c3   :  { %v2783_v35 = vsel %vm2780_vm0, %v2782_v26, %v2778_v25  ;;  %14357 = vrcp.f32 %v15460_v19  ;;  %v10548_v26 = vld [vmem:[#allocation11 + $0x170] sm:$0xf0]  ;;  %v10699_v25 = vor.u32 %v13634_v4, %v10698_v41  ;;  %v10700_v5 = vld [vmem:[#allocation11 + $0x2a8] sm:$0xf0]  ;;  %v13587_v34 = vld [vmem:[#allocation11 + $0x12c] sm:$0xf0]  ;;  %vm2680_vm3 = vweird.f32 %v15460_v19 }
 0x2c4   :  { %v14354_v0 = vpop.eup %14353  ;;  %3655 = vmatpush.bf16.msrb.mxu3 %v10767_v22  ;;  %v10703_v2 = vor.u32 %v13630_v30, %v10700_v5  ;;  %v13583_v22 = vld [vmem:[#allocation11 + $0x114] sm:$0xf]  ;;  %v13622_v59 = vld [vmem:[#allocation11 + $0x24c] sm:$0xf]  ;;  %v10482_v39 = vld [vmem:[#allocation11 + $0xd0] sm:$0xf] }
 0x2c5   :  { %v2790_v17 = vmul.f32 %v14354_v0, %v2783_v35  ;;  %v10514_v35 = vld [vmem:[#allocation11 + $0x110] sm:$0xf]  ;;  %v10547_v0 = vor.u32 %v13595_v43, %v10546_v6  ;;  %v10668_v55 = vld [vmem:[#allocation11 + $0x268] sm:$0xf0]  ;;  %v13575_v43 = vld [vmem:[#allocation11 + $0xd4] sm:$0xf] }
 0x2c6   :  { %v14356_v7 = vpop.eup %14355  ;;  %3629 = vmatpush.bf16.msra.mxu1 %v10763_v49  ;;  %v10551_v49 = vor.u32 %v13591_v15, %v10548_v26  ;;  %v10671_v47 = vor.u32 %v13622_v59, %v10668_v55  ;;  %v10634_v15 = vld [vmem:[#allocation11 + $0x208] sm:$0xf]  ;;  %v10484_v41 = vld [vmem:[#allocation11 + $0xf0] sm:$0xf0]  ;;  %v13614_v30 = vld [vmem:[#allocation11 + $0x20c] sm:$0xf] }
 0x2c7   :  { %v15463_v27 = vpack.c.bf16 %v2790_v17, %v2790_v17  ;;  %v15465_v21 = vadd.f32 1.0, %v14356_v7  ;;  %v10516_v17 = vld [vmem:[#allocation11 + $0x130] sm:$0xf0]  ;;  %v13618_v4 = vld [vmem:[#allocation11 + $0x224] sm:$0xf0] }
 0x2c8   :  { %3656 = vmatpush.bf16.msrb.mxu3 %v10735_v13  ;;  %v10519_v6 = vor.u32 %v13583_v22, %v10516_v17  ;;  %v10636_v5 = vld [vmem:[#allocation11 + $0x228] sm:$0xf0]  ;;  %v13567_v17 = vld [vmem:[#allocation11 + $0x94] sm:$0xf] }
 0x2c9   :  { %3569 = vmatmul.bf16.vlgmr.msrb.gmra.mxu0 %v15463_v27  ;;  %3595 = vmatmul.bf16.vlgmr.msra.gmra.mxu2 %v15463_v27  ;;  %14359 = vrcp.f32 %v15465_v21  ;;  %v15470_v24 = vpop.eup %14357  ;;  %v10639_v59 = vor.u32 %v13614_v30, %v10636_v5  ;;  %vm2695_vm4 = vweird.f32 %v15465_v21 }
 0x2ca   :  { %3665 = vmatpush.bf16.msrb.mxu0 %v10611_v37  ;;  %3691 = vmatpush.bf16.msra.mxu2 %v10615_v54  ;;  %v2676_v61 = vmul.f32 %v15470_v24, %v15460_v19  ;;  %v10666_v37 = vld [vmem:[#allocation11 + $0x248] sm:$0xf]  ;;  %vm2681_vm1 = vweird.f32 %v15470_v24 }
 0x2cb   :  { %3630 = vmatpush.bf16.msra.mxu1 %v10731_v9  ;;  %v13626_v54 = vld [vmem:[#allocation11 + $0x264] sm:$0xf0]  ;;  %v13579_v9 = vld [vmem:[#allocation11 + $0xec] sm:$0xf0]  ;;  %vm15496_vm5 = vmor %vm2680_vm3, %vm2681_vm1 }
 0x2cc   :  { %v10667_v58 = vor.u32 %v13626_v54, %v10666_v37  ;;  %3657 = vmatpush.bf16.msrb.mxu3 %v10703_v2  ;;  %v2654_v37 = vperm.slane %v15424_v60, 3  ;;  %v10483_v2 = vor.u32 %v13579_v9, %v10482_v39  ;;  %v10452_v54 = vld [vmem:[#allocation11 + $0xb0] sm:$0xf0]  ;;  %v13563_v39 = vld [vmem:[#allocation11 + $0x6c] sm:$0xf0]  ;;  %v2701_v9 = vand.u32 2147483648, %v15465_v21 }
 0x2ce   :  { %3666 = vmatpush.bf16.msrb.mxu0 %v10579_v56  ;;  %3692 = vmatpush.bf16.msra.mxu2 %v10583_v8  ;;  %v2677_v56 = vsub.f32 1.0, %v2676_v61  ;;  %v10515_v8 = vor.u32 %v13587_v34, %v10514_v35  ;;  %v10487_v34 = vor.u32 %v13575_v43, %v10484_v41  ;;  %v2684_v43 = vand.u32 2147483647, %v15460_v19 }
 0x2cf   :  { %3631 = vmatpush.bf16.msra.mxu1 %v10699_v25  ;;  %v15475_v7 = vpop.eup %14359  ;;  %v10635_v25 = vor.u32 %v13618_v4, %v10634_v15  ;;  %v2699_v15 = vand.u32 2147483647, %v15465_v21  ;;  %v10386_v4 = vld [vmem:[#allocation11 + $0x10] sm:$0xf] }
 0x2d0   :  { %v2691_v1 = vmul.f32 %v15475_v7, %v15465_v21  ;;  %3658 = vmatpush.bf16.msrb.mxu3 %v10671_v47  ;;  %v2678_v35 = vmul.f32 %v15470_v24, %v2677_v56  ;;  %vm2696_vm2 = vweird.f32 %v15475_v7  ;;  %v2686_v47 = vand.u32 2147483648, %v15460_v19  ;;  %v13559_v56 = vld [vmem:[#allocation11 + $0x54] sm:$0xf] }
 0x2d1   :  { %vm15504_vm6 = vmor %vm2695_vm4, %vm2696_vm2  ;;  %vm2685_vm7 = vcmp.eq.f32.partialorder %v2684_v43, 8.507059e+37  ;;  %vm2700_vm8 = vcmp.eq.f32.partialorder %v2699_v15, 8.507059e+37  ;;  %v13596_v43 = vld [vmem:[#allocation11 + $0x174] sm:$0xf0]  ;;  %v13592_v15 = vld [vmem:[#allocation11 + $0x15c] sm:$0xf] }
 0x2d2   :  { %3667 = vmatpush.bf16.msrb.mxu0 %v10547_v0  ;;  %3693 = vmatpush.bf16.msra.mxu2 %v10551_v49  ;;  %v2692_v26 = vsub.f32 1.0, %v2691_v1  ;;  %v13571_v49 = vld [vmem:[#allocation11 + $0xac] sm:$0xf0] }
 0x2d3   :  { %v2608_v63 = vpop.f32.mrf.mxu1  ;;  %3632 = vmatpush.bf16.msra.mxu1 %v10667_v58  ;;  %v2679_v58 = vadd.f32 %v15470_v24, %v2678_v35  ;;  %v10618_v35 = vld [vmem:[#allocation11 + $0x1d8] sm:$0xf] }
 0x2d4   :  { %v2609_v12 = vadd.f32 %v2608_v63, %v15407_v51  ;;  %v2693_v61 = vmul.f32 %v15475_v7, %v2692_v26  ;;  %3659 = vmatpush.bf16.msrb.mxu3 %v10639_v59 }
 0x2d5   :  { %v2683_v5 = vsel %vm15496_vm5, %v15470_v24, %v2679_v58  ;;  %v10620_v24 = vld [vmem:[#allocation11 + $0x1f8] sm:$0xf0] }
 0x2d6   :  { %v2661_v13 = vadd.f32 %v2653_v46, %v2609_v12  ;;  %3668 = vmatpush.bf16.msrb.mxu0 %v10515_v8  ;;  %3694 = vmatpush.bf16.msra.mxu2 %v10519_v6  ;;  %v10450_v46 = vld [vmem:[#allocation11 + $0x90] sm:$0xf]  ;;  %v2694_v1 = vadd.f32 %v15475_v7, %v2693_v61  ;;  %v10420_v8 = vld [vmem:[#allocation11 + $0x70] sm:$0xf0]  ;;  %v2702_v61 = vor.u32 1.1754944e-38, %v2701_v9 }
 0x2d7   :  { %3633 = vmatpush.bf16.msra.mxu1 %v10635_v25  ;;  %v10451_v63 = vor.u32 %v13571_v49, %v10450_v46  ;;  %v10418_v12 = vld [vmem:[#allocation11 + $0x50] sm:$0xf]  ;;  %v13608_v46 = vld [vmem:[#allocation11 + $0x1dc] sm:$0xf]  ;;  %v10554_v6 = vld [vmem:[#allocation11 + $0x158] sm:$0xf] }
 0x2d8   :  { %v10364_v51 = vmul.f32 -1.442695, %v2661_v13  ;;  %v10419_v41 = vor.u32 %v13563_v39, %v10418_v12  ;;  %v13555_v25 = vld [vmem:[#allocation11 + $0x2c] sm:$0xf0]  ;;  %v2698_v19 = vsel %vm15504_vm6, %v15475_v7, %v2694_v1  ;;  %v13604_v1 = vld [vmem:[#allocation11 + $0x1b4] sm:$0xf0] }
 0x2d9   :  { %v2634_v0 = vpop.f32.mrf.mxu3  ;;  %3621 = vmatmul.bf16.vlgmr.msra.gmra.mxu0 %v15463_v27  ;;  %3647 = vmatmul.bf16.vlgmr.msrb.gmra.mxu2 %v15463_v27  ;;  %v10588_v12 = vld [vmem:[#allocation11 + $0x1b8] sm:$0xf0] }
 0x2da   :  { %14361 = vpow2.f32 %v10364_v51  ;;  %v2635_v22 = vadd.f32 %v2634_v0, %v15418_v3  ;;  %3669 = vmatpush.bf16.msrb.mxu0 %v10483_v2  ;;  %3695 = vmatpush.bf16.msra.mxu2 %v10487_v34  ;;  %v10455_v3 = vor.u32 %v13567_v17, %v10452_v54  ;;  %v10423_v51 = vor.u32 %v13559_v56, %v10420_v8  ;;  %v10388_v2 = vld [vmem:[#allocation11 + $0x30] sm:$0xf0]  ;;  %v13612_v34 = vld [vmem:[#allocation11 + $0x1f4] sm:$0xf0] }
 0x2db   :  { %v2610_v60 = vpop.f32.mrf.mxu1  ;;  %v2687_v0 = vor.u32 1.1754944e-38, %v2686_v47  ;;  %v2703_v17 = vsel %vm2700_vm8, %v2702_v61, %v2698_v19  ;;  %v10387_v54 = vor.u32 %v13555_v25, %v10386_v4  ;;  %v10522_v19 = vld [vmem:[#allocation11 + $0x118] sm:$0xf]  ;;  %v10866_v61 = vld [vmem:[#allocation11 + $0x3d0] sm:$0xf] }
 0x2dc   :  { %v2662_v55 = vadd.f32 %v2654_v37, %v2635_v22  ;;  %v13551_v37 = vld [vmem:[#allocation11 + $0x14] sm:$0xf]  ;;  %v10619_v60 = vor.u32 %v13612_v34, %v10618_v35  ;;  %v2721_v58 = vmul.f32 %v2703_v17, %v15362_v16  ;;  %v13675_v35 = vld [vmem:[#allocation11 + $0x3ec] sm:$0xf0]  ;;  %v10490_v17 = vld [vmem:[#allocation11 + $0xd8] sm:$0xf] }
 0x2dd   :  { %v2688_v22 = vsel %vm2685_vm7, %v2687_v0, %v2683_v5  ;;  %v10391_v59 = vor.u32 %v13551_v37, %v10388_v2  ;;  %v10524_v37 = vld [vmem:[#allocation11 + $0x138] sm:$0xf0]  ;;  %v13671_v34 = vld [vmem:[#allocation11 + $0x3d4] sm:$0xf] }
 0x2de   :  { %14363 = vtanh.f32 %v2662_v55  ;;  %3670 = vmatpush.bf16.msrb.mxu0 %v10451_v63  ;;  %3696 = vmatpush.bf16.msra.mxu2 %v10455_v3  ;;  %v10623_v55 = vor.u32 %v13608_v46, %v10620_v24  ;;  %v10586_v63 = vld [vmem:[#allocation11 + $0x198] sm:$0xf]  ;;  %v13600_v3 = vld [vmem:[#allocation11 + $0x19c] sm:$0xf] }
 0x2df   :  { %v10587_v56 = vor.u32 %v13604_v1, %v10586_v63  ;;  %v10591_v8 = vor.u32 %v13600_v3, %v10588_v12  ;;  %v10834_v1 = vld [vmem:[#allocation11 + $0x390] sm:$0xf] }
 0x2e0   :  { %v14362_v26 = vpop.eup %14361  ;;  %v13667_v3 = vld [vmem:[#allocation11 + $0x3ac] sm:$0xf0] }
 0x2e1   :  { %v15508_v30 = vadd.f32 1.0, %v14362_v26  ;;  %v2636_v21 = vpop.f32.mrf.mxu3  ;;  %v10556_v26 = vld [vmem:[#allocation11 + $0x178] sm:$0xf0] }
 0x2e2   :  { %3671 = vmatpush.bf16.msrb.mxu0 %v10419_v41  ;;  %3697 = vmatpush.bf16.msra.mxu2 %v10423_v51  ;;  %v10555_v41 = vor.u32 %v13596_v43, %v10554_v6  ;;  %v10559_v5 = vor.u32 %v13592_v15, %v10556_v26  ;;  %v13588_v21 = vld [vmem:[#allocation11 + $0x134] sm:$0xf0]  ;;  %v13584_v51 = vld [vmem:[#allocation11 + $0x11c] sm:$0xf] }
 0x2e3   :  { %14365 = vrcp.f32 %v15508_v30  ;;  %v2716_v16 = vand.u32 2147483648, %v15508_v30  ;;  %v2714_v25 = vand.u32 2147483647, %v15508_v30  ;;  %vm2710_vm10 = vweird.f32 %v15508_v30  ;;  %v10458_v6 = vld [vmem:[#allocation11 + $0x98] sm:$0xf] }
 0x2e4   :  { %v14364_v49 = vpop.eup %14363  ;;  %v10523_v24 = vor.u32 %v13588_v21, %v10522_v19  ;;  %v13572_v43 = vld [vmem:[#allocation11 + $0xb4] sm:$0xf0]  ;;  %v13568_v15 = vld [vmem:[#allocation11 + $0x9c] sm:$0xf]  ;;  %v13655_v19 = vld [vmem:[#allocation11 + $0x354] sm:$0xf] }
 0x2e5   :  { %v2722_v7 = vmul.f32 %v14364_v49, %v2688_v22  ;;  %v2717_v0 = vor.u32 1.1754944e-38, %v2716_v16  ;;  %vm2715_vm12 = vcmp.eq.f32.partialorder %v2714_v25, 8.507059e+37  ;;  %v10527_v49 = vor.u32 %v13584_v51, %v10524_v37  ;;  %v10868_v22 = vld [vmem:[#allocation11 + $0x3f0] sm:$0xf0]  ;;  %v10460_v26 = vld [vmem:[#allocation11 + $0xb8] sm:$0xf0] }
 0x2e6   :  { %3672 = vmatpush.bf16.msrb.mxu0 %v10387_v54  ;;  %3698 = vmatpush.bf16.msra.mxu2 %v10391_v59  ;;  %v13580_v59 = vld [vmem:[#allocation11 + $0xf4] sm:$0xf0]  ;;  %v10459_v25 = vor.u32 %v13572_v43, %v10458_v6  ;;  %v10804_v21 = vld [vmem:[#allocation11 + $0x370] sm:$0xf0]  ;;  %v10706_v43 = vld [vmem:[#allocation11 + $0x290] sm:$0xf] }
 0x2e7   :  { %v15518_v9 = vadd.f32 %v2722_v7, %v2721_v58  ;;  %v10871_v58 = vor.u32 %v13671_v34, %v10868_v22  ;;  %v10426_v51 = vld [vmem:[#allocation11 + $0x58] sm:$0xf]  ;;  %v10770_v34 = vld [vmem:[#allocation11 + $0x310] sm:$0xf]  ;;  %v13647_v22 = vld [vmem:[#allocation11 + $0x314] sm:$0xf] }
 0x2e8   :  { %v13564_v37 = vld [vmem:[#allocation11 + $0x74] sm:$0xf0] }
 0x2e9   :  { %v14366_v39 = vpop.eup %14365  ;;  %3673 = vmatmul.bf16.vlgmr.msrb.gmra.mxu0 %v15463_v27  ;;  %3699 = vmatmul.bf16.vlgmr.msra.gmra.mxu2 %v15463_v27  ;;  %14367 = vtanh.f32 %v15518_v9 }
 0x2ea   :  { %v2706_v47 = vmul.f32 %v14366_v39, %v15508_v30  ;;  %3717 = vmatpush.bf16.msra.mxu0 %v10619_v60  ;;  %3743 = vmatpush.bf16.msrb.mxu2 %v10623_v55  ;;  %vm2711_vm9 = vweird.f32 %v14366_v39  ;;  %v13576_v60 = vld [vmem:[#allocation11 + $0xdc] sm:$0xf]  ;;  %v10867_v30 = vor.u32 %v13675_v35, %v10866_v61  ;;  %v10807_v35 = vor.u32 %v13655_v19, %v10804_v21  ;;  %v10676_v19 = vld [vmem:[#allocation11 + $0x270] sm:$0xf0] }
 0x2eb   :  { %vm2712_vm11 = vmor %vm2710_vm10, %vm2711_vm9  ;;  %v10492_v55 = vld [vmem:[#allocation11 + $0xf8] sm:$0xf0] }
 0x2ec   :  { %v2707_v13 = vsub.f32 1.0, %v2706_v47  ;;  %v10495_v47 = vor.u32 %v13576_v60, %v10492_v55  ;;  %v10428_v61 = vld [vmem:[#allocation11 + $0x78] sm:$0xf0] }
 0x2ed   :  { %v10396_v60 = vld [vmem:[#allocation11 + $0x38] sm:$0xf0] }
 0x2ee   :  { %v2708_v4 = vmul.f32 %v14366_v39, %v2707_v13  ;;  %3718 = vmatpush.bf16.msra.mxu0 %v10587_v56  ;;  %3744 = vmatpush.bf16.msrb.mxu2 %v10591_v8  ;;  %v13663_v56 = vld [vmem:[#allocation11 + $0x394] sm:$0xf]  ;;  %v10835_v13 = vor.u32 %v13667_v3, %v10834_v1 }
 0x2ef   :  { %v14368_v7 = vpop.eup %14367  ;;  %v10836_v8 = vld [vmem:[#allocation11 + $0x3b0] sm:$0xf0] }
 0x2f0   :  { %v2709_v2 = vadd.f32 %v14366_v39, %v2708_v4  ;;  %v10839_v16 = vor.u32 %v13663_v56, %v10836_v8  ;;  %v13659_v4 = vld [vmem:[#allocation11 + $0x36c] sm:$0xf0]  ;;  %v10740_v56 = vld [vmem:[#allocation11 + $0x2f0] sm:$0xf0] }
 0x2f2   :  { %v2713_v46 = vsel %vm2712_vm11, %v14366_v39, %v2709_v2  ;;  %3719 = vmatpush.bf16.msra.mxu0 %v10555_v41  ;;  %3745 = vmatpush.bf16.msrb.mxu2 %v10559_v5  ;;  %v10491_v39 = vor.u32 %v13580_v59, %v10490_v17  ;;  %v10802_v41 = vld [vmem:[#allocation11 + $0x350] sm:$0xf]  ;;  %v10463_v5 = vor.u32 %v13568_v15, %v10460_v26  ;;  %v13560_v2 = vld [vmem:[#allocation11 + $0x5c] sm:$0xf]  ;;  %v10772_v17 = vld [vmem:[#allocation11 + $0x330] sm:$0xf0] }
 0x2f3   :  { %v2718_v54 = vsel %vm2715_vm12, %v2717_v0, %v2713_v46  ;;  %v10803_v0 = vor.u32 %v13659_v4, %v10802_v41  ;;  %v13651_v46 = vld [vmem:[#allocation11 + $0x32c] sm:$0xf0]  ;;  %v13552_v59 = vld [vmem:[#allocation11 + $0x1c] sm:$0xf]  ;;  %v13631_v26 = vld [vmem:[#allocation11 + $0x294] sm:$0xf] }
 0x2f4   :  { %v15527_v63 = vmul.f32 %v14368_v7, %v2718_v54  ;;  %v10394_v7 = vld [vmem:[#allocation11 + $0x18] sm:$0xf]  ;;  %v10771_v55 = vor.u32 %v13651_v46, %v10770_v34  ;;  %v10399_v3 = vor.u32 %v13552_v59, %v10396_v60  ;;  %v13635_v15 = vld [vmem:[#allocation11 + $0x2ac] sm:$0xf0]  ;;  %v13672_v46 = vld [vmem:[#allocation11 + $0x3dc] sm:$0xf] }
 0x2f5   :  { %v13556_v54 = vld [vmem:[#allocation11 + $0x34] sm:$0xf0]  ;;  %v10674_v4 = vld [vmem:[#allocation11 + $0x250] sm:$0xf]  ;;  %v13664_v59 = vld [vmem:[#allocation11 + $0x39c] sm:$0xf] }
 0x2f6   :  { %v15531_v12 = vpack.c.bf16 %v15527_v63, %v15527_v63  ;;  %3720 = vmatpush.bf16.msra.mxu0 %v10523_v24  ;;  %3746 = vmatpush.bf16.msrb.mxu2 %v10527_v49  ;;  %v10427_v24 = vor.u32 %v13564_v37, %v10426_v51  ;;  %v10431_v49 = vor.u32 %v13560_v2, %v10428_v61  ;;  %v10642_v37 = vld [vmem:[#allocation11 + $0x210] sm:$0xf]  ;;  %v13615_v61 = vld [vmem:[#allocation11 + $0x214] sm:$0xf]  ;;  %v13676_v34 = vld [vmem:[#allocation11 + $0x3f4] sm:$0xf0] }
 0x2f7   :  { %v10395_v1 = vor.u32 %v13556_v54, %v10394_v7  ;;  %v13619_v2 = vld [vmem:[#allocation11 + $0x22c] sm:$0xf0]  ;;  %v10842_v7 = vld [vmem:[#allocation11 + $0x398] sm:$0xf]  ;;  %v10844_v60 = vld [vmem:[#allocation11 + $0x3b8] sm:$0xf0] }
 0x2f8   :  { %3582 = vmatmul.bf16.vlgmr.msrb.gmra.mxu1 %v15531_v12  ;;  %3608 = vmatmul.bf16.vlgmr.msra.gmra.mxu3 %v15531_v12  ;;  %v13668_v54 = vld [vmem:[#allocation11 + $0x3b4] sm:$0xf0] }
 0x2f9   :  { %3678 = vmatpush.bf16.msrb.mxu1 %v10867_v30  ;;  %3704 = vmatpush.bf16.msra.mxu3 %v10871_v58  ;;  %v10775_v30 = vor.u32 %v13647_v22, %v10772_v17  ;;  %v10738_v58 = vld [vmem:[#allocation11 + $0x2d0] sm:$0xf] }
 0x2fa   :  { %3721 = vmatpush.bf16.msra.mxu0 %v10491_v39  ;;  %3747 = vmatpush.bf16.msrb.mxu2 %v10495_v47  ;;  %v13643_v39 = vld [vmem:[#allocation11 + $0x2ec] sm:$0xf0]  ;;  %v13639_v47 = vld [vmem:[#allocation11 + $0x2d4] sm:$0xf] }
 0x2fb   :  { %v10739_v8 = vor.u32 %v13643_v39, %v10738_v58  ;;  %v10743_v6 = vor.u32 %v13639_v47, %v10740_v56  ;;  %v10810_v58 = vld [vmem:[#allocation11 + $0x358] sm:$0xf]  ;;  %v10812_v39 = vld [vmem:[#allocation11 + $0x378] sm:$0xf0] }
 0x2fd   :  { %3679 = vmatpush.bf16.msrb.mxu1 %v10835_v13  ;;  %3705 = vmatpush.bf16.msra.mxu3 %v10839_v16  ;;  %v10708_v13 = vld [vmem:[#allocation11 + $0x2b0] sm:$0xf0]  ;;  %v10707_v16 = vor.u32 %v13635_v15, %v10706_v43  ;;  %v13648_v43 = vld [vmem:[#allocation11 + $0x31c] sm:$0xf] }
 0x2fe   :  { %3722 = vmatpush.bf16.msra.mxu0 %v10459_v25  ;;  %3748 = vmatpush.bf16.msrb.mxu2 %v10463_v5  ;;  %v10711_v41 = vor.u32 %v13631_v26, %v10708_v13  ;;  %v13627_v25 = vld [vmem:[#allocation11 + $0x26c] sm:$0xf0]  ;;  %v13623_v5 = vld [vmem:[#allocation11 + $0x254] sm:$0xf]  ;;  %v10780_v15 = vld [vmem:[#allocation11 + $0x338] sm:$0xf0] }
 0x2ff   :  { %v10675_v21 = vor.u32 %v13627_v25, %v10674_v4  ;;  %v10679_v51 = vor.u32 %v13623_v5, %v10676_v19  ;;  %v10783_v13 = vor.u32 %v13648_v43, %v10780_v15  ;;  %v13640_v4 = vld [vmem:[#allocation11 + $0x2dc] sm:$0xf]  ;;  %v13729_v43 = vld [vmem:[#allocation11 + $0x19c] sm:$0xf0]  ;;  %v13725_v15 = vld [vmem:[#allocation11 + $0x184] sm:$0xf] }
 0x300   :  { %v10748_v25 = vld [vmem:[#allocation11 + $0x2f8] sm:$0xf0] }
 0x301   :  { %3680 = vmatpush.bf16.msrb.mxu1 %v10803_v0  ;;  %3706 = vmatpush.bf16.msra.mxu3 %v10807_v35  ;;  %v10644_v0 = vld [vmem:[#allocation11 + $0x230] sm:$0xf0]  ;;  %v10874_v35 = vld [vmem:[#allocation11 + $0x3d8] sm:$0xf]  ;;  %v10751_v19 = vor.u32 %v13640_v4, %v10748_v25  ;;  %v13721_v4 = vld [vmem:[#allocation11 + $0x15c] sm:$0xf0] }
 0x302   :  { %3723 = vmatpush.bf16.msra.mxu0 %v10427_v24  ;;  %3749 = vmatpush.bf16.msrb.mxu2 %v10431_v49  ;;  %v10876_v24 = vld [vmem:[#allocation11 + $0x3f8] sm:$0xf0]  ;;  %v10643_v49 = vor.u32 %v13619_v2, %v10642_v37  ;;  %v10647_v22 = vor.u32 %v13615_v61, %v10644_v0  ;;  %v13717_v25 = vld [vmem:[#allocation11 + $0x144] sm:$0xf] }
 0x303   :  { %v10879_v17 = vor.u32 %v13672_v46, %v10876_v24  ;;  %v13632_v37 = vld [vmem:[#allocation11 + $0x29c] sm:$0xf] }
 0x304   :  { %v10716_v2 = vld [vmem:[#allocation11 + $0x2b8] sm:$0xf0] }
 0x305   :  { %3681 = vmatpush.bf16.msrb.mxu1 %v10771_v55  ;;  %3707 = vmatpush.bf16.msra.mxu3 %v10775_v30  ;;  %v10843_v55 = vor.u32 %v13668_v54, %v10842_v7  ;;  %v10847_v30 = vor.u32 %v13664_v59, %v10844_v60  ;;  %v10719_v0 = vor.u32 %v13632_v37, %v10716_v2  ;;  %v13624_v46 = vld [vmem:[#allocation11 + $0x25c] sm:$0xf]  ;;  %v11016_v37 = vld [vmem:[#allocation11 + $0x100] sm:$0xf] }
 0x306   :  { %3724 = vmatpush.bf16.msra.mxu0 %v10395_v1  ;;  %3750 = vmatpush.bf16.msrb.mxu2 %v10399_v3  ;;  %v13660_v1 = vld [vmem:[#allocation11 + $0x374] sm:$0xf0]  ;;  %v13656_v3 = vld [vmem:[#allocation11 + $0x35c] sm:$0xf]  ;;  %v13713_v2 = vld [vmem:[#allocation11 + $0x11c] sm:$0xf0] }
 0x307   :  { %v10811_v47 = vor.u32 %v13660_v1, %v10810_v58  ;;  %v10815_v56 = vor.u32 %v13656_v3, %v10812_v39  ;;  %v10684_v24 = vld [vmem:[#allocation11 + $0x278] sm:$0xf0]  ;;  %v11112_v58 = vld [vmem:[#allocation11 + $0x1c0] sm:$0xf]  ;;  %v13733_v3 = vld [vmem:[#allocation11 + $0x1c4] sm:$0xf] }
 0x308   :  { %3634 = vmatmul.bf16.vlgmr.msra.gmra.mxu1 %v15531_v12  ;;  %3660 = vmatmul.bf16.vlgmr.msrb.gmra.mxu3 %v15531_v12  ;;  %v13616_v7 = vld [vmem:[#allocation11 + $0x21c] sm:$0xf]  ;;  %v13737_v1 = vld [vmem:[#allocation11 + $0x1dc] sm:$0xf0] }
 0x309   :  { %3682 = vmatpush.bf16.msrb.mxu1 %v10739_v8  ;;  %3708 = vmatpush.bf16.msra.mxu3 %v10743_v6  ;;  %v10778_v8 = vld [vmem:[#allocation11 + $0x318] sm:$0xf]  ;;  %v10652_v54 = vld [vmem:[#allocation11 + $0x238] sm:$0xf0]  ;;  %v11113_v39 = vor.u32 %v13737_v1, %v11112_v58  ;;  %v13693_v58 = vld [vmem:[#allocation11 + $0x84] sm:$0xf] }
 0x30a   :  { %3725 = vmatmul.bf16.vlgmr.msra.gmra.mxu0 %v15463_v27  ;;  %3751 = vmatmul.bf16.vlgmr.msrb.gmra.mxu2 %v15463_v27  ;;  %v10875_v27 = vor.u32 %v13676_v34, %v10874_v35  ;;  %v13652_v6 = vld [vmem:[#allocation11 + $0x334] sm:$0xf0]  ;;  %v10655_v60 = vor.u32 %v13616_v7, %v10652_v54 }
 0x30b   :  { %v10779_v26 = vor.u32 %v13652_v6, %v10778_v8  ;;  %v10682_v35 = vld [vmem:[#allocation11 + $0x258] sm:$0xf]  ;;  %4692 = vmatpush.bf16.msrb.mxu0 %v11113_v39  ;;  %v11080_v6 = vld [vmem:[#allocation11 + $0x180] sm:$0xf] }
 0x30c   :  { %v13628_v34 = vld [vmem:[#allocation11 + $0x274] sm:$0xf0] }
 0x30d   :  { %3683 = vmatpush.bf16.msrb.mxu1 %v10707_v16  ;;  %3709 = vmatpush.bf16.msra.mxu3 %v10711_v41  ;;  %v10746_v16 = vld [vmem:[#allocation11 + $0x2d8] sm:$0xf] }
 0x30e   :  { %v13644_v41 = vld [vmem:[#allocation11 + $0x2f4] sm:$0xf0] }
 0x30f   :  { %v10747_v5 = vor.u32 %v13644_v41, %v10746_v16  ;;  %v11048_v41 = vld [vmem:[#allocation11 + $0x140] sm:$0xf] }
 0x311   :  { %3684 = vmatpush.bf16.msrb.mxu1 %v10675_v21  ;;  %3710 = vmatpush.bf16.msra.mxu3 %v10679_v51  ;;  %v10714_v21 = vld [vmem:[#allocation11 + $0x298] sm:$0xf] }
 0x312   :  { %v13636_v51 = vld [vmem:[#allocation11 + $0x2b4] sm:$0xf0] }
 0x313   :  { %v10715_v61 = vor.u32 %v13636_v51, %v10714_v21 }
 0x315   :  { %3685 = vmatpush.bf16.msrb.mxu1 %v10643_v49  ;;  %3711 = vmatpush.bf16.msra.mxu3 %v10647_v22  ;;  %v10683_v49 = vor.u32 %v13628_v34, %v10682_v35  ;;  %v10687_v22 = vor.u32 %v13624_v46, %v10684_v24  ;;  %v11018_v35 = vld [vmem:[#allocation11 + $0x120] sm:$0xf0]  ;;  %v10984_v24 = vld [vmem:[#allocation11 + $0xc0] sm:$0xf] }
 0x318   :  { %3686 = vmatmul.bf16.vlgmr.msrb.gmra.mxu1 %v15531_v12  ;;  %3712 = vmatmul.bf16.vlgmr.msra.gmra.mxu3 %v15531_v12 }
 0x319   :  { %3730 = vmatpush.bf16.msra.mxu1 %v10875_v27  ;;  %3756 = vmatpush.bf16.msrb.mxu3 %v10879_v17  ;;  %v10650_v27 = vld [vmem:[#allocation11 + $0x218] sm:$0xf] }
 0x31a   :  { %v13620_v17 = vld [vmem:[#allocation11 + $0x234] sm:$0xf0] }
 0x31b   :  { %v10651_v59 = vor.u32 %v13620_v17, %v10650_v27  ;;  %v10986_v17 = vld [vmem:[#allocation11 + $0xe0] sm:$0xf0] }
 0x31d   :  { %3731 = vmatpush.bf16.msra.mxu1 %v10843_v55  ;;  %3757 = vmatpush.bf16.msrb.mxu3 %v10847_v30 }
 0x321   :  { %3732 = vmatpush.bf16.msra.mxu1 %v10811_v47  ;;  %3758 = vmatpush.bf16.msrb.mxu3 %v10815_v56  ;;  %v11114_v47 = vld [vmem:[#allocation11 + $0x1e0] sm:$0xf0] }
 0x322   :  { %v11117_v8 = vor.u32 %v13733_v3, %v11114_v47  ;;  %v10954_v3 = vld [vmem:[#allocation11 + $0xa0] sm:$0xf0] }
 0x323   :  { %v10957_v39 = vor.u32 %v13693_v58, %v10954_v3  ;;  %v11058_v3 = vld [vmem:[#allocation11 + $0x168] sm:$0xf0] }
 0x324   :  { %4718 = vmatpush.bf16.msra.mxu2 %v11117_v8  ;;  %v13689_v8 = vld [vmem:[#allocation11 + $0x5c] sm:$0xf0] }
 0x325   :  { %3733 = vmatpush.bf16.msra.mxu1 %v10779_v26  ;;  %3759 = vmatpush.bf16.msrb.mxu3 %v10783_v13  ;;  %v11081_v26 = vor.u32 %v13729_v43, %v11080_v6  ;;  %v11082_v13 = vld [vmem:[#allocation11 + $0x1a0] sm:$0xf0] }
 0x326   :  { %v11085_v16 = vor.u32 %v13725_v15, %v11082_v13  ;;  %v13685_v6 = vld [vmem:[#allocation11 + $0x44] sm:$0xf] }
 0x327   :  { %4693 = vmatpush.bf16.msrb.mxu0 %v11081_v26  ;;  %v10922_v15 = vld [vmem:[#allocation11 + $0x60] sm:$0xf0] }
 0x328   :  { %4719 = vmatpush.bf16.msra.mxu2 %v11085_v16  ;;  %v10925_v13 = vor.u32 %v13685_v6, %v10922_v15  ;;  %v10888_v16 = vld [vmem:[#allocation11] sm:$0xf]  ;;  %v13714_v15 = vld [vmem:[#allocation11 + $0x124] sm:$0xf0] }
 0x329   :  { %3734 = vmatpush.bf16.msra.mxu1 %v10747_v5  ;;  %3760 = vmatpush.bf16.msrb.mxu3 %v10751_v19  ;;  %v11049_v5 = vor.u32 %v13721_v4, %v11048_v41  ;;  %v11050_v19 = vld [vmem:[#allocation11 + $0x160] sm:$0xf0] }
 0x32a   :  { %v11053_v51 = vor.u32 %v13717_v25, %v11050_v19  ;;  %v13677_v41 = vld [vmem:[#allocation11 + $0x4] sm:$0xf]  ;;  %v13738_v19 = vld [vmem:[#allocation11 + $0x1e4] sm:$0xf0] }
 0x32b   :  { %4694 = vmatpush.bf16.msrb.mxu0 %v11049_v5  ;;  %v10890_v25 = vld [vmem:[#allocation11 + $0x20] sm:$0xf0]  ;;  %v11120_v5 = vld [vmem:[#allocation11 + $0x1c8] sm:$0xf] }
 0x32c   :  { %4720 = vmatpush.bf16.msra.mxu2 %v11053_v51  ;;  %v10893_v51 = vor.u32 %v13677_v41, %v10890_v25  ;;  %v11368_v25 = vld [vmem:[#allocation11 + $0x3c0] sm:$0xf] }
 0x32d   :  { %3735 = vmatpush.bf16.msra.mxu1 %v10715_v61  ;;  %3761 = vmatpush.bf16.msrb.mxu3 %v10719_v0  ;;  %v13709_v61 = vld [vmem:[#allocation11 + $0x104] sm:$0xf]  ;;  %v11017_v0 = vor.u32 %v13713_v2, %v11016_v37  ;;  %v11121_v37 = vor.u32 %v13738_v19, %v11120_v5  ;;  %v13734_v2 = vld [vmem:[#allocation11 + $0x1cc] sm:$0xf]  ;;  %v13801_v5 = vld [vmem:[#allocation11 + $0x3dc] sm:$0xf0] }
 0x32e   :  { %v11021_v34 = vor.u32 %v13709_v61, %v11018_v35  ;;  %v11122_v61 = vld [vmem:[#allocation11 + $0x1e8] sm:$0xf0] }
 0x32f   :  { %4695 = vmatpush.bf16.msrb.mxu0 %v11017_v0  ;;  %v11125_v0 = vor.u32 %v13734_v2, %v11122_v61 }
 0x330   :  { %4721 = vmatpush.bf16.msra.mxu2 %v11021_v34  ;;  %v11088_v34 = vld [vmem:[#allocation11 + $0x188] sm:$0xf] }
 0x331   :  { %3736 = vmatpush.bf16.msra.mxu1 %v10683_v49  ;;  %3762 = vmatpush.bf16.msrb.mxu3 %v10687_v22  ;;  %v13705_v49 = vld [vmem:[#allocation11 + $0xdc] sm:$0xf0]  ;;  %v13701_v22 = vld [vmem:[#allocation11 + $0xc4] sm:$0xf] }
 0x332   :  { %v10985_v27 = vor.u32 %v13705_v49, %v10984_v24  ;;  %v10989_v54 = vor.u32 %v13701_v22, %v10986_v17  ;;  %v13730_v24 = vld [vmem:[#allocation11 + $0x1a4] sm:$0xf0]  ;;  %v13726_v49 = vld [vmem:[#allocation11 + $0x18c] sm:$0xf] }
 0x333   :  { %v11090_v17 = vld [vmem:[#allocation11 + $0x1a8] sm:$0xf0] }
 0x334   :  { %4696 = vmatpush.bf16.msrb.mxu0 %v10985_v27  ;;  %4722 = vmatpush.bf16.msra.mxu2 %v10989_v54  ;;  %v11089_v27 = vor.u32 %v13730_v24, %v11088_v34  ;;  %v11056_v54 = vld [vmem:[#allocation11 + $0x148] sm:$0xf]  ;;  %v13702_v24 = vld [vmem:[#allocation11 + $0xcc] sm:$0xf] }
 0x335   :  { %3737 = vmatpush.bf16.msra.mxu1 %v10651_v59  ;;  %3763 = vmatpush.bf16.msrb.mxu3 %v10655_v60  ;;  %v10952_v59 = vld [vmem:[#allocation11 + $0x80] sm:$0xf]  ;;  %v13706_v34 = vld [vmem:[#allocation11 + $0xe4] sm:$0xf0] }
 0x336   :  { %v13697_v60 = vld [vmem:[#allocation11 + $0x9c] sm:$0xf0] }
 0x337   :  { %v10953_v1 = vor.u32 %v13697_v60, %v10952_v59  ;;  %v13722_v59 = vld [vmem:[#allocation11 + $0x164] sm:$0xf0]  ;;  %v13718_v60 = vld [vmem:[#allocation11 + $0x14c] sm:$0xf] }
 0x338   :  { %3738 = vmatmul.bf16.vlgmr.msra.gmra.mxu1 %v15531_v12  ;;  %3764 = vmatmul.bf16.vlgmr.msrb.gmra.mxu3 %v15531_v12 }
 0x339   :  { %4697 = vmatpush.bf16.msrb.mxu0 %v10953_v1  ;;  %4723 = vmatpush.bf16.msra.mxu2 %v10957_v39  ;;  %v11057_v1 = vor.u32 %v13722_v59, %v11056_v54  ;;  %v221_v39 = vadd.f32 %v15104_v29, %v15063_v11  ;;  %v13797_v29 = vld [vmem:[#allocation11 + $0x3c4] sm:$0xf]  ;;  %v11336_v54 = vld [vmem:[#allocation11 + $0x380] sm:$0xf] }
 0x33a   :  { %v13793_v59 = vld [vmem:[#allocation11 + $0x39c] sm:$0xf0] }
 0x33d   :  { %4724 = vmatpush.bf16.msra.mxu2 %v10925_v13  ;;  %v13710_v13 = vld [vmem:[#allocation11 + $0x10c] sm:$0xf] }
 0x341   :  { %4725 = vmatpush.bf16.msra.mxu2 %v10893_v51  ;;  %v11369_v51 = vor.u32 %v13801_v5, %v11368_v25  ;;  %v11306_v25 = vld [vmem:[#allocation11 + $0x360] sm:$0xf0] }
 0x343   :  { %4705 = vmatpush.bf16.msrb.mxu1 %v11369_v51  ;;  %v13690_v51 = vld [vmem:[#allocation11 + $0x64] sm:$0xf0] }
 0x345   :  { %4770 = vmatpush.bf16.msrb.mxu2 %v11125_v0  ;;  %v10992_v0 = vld [vmem:[#allocation11 + $0xc8] sm:$0xf] }
 0x346   :  { %v15543_v55 = vpop.f32.mrf.mxu0 }
 0x34c   :  { %v15545_v30 = vpop.f32.mrf.mxu2 }
 0x34e   :  { %v3572_v56 = vpop.f32.mrf.mxu0 }
 0x34f   :  { %v10920_v56 = vld [vmem:[#allocation11 + $0x40] sm:$0xf] }
 0x350   :  { %v10921_v43 = vor.u32 %v13689_v8, %v10920_v56  ;;  %v11061_v56 = vor.u32 %v13718_v60, %v11058_v3  ;;  %v13789_v60 = vld [vmem:[#allocation11 + $0x384] sm:$0xf]  ;;  %v10960_v3 = vld [vmem:[#allocation11 + $0x88] sm:$0xf] }
 0x352   :  { %4698 = vmatpush.bf16.msrb.mxu0 %v10921_v43  ;;  %v11024_v43 = vld [vmem:[#allocation11 + $0x108] sm:$0xf] }
 0x354   :  { %v3598_v12 = vpop.f32.mrf.mxu2 }
 0x355   :  { %v13681_v12 = vld [vmem:[#allocation11 + $0x1c] sm:$0xf0] }
 0x356   :  { %v15547_v21 = vpop.f32.mrf.mxu0  ;;  %v10889_v4 = vor.u32 %v13681_v12, %v10888_v16  ;;  %v11025_v16 = vor.u32 %v13714_v15, %v11024_v43  ;;  %v11026_v12 = vld [vmem:[#allocation11 + $0x128] sm:$0xf0]  ;;  %v11304_v15 = vld [vmem:[#allocation11 + $0x340] sm:$0xf] }
 0x358   :  { %4699 = vmatpush.bf16.msrb.mxu0 %v10889_v4  ;;  %v11029_v4 = vor.u32 %v13710_v13, %v11026_v12  ;;  %v13785_v13 = vld [vmem:[#allocation11 + $0x35c] sm:$0xf0] }
 0x35c   :  { %v15549_v46 = vpop.f32.mrf.mxu2  ;;  %4744 = vmatpush.bf16.msra.mxu0 %v11121_v37  ;;  %v11370_v37 = vld [vmem:[#allocation11 + $0x3e0] sm:$0xf0] }
 0x35d   :  { %v11373_v61 = vor.u32 %v13797_v29, %v11370_v37  ;;  %v13686_v29 = vld [vmem:[#allocation11 + $0x4c] sm:$0xf] }
 0x35e   :  { %v3624_v7 = vpop.f32.mrf.mxu0 }
 0x35f   :  { %v11093_v7 = vor.u32 %v13726_v49, %v11090_v17  ;;  %4731 = vmatpush.bf16.msra.mxu3 %v11373_v61 }
 0x360   :  { %4745 = vmatpush.bf16.msra.mxu0 %v11089_v27  ;;  %v10994_v27 = vld [vmem:[#allocation11 + $0xe8] sm:$0xf0] }
 0x361   :  { %4771 = vmatpush.bf16.msrb.mxu2 %v11093_v7  ;;  %v10997_v7 = vor.u32 %v13702_v24, %v10994_v27  ;;  %v11272_v24 = vld [vmem:[#allocation11 + $0x300] sm:$0xf] }
 0x364   :  { %v3650_v47 = vpop.f32.mrf.mxu2  ;;  %4746 = vmatpush.bf16.msra.mxu0 %v11057_v1 }
 0x365   :  { %4772 = vmatpush.bf16.msrb.mxu2 %v11061_v56  ;;  %v13694_v56 = vld [vmem:[#allocation11 + $0x8c] sm:$0xf] }
 0x366   :  { %v15551_v26 = vpop.f32.mrf.mxu0 }
 0x368   :  { %4747 = vmatpush.bf16.msra.mxu0 %v11025_v16  ;;  %v13781_v16 = vld [vmem:[#allocation11 + $0x344] sm:$0xf] }
 0x369   :  { %4773 = vmatpush.bf16.msrb.mxu2 %v11029_v4  ;;  %v11305_v4 = vor.u32 %v13785_v13, %v11304_v15  ;;  %v11309_v5 = vor.u32 %v13781_v16, %v11306_v25  ;;  %v11240_v15 = vld [vmem:[#allocation11 + $0x2c0] sm:$0xf]  ;;  %v13765_v16 = vld [vmem:[#allocation11 + $0x2c4] sm:$0xf] }
 0x36a   :  { %v13769_v13 = vld [vmem:[#allocation11 + $0x2dc] sm:$0xf0]  ;;  %v11242_v25 = vld [vmem:[#allocation11 + $0x2e0] sm:$0xf0] }
 0x36c   :  { %v15553_v35 = vpop.f32.mrf.mxu2 }
 0x36d   :  { %4774 = vmatpush.bf16.msrb.mxu2 %v10997_v7  ;;  %v11274_v7 = vld [vmem:[#allocation11 + $0x320] sm:$0xf0] }
 0x36e   :  { %v3676_v22 = vpop.f32.mrf.mxu0 }
 0x36f   :  { %v10993_v22 = vor.u32 %v13706_v34, %v10992_v0 }
 0x371   :  { %4748 = vmatpush.bf16.msra.mxu0 %v10993_v22  ;;  %v13773_v22 = vld [vmem:[#allocation11 + $0x304] sm:$0xf] }
 0x374   :  { %v3702_v8 = vpop.f32.mrf.mxu2 }
 0x375   :  { %v3583_v58 = vpop.f32.mrf.mxu1  ;;  %v10962_v8 = vld [vmem:[#allocation11 + $0xa8] sm:$0xf0] }
 0x376   :  { %v3584_v47 = vadd.f32 %v3583_v58, %v15543_v55  ;;  %v250_v55 = vadd.f32 %v15106_v23, %v15065_v20  ;;  %v11337_v23 = vor.u32 %v13793_v59, %v11336_v54  ;;  %v11338_v58 = vld [vmem:[#allocation11 + $0x3a0] sm:$0xf0]  ;;  %v10965_v43 = vor.u32 %v13694_v56, %v10962_v8 }
 0x377   :  { %v308_v8 = vadd.f32 %v15136_v18, %v15126_v57  ;;  %v15584_v18 = vld [vmem:[%s16352_s4] sm:$0xf] }
 0x378   :  { %v3776_v6 = vadd.f32 %v3584_v47, %v221_v39  ;;  %v13698_v39 = vld [vmem:[#allocation11 + $0xa4] sm:$0xf0]  ;;  %4706 = vmatpush.bf16.msrb.mxu1 %v11337_v23  ;;  %4775 = vmatpush.bf16.msrb.mxu2 %v10965_v43 }
 0x379   :  { %v10961_v47 = vor.u32 %v13698_v39, %v10960_v3  ;;  %v10896_v23 = vld [vmem:[#allocation11 + $0x8] sm:$0xf] }
 0x37a   :  { %v10883_v41 = vmul.f32 -1.442695, %v3776_v6 }
 0x37b   :  { %v3609_v19 = vpop.f32.mrf.mxu3  ;;  %4749 = vmatpush.bf16.msra.mxu0 %v10961_v47 }
 0x37c   :  { %14369 = vpow2.f32 %v10883_v41  ;;  %v3610_v2 = vadd.f32 %v3609_v19, %v15545_v30  ;;  %v11341_v30 = vor.u32 %v13789_v60, %v11338_v58  ;;  %v10928_v19 = vld [vmem:[#allocation11 + $0x48] sm:$0xf]  ;;  %4707 = vmatpush.bf16.msrb.mxu1 %v11305_v4  ;;  %v11277_v60 = vor.u32 %v13773_v22, %v11274_v7 }
 0x37d   :  { %v3585_v49 = vpop.f32.mrf.mxu1  ;;  %v10929_v0 = vor.u32 %v13690_v51, %v10928_v19  ;;  %v13682_v58 = vld [vmem:[#allocation11 + $0x24] sm:$0xf0]  ;;  %v11241_v51 = vor.u32 %v13769_v13, %v11240_v15 }
 0x37e   :  { %v3777_v17 = vadd.f32 %v3610_v2, %v250_v55  ;;  %4732 = vmatpush.bf16.msra.mxu3 %v11341_v30  ;;  %v10930_v55 = vld [vmem:[#allocation11 + $0x68] sm:$0xf0]  ;;  %v279_v2 = vadd.f32 %v15134_v42, %v15124_v14  ;;  %v13777_v49 = vld [vmem:[#allocation11 + $0x31c] sm:$0xf0] }
 0x37f   :  { %v10933_v34 = vor.u32 %v13686_v29, %v10930_v55  ;;  %4750 = vmatpush.bf16.msra.mxu0 %v10929_v0  ;;  %v13678_v42 = vld [vmem:[#allocation11 + $0xc] sm:$0xf]  ;;  %v11245_v29 = vor.u32 %v13765_v16, %v11242_v25  ;;  %v11208_v55 = vld [vmem:[#allocation11 + $0x280] sm:$0xf] }
 0x380   :  { %v10884_v1 = vmul.f32 -1.442695, %v3777_v17  ;;  %v11273_v17 = vor.u32 %v13777_v49, %v11272_v24  ;;  %v10898_v30 = vld [vmem:[#allocation11 + $0x28] sm:$0xf0]  ;;  %v11210_v24 = vld [vmem:[#allocation11 + $0x2a0] sm:$0xf0] }
 0x381   :  { %4776 = vmatpush.bf16.msrb.mxu2 %v10933_v34  ;;  %v10901_v39 = vor.u32 %v13678_v42, %v10898_v30  ;;  %v13757_v34 = vld [vmem:[#allocation11 + $0x284] sm:$0xf] }
 0x382   :  { %v14370_v6 = vpop.eup %14369  ;;  %14371 = vpow2.f32 %v10884_v1  ;;  %4733 = vmatpush.bf16.msra.mxu3 %v11309_v5  ;;  %4708 = vmatpush.bf16.msrb.mxu1 %v11273_v17  ;;  %v11213_v17 = vor.u32 %v13757_v34, %v11210_v24 }
 0x383   :  { %v15561_v12 = vadd.f32 1.0, %v14370_v6  ;;  %v3611_v41 = vpop.f32.mrf.mxu3 }
 0x385   :  { %14373 = vrcp.f32 %v15561_v12  ;;  %v3635_v37 = vpop.f32.mrf.mxu1  ;;  %4777 = vmatpush.bf16.msrb.mxu2 %v10901_v39  ;;  %v3880_v22 = vand.u32 2147483647, %v15561_v12  ;;  %vm3876_vm14 = vweird.f32 %v15561_v12  ;;  %v13749_v39 = vld [vmem:[#allocation11 + $0x244] sm:$0xf] }
 0x386   :  { %v3636_v61 = vadd.f32 %v3635_v37, %v15547_v21  ;;  %v10897_v21 = vor.u32 %v13682_v58, %v10896_v23  ;;  %4734 = vmatpush.bf16.msra.mxu3 %v11277_v60  ;;  %4709 = vmatpush.bf16.msrb.mxu1 %v11241_v51  ;;  %v3782_v60 = vperm.slane %v15584_v18, 0  ;;  %v11176_v23 = vld [vmem:[#allocation11 + $0x240] sm:$0xf] }
 0x387   :  { %v15567_v27 = vpop.f32.mrf.mxu0  ;;  %v13753_v58 = vld [vmem:[#allocation11 + $0x25c] sm:$0xf0]  ;;  %vm3881_vm0 = vcmp.eq.f32.partialorder %v3880_v22, 8.507059e+37  ;;  %v11376_v22 = vld [vmem:[#allocation11 + $0x3c8] sm:$0xf] }
 0x388   :  { %v14372_v54 = vpop.eup %14371  ;;  %v3778_v59 = vadd.f32 %v3636_v61, %v279_v2  ;;  %4751 = vmatpush.bf16.msra.mxu0 %v10897_v21  ;;  %v13761_v2 = vld [vmem:[#allocation11 + $0x29c] sm:$0xf0]  ;;  %v3783_v21 = vperm.slane %v15584_v18, 1 }
 0x389   :  { %v15569_v1 = vadd.f32 1.0, %v14372_v54  ;;  %v11209_v0 = vor.u32 %v13761_v2, %v11208_v55  ;;  %v13745_v55 = vld [vmem:[#allocation11 + $0x21c] sm:$0xf0]  ;;  %v13741_v2 = vld [vmem:[#allocation11 + $0x204] sm:$0xf] }
 0x38a   :  { %v10885_v3 = vmul.f32 -1.442695, %v3778_v59  ;;  %4735 = vmatpush.bf16.msra.mxu3 %v11245_v29  ;;  %v11144_v29 = vld [vmem:[#allocation11 + $0x200] sm:$0xf] }
 0x38b   :  { %v15571_v47 = vpop.eup %14373  ;;  %14375 = vrcp.f32 %v15569_v1  ;;  %v3661_v56 = vpop.f32.mrf.mxu3  ;;  %4710 = vmatpush.bf16.msrb.mxu1 %v11209_v0  ;;  %v3897_v15 = vand.u32 2147483648, %v15569_v1  ;;  %v3895_v13 = vand.u32 2147483647, %v15569_v1  ;;  %vm3891_vm2 = vweird.f32 %v15569_v1 }
 0x38c   :  { %v3872_v6 = vmul.f32 %v15571_v47, %v15561_v12  ;;  %14377 = vpow2.f32 %v10885_v3  ;;  %v3662_v43 = vadd.f32 %v3661_v56, %v15549_v46  ;;  %v3882_v46 = vand.u32 2147483648, %v15561_v12  ;;  %v11178_v56 = vld [vmem:[#allocation11 + $0x260] sm:$0xf0] }
 0x38d   :  { %v15579_v41 = vpop.f32.mrf.mxu2  ;;  %v3637_v4 = vpop.f32.mrf.mxu1  ;;  %vm3877_vm13 = vweird.f32 %v15571_v47  ;;  %v3898_v0 = vor.u32 1.1754944e-38, %v3897_v15  ;;  %vm3896_vm4 = vcmp.eq.f32.partialorder %v3895_v13, 8.507059e+37  ;;  %v11145_v34 = vor.u32 %v13745_v55, %v11144_v29  ;;  %v13782_v29 = vld [vmem:[#allocation11 + $0x34c] sm:$0xf] }
 0x38e   :  { %v3873_v5 = vsub.f32 1.0, %v3872_v6  ;;  %v3779_v19 = vadd.f32 %v3662_v43, %v308_v8  ;;  %vm15598_vm15 = vmor %vm3876_vm14, %vm3877_vm13  ;;  %v3883_v30 = vor.u32 1.1754944e-38, %v3882_v46  ;;  %4736 = vmatpush.bf16.msra.mxu3 %v11213_v17  ;;  %v11177_v6 = vor.u32 %v13753_v58, %v11176_v23  ;;  %v13802_v17 = vld [vmem:[#allocation11 + $0x3e4] sm:$0xf0]  ;;  %v11378_v23 = vld [vmem:[#allocation11 + $0x3e8] sm:$0xf0] }
 0x38f   :  { %v3728_v37 = vpop.f32.mrf.mxu0  ;;  %v11181_v43 = vor.u32 %v13749_v39, %v11178_v56  ;;  %v11344_v56 = vld [vmem:[#allocation11 + $0x388] sm:$0xf] }
 0x390   :  { %v3874_v61 = vmul.f32 %v15571_v47, %v3873_v5  ;;  %14379 = vtanh.f32 %v3779_v19  ;;  %4711 = vmatpush.bf16.msrb.mxu1 %v11177_v6  ;;  %v13790_v6 = vld [vmem:[#allocation11 + $0x38c] sm:$0xf] }
 0x391   :  { %v14376_v49 = vpop.eup %14375 }
 0x392   :  { %v14378_v7 = vpop.eup %14377  ;;  %v3887_v54 = vmul.f32 %v14376_v49, %v15569_v1  ;;  %v3875_v59 = vadd.f32 %v15571_v47, %v3874_v61  ;;  %vm3892_vm1 = vweird.f32 %v14376_v49  ;;  %4737 = vmatpush.bf16.msra.mxu3 %v11181_v43  ;;  %v11146_v61 = vld [vmem:[#allocation11 + $0x220] sm:$0xf0]  ;;  %v11346_v43 = vld [vmem:[#allocation11 + $0x3a8] sm:$0xf0] }
 0x393   :  { %v15594_v42 = vadd.f32 1.0, %v14378_v7  ;;  %v3663_v3 = vpop.f32.mrf.mxu3  ;;  %vm3893_vm3 = vmor %vm3891_vm2, %vm3892_vm1  ;;  %v11149_v24 = vor.u32 %v13741_v2, %v11146_v61 }
 0x394   :  { %v3888_v8 = vsub.f32 1.0, %v3887_v54  ;;  %v3879_v12 = vsel %vm15598_vm15, %v15571_v47, %v3875_v59  ;;  %v11377_v54 = vor.u32 %v13802_v17, %v11376_v22  ;;  %v13798_v59 = vld [vmem:[#allocation11 + $0x3cc] sm:$0xf]  ;;  %4712 = vmatpush.bf16.msrb.mxu1 %v11145_v34  ;;  %v11128_v22 = vld [vmem:[#allocation11 + $0x1d0] sm:$0xf] }
 0x395   :  { %14381 = vrcp.f32 %v15594_v42  ;;  %v3754_v16 = vpop.f32.mrf.mxu2  ;;  %v3687_v4 = vpop.f32.mrf.mxu1  ;;  %v3884_v19 = vsel %vm3881_vm0, %v3883_v30, %v3879_v12  ;;  %v11381_v30 = vor.u32 %v13798_v59, %v11378_v23  ;;  %vm3906_vm6 = vweird.f32 %v15594_v42  ;;  %v13739_v17 = vld [vmem:[#allocation11 + $0x1ec] sm:$0xf0]  ;;  %v13774_v59 = vld [vmem:[#allocation11 + $0x30c] sm:$0xf] }
 0x396   :  { %v14380_v25 = vpop.eup %14379  ;;  %v3889_v5 = vmul.f32 %v14376_v49, %v3888_v8  ;;  %v3688_v51 = vadd.f32 %v3687_v4, %v15551_v26  ;;  %4738 = vmatpush.bf16.msra.mxu3 %v11149_v24  ;;  %v13794_v8 = vld [vmem:[#allocation11 + $0x3a4] sm:$0xf0]  ;;  %v11349_v4 = vor.u32 %v13790_v6, %v11346_v43  ;;  %v13727_v43 = vld [vmem:[#allocation11 + $0x194] sm:$0xf] }
 0x397   :  { %v3918_v47 = vmul.f32 %v14380_v25, %v3884_v19  ;;  %v11345_v16 = vor.u32 %v13794_v8, %v11344_v56  ;;  %v3910_v25 = vand.u32 2147483647, %v15594_v42  ;;  %v11129_v56 = vor.u32 %v13739_v17, %v11128_v22  ;;  %v13758_v22 = vld [vmem:[#allocation11 + $0x28c] sm:$0xf] }
 0x398   :  { %v3890_v46 = vadd.f32 %v14376_v49, %v3889_v5  ;;  %v3790_v37 = vadd.f32 %v3782_v60, %v3688_v51  ;;  %4757 = vmatpush.bf16.msra.mxu1 %v11377_v54  ;;  %v13786_v51 = vld [vmem:[#allocation11 + $0x364] sm:$0xf0]  ;;  %v11218_v17 = vld [vmem:[#allocation11 + $0x2a8] sm:$0xf0] }
 0x399   :  { %vm3911_vm8 = vcmp.eq.f32.partialorder %v3910_v25, 8.507059e+37  ;;  %v13778_v54 = vld [vmem:[#allocation11 + $0x324] sm:$0xf0] }
 0x39a   :  { %v3894_v7 = vsel %vm3893_vm3, %v14376_v49, %v3890_v46  ;;  %v10880_v26 = vmul.f32 -1.442695, %v3790_v37  ;;  %4783 = vmatpush.bf16.msrb.mxu3 %v11381_v30  ;;  %v13770_v25 = vld [vmem:[#allocation11 + $0x2e4] sm:$0xf0] }
 0x39b   :  { %v14382_v1 = vpop.eup %14381  ;;  %v3899_v58 = vsel %vm3896_vm4, %v3898_v0, %v3894_v7  ;;  %v3713_v60 = vpop.f32.mrf.mxu3 }
 0x39c   :  { %v3902_v3 = vmul.f32 %v14382_v1, %v15594_v42  ;;  %v3917_v39 = vmul.f32 %v3899_v58, %v15454_v53  ;;  %14383 = vpow2.f32 %v10880_v26  ;;  %v3714_v49 = vadd.f32 %v3713_v60, %v15553_v35  ;;  %v11312_v35 = vld [vmem:[#allocation11 + $0x348] sm:$0xf]  ;;  %4758 = vmatpush.bf16.msra.mxu1 %v11345_v16  ;;  %v13735_v58 = vld [vmem:[#allocation11 + $0x1d4] sm:$0xf] }
 0x39d   :  { %v3689_v12 = vpop.f32.mrf.mxu1  ;;  %v3912_v53 = vand.u32 2147483648, %v15594_v42  ;;  %vm3907_vm5 = vweird.f32 %v14382_v1  ;;  %v11313_v37 = vor.u32 %v13786_v51, %v11312_v35  ;;  %v11280_v26 = vld [vmem:[#allocation11 + $0x308] sm:$0xf]  ;;  %v11130_v60 = vld [vmem:[#allocation11 + $0x1f0] sm:$0xf0] }
 0x39e   :  { %v3903_v15 = vsub.f32 1.0, %v3902_v3  ;;  %v15614_v13 = vadd.f32 %v3918_v47, %v3917_v39  ;;  %v3791_v5 = vadd.f32 %v3783_v21, %v3714_v49  ;;  %4784 = vmatpush.bf16.msrb.mxu3 %v11349_v4  ;;  %v11314_v47 = vld [vmem:[#allocation11 + $0x368] sm:$0xf0]  ;;  %vm3908_vm7 = vmor %vm3906_vm6, %vm3907_vm5  ;;  %v11281_v30 = vor.u32 %v13778_v54, %v11280_v26  ;;  %v11096_v49 = vld [vmem:[#allocation11 + $0x190] sm:$0xf] }
 0x39f   :  { %v11317_v61 = vor.u32 %v13782_v29, %v11314_v47  ;;  %v3913_v0 = vor.u32 1.1754944e-38, %v3912_v53  ;;  %v11282_v42 = vld [vmem:[#allocation11 + $0x328] sm:$0xf0]  ;;  %v11133_v8 = vor.u32 %v13735_v58, %v11130_v60  ;;  %v13731_v12 = vld [vmem:[#allocation11 + $0x1ac] sm:$0xf0] }
 0x3a0   :  { %v3904_v19 = vmul.f32 %v14382_v1, %v3903_v15  ;;  %14385 = vtanh.f32 %v15614_v13  ;;  %v10881_v46 = vmul.f32 -1.442695, %v3791_v5  ;;  %4759 = vmatpush.bf16.msra.mxu1 %v11313_v37  ;;  %v11285_v3 = vor.u32 %v13774_v59, %v11282_v42  ;;  %v11098_v15 = vld [vmem:[#allocation11 + $0x1b0] sm:$0xf0]  ;;  %v11248_v16 = vld [vmem:[#allocation11 + $0x2c8] sm:$0xf] }
 0x3a1   :  { %v13766_v53 = vld [vmem:[#allocation11 + $0x2cc] sm:$0xf]  ;;  %v11249_v5 = vor.u32 %v13770_v25, %v11248_v16  ;;  %v11097_v35 = vor.u32 %v13731_v12, %v11096_v49  ;;  %v11101_v51 = vor.u32 %v13727_v43, %v11098_v15  ;;  %v11064_v29 = vld [vmem:[#allocation11 + $0x150] sm:$0xf]  ;;  %v13719_v37 = vld [vmem:[#allocation11 + $0x154] sm:$0xf]  ;;  %v11221_v59 = vor.u32 %v13758_v22, %v11218_v17 }
 0x3a2   :  { %v14384_v55 = vpop.eup %14383  ;;  %v3905_v2 = vadd.f32 %v14382_v1, %v3904_v19  ;;  %14387 = vpow2.f32 %v10881_v46  ;;  %4785 = vmatpush.bf16.msrb.mxu3 %v11317_v61  ;;  %v11250_v19 = vld [vmem:[#allocation11 + $0x2e8] sm:$0xf0]  ;;  %v13723_v46 = vld [vmem:[#allocation11 + $0x16c] sm:$0xf0]  ;;  %v11216_v61 = vld [vmem:[#allocation11 + $0x288] sm:$0xf] }
 0x3a3   :  { %v15620_v34 = vadd.f32 1.0, %v14384_v55  ;;  %v3715_v24 = vpop.f32.mrf.mxu3  ;;  %v11066_v55 = vld [vmem:[#allocation11 + $0x170] sm:$0xf0]  ;;  %v11032_v26 = vld [vmem:[#allocation11 + $0x110] sm:$0xf]  ;;  %v11065_v58 = vor.u32 %v13723_v46, %v11064_v29 }
 0x3a4   :  { %v3909_v7 = vsel %vm3908_vm7, %v14382_v1, %v3905_v2  ;;  %4760 = vmatpush.bf16.msra.mxu1 %v11281_v30  ;;  %v11253_v2 = vor.u32 %v13766_v53, %v11250_v19  ;;  %v13715_v54 = vld [vmem:[#allocation11 + $0x12c] sm:$0xf0]  ;;  %v11069_v60 = vor.u32 %v13719_v37, %v11066_v55  ;;  %v13711_v42 = vld [vmem:[#allocation11 + $0x114] sm:$0xf]  ;;  %v11184_v30 = vld [vmem:[#allocation11 + $0x248] sm:$0xf] }
 0x3a5   :  { %v3914_v23 = vsel %vm3911_vm8, %v3913_v0, %v3909_v7  ;;  %14389 = vrcp.f32 %v15620_v34  ;;  %v13762_v0 = vld [vmem:[#allocation11 + $0x2a4] sm:$0xf0]  ;;  %v3784_v7 = vperm.slane %v15584_v18, 2  ;;  %v11000_v15 = vld [vmem:[#allocation11 + $0xd0] sm:$0xf]  ;;  %vm3811_vm11 = vweird.f32 %v15620_v34 }
 0x3a6   :  { %v14386_v21 = vpop.eup %14385  ;;  %4786 = vmatpush.bf16.msrb.mxu3 %v11285_v3  ;;  %v11217_v24 = vor.u32 %v13762_v0, %v11216_v61  ;;  %v13754_v3 = vld [vmem:[#allocation11 + $0x264] sm:$0xf0]  ;;  %v13707_v16 = vld [vmem:[#allocation11 + $0xec] sm:$0xf0]  ;;  %v11002_v37 = vld [vmem:[#allocation11 + $0xf0] sm:$0xf0] }
 0x3a7   :  { %v3921_v39 = vmul.f32 %v14386_v21, %v3914_v23  ;;  %v11034_v21 = vld [vmem:[#allocation11 + $0x130] sm:$0xf0]  ;;  %v11185_v12 = vor.u32 %v13754_v3, %v11184_v30  ;;  %v13746_v55 = vld [vmem:[#allocation11 + $0x224] sm:$0xf0]  ;;  %v13742_v61 = vld [vmem:[#allocation11 + $0x20c] sm:$0xf]  ;;  %v11001_v22 = vor.u32 %v13707_v16, %v11000_v15 }
 0x3a8   :  { %v14388_v1 = vpop.eup %14387  ;;  %4761 = vmatpush.bf16.msra.mxu1 %v11249_v5  ;;  %v11033_v5 = vor.u32 %v13715_v54, %v11032_v26  ;;  %v11037_v19 = vor.u32 %v13711_v42, %v11034_v21  ;;  %v11154_v0 = vld [vmem:[#allocation11 + $0x228] sm:$0xf0]  ;;  %v10970_v42 = vld [vmem:[#allocation11 + $0xb0] sm:$0xf0] }
 0x3a9   :  { %v15623_v6 = vpack.c.bf16 %v3921_v39, %v3921_v39  ;;  %v15625_v4 = vadd.f32 1.0, %v14388_v1  ;;  %v13750_v39 = vld [vmem:[#allocation11 + $0x24c] sm:$0xf]  ;;  %v11157_v21 = vor.u32 %v13742_v61, %v11154_v0  ;;  %v13687_v15 = vld [vmem:[#allocation11 + $0x54] sm:$0xf] }
 0x3aa   :  { %4787 = vmatpush.bf16.msrb.mxu3 %v11253_v2  ;;  %v10938_v16 = vld [vmem:[#allocation11 + $0x70] sm:$0xf0] }
 0x3ab   :  { %4700 = vmatmul.bf16.vlgmr.msrb.gmra.mxu0 %v15623_v6  ;;  %4726 = vmatmul.bf16.vlgmr.msra.gmra.mxu2 %v15623_v6  ;;  %14391 = vrcp.f32 %v15625_v4  ;;  %v15630_v47 = vpop.eup %14389  ;;  %vm3826_vm12 = vweird.f32 %v15625_v4  ;;  %v13679_v61 = vld [vmem:[#allocation11 + $0x14] sm:$0xf] }
 0x3ac   :  { %4796 = vmatpush.bf16.msrb.mxu0 %v11129_v56  ;;  %4822 = vmatpush.bf16.msra.mxu2 %v11133_v8  ;;  %v3807_v23 = vmul.f32 %v15630_v47, %v15620_v34  ;;  %v11186_v56 = vld [vmem:[#allocation11 + $0x268] sm:$0xf0]  ;;  %vm3812_vm9 = vweird.f32 %v15630_v47  ;;  %v10906_v0 = vld [vmem:[#allocation11 + $0x30] sm:$0xf0] }
 0x3ad   :  { %4762 = vmatpush.bf16.msra.mxu1 %v11217_v24  ;;  %v11189_v25 = vor.u32 %v13750_v39, %v11186_v56  ;;  %v3785_v24 = vperm.slane %v15584_v18, 3  ;;  %vm15656_vm13 = vmor %vm3811_vm11, %vm3812_vm9 }
 0x3ae   :  { %4788 = vmatpush.bf16.msrb.mxu3 %v11221_v59  ;;  %v3808_v53 = vsub.f32 1.0, %v3807_v23  ;;  %v13699_v23 = vld [vmem:[#allocation11 + $0xac] sm:$0xf0] }
 0x3b0   :  { %4797 = vmatpush.bf16.msrb.mxu0 %v11097_v35  ;;  %4823 = vmatpush.bf16.msra.mxu2 %v11101_v51  ;;  %v13703_v35 = vld [vmem:[#allocation11 + $0xd4] sm:$0xf]  ;;  %v11152_v51 = vld [vmem:[#allocation11 + $0x208] sm:$0xf]  ;;  %v3809_v26 = vmul.f32 %v15630_v47, %v3808_v53  ;;  %v3815_v53 = vand.u32 2147483647, %v15620_v34 }
 0x3b1   :  { %v15635_v8 = vpop.eup %14391  ;;  %4763 = vmatpush.bf16.msra.mxu1 %v11185_v12  ;;  %v11153_v2 = vor.u32 %v13746_v55, %v11152_v51  ;;  %v11005_v54 = vor.u32 %v13703_v35, %v11002_v37  ;;  %v13691_v12 = vld [vmem:[#allocation11 + $0x6c] sm:$0xf0] }
 0x3b2   :  { %v3822_v1 = vmul.f32 %v15635_v8, %v15625_v4  ;;  %4789 = vmatpush.bf16.msrb.mxu3 %v11189_v25  ;;  %vm3827_vm10 = vweird.f32 %v15635_v8  ;;  %v3810_v39 = vadd.f32 %v15630_v47, %v3809_v26  ;;  %vm3816_vm15 = vcmp.eq.f32.partialorder %v3815_v53, 8.507059e+37  ;;  %v11074_v25 = vld [vmem:[#allocation11 + $0x178] sm:$0xf0] }
 0x3b3   :  { %vm15664_vm14 = vmor %vm3826_vm12, %vm3827_vm10 }
 0x3b4   :  { %4798 = vmatpush.bf16.msrb.mxu0 %v11065_v58  ;;  %4824 = vmatpush.bf16.msra.mxu2 %v11069_v60  ;;  %v3823_v29 = vsub.f32 1.0, %v3822_v1  ;;  %v13695_v60 = vld [vmem:[#allocation11 + $0x94] sm:$0xf]  ;;  %v3832_v1 = vand.u32 2147483648, %v15625_v4  ;;  %v3814_v55 = vsel %vm15656_vm13, %v15630_v47, %v3810_v39  ;;  %v11138_v47 = vld [vmem:[#allocation11 + $0x1f8] sm:$0xf0] }
 0x3b5   :  { %v3739_v49 = vpop.f32.mrf.mxu1  ;;  %4764 = vmatpush.bf16.msra.mxu1 %v11153_v2  ;;  %v10941_v2 = vor.u32 %v13687_v15, %v10938_v16  ;;  %v11106_v39 = vld [vmem:[#allocation11 + $0x1b8] sm:$0xf0]  ;;  %v13724_v15 = vld [vmem:[#allocation11 + $0x174] sm:$0xf0] }
 0x3b6   :  { %v3740_v43 = vadd.f32 %v3739_v49, %v15567_v27  ;;  %v3824_v17 = vmul.f32 %v15635_v8, %v3823_v29  ;;  %v10936_v49 = vld [vmem:[#allocation11 + $0x50] sm:$0xf]  ;;  %4790 = vmatpush.bf16.msrb.mxu3 %v11157_v21  ;;  %v11104_v21 = vld [vmem:[#allocation11 + $0x198] sm:$0xf]  ;;  %v13720_v16 = vld [vmem:[#allocation11 + $0x15c] sm:$0xf] }
 0x3b7   :  { %v10937_v51 = vor.u32 %v13691_v12, %v10936_v49  ;;  %v10904_v29 = vld [vmem:[#allocation11 + $0x10] sm:$0xf] }
 0x3b8   :  { %v3792_v46 = vadd.f32 %v3784_v7, %v3740_v43  ;;  %4799 = vmatpush.bf16.msrb.mxu0 %v11033_v5  ;;  %4825 = vmatpush.bf16.msra.mxu2 %v11037_v19  ;;  %v10968_v7 = vld [vmem:[#allocation11 + $0x90] sm:$0xf]  ;;  %v3825_v56 = vadd.f32 %v15635_v8, %v3824_v17  ;;  %v3817_v43 = vand.u32 2147483648, %v15620_v34  ;;  %v3830_v5 = vand.u32 2147483647, %v15625_v4 }
 0x3b9   :  { %v10969_v3 = vor.u32 %v13699_v23, %v10968_v7  ;;  %v13740_v17 = vld [vmem:[#allocation11 + $0x1f4] sm:$0xf0] }
 0x3ba   :  { %v10882_v27 = vmul.f32 -1.442695, %v3792_v46  ;;  %v13683_v46 = vld [vmem:[#allocation11 + $0x2c] sm:$0xf0]  ;;  %v3829_v34 = vsel %vm15664_vm14, %v15635_v8, %v3825_v56  ;;  %vm3831_vm0 = vcmp.eq.f32.partialorder %v3830_v5, 8.507059e+37 }
 0x3bb   :  { %v3765_v59 = vpop.f32.mrf.mxu3  ;;  %4752 = vmatmul.bf16.vlgmr.msra.gmra.mxu0 %v15623_v6  ;;  %4778 = vmatmul.bf16.vlgmr.msrb.gmra.mxu2 %v15623_v6  ;;  %v10905_v23 = vor.u32 %v13683_v46, %v10904_v29  ;;  %v11040_v29 = vld [vmem:[#allocation11 + $0x118] sm:$0xf] }
 0x3bc   :  { %14393 = vpow2.f32 %v10882_v27  ;;  %v3766_v58 = vadd.f32 %v3765_v59, %v15579_v41  ;;  %4800 = vmatpush.bf16.msrb.mxu0 %v11001_v22  ;;  %4826 = vmatpush.bf16.msra.mxu2 %v11005_v54  ;;  %v10973_v41 = vor.u32 %v13695_v60, %v10970_v42  ;;  %v3833_v27 = vor.u32 1.1754944e-38, %v3832_v1  ;;  %v11136_v22 = vld [vmem:[#allocation11 + $0x1d8] sm:$0xf]  ;;  %v13736_v59 = vld [vmem:[#allocation11 + $0x1dc] sm:$0xf] }
 0x3bd   :  { %v3741_v18 = vpop.f32.mrf.mxu1  ;;  %v11137_v60 = vor.u32 %v13740_v17, %v11136_v22  ;;  %v11141_v42 = vor.u32 %v13736_v59, %v11138_v47  ;;  %v13716_v46 = vld [vmem:[#allocation11 + $0x134] sm:$0xf0]  ;;  %v11386_v59 = vld [vmem:[#allocation11 + $0x3f0] sm:$0xf0] }
 0x3be   :  { %v3793_v30 = vadd.f32 %v3785_v24, %v3766_v58  ;;  %v3818_v24 = vor.u32 1.1754944e-38, %v3817_v43  ;;  %v3834_v7 = vsel %vm3831_vm0, %v3833_v27, %v3829_v34  ;;  %v10909_v58 = vor.u32 %v13679_v61, %v10906_v0  ;;  %v11072_v43 = vld [vmem:[#allocation11 + $0x158] sm:$0xf]  ;;  %v11042_v34 = vld [vmem:[#allocation11 + $0x138] sm:$0xf0] }
 0x3bf   :  { %v3852_v18 = vmul.f32 %v3834_v7, %v15518_v9  ;;  %v11073_v5 = vor.u32 %v13724_v15, %v11072_v43  ;;  %v13803_v0 = vld [vmem:[#allocation11 + $0x3ec] sm:$0xf0]  ;;  %v13799_v27 = vld [vmem:[#allocation11 + $0x3d4] sm:$0xf]  ;;  %v11041_v22 = vor.u32 %v13716_v46, %v11040_v29  ;;  %v11008_v47 = vld [vmem:[#allocation11 + $0xd8] sm:$0xf] }
 0x3c0   :  { %14395 = vtanh.f32 %v3793_v30  ;;  %4801 = vmatpush.bf16.msrb.mxu0 %v10969_v3  ;;  %4827 = vmatpush.bf16.msra.mxu2 %v10973_v41  ;;  %v3819_v54 = vsel %vm3816_vm15, %v3818_v24, %v3814_v55  ;;  %v13732_v30 = vld [vmem:[#allocation11 + $0x1b4] sm:$0xf0]  ;;  %v13728_v3 = vld [vmem:[#allocation11 + $0x19c] sm:$0xf] }
 0x3c1   :  { %v11105_v12 = vor.u32 %v13732_v30, %v11104_v21  ;;  %v11109_v1 = vor.u32 %v13728_v3, %v11106_v39  ;;  %v13712_v55 = vld [vmem:[#allocation11 + $0x11c] sm:$0xf]  ;;  %v13708_v7 = vld [vmem:[#allocation11 + $0xf4] sm:$0xf0]  ;;  %v13795_v21 = vld [vmem:[#allocation11 + $0x3ac] sm:$0xf0] }
 0x3c2   :  { %v14394_v19 = vpop.eup %14393  ;;  %v11045_v17 = vor.u32 %v13712_v55, %v11042_v34  ;;  %v11009_v30 = vor.u32 %v13708_v7, %v11008_v47  ;;  %v13791_v39 = vld [vmem:[#allocation11 + $0x394] sm:$0xf]  ;;  %v10978_v43 = vld [vmem:[#allocation11 + $0xb8] sm:$0xf0]  ;;  %v13692_v29 = vld [vmem:[#allocation11 + $0x74] sm:$0xf0] }
 0x3c3   :  { %v15668_v37 = vadd.f32 1.0, %v14394_v19  ;;  %v3767_v4 = vpop.f32.mrf.mxu3  ;;  %v13688_v46 = vld [vmem:[#allocation11 + $0x5c] sm:$0xf] }
 0x3c4   :  { %4802 = vmatpush.bf16.msrb.mxu0 %v10937_v51  ;;  %4828 = vmatpush.bf16.msra.mxu2 %v10941_v2  ;;  %v11077_v51 = vor.u32 %v13720_v16, %v11074_v25  ;;  %v11384_v2 = vld [vmem:[#allocation11 + $0x3d0] sm:$0xf]  ;;  %v10946_v55 = vld [vmem:[#allocation11 + $0x78] sm:$0xf0] }
 0x3c5   :  { %14397 = vrcp.f32 %v15668_v37  ;;  %v3847_v9 = vand.u32 2147483648, %v15668_v37  ;;  %v3845_v35 = vand.u32 2147483647, %v15668_v37  ;;  %vm3841_vm2 = vweird.f32 %v15668_v37  ;;  %v11320_v25 = vld [vmem:[#allocation11 + $0x350] sm:$0xf] }
 0x3c6   :  { %v14396_v26 = vpop.eup %14395  ;;  %v13680_v47 = vld [vmem:[#allocation11 + $0x1c] sm:$0xf] }
 0x3c7   :  { %v3853_v8 = vmul.f32 %v14396_v26, %v3819_v54  ;;  %v3848_v61 = vor.u32 1.1754944e-38, %v3847_v9  ;;  %vm3846_vm4 = vcmp.eq.f32.partialorder %v3845_v35, 8.507059e+37  ;;  %v11322_v35 = vld [vmem:[#allocation11 + $0x370] sm:$0xf0] }
 0x3c8   :  { %4803 = vmatpush.bf16.msrb.mxu0 %v10905_v23  ;;  %4829 = vmatpush.bf16.msra.mxu2 %v10909_v58  ;;  %v11010_v23 = vld [vmem:[#allocation11 + $0xf8] sm:$0xf0] }
 0x3c9   :  { %v15678_v41 = vadd.f32 %v3853_v8, %v3852_v18  ;;  %v13704_v8 = vld [vmem:[#allocation11 + $0xdc] sm:$0xf] }
 0x3ca   :  { %v11013_v3 = vor.u32 %v13704_v8, %v11010_v23  ;;  %v11256_v8 = vld [vmem:[#allocation11 + $0x2d0] sm:$0xf] }
 0x3cb   :  { %v14398_v56 = vpop.eup %14397  ;;  %4804 = vmatmul.bf16.vlgmr.msrb.gmra.mxu0 %v15623_v6  ;;  %4830 = vmatmul.bf16.vlgmr.msra.gmra.mxu2 %v15623_v6  ;;  %14399 = vtanh.f32 %v15678_v41 }
 0x3cc   :  { %v3837_v49 = vmul.f32 %v14398_v56, %v15668_v37  ;;  %4848 = vmatpush.bf16.msra.mxu0 %v11137_v60  ;;  %4874 = vmatpush.bf16.msrb.mxu2 %v11141_v42  ;;  %vm3842_vm1 = vweird.f32 %v14398_v56  ;;  %v11385_v37 = vor.u32 %v13803_v0, %v11384_v2  ;;  %v11389_v60 = vor.u32 %v13799_v27, %v11386_v59  ;;  %v11352_v42 = vld [vmem:[#allocation11 + $0x390] sm:$0xf]  ;;  %v13684_v59 = vld [vmem:[#allocation11 + $0x34] sm:$0xf0] }
 0x3cd   :  { %vm3843_vm3 = vmor %vm3841_vm2, %vm3842_vm1  ;;  %v11353_v15 = vor.u32 %v13795_v21, %v11352_v42  ;;  %v11288_v2 = vld [vmem:[#allocation11 + $0x310] sm:$0xf]  ;;  %v10949_v27 = vor.u32 %v13688_v46, %v10946_v55  ;;  %v13767_v42 = vld [vmem:[#allocation11 + $0x2d4] sm:$0xf] }
 0x3ce   :  { %v3838_v53 = vsub.f32 1.0, %v3837_v49  ;;  %v10976_v49 = vld [vmem:[#allocation11 + $0x98] sm:$0xf]  ;;  %v11258_v21 = vld [vmem:[#allocation11 + $0x2f0] sm:$0xf0] }
 0x3cf   :  { %v11392_v46 = vld [vmem:[#allocation11 + $0x3d8] sm:$0xf] }
 0x3d0   :  { %v3839_v19 = vmul.f32 %v14398_v56, %v3838_v53  ;;  %4849 = vmatpush.bf16.msra.mxu0 %v11105_v12  ;;  %4875 = vmatpush.bf16.msrb.mxu2 %v11109_v1  ;;  %v13700_v12 = vld [vmem:[#allocation11 + $0xb4] sm:$0xf0]  ;;  %v13696_v1 = vld [vmem:[#allocation11 + $0x9c] sm:$0xf]  ;;  %v13787_v53 = vld [vmem:[#allocation11 + $0x36c] sm:$0xf0] }
 0x3d1   :  { %v14400_v26 = vpop.eup %14399  ;;  %v10977_v9 = vor.u32 %v13700_v12, %v10976_v49  ;;  %v11321_v34 = vor.u32 %v13787_v53, %v11320_v25  ;;  %v13759_v49 = vld [vmem:[#allocation11 + $0x294] sm:$0xf]  ;;  %v13804_v55 = vld [vmem:[#allocation11 + $0x3f4] sm:$0xf0] }
 0x3d2   :  { %v3840_v4 = vadd.f32 %v14398_v56, %v3839_v19  ;;  %v13783_v19 = vld [vmem:[#allocation11 + $0x354] sm:$0xf] }
 0x3d3   :  { %v11226_v12 = vld [vmem:[#allocation11 + $0x2b0] sm:$0xf0] }
 0x3d4   :  { %v3844_v24 = vsel %vm3843_vm3, %v14398_v56, %v3840_v4  ;;  %4850 = vmatpush.bf16.msra.mxu0 %v11073_v5  ;;  %4876 = vmatpush.bf16.msrb.mxu2 %v11077_v51  ;;  %v11354_v56 = vld [vmem:[#allocation11 + $0x3b0] sm:$0xf0]  ;;  %v10981_v5 = vor.u32 %v13696_v1, %v10978_v43  ;;  %v10944_v51 = vld [vmem:[#allocation11 + $0x58] sm:$0xf]  ;;  %v11325_v4 = vor.u32 %v13783_v19, %v11322_v35  ;;  %v11160_v19 = vld [vmem:[#allocation11 + $0x210] sm:$0xf] }
 0x3d5   :  { %v3849_v54 = vsel %vm3846_vm4, %v3848_v61, %v3844_v24  ;;  %v11357_v16 = vor.u32 %v13791_v39, %v11354_v56  ;;  %v13779_v61 = vld [vmem:[#allocation11 + $0x32c] sm:$0xf0]  ;;  %v10945_v0 = vor.u32 %v13692_v29, %v10944_v51  ;;  %v13775_v24 = vld [vmem:[#allocation11 + $0x314] sm:$0xf]  ;;  %v11229_v43 = vor.u32 %v13759_v49, %v11226_v12  ;;  %v13772_v49 = vld [vmem:[#allocation11 + $0x2f4] sm:$0xf0] }
 0x3d6   :  { %v15687_v58 = vmul.f32 %v14400_v26, %v3849_v54  ;;  %v10914_v26 = vld [vmem:[#allocation11 + $0x38] sm:$0xf0]  ;;  %v11289_v54 = vor.u32 %v13779_v61, %v11288_v2  ;;  %v11224_v39 = vld [vmem:[#allocation11 + $0x290] sm:$0xf]  ;;  %v13751_v25 = vld [vmem:[#allocation11 + $0x254] sm:$0xf] }
 0x3d7   :  { %v13763_v56 = vld [vmem:[#allocation11 + $0x2ac] sm:$0xf0]  ;;  %v11194_v53 = vld [vmem:[#allocation11 + $0x270] sm:$0xf0]  ;;  %v13768_v12 = vld [vmem:[#allocation11 + $0x2dc] sm:$0xf] }
 0x3d8   :  { %v15691_v18 = vpack.c.bf16 %v15687_v58, %v15687_v58  ;;  %4851 = vmatpush.bf16.msra.mxu0 %v11041_v22  ;;  %4877 = vmatpush.bf16.msrb.mxu2 %v11045_v17  ;;  %v11290_v22 = vld [vmem:[#allocation11 + $0x330] sm:$0xf0]  ;;  %v10912_v17 = vld [vmem:[#allocation11 + $0x18] sm:$0xf]  ;;  %v11225_v1 = vor.u32 %v13763_v56, %v11224_v39  ;;  %v13747_v35 = vld [vmem:[#allocation11 + $0x22c] sm:$0xf0] }
 0x3d9   :  { %v11293_v7 = vor.u32 %v13775_v24, %v11290_v22  ;;  %v10913_v23 = vor.u32 %v13684_v59, %v10912_v17  ;;  %v13743_v51 = vld [vmem:[#allocation11 + $0x214] sm:$0xf]  ;;  %v11161_v2 = vor.u32 %v13747_v35, %v11160_v19  ;;  %v13796_v24 = vld [vmem:[#allocation11 + $0x3b4] sm:$0xf0]  ;;  %v13792_v22 = vld [vmem:[#allocation11 + $0x39c] sm:$0xf] }
 0x3da   :  { %4713 = vmatmul.bf16.vlgmr.msrb.gmra.mxu1 %v15691_v18  ;;  %4739 = vmatmul.bf16.vlgmr.msra.gmra.mxu3 %v15691_v18  ;;  %v11162_v29 = vld [vmem:[#allocation11 + $0x230] sm:$0xf0]  ;;  %v11362_v17 = vld [vmem:[#allocation11 + $0x3b8] sm:$0xf0]  ;;  %v11264_v56 = vld [vmem:[#allocation11 + $0x2d8] sm:$0xf] }
 0x3db   :  { %4809 = vmatpush.bf16.msrb.mxu1 %v11385_v37  ;;  %4835 = vmatpush.bf16.msra.mxu3 %v11389_v60  ;;  %v10917_v37 = vor.u32 %v13680_v47, %v10914_v26  ;;  %v13771_v60 = vld [vmem:[#allocation11 + $0x2ec] sm:$0xf0]  ;;  %v11165_v61 = vor.u32 %v13743_v51, %v11162_v29  ;;  %v11365_v47 = vor.u32 %v13792_v22, %v11362_v17  ;;  %v11328_v26 = vld [vmem:[#allocation11 + $0x358] sm:$0xf]  ;;  %v13752_v29 = vld [vmem:[#allocation11 + $0x25c] sm:$0xf] }
 0x3dc   :  { %4852 = vmatpush.bf16.msra.mxu0 %v11009_v30  ;;  %4878 = vmatpush.bf16.msrb.mxu2 %v11013_v3  ;;  %v11257_v30 = vor.u32 %v13771_v60, %v11256_v8  ;;  %v11261_v3 = vor.u32 %v13767_v42, %v11258_v21  ;;  %v11330_v8 = vld [vmem:[#allocation11 + $0x378] sm:$0xf0]  ;;  %v11296_v60 = vld [vmem:[#allocation11 + $0x318] sm:$0xf]  ;;  %v11630_v17 = vld [vmem:[#allocation11 + $0x1c0] sm:$0xf] }
 0x3dd   :  { %v13780_v42 = vld [vmem:[#allocation11 + $0x334] sm:$0xf0]  ;;  %v13776_v21 = vld [vmem:[#allocation11 + $0x31c] sm:$0xf] }
 0x3de   :  { %v11200_v35 = vld [vmem:[#allocation11 + $0x258] sm:$0xf] }
 0x3df   :  { %4810 = vmatpush.bf16.msrb.mxu1 %v11353_v15  ;;  %4836 = vmatpush.bf16.msra.mxu3 %v11357_v16  ;;  %v11192_v15 = vld [vmem:[#allocation11 + $0x250] sm:$0xf]  ;;  %v13756_v51 = vld [vmem:[#allocation11 + $0x274] sm:$0xf0] }
 0x3e0   :  { %4853 = vmatpush.bf16.msra.mxu0 %v10977_v9  ;;  %4879 = vmatpush.bf16.msrb.mxu2 %v10981_v5  ;;  %v13755_v16 = vld [vmem:[#allocation11 + $0x26c] sm:$0xf0]  ;;  %v11197_v5 = vor.u32 %v13751_v25, %v11194_v53  ;;  %v13764_v25 = vld [vmem:[#allocation11 + $0x2b4] sm:$0xf0]  ;;  %v13760_v53 = vld [vmem:[#allocation11 + $0x29c] sm:$0xf] }
 0x3e1   :  { %v11193_v9 = vor.u32 %v13755_v16, %v11192_v15  ;;  %v11232_v16 = vld [vmem:[#allocation11 + $0x298] sm:$0xf] }
 0x3e3   :  { %4811 = vmatpush.bf16.msrb.mxu1 %v11321_v34  ;;  %4837 = vmatpush.bf16.msra.mxu3 %v11325_v4  ;;  %v13800_v34 = vld [vmem:[#allocation11 + $0x3dc] sm:$0xf] }
 0x3e4   :  { %4854 = vmatpush.bf16.msra.mxu0 %v10945_v0  ;;  %4880 = vmatpush.bf16.msrb.mxu2 %v10949_v27  ;;  %v11394_v4 = vld [vmem:[#allocation11 + $0x3f8] sm:$0xf0]  ;;  %v11360_v27 = vld [vmem:[#allocation11 + $0x398] sm:$0xf] }
 0x3e5   :  { %v11397_v0 = vor.u32 %v13800_v34, %v11394_v4  ;;  %v11361_v59 = vor.u32 %v13796_v24, %v11360_v27  ;;  %v11168_v4 = vld [vmem:[#allocation11 + $0x218] sm:$0xf] }
 0x3e7   :  { %4812 = vmatpush.bf16.msrb.mxu1 %v11289_v54  ;;  %4838 = vmatpush.bf16.msra.mxu3 %v11293_v7  ;;  %v13788_v54 = vld [vmem:[#allocation11 + $0x374] sm:$0xf0]  ;;  %v13784_v7 = vld [vmem:[#allocation11 + $0x35c] sm:$0xf] }
 0x3e8   :  { %4855 = vmatpush.bf16.msra.mxu0 %v10913_v23  ;;  %4881 = vmatpush.bf16.msrb.mxu2 %v10917_v37  ;;  %v11329_v23 = vor.u32 %v13788_v54, %v11328_v26  ;;  %v11333_v37 = vor.u32 %v13784_v7, %v11330_v8  ;;  %v11632_v54 = vld [vmem:[#allocation11 + $0x1e0] sm:$0xf0] }
 0x3ea   :  { %4765 = vmatmul.bf16.vlgmr.msra.gmra.mxu1 %v15691_v18  ;;  %4791 = vmatmul.bf16.vlgmr.msrb.gmra.mxu3 %v15691_v18 }
 0x3eb   :  { %4813 = vmatpush.bf16.msrb.mxu1 %v11257_v30  ;;  %4839 = vmatpush.bf16.msra.mxu3 %v11261_v3  ;;  %v11298_v30 = vld [vmem:[#allocation11 + $0x338] sm:$0xf0]  ;;  %v11297_v3 = vor.u32 %v13780_v42, %v11296_v60  ;;  %v13853_v60 = vld [vmem:[#allocation11 + $0x184] sm:$0xf] }
 0x3ec   :  { %4856 = vmatmul.bf16.vlgmr.msra.gmra.mxu0 %v15623_v6  ;;  %4882 = vmatmul.bf16.vlgmr.msrb.gmra.mxu2 %v15623_v6  ;;  %v11393_v6 = vor.u32 %v13804_v55, %v11392_v46  ;;  %v11301_v39 = vor.u32 %v13776_v21, %v11298_v30  ;;  %v11202_v46 = vld [vmem:[#allocation11 + $0x278] sm:$0xf0]  ;;  %v11201_v55 = vor.u32 %v13756_v51, %v11200_v35  ;;  %v11600_v21 = vld [vmem:[#allocation11 + $0x1a0] sm:$0xf0]  ;;  %v11502_v35 = vld [vmem:[#allocation11 + $0xc0] sm:$0xf] }
 0x3ed   :  { %v11205_v34 = vor.u32 %v13752_v29, %v11202_v46  ;;  %v11603_v30 = vor.u32 %v13853_v60, %v11600_v21  ;;  %v13833_v51 = vld [vmem:[#allocation11 + $0xdc] sm:$0xf0]  ;;  %v13829_v29 = vld [vmem:[#allocation11 + $0xc4] sm:$0xf] }
 0x3ee   :  { %v11503_v46 = vor.u32 %v13833_v51, %v11502_v35  ;;  %v11406_v60 = vld [vmem:[#allocation11] sm:$0xf]  ;;  %v13805_v21 = vld [vmem:[#allocation11 + $0x4] sm:$0xf]  ;;  %v11608_v51 = vld [vmem:[#allocation11 + $0x1a8] sm:$0xf0] }
 0x3ef   :  { %4814 = vmatpush.bf16.msrb.mxu1 %v11225_v1  ;;  %4840 = vmatpush.bf16.msra.mxu3 %v11229_v43  ;;  %v11266_v1 = vld [vmem:[#allocation11 + $0x2f8] sm:$0xf0]  ;;  %v11265_v43 = vor.u32 %v13772_v49, %v11264_v56  ;;  %v13845_v56 = vld [vmem:[#allocation11 + $0x144] sm:$0xf] }
 0x3f0   :  { %v11269_v15 = vor.u32 %v13768_v12, %v11266_v1  ;;  %v11568_v12 = vld [vmem:[#allocation11 + $0x160] sm:$0xf0] }
 0x3f3   :  { %4815 = vmatpush.bf16.msrb.mxu1 %v11193_v9  ;;  %4841 = vmatpush.bf16.msra.mxu3 %v11197_v5  ;;  %v11234_v9 = vld [vmem:[#allocation11 + $0x2b8] sm:$0xf0]  ;;  %v11233_v5 = vor.u32 %v13764_v25, %v11232_v16  ;;  %v13841_v16 = vld [vmem:[#allocation11 + $0x11c] sm:$0xf0]  ;;  %v13837_v25 = vld [vmem:[#allocation11 + $0x104] sm:$0xf] }
 0x3f4   :  { %v11237_v19 = vor.u32 %v13760_v53, %v11234_v9  ;;  %v11536_v9 = vld [vmem:[#allocation11 + $0x120] sm:$0xf0] }
 0x3f7   :  { %4816 = vmatpush.bf16.msrb.mxu1 %v11161_v2  ;;  %4842 = vmatpush.bf16.msra.mxu3 %v11165_v61  ;;  %v13748_v2 = vld [vmem:[#allocation11 + $0x234] sm:$0xf0]  ;;  %v13744_v61 = vld [vmem:[#allocation11 + $0x21c] sm:$0xf] }
 0x3fa   :  { %4817 = vmatmul.bf16.vlgmr.msrb.gmra.mxu1 %v15691_v18  ;;  %4843 = vmatmul.bf16.vlgmr.msra.gmra.mxu3 %v15691_v18 }
 0x3fb   :  { %4861 = vmatpush.bf16.msra.mxu1 %v11393_v6  ;;  %4887 = vmatpush.bf16.msrb.mxu3 %v11397_v0  ;;  %v11170_v6 = vld [vmem:[#allocation11 + $0x238] sm:$0xf0]  ;;  %v11169_v0 = vor.u32 %v13748_v2, %v11168_v4  ;;  %v11470_v2 = vld [vmem:[#allocation11 + $0x80] sm:$0xf] }
 0x3fc   :  { %v11173_v27 = vor.u32 %v13744_v61, %v11170_v6  ;;  %v13825_v61 = vld [vmem:[#allocation11 + $0x9c] sm:$0xf0]  ;;  %v13821_v6 = vld [vmem:[#allocation11 + $0x84] sm:$0xf] }
 0x3ff   :  { %4862 = vmatpush.bf16.msra.mxu1 %v11361_v59  ;;  %4888 = vmatpush.bf16.msrb.mxu3 %v11365_v47  ;;  %v13865_v59 = vld [vmem:[#allocation11 + $0x1dc] sm:$0xf0]  ;;  %v13861_v47 = vld [vmem:[#allocation11 + $0x1c4] sm:$0xf] }
 0x400   :  { %v11631_v26 = vor.u32 %v13865_v59, %v11630_v17  ;;  %v11635_v8 = vor.u32 %v13861_v47, %v11632_v54  ;;  %v11438_v47 = vld [vmem:[#allocation11 + $0x40] sm:$0xf]  ;;  %v13813_v54 = vld [vmem:[#allocation11 + $0x44] sm:$0xf] }
 0x402   :  { %5823 = vmatpush.bf16.msrb.mxu0 %v11631_v26  ;;  %5849 = vmatpush.bf16.msra.mxu2 %v11635_v8  ;;  %v13817_v26 = vld [vmem:[#allocation11 + $0x5c] sm:$0xf0]  ;;  %v11440_v8 = vld [vmem:[#allocation11 + $0x60] sm:$0xf0] }
 0x403   :  { %4863 = vmatpush.bf16.msra.mxu1 %v11329_v23  ;;  %4889 = vmatpush.bf16.msrb.mxu3 %v11333_v37  ;;  %v11598_v23 = vld [vmem:[#allocation11 + $0x180] sm:$0xf] }
 0x404   :  { %v13857_v37 = vld [vmem:[#allocation11 + $0x19c] sm:$0xf0] }
 0x405   :  { %v11599_v42 = vor.u32 %v13857_v37, %v11598_v23  ;;  %v11443_v37 = vor.u32 %v13813_v54, %v11440_v8 }
 0x406   :  { %5850 = vmatpush.bf16.msra.mxu2 %v11603_v30 }
 0x407   :  { %4864 = vmatpush.bf16.msra.mxu1 %v11297_v3  ;;  %4890 = vmatpush.bf16.msrb.mxu3 %v11301_v39  ;;  %v11566_v3 = vld [vmem:[#allocation11 + $0x140] sm:$0xf] }
 0x408   :  { %5824 = vmatpush.bf16.msrb.mxu0 %v11599_v42  ;;  %v13849_v39 = vld [vmem:[#allocation11 + $0x15c] sm:$0xf0] }
 0x409   :  { %v11567_v49 = vor.u32 %v13849_v39, %v11566_v3  ;;  %v13809_v42 = vld [vmem:[#allocation11 + $0x1c] sm:$0xf0]  ;;  %v11638_v3 = vld [vmem:[#allocation11 + $0x1c8] sm:$0xf] }
 0x40a   :  { %v11407_v30 = vor.u32 %v13809_v42, %v11406_v60  ;;  %v13866_v39 = vld [vmem:[#allocation11 + $0x1e4] sm:$0xf0]  ;;  %v11886_v60 = vld [vmem:[#allocation11 + $0x3c0] sm:$0xf] }
 0x40b   :  { %4865 = vmatpush.bf16.msra.mxu1 %v11265_v43  ;;  %4891 = vmatpush.bf16.msrb.mxu3 %v11269_v15  ;;  %v11571_v43 = vor.u32 %v13845_v56, %v11568_v12  ;;  %v11534_v15 = vld [vmem:[#allocation11 + $0x100] sm:$0xf]  ;;  %v13862_v12 = vld [vmem:[#allocation11 + $0x1cc] sm:$0xf] }
 0x40c   :  { %5825 = vmatpush.bf16.msrb.mxu0 %v11567_v49  ;;  %v11535_v53 = vor.u32 %v13841_v16, %v11534_v15  ;;  %v11639_v49 = vor.u32 %v13866_v39, %v11638_v3  ;;  %v13929_v42 = vld [vmem:[#allocation11 + $0x3dc] sm:$0xf0]  ;;  %v11510_v39 = vld [vmem:[#allocation11 + $0xc8] sm:$0xf] }
 0x40d   :  { %5851 = vmatpush.bf16.msra.mxu2 %v11571_v43  ;;  %v11640_v43 = vld [vmem:[#allocation11 + $0x1e8] sm:$0xf0] }
 0x40e   :  { %v11643_v15 = vor.u32 %v13862_v12, %v11640_v43 }
 0x40f   :  { %4866 = vmatpush.bf16.msra.mxu1 %v11233_v5  ;;  %4892 = vmatpush.bf16.msrb.mxu3 %v11237_v19  ;;  %v11539_v5 = vor.u32 %v13837_v25, %v11536_v9  ;;  %v11606_v25 = vld [vmem:[#allocation11 + $0x188] sm:$0xf]  ;;  %v13854_v9 = vld [vmem:[#allocation11 + $0x18c] sm:$0xf] }
 0x410   :  { %5826 = vmatpush.bf16.msrb.mxu0 %v11535_v53  ;;  %v13858_v53 = vld [vmem:[#allocation11 + $0x1a4] sm:$0xf0] }
 0x411   :  { %5852 = vmatpush.bf16.msra.mxu2 %v11539_v5  ;;  %v11607_v35 = vor.u32 %v13858_v53, %v11606_v25 }
 0x413   :  { %4867 = vmatpush.bf16.msra.mxu1 %v11201_v55  ;;  %4893 = vmatpush.bf16.msrb.mxu3 %v11205_v34  ;;  %v11504_v55 = vld [vmem:[#allocation11 + $0xe0] sm:$0xf0] }
 0x414   :  { %v11507_v4 = vor.u32 %v13829_v29, %v11504_v55  ;;  %5827 = vmatpush.bf16.msrb.mxu0 %v11503_v46  ;;  %v11611_v29 = vor.u32 %v13854_v9, %v11608_v51  ;;  %v11574_v46 = vld [vmem:[#allocation11 + $0x148] sm:$0xf]  ;;  %v11854_v9 = vld [vmem:[#allocation11 + $0x380] sm:$0xf] }
 0x415   :  { %v13850_v55 = vld [vmem:[#allocation11 + $0x164] sm:$0xf0] }
 0x416   :  { %5853 = vmatpush.bf16.msra.mxu2 %v11507_v4 }
 0x417   :  { %4868 = vmatpush.bf16.msra.mxu1 %v11169_v0  ;;  %4894 = vmatpush.bf16.msrb.mxu3 %v11173_v27  ;;  %v11471_v0 = vor.u32 %v13825_v61, %v11470_v2  ;;  %v11472_v27 = vld [vmem:[#allocation11 + $0xa0] sm:$0xf0]  ;;  %v11575_v2 = vor.u32 %v13850_v55, %v11574_v46  ;;  %v11576_v61 = vld [vmem:[#allocation11 + $0x168] sm:$0xf0]  ;;  %v11478_v55 = vld [vmem:[#allocation11 + $0x88] sm:$0xf] }
 0x418   :  { %v11475_v17 = vor.u32 %v13821_v6, %v11472_v27 }
 0x419   :  { %5828 = vmatpush.bf16.msrb.mxu0 %v11471_v0 }
 0x41a   :  { %4869 = vmatmul.bf16.vlgmr.msra.gmra.mxu1 %v15691_v18  ;;  %4895 = vmatmul.bf16.vlgmr.msrb.gmra.mxu3 %v15691_v18 }
 0x41b   :  { %5854 = vmatpush.bf16.msra.mxu2 %v11475_v17 }
 0x41f   :  { %5855 = vmatpush.bf16.msra.mxu2 %v11443_v37 }
 0x428   :  { %v15703_v24 = vpop.f32.mrf.mxu0 }
 0x42e   :  { %v15705_v22 = vpop.f32.mrf.mxu2 }
 0x430   :  { %v4703_v7 = vpop.f32.mrf.mxu0 }
 0x431   :  { %v11439_v7 = vor.u32 %v13817_v26, %v11438_v47  ;;  %v13842_v47 = vld [vmem:[#allocation11 + $0x124] sm:$0xf0]  ;;  %v13838_v26 = vld [vmem:[#allocation11 + $0x10c] sm:$0xf] }
 0x433   :  { %5829 = vmatpush.bf16.msrb.mxu0 %v11439_v7  ;;  %v11544_v7 = vld [vmem:[#allocation11 + $0x128] sm:$0xf0] }
 0x434   :  { %v11547_v37 = vor.u32 %v13838_v26, %v11544_v7 }
 0x436   :  { %v4729_v18 = vpop.f32.mrf.mxu2 }
 0x437   :  { %v11408_v18 = vld [vmem:[#allocation11 + $0x20] sm:$0xf0]  ;;  %5830 = vmatpush.bf16.msrb.mxu0 %v11407_v30  ;;  %v11887_v30 = vor.u32 %v13929_v42, %v11886_v60  ;;  %v13814_v60 = vld [vmem:[#allocation11 + $0x4c] sm:$0xf] }
 0x438   :  { %v15707_v1 = vpop.f32.mrf.mxu0  ;;  %v11411_v56 = vor.u32 %v13805_v21, %v11408_v18  ;;  %v13925_v18 = vld [vmem:[#allocation11 + $0x3c4] sm:$0xf] }
 0x439   :  { %5836 = vmatpush.bf16.msrb.mxu1 %v11887_v30 }
 0x43a   :  { %5856 = vmatpush.bf16.msra.mxu2 %v11411_v56  ;;  %v13834_v56 = vld [vmem:[#allocation11 + $0xe4] sm:$0xf0] }
 0x43b   :  { %5875 = vmatpush.bf16.msra.mxu0 %v11639_v49  ;;  %v13830_v49 = vld [vmem:[#allocation11 + $0xcc] sm:$0xf]  ;;  %v11511_v43 = vor.u32 %v13834_v56, %v11510_v39  ;;  %v13901_v39 = vld [vmem:[#allocation11 + $0x304] sm:$0xf] }
 0x43e   :  { %v15709_v19 = vpop.f32.mrf.mxu2  ;;  %5901 = vmatpush.bf16.msrb.mxu2 %v11643_v15  ;;  %v11512_v15 = vld [vmem:[#allocation11 + $0xe8] sm:$0xf0] }
 0x43f   :  { %5876 = vmatpush.bf16.msra.mxu0 %v11607_v35  ;;  %v11515_v53 = vor.u32 %v13830_v49, %v11512_v15  ;;  %v13917_v35 = vld [vmem:[#allocation11 + $0x384] sm:$0xf] }
 0x440   :  { %v4755_v34 = vpop.f32.mrf.mxu0 }
 0x441   :  { %v13846_v34 = vld [vmem:[#allocation11 + $0x14c] sm:$0xf] }
 0x442   :  { %5902 = vmatpush.bf16.msrb.mxu2 %v11611_v29  ;;  %v11579_v0 = vor.u32 %v13846_v34, %v11576_v61  ;;  %v11856_v29 = vld [vmem:[#allocation11 + $0x3a0] sm:$0xf0]  ;;  %v13826_v34 = vld [vmem:[#allocation11 + $0xa4] sm:$0xf0]  ;;  %v11480_v61 = vld [vmem:[#allocation11 + $0xa8] sm:$0xf0] }
 0x443   :  { %5877 = vmatpush.bf16.msra.mxu0 %v11575_v2  ;;  %v11859_v46 = vor.u32 %v13917_v35, %v11856_v29  ;;  %v13822_v2 = vld [vmem:[#allocation11 + $0x8c] sm:$0xf] }
 0x446   :  { %v4781_v59 = vpop.f32.mrf.mxu2  ;;  %5903 = vmatpush.bf16.msrb.mxu2 %v11579_v0  ;;  %v11822_v0 = vld [vmem:[#allocation11 + $0x340] sm:$0xf] }
 0x447   :  { %v11542_v59 = vld [vmem:[#allocation11 + $0x108] sm:$0xf] }
 0x448   :  { %v15711_v23 = vpop.f32.mrf.mxu0  ;;  %v11543_v54 = vor.u32 %v13842_v47, %v11542_v59 }
 0x44a   :  { %5878 = vmatpush.bf16.msra.mxu0 %v11543_v54  ;;  %5904 = vmatpush.bf16.msrb.mxu2 %v11547_v37  ;;  %v11824_v54 = vld [vmem:[#allocation11 + $0x360] sm:$0xf0]  ;;  %v13818_v37 = vld [vmem:[#allocation11 + $0x64] sm:$0xf0] }
 0x44e   :  { %v15713_v16 = vpop.f32.mrf.mxu2  ;;  %5879 = vmatpush.bf16.msra.mxu0 %v11511_v43  ;;  %5905 = vmatpush.bf16.msrb.mxu2 %v11515_v53  ;;  %v11414_v53 = vld [vmem:[#allocation11 + $0x8] sm:$0xf] }
 0x450   :  { %v4807_v5 = vpop.f32.mrf.mxu0 }
 0x451   :  { %v13921_v5 = vld [vmem:[#allocation11 + $0x39c] sm:$0xf0] }
 0x452   :  { %v11855_v51 = vor.u32 %v13921_v5, %v11854_v9  ;;  %v13810_v9 = vld [vmem:[#allocation11 + $0x24] sm:$0xf0]  ;;  %v13806_v5 = vld [vmem:[#allocation11 + $0xc] sm:$0xf] }
 0x453   :  { %v11415_v35 = vor.u32 %v13810_v9, %v11414_v53 }
 0x454   :  { %5837 = vmatpush.bf16.msrb.mxu1 %v11855_v51  ;;  %v11416_v51 = vld [vmem:[#allocation11 + $0x28] sm:$0xf0] }
 0x456   :  { %v4833_v27 = vpop.f32.mrf.mxu2 }
 0x457   :  { %v4714_v4 = vpop.f32.mrf.mxu1  ;;  %v13913_v27 = vld [vmem:[#allocation11 + $0x35c] sm:$0xf0] }
 0x458   :  { %v4715_v6 = vadd.f32 %v4714_v4, %v15703_v24  ;;  %v11888_v24 = vld [vmem:[#allocation11 + $0x3e0] sm:$0xf0]  ;;  %v11479_v4 = vor.u32 %v13826_v34, %v11478_v55  ;;  %v11823_v26 = vor.u32 %v13913_v27, %v11822_v0 }
 0x459   :  { %v11760_v0 = vld [vmem:[#allocation11 + $0x2e0] sm:$0xf0] }
 0x45a   :  { %v4907_v17 = vadd.f32 %v4715_v6, %v15071_v31  ;;  %v11891_v31 = vor.u32 %v13925_v18, %v11888_v24  ;;  %5880 = vmatpush.bf16.msra.mxu0 %v11479_v4  ;;  %5838 = vmatpush.bf16.msrb.mxu1 %v11823_v26  ;;  %v11758_v4 = vld [vmem:[#allocation11 + $0x2c0] sm:$0xf] }
 0x45c   :  { %v11401_v8 = vmul.f32 -1.442695, %v4907_v17  ;;  %5862 = vmatpush.bf16.msra.mxu3 %v11891_v31  ;;  %v13909_v17 = vld [vmem:[#allocation11 + $0x344] sm:$0xf]  ;;  %v13905_v31 = vld [vmem:[#allocation11 + $0x31c] sm:$0xf0] }
 0x45d   :  { %v4740_v21 = vpop.f32.mrf.mxu3  ;;  %v11827_v7 = vor.u32 %v13909_v17, %v11824_v54 }
 0x45e   :  { %14401 = vpow2.f32 %v11401_v8  ;;  %v4741_v3 = vadd.f32 %v4740_v21, %v15705_v22  ;;  %v11446_v8 = vld [vmem:[#allocation11 + $0x48] sm:$0xf]  ;;  %v11448_v21 = vld [vmem:[#allocation11 + $0x68] sm:$0xf0] }
 0x45f   :  { %v4716_v12 = vpop.f32.mrf.mxu1  ;;  %v11447_v18 = vor.u32 %v13818_v37, %v11446_v8  ;;  %v11451_v24 = vor.u32 %v13814_v60, %v11448_v21  ;;  %v11726_v8 = vld [vmem:[#allocation11 + $0x280] sm:$0xf]  ;;  %v11728_v21 = vld [vmem:[#allocation11 + $0x2a0] sm:$0xf0] }
 0x460   :  { %v4908_v25 = vadd.f32 %v4741_v3, %v15074_v36  ;;  %5863 = vmatpush.bf16.msra.mxu3 %v11859_v46  ;;  %v11483_v36 = vor.u32 %v13822_v2, %v11480_v61  ;;  %v11790_v3 = vld [vmem:[#allocation11 + $0x300] sm:$0xf]  ;;  %v11792_v12 = vld [vmem:[#allocation11 + $0x320] sm:$0xf0] }
 0x461   :  { %v11791_v49 = vor.u32 %v13905_v31, %v11790_v3  ;;  %5881 = vmatpush.bf16.msra.mxu0 %v11447_v18  ;;  %v13897_v2 = vld [vmem:[#allocation11 + $0x2dc] sm:$0xf0]  ;;  %v13893_v61 = vld [vmem:[#allocation11 + $0x2c4] sm:$0xf] }
 0x462   :  { %v11402_v22 = vmul.f32 -1.442695, %v4908_v25  ;;  %5906 = vmatpush.bf16.msrb.mxu2 %v11483_v36  ;;  %v11795_v25 = vor.u32 %v13901_v39, %v11792_v12  ;;  %v11759_v26 = vor.u32 %v13897_v2, %v11758_v4  ;;  %v11763_v54 = vor.u32 %v13893_v61, %v11760_v0  ;;  %v13889_v37 = vld [vmem:[#allocation11 + $0x29c] sm:$0xf0] }
 0x463   :  { %5839 = vmatpush.bf16.msrb.mxu1 %v11791_v49  ;;  %v11694_v12 = vld [vmem:[#allocation11 + $0x240] sm:$0xf] }
 0x464   :  { %v14402_v6 = vpop.eup %14401  ;;  %14403 = vpow2.f32 %v11402_v22  ;;  %5864 = vmatpush.bf16.msra.mxu3 %v11827_v7  ;;  %v11419_v22 = vor.u32 %v13806_v5, %v11416_v51  ;;  %v13877_v5 = vld [vmem:[#allocation11 + $0x244] sm:$0xf] }
 0x465   :  { %v15719_v59 = vadd.f32 1.0, %v14402_v6  ;;  %v4742_v47 = vpop.f32.mrf.mxu3  ;;  %5882 = vmatpush.bf16.msra.mxu0 %v11415_v35  ;;  %v11696_v35 = vld [vmem:[#allocation11 + $0x260] sm:$0xf0] }
 0x466   :  { %5907 = vmatpush.bf16.msrb.mxu2 %v11451_v24  ;;  %v15740_v47 = vld [vmem:[%s16352_s4] sm:$0xf] }
 0x467   :  { %14405 = vrcp.f32 %v15719_v59  ;;  %v4766_v42 = vpop.f32.mrf.mxu1  ;;  %5840 = vmatpush.bf16.msrb.mxu1 %v11759_v26  ;;  %v5011_v18 = vand.u32 2147483647, %v15719_v59  ;;  %vm5007_vm6 = vweird.f32 %v15719_v59  ;;  %v4913_v49 = vperm.slane %v15740_v47, 0 }
 0x468   :  { %v4767_v30 = vadd.f32 %v4766_v42, %v15707_v1  ;;  %5865 = vmatpush.bf16.msra.mxu3 %v11795_v25  ;;  %v13885_v42 = vld [vmem:[#allocation11 + $0x284] sm:$0xf] }
 0x469   :  { %v15723_v56 = vpop.f32.mrf.mxu0  ;;  %v11731_v24 = vor.u32 %v13885_v42, %v11728_v21  ;;  %vm5012_vm8 = vcmp.eq.f32.partialorder %v5011_v18, 8.507059e+37  ;;  %v13930_v42 = vld [vmem:[#allocation11 + $0x3e4] sm:$0xf0] }
 0x46a   :  { %v14404_v43 = vpop.eup %14403  ;;  %v4909_v15 = vadd.f32 %v4767_v30, %v15139_v40  ;;  %5908 = vmatpush.bf16.msrb.mxu2 %v11419_v22  ;;  %v11699_v22 = vor.u32 %v13877_v5, %v11696_v35  ;;  %v13918_v35 = vld [vmem:[#allocation11 + $0x38c] sm:$0xf] }
 0x46b   :  { %v15726_v1 = vadd.f32 1.0, %v14404_v43  ;;  %v13881_v43 = vld [vmem:[#allocation11 + $0x25c] sm:$0xf0] }
 0x46c   :  { %v11403_v29 = vmul.f32 -1.442695, %v4909_v15  ;;  %5866 = vmatpush.bf16.msra.mxu3 %v11763_v54  ;;  %v13873_v54 = vld [vmem:[#allocation11 + $0x21c] sm:$0xf0] }
 0x46d   :  { %v15728_v46 = vpop.eup %14405  ;;  %14407 = vrcp.f32 %v15726_v1  ;;  %v4792_v55 = vpop.f32.mrf.mxu3  ;;  %vm5022_vm10 = vweird.f32 %v15726_v1 }
 0x46e   :  { %v5003_v40 = vmul.f32 %v15728_v46, %v15719_v59  ;;  %14409 = vpow2.f32 %v11403_v29  ;;  %v4793_v34 = vadd.f32 %v4792_v55, %v15709_v19  ;;  %v5013_v19 = vand.u32 2147483648, %v15719_v59 }
 0x46f   :  { %v15734_v6 = vpop.f32.mrf.mxu2  ;;  %v4768_v36 = vpop.f32.mrf.mxu1  ;;  %vm5008_vm5 = vweird.f32 %v15728_v46  ;;  %v11695_v29 = vor.u32 %v13881_v43, %v11694_v12  ;;  %v5028_v55 = vand.u32 2147483648, %v15726_v1 }
 0x470   :  { %v5004_v27 = vsub.f32 1.0, %v5003_v40  ;;  %v4910_v17 = vadd.f32 %v4793_v34, %v15142_v32  ;;  %v11727_v32 = vor.u32 %v13889_v37, %v11726_v8  ;;  %vm15754_vm7 = vmor %vm5007_vm6, %vm5008_vm5  ;;  %v5014_v53 = vor.u32 1.1754944e-38, %v5013_v19  ;;  %5867 = vmatpush.bf16.msra.mxu3 %v11731_v24  ;;  %v13869_v19 = vld [vmem:[#allocation11 + $0x204] sm:$0xf]  ;;  %v13926_v24 = vld [vmem:[#allocation11 + $0x3cc] sm:$0xf] }
 0x471   :  { %v4859_v7 = vpop.f32.mrf.mxu0  ;;  %v5026_v40 = vand.u32 2147483647, %v15726_v1  ;;  %v5029_v8 = vor.u32 1.1754944e-38, %v5028_v55 }
 0x472   :  { %v5005_v60 = vmul.f32 %v15728_v46, %v5004_v27  ;;  %14411 = vtanh.f32 %v4910_v17  ;;  %5841 = vmatpush.bf16.msrb.mxu1 %v11727_v32  ;;  %v11662_v27 = vld [vmem:[#allocation11 + $0x200] sm:$0xf]  ;;  %v11664_v7 = vld [vmem:[#allocation11 + $0x220] sm:$0xf0]  ;;  %v11894_v32 = vld [vmem:[#allocation11 + $0x3c8] sm:$0xf] }
 0x473   :  { %v14408_v30 = vpop.eup %14407  ;;  %vm5027_vm12 = vcmp.eq.f32.partialorder %v5026_v40, 8.507059e+37  ;;  %v11663_v37 = vor.u32 %v13873_v54, %v11662_v27  ;;  %v11895_v18 = vor.u32 %v13930_v42, %v11894_v32  ;;  %v11798_v32 = vld [vmem:[#allocation11 + $0x308] sm:$0xf] }
 0x474   :  { %v14410_v3 = vpop.eup %14409  ;;  %v5018_v31 = vmul.f32 %v14408_v30, %v15726_v1  ;;  %v5006_v39 = vadd.f32 %v15728_v46, %v5005_v60  ;;  %vm5023_vm9 = vweird.f32 %v14408_v30  ;;  %5868 = vmatpush.bf16.msra.mxu3 %v11699_v22  ;;  %v11667_v60 = vor.u32 %v13869_v19, %v11664_v7  ;;  %v13906_v42 = vld [vmem:[#allocation11 + $0x324] sm:$0xf0] }
 0x475   :  { %v15750_v15 = vadd.f32 1.0, %v14410_v3  ;;  %v4794_v9 = vpop.f32.mrf.mxu3  ;;  %vm5024_vm11 = vmor %vm5022_vm10, %vm5023_vm9  ;;  %v11896_v3 = vld [vmem:[#allocation11 + $0x3e8] sm:$0xf0] }
 0x476   :  { %v5019_v51 = vsub.f32 1.0, %v5018_v31  ;;  %v5010_v59 = vsel %vm15754_vm7, %v15728_v46, %v5006_v39  ;;  %5842 = vmatpush.bf16.msrb.mxu1 %v11695_v29  ;;  %v11899_v12 = vor.u32 %v13926_v24, %v11896_v3  ;;  %v13922_v9 = vld [vmem:[#allocation11 + $0x3a4] sm:$0xf0]  ;;  %v11648_v24 = vld [vmem:[#allocation11 + $0x1f0] sm:$0xf0] }
 0x477   :  { %14413 = vrcp.f32 %v15750_v15  ;;  %v4885_v34 = vpop.f32.mrf.mxu2  ;;  %v4818_v4 = vpop.f32.mrf.mxu1  ;;  %v5015_v36 = vsel %vm5012_vm8, %v5014_v53, %v5010_v59  ;;  %v11862_v53 = vld [vmem:[#allocation11 + $0x388] sm:$0xf]  ;;  %v5041_v40 = vand.u32 2147483647, %v15750_v15  ;;  %vm5037_vm14 = vweird.f32 %v15750_v15 }
 0x478   :  { %v14412_v2 = vpop.eup %14411  ;;  %v5020_v61 = vmul.f32 %v14408_v30, %v5019_v51  ;;  %v4819_v0 = vadd.f32 %v4818_v4, %v15711_v23  ;;  %5869 = vmatpush.bf16.msra.mxu3 %v11667_v60  ;;  %v11864_v51 = vld [vmem:[#allocation11 + $0x3a8] sm:$0xf0]  ;;  %v11863_v22 = vor.u32 %v13922_v9, %v11862_v53  ;;  %v13859_v53 = vld [vmem:[#allocation11 + $0x1ac] sm:$0xf0] }
 0x479   :  { %v5049_v46 = vmul.f32 %v14412_v2, %v5015_v36  ;;  %v11867_v55 = vor.u32 %v13918_v35, %v11864_v51  ;;  %v13914_v2 = vld [vmem:[#allocation11 + $0x364] sm:$0xf0]  ;;  %vm5042_vm0 = vcmp.eq.f32.partialorder %v5041_v40, 8.507059e+37  ;;  %v11768_v40 = vld [vmem:[#allocation11 + $0x2e8] sm:$0xf0] }
 0x47a   :  { %v5021_v17 = vadd.f32 %v14408_v30, %v5020_v61  ;;  %v4921_v26 = vadd.f32 %v4913_v49, %v4819_v0  ;;  %v4914_v49 = vperm.slane %v15740_v47, 1  ;;  %5843 = vmatpush.bf16.msrb.mxu1 %v11663_v37  ;;  %v13910_v61 = vld [vmem:[#allocation11 + $0x34c] sm:$0xf]  ;;  %v13867_v37 = vld [vmem:[#allocation11 + $0x1ec] sm:$0xf0] }
 0x47b   :  { %v11766_v35 = vld [vmem:[#allocation11 + $0x2c8] sm:$0xf] }
 0x47c   :  { %v5025_v21 = vsel %vm5024_vm11, %v14408_v30, %v5021_v17  ;;  %v11398_v23 = vmul.f32 -1.442695, %v4921_v26  ;;  %5914 = vmatpush.bf16.msrb.mxu3 %v11899_v12 }
 0x47d   :  { %v14414_v1 = vpop.eup %14413  ;;  %v5030_v31 = vsel %vm5027_vm12, %v5029_v8, %v5025_v21  ;;  %v4844_v39 = vpop.f32.mrf.mxu3  ;;  %v11646_v8 = vld [vmem:[#allocation11 + $0x1d0] sm:$0xf]  ;;  %v13902_v21 = vld [vmem:[#allocation11 + $0x30c] sm:$0xf] }
 0x47e   :  { %v5033_v43 = vmul.f32 %v14414_v1, %v15750_v15  ;;  %v5048_v25 = vmul.f32 %v5030_v31, %v15614_v13  ;;  %14415 = vpow2.f32 %v11398_v23  ;;  %v4845_v30 = vadd.f32 %v4844_v39, %v15713_v16  ;;  %5888 = vmatpush.bf16.msra.mxu1 %v11895_v18  ;;  %v11830_v16 = vld [vmem:[#allocation11 + $0x348] sm:$0xf]  ;;  %v13863_v18 = vld [vmem:[#allocation11 + $0x1d4] sm:$0xf] }
 0x47f   :  { %v4820_v5 = vpop.f32.mrf.mxu1  ;;  %v5043_v13 = vand.u32 2147483648, %v15750_v15  ;;  %vm5038_vm13 = vweird.f32 %v14414_v1  ;;  %v11831_v0 = vor.u32 %v13914_v2, %v11830_v16  ;;  %v11800_v15 = vld [vmem:[#allocation11 + $0x328] sm:$0xf0]  ;;  %v11799_v31 = vor.u32 %v13906_v42, %v11798_v32  ;;  %v13851_v16 = vld [vmem:[#allocation11 + $0x16c] sm:$0xf0] }
 0x480   :  { %v5034_v59 = vsub.f32 1.0, %v5033_v43  ;;  %v15770_v29 = vadd.f32 %v5049_v46, %v5048_v25  ;;  %v4922_v34 = vadd.f32 %v4914_v49, %v4845_v30  ;;  %5915 = vmatpush.bf16.msrb.mxu3 %v11867_v55  ;;  %v11832_v46 = vld [vmem:[#allocation11 + $0x368] sm:$0xf0]  ;;  %vm5039_vm15 = vmor %vm5037_vm14, %vm5038_vm13  ;;  %v11803_v39 = vor.u32 %v13902_v21, %v11800_v15  ;;  %v11614_v25 = vld [vmem:[#allocation11 + $0x190] sm:$0xf] }
 0x481   :  { %v11835_v26 = vor.u32 %v13910_v61, %v11832_v46  ;;  %v5044_v54 = vor.u32 1.1754944e-38, %v5043_v13  ;;  %v11647_v12 = vor.u32 %v13867_v37, %v11646_v8  ;;  %v11651_v43 = vor.u32 %v13863_v18, %v11648_v24  ;;  %v13855_v30 = vld [vmem:[#allocation11 + $0x194] sm:$0xf]  ;;  %v11734_v46 = vld [vmem:[#allocation11 + $0x288] sm:$0xf] }
 0x482   :  { %v5035_v4 = vmul.f32 %v14414_v1, %v5034_v59  ;;  %14417 = vtanh.f32 %v15770_v29  ;;  %v11399_v36 = vmul.f32 -1.442695, %v4922_v34  ;;  %5889 = vmatpush.bf16.msra.mxu1 %v11863_v22  ;;  %v11616_v5 = vld [vmem:[#allocation11 + $0x1b0] sm:$0xf0]  ;;  %v13898_v59 = vld [vmem:[#allocation11 + $0x2e4] sm:$0xf0]  ;;  %v11615_v13 = vor.u32 %v13859_v53, %v11614_v25 }
 0x483   :  { %v13894_v22 = vld [vmem:[#allocation11 + $0x2cc] sm:$0xf]  ;;  %v11767_v55 = vor.u32 %v13898_v59, %v11766_v35  ;;  %v11619_v34 = vor.u32 %v13855_v30, %v11616_v5  ;;  %v13847_v2 = vld [vmem:[#allocation11 + $0x154] sm:$0xf]  ;;  %v11550_v8 = vld [vmem:[#allocation11 + $0x110] sm:$0xf] }
 0x484   :  { %v14416_v27 = vpop.eup %14415  ;;  %v5036_v17 = vadd.f32 %v14414_v1, %v5035_v4  ;;  %14419 = vpow2.f32 %v11399_v36  ;;  %5916 = vmatpush.bf16.msrb.mxu3 %v11835_v26  ;;  %v11582_v4 = vld [vmem:[#allocation11 + $0x150] sm:$0xf]  ;;  %v11584_v36 = vld [vmem:[#allocation11 + $0x170] sm:$0xf0]  ;;  %v13886_v26 = vld [vmem:[#allocation11 + $0x28c] sm:$0xf] }
 0x485   :  { %v15776_v19 = vadd.f32 1.0, %v14416_v27  ;;  %v4846_v7 = vpop.f32.mrf.mxu3  ;;  %v13890_v27 = vld [vmem:[#allocation11 + $0x2a4] sm:$0xf0]  ;;  %v13843_v37 = vld [vmem:[#allocation11 + $0x12c] sm:$0xf0]  ;;  %v11583_v42 = vor.u32 %v13851_v16, %v11582_v4  ;;  %v11587_v21 = vor.u32 %v13847_v2, %v11584_v36 }
 0x486   :  { %v5040_v60 = vsel %vm5039_vm15, %v14414_v1, %v5036_v17  ;;  %5890 = vmatpush.bf16.msra.mxu1 %v11831_v0  ;;  %v11771_v0 = vor.u32 %v13894_v22, %v11768_v40  ;;  %v11735_v17 = vor.u32 %v13890_v27, %v11734_v46  ;;  %v4915_v7 = vperm.slane %v15740_v47, 2  ;;  %v11552_v18 = vld [vmem:[#allocation11 + $0x130] sm:$0xf0]  ;;  %v11702_v24 = vld [vmem:[#allocation11 + $0x248] sm:$0xf] }
 0x487   :  { %v5045_v23 = vsel %vm5042_vm0, %v5044_v54, %v5040_v60  ;;  %14421 = vrcp.f32 %v15776_v19  ;;  %v11736_v54 = vld [vmem:[#allocation11 + $0x2a8] sm:$0xf0]  ;;  %v13882_v15 = vld [vmem:[#allocation11 + $0x264] sm:$0xf0]  ;;  %v11518_v53 = vld [vmem:[#allocation11 + $0xd0] sm:$0xf]  ;;  %v11551_v35 = vor.u32 %v13843_v37, %v11550_v8  ;;  %vm4942_vm3 = vweird.f32 %v15776_v19 }
 0x488   :  { %v14418_v3 = vpop.eup %14417  ;;  %5917 = vmatpush.bf16.msrb.mxu3 %v11803_v39  ;;  %v11739_v60 = vor.u32 %v13886_v26, %v11736_v54  ;;  %v13831_v22 = vld [vmem:[#allocation11 + $0xd4] sm:$0xf]  ;;  %v13874_v4 = vld [vmem:[#allocation11 + $0x224] sm:$0xf0]  ;;  %v13870_v2 = vld [vmem:[#allocation11 + $0x20c] sm:$0xf] }
 0x489   :  { %v5052_v49 = vmul.f32 %v14418_v3, %v5045_v23  ;;  %v13839_v23 = vld [vmem:[#allocation11 + $0x114] sm:$0xf]  ;;  %v13878_v3 = vld [vmem:[#allocation11 + $0x24c] sm:$0xf]  ;;  %v13827_v8 = vld [vmem:[#allocation11 + $0xac] sm:$0xf0] }
 0x48a   :  { %v14420_v1 = vpop.eup %14419  ;;  %5891 = vmatpush.bf16.msra.mxu1 %v11799_v31  ;;  %v11704_v31 = vld [vmem:[#allocation11 + $0x268] sm:$0xf0]  ;;  %v11555_v59 = vor.u32 %v13839_v23, %v11552_v18 }
 0x48b   :  { %v15779_v9 = vpack.c.bf16 %v5052_v49, %v5052_v49  ;;  %v15781_v51 = vadd.f32 1.0, %v14420_v1  ;;  %v13835_v1 = vld [vmem:[#allocation11 + $0xec] sm:$0xf0]  ;;  %v11707_v30 = vor.u32 %v13878_v3, %v11704_v31  ;;  %v11672_v36 = vld [vmem:[#allocation11 + $0x228] sm:$0xf0] }
 0x48c   :  { %5918 = vmatpush.bf16.msrb.mxu3 %v11771_v0  ;;  %v4916_v0 = vperm.slane %v15740_v47, 3  ;;  %v11519_v46 = vor.u32 %v13835_v1, %v11518_v53  ;;  %v13819_v3 = vld [vmem:[#allocation11 + $0x6c] sm:$0xf0]  ;;  %v4946_v53 = vand.u32 2147483647, %v15776_v19 }
 0x48d   :  { %5831 = vmatmul.bf16.vlgmr.msrb.gmra.mxu0 %v15779_v9  ;;  %5857 = vmatmul.bf16.vlgmr.msra.gmra.mxu2 %v15779_v9  ;;  %14423 = vrcp.f32 %v15781_v51  ;;  %v15786_v61 = vpop.eup %14421  ;;  %v4963_v31 = vand.u32 2147483648, %v15781_v51  ;;  %vm4957_vm4 = vweird.f32 %v15781_v51  ;;  %v4961_v1 = vand.u32 2147483647, %v15781_v51 }
 0x48e   :  { %5927 = vmatpush.bf16.msrb.mxu0 %v11647_v12  ;;  %5953 = vmatpush.bf16.msra.mxu2 %v11651_v43  ;;  %v4938_v32 = vmul.f32 %v15786_v61, %v15776_v19  ;;  %v11703_v12 = vor.u32 %v13882_v15, %v11702_v24  ;;  %vm4943_vm1 = vweird.f32 %v15786_v61  ;;  %v11454_v15 = vld [vmem:[#allocation11 + $0x50] sm:$0xf]  ;;  %vm4947_vm7 = vcmp.eq.f32.partialorder %v4946_v53, 8.507059e+37 }
 0x48f   :  { %5892 = vmatpush.bf16.msra.mxu1 %v11767_v55  ;;  %v11670_v55 = vld [vmem:[#allocation11 + $0x208] sm:$0xf]  ;;  %vm15812_vm5 = vmor %vm4942_vm3, %vm4943_vm1  ;;  %vm4962_vm8 = vcmp.eq.f32.partialorder %v4961_v1, 8.507059e+37 }
 0x490   :  { %5919 = vmatpush.bf16.msrb.mxu3 %v11739_v60  ;;  %v4939_v5 = vsub.f32 1.0, %v4938_v32  ;;  %v11671_v16 = vor.u32 %v13874_v4, %v11670_v55  ;;  %v13823_v60 = vld [vmem:[#allocation11 + $0x94] sm:$0xf] }
 0x491   :  { %v11488_v32 = vld [vmem:[#allocation11 + $0xb0] sm:$0xf0] }
 0x492   :  { %5928 = vmatpush.bf16.msrb.mxu0 %v11615_v13  ;;  %5954 = vmatpush.bf16.msra.mxu2 %v11619_v34  ;;  %v11520_v34 = vld [vmem:[#allocation11 + $0xf0] sm:$0xf0]  ;;  %v4940_v26 = vmul.f32 %v15786_v61, %v4939_v5  ;;  %v13844_v5 = vld [vmem:[#allocation11 + $0x134] sm:$0xf0] }
 0x493   :  { %5893 = vmatpush.bf16.msra.mxu1 %v11735_v17  ;;  %v15791_v39 = vpop.eup %14423  ;;  %v11523_v54 = vor.u32 %v13831_v22, %v11520_v34  ;;  %v13811_v22 = vld [vmem:[#allocation11 + $0x2c] sm:$0xf0]  ;;  %v13807_v34 = vld [vmem:[#allocation11 + $0x14] sm:$0xf] }
 0x494   :  { %v4953_v43 = vmul.f32 %v15791_v39, %v15781_v51  ;;  %5920 = vmatpush.bf16.msrb.mxu3 %v11707_v30  ;;  %vm4958_vm2 = vweird.f32 %v15791_v39  ;;  %v4941_v18 = vadd.f32 %v15786_v61, %v4940_v26  ;;  %v11424_v4 = vld [vmem:[#allocation11 + $0x30] sm:$0xf0] }
 0x495   :  { %vm15820_vm6 = vmor %vm4957_vm4, %vm4958_vm2 }
 0x496   :  { %5929 = vmatpush.bf16.msrb.mxu0 %v11583_v42  ;;  %5955 = vmatpush.bf16.msra.mxu2 %v11587_v21  ;;  %v4954_v40 = vsub.f32 1.0, %v4953_v43  ;;  %v11675_v42 = vor.u32 %v13870_v2, %v11672_v36  ;;  %v11456_v43 = vld [vmem:[#allocation11 + $0x70] sm:$0xf0]  ;;  %v11654_v36 = vld [vmem:[#allocation11 + $0x1d8] sm:$0xf] }
 0x497   :  { %v4870_v49 = vpop.f32.mrf.mxu1  ;;  %5894 = vmatpush.bf16.msra.mxu1 %v11703_v12  ;;  %v13815_v12 = vld [vmem:[#allocation11 + $0x54] sm:$0xf] }
 0x498   :  { %v4871_v25 = vadd.f32 %v4870_v49, %v15723_v56  ;;  %v4955_v27 = vmul.f32 %v15791_v39, %v4954_v40  ;;  %v4948_v49 = vand.u32 2147483648, %v15776_v19  ;;  %5921 = vmatpush.bf16.msrb.mxu3 %v11675_v42  ;;  %v4945_v40 = vsel %vm15812_vm5, %v15786_v61, %v4941_v18  ;;  %v11656_v61 = vld [vmem:[#allocation11 + $0x1f8] sm:$0xf0] }
 0x499   :  { %v13856_v42 = vld [vmem:[#allocation11 + $0x19c] sm:$0xf] }
 0x49a   :  { %v4923_v13 = vadd.f32 %v4915_v7, %v4871_v25  ;;  %5930 = vmatpush.bf16.msrb.mxu0 %v11551_v35  ;;  %5956 = vmatpush.bf16.msra.mxu2 %v11555_v59  ;;  %v11486_v7 = vld [vmem:[#allocation11 + $0x90] sm:$0xf]  ;;  %v4956_v24 = vadd.f32 %v15791_v39, %v4955_v27  ;;  %v11455_v35 = vor.u32 %v13819_v3, %v11454_v15  ;;  %v4949_v2 = vor.u32 1.1754944e-38, %v4948_v49  ;;  %v11590_v15 = vld [vmem:[#allocation11 + $0x158] sm:$0xf] }
 0x49b   :  { %5895 = vmatpush.bf16.msra.mxu1 %v11671_v16  ;;  %v11487_v23 = vor.u32 %v13827_v8, %v11486_v7  ;;  %v11422_v59 = vld [vmem:[#allocation11 + $0x10] sm:$0xf]  ;;  %v4964_v16 = vor.u32 1.1754944e-38, %v4963_v31  ;;  %v13852_v3 = vld [vmem:[#allocation11 + $0x174] sm:$0xf0] }
 0x49c   :  { %v11400_v56 = vmul.f32 -1.442695, %v4923_v13  ;;  %v4960_v19 = vsel %vm15820_vm6, %v15791_v39, %v4956_v24  ;;  %v11459_v13 = vor.u32 %v13815_v12, %v11456_v43  ;;  %v4950_v27 = vsel %vm4947_vm7, %v4949_v2, %v4945_v40  ;;  %v13848_v31 = vld [vmem:[#allocation11 + $0x15c] sm:$0xf]  ;;  %v11902_v40 = vld [vmem:[#allocation11 + $0x3d0] sm:$0xf] }
 0x49d   :  { %v4896_v17 = vpop.f32.mrf.mxu3  ;;  %5883 = vmatmul.bf16.vlgmr.msra.gmra.mxu0 %v15779_v9  ;;  %5909 = vmatmul.bf16.vlgmr.msrb.gmra.mxu2 %v15779_v9  ;;  %v11423_v26 = vor.u32 %v13811_v22, %v11422_v59  ;;  %v11592_v49 = vld [vmem:[#allocation11 + $0x178] sm:$0xf0]  ;;  %v11591_v43 = vor.u32 %v13852_v3, %v11590_v15  ;;  %v11904_v2 = vld [vmem:[#allocation11 + $0x3f0] sm:$0xf0]  ;;  %v11838_v15 = vld [vmem:[#allocation11 + $0x350] sm:$0xf] }
 0x49e   :  { %14425 = vpow2.f32 %v11400_v56  ;;  %v4897_v37 = vadd.f32 %v4896_v17, %v15734_v6  ;;  %5931 = vmatpush.bf16.msrb.mxu0 %v11519_v46  ;;  %5957 = vmatpush.bf16.msra.mxu2 %v11523_v54  ;;  %v11491_v6 = vor.u32 %v13823_v60, %v11488_v32  ;;  %v13868_v56 = vld [vmem:[#allocation11 + $0x1f4] sm:$0xf0]  ;;  %v4965_v17 = vsel %vm4962_vm8, %v4964_v16, %v4960_v19  ;;  %v11560_v59 = vld [vmem:[#allocation11 + $0x138] sm:$0xf0]  ;;  %v13915_v3 = vld [vmem:[#allocation11 + $0x36c] sm:$0xf0] }
 0x49f   :  { %v4872_v47 = vpop.f32.mrf.mxu1  ;;  %v11427_v54 = vor.u32 %v13807_v34, %v11424_v4  ;;  %v11655_v7 = vor.u32 %v13868_v56, %v11654_v36  ;;  %v4983_v60 = vmul.f32 %v4965_v17, %v15678_v41  ;;  %v13860_v32 = vld [vmem:[#allocation11 + $0x1b4] sm:$0xf0]  ;;  %v11595_v1 = vor.u32 %v13848_v31, %v11592_v49 }
 0x4a0   :  { %v4924_v21 = vadd.f32 %v4916_v0, %v4897_v37  ;;  %v13864_v0 = vld [vmem:[#allocation11 + $0x1dc] sm:$0xf]  ;;  %v11622_v37 = vld [vmem:[#allocation11 + $0x198] sm:$0xf] }
 0x4a1   :  { %v11659_v8 = vor.u32 %v13864_v0, %v11656_v61  ;;  %v11624_v47 = vld [vmem:[#allocation11 + $0x1b8] sm:$0xf0]  ;;  %v11623_v24 = vor.u32 %v13860_v32, %v11622_v37  ;;  %v11526_v36 = vld [vmem:[#allocation11 + $0xd8] sm:$0xf]  ;;  %v11872_v32 = vld [vmem:[#allocation11 + $0x3b0] sm:$0xf0] }
 0x4a2   :  { %14427 = vtanh.f32 %v4924_v21  ;;  %5932 = vmatpush.bf16.msrb.mxu0 %v11487_v23  ;;  %5958 = vmatpush.bf16.msra.mxu2 %v11491_v6  ;;  %v11627_v6 = vor.u32 %v13856_v42, %v11624_v47  ;;  %v13836_v61 = vld [vmem:[#allocation11 + $0xf4] sm:$0xf0] }
 0x4a3   :  { %v11494_v42 = vld [vmem:[#allocation11 + $0x98] sm:$0xf] }
 0x4a4   :  { %v14426_v30 = vpop.eup %14425  ;;  %v13828_v47 = vld [vmem:[#allocation11 + $0xb4] sm:$0xf0] }
 0x4a5   :  { %v15824_v55 = vadd.f32 1.0, %v14426_v30  ;;  %v4898_v51 = vpop.f32.mrf.mxu3  ;;  %v11558_v30 = vld [vmem:[#allocation11 + $0x118] sm:$0xf]  ;;  %v11495_v31 = vor.u32 %v13828_v47, %v11494_v42  ;;  %v11710_v47 = vld [vmem:[#allocation11 + $0x250] sm:$0xf] }
 0x4a6   :  { %5933 = vmatpush.bf16.msrb.mxu0 %v11455_v35  ;;  %5959 = vmatpush.bf16.msra.mxu2 %v11459_v13  ;;  %v13840_v35 = vld [vmem:[#allocation11 + $0x11c] sm:$0xf]  ;;  %v13931_v51 = vld [vmem:[#allocation11 + $0x3ec] sm:$0xf0]  ;;  %v13927_v13 = vld [vmem:[#allocation11 + $0x3d4] sm:$0xf]  ;;  %v11559_v4 = vor.u32 %v13844_v5, %v11558_v30  ;;  %v11839_v30 = vor.u32 %v13915_v3, %v11838_v15 }
 0x4a7   :  { %14429 = vrcp.f32 %v15824_v55  ;;  %v4978_v41 = vand.u32 2147483648, %v15824_v55  ;;  %v4976_v53 = vand.u32 2147483647, %v15824_v55  ;;  %vm4972_vm10 = vweird.f32 %v15824_v55  ;;  %v11678_v3 = vld [vmem:[#allocation11 + $0x210] sm:$0xf] }
 0x4a8   :  { %v14428_v46 = vpop.eup %14427  ;;  %v11563_v16 = vor.u32 %v13840_v35, %v11560_v59  ;;  %v11806_v35 = vld [vmem:[#allocation11 + $0x310] sm:$0xf] }
 0x4a9   :  { %v4984_v39 = vmul.f32 %v14428_v46, %v4950_v27  ;;  %v4979_v19 = vor.u32 1.1754944e-38, %v4978_v41  ;;  %vm4977_vm12 = vcmp.eq.f32.partialorder %v4976_v53, 8.507059e+37  ;;  %v13832_v46 = vld [vmem:[#allocation11 + $0xdc] sm:$0xf]  ;;  %v11840_v41 = vld [vmem:[#allocation11 + $0x370] sm:$0xf0] }
 0x4aa   :  { %5934 = vmatpush.bf16.msrb.mxu0 %v11423_v26  ;;  %5960 = vmatpush.bf16.msra.mxu2 %v11427_v54  ;;  %v11528_v27 = vld [vmem:[#allocation11 + $0xf8] sm:$0xf0]  ;;  %v11870_v26 = vld [vmem:[#allocation11 + $0x390] sm:$0xf] }
 0x4ab   :  { %v15834_v23 = vadd.f32 %v4984_v39, %v4983_v60  ;;  %v11907_v39 = vor.u32 %v13927_v13, %v11904_v2  ;;  %v13923_v54 = vld [vmem:[#allocation11 + $0x3ac] sm:$0xf0]  ;;  %v11531_v37 = vor.u32 %v13832_v46, %v11528_v27  ;;  %v13919_v60 = vld [vmem:[#allocation11 + $0x394] sm:$0xf]  ;;  %v13816_v53 = vld [vmem:[#allocation11 + $0x5c] sm:$0xf] }
 0x4ac   :  { %v13907_v59 = vld [vmem:[#allocation11 + $0x32c] sm:$0xf0]  ;;  %v11430_v13 = vld [vmem:[#allocation11 + $0x18] sm:$0xf]  ;;  %v13895_v27 = vld [vmem:[#allocation11 + $0x2d4] sm:$0xf] }
 0x4ad   :  { %v14430_v21 = vpop.eup %14429  ;;  %5935 = vmatmul.bf16.vlgmr.msrb.gmra.mxu0 %v15779_v9  ;;  %5961 = vmatmul.bf16.vlgmr.msra.gmra.mxu2 %v15779_v9  ;;  %14431 = vtanh.f32 %v15834_v23  ;;  %v11807_v2 = vor.u32 %v13907_v59, %v11806_v35  ;;  %v13899_v46 = vld [vmem:[#allocation11 + $0x2ec] sm:$0xf0]  ;;  %v11878_v35 = vld [vmem:[#allocation11 + $0x398] sm:$0xf] }
 0x4ae   :  { %v4968_v18 = vmul.f32 %v14430_v21, %v15824_v55  ;;  %5979 = vmatpush.bf16.msra.mxu0 %v11655_v7  ;;  %6005 = vmatpush.bf16.msrb.mxu2 %v11659_v8  ;;  %vm4973_vm9 = vweird.f32 %v14430_v21  ;;  %v11903_v55 = vor.u32 %v13931_v51, %v11902_v40  ;;  %v11527_v8 = vor.u32 %v13836_v61, %v11526_v36  ;;  %v11808_v51 = vld [vmem:[#allocation11 + $0x330] sm:$0xf0]  ;;  %v13924_v59 = vld [vmem:[#allocation11 + $0x3b4] sm:$0xf0] }
 0x4af   :  { %vm4974_vm11 = vmor %vm4972_vm10, %vm4973_vm9 }
 0x4b0   :  { %v4969_v12 = vsub.f32 1.0, %v4968_v18  ;;  %v11496_v18 = vld [vmem:[#allocation11 + $0xb8] sm:$0xf0] }
 0x4b2   :  { %v4970_v25 = vmul.f32 %v14430_v21, %v4969_v12  ;;  %5980 = vmatpush.bf16.msra.mxu0 %v11623_v24  ;;  %6006 = vmatpush.bf16.msrb.mxu2 %v11627_v6  ;;  %v11871_v24 = vor.u32 %v13923_v54, %v11870_v26  ;;  %v11875_v6 = vor.u32 %v13919_v60, %v11872_v32  ;;  %v13911_v12 = vld [vmem:[#allocation11 + $0x354] sm:$0xf]  ;;  %v11742_v54 = vld [vmem:[#allocation11 + $0x290] sm:$0xf] }
 0x4b3   :  { %v14432_v56 = vpop.eup %14431  ;;  %v11843_v5 = vor.u32 %v13911_v12, %v11840_v41  ;;  %v11744_v60 = vld [vmem:[#allocation11 + $0x2b0] sm:$0xf0]  ;;  %v11910_v41 = vld [vmem:[#allocation11 + $0x3d8] sm:$0xf] }
 0x4b4   :  { %v4971_v22 = vadd.f32 %v14430_v21, %v4970_v25  ;;  %v13820_v25 = vld [vmem:[#allocation11 + $0x74] sm:$0xf0]  ;;  %v11680_v12 = vld [vmem:[#allocation11 + $0x230] sm:$0xf0] }
 0x4b6   :  { %v4975_v34 = vsel %vm4974_vm11, %v14430_v21, %v4971_v22  ;;  %5981 = vmatpush.bf16.msra.mxu0 %v11591_v43  ;;  %6007 = vmatpush.bf16.msrb.mxu2 %v11595_v1  ;;  %v13824_v21 = vld [vmem:[#allocation11 + $0x9c] sm:$0xf]  ;;  %v11462_v43 = vld [vmem:[#allocation11 + $0x58] sm:$0xf] }
 0x4b7   :  { %v4980_v0 = vsel %vm4977_vm12, %v4979_v19, %v4975_v34  ;;  %v11499_v49 = vor.u32 %v13824_v21, %v11496_v18  ;;  %v11464_v1 = vld [vmem:[#allocation11 + $0x78] sm:$0xf0]  ;;  %v11463_v22 = vor.u32 %v13820_v25, %v11462_v43  ;;  %v13903_v19 = vld [vmem:[#allocation11 + $0x314] sm:$0xf]  ;;  %v13812_v34 = vld [vmem:[#allocation11 + $0x34] sm:$0xf0] }
 0x4b8   :  { %v15843_v17 = vmul.f32 %v14432_v56, %v4980_v0  ;;  %v11467_v40 = vor.u32 %v13816_v53, %v11464_v1  ;;  %v11811_v36 = vor.u32 %v13903_v19, %v11808_v51  ;;  %v11774_v56 = vld [vmem:[#allocation11 + $0x2d0] sm:$0xf]  ;;  %v11431_v0 = vor.u32 %v13812_v34, %v11430_v13  ;;  %v13879_v18 = vld [vmem:[#allocation11 + $0x254] sm:$0xf]  ;;  %v13932_v43 = vld [vmem:[#allocation11 + $0x3f4] sm:$0xf0] }
 0x4b9   :  { %v13883_v21 = vld [vmem:[#allocation11 + $0x26c] sm:$0xf0]  ;;  %v13928_v25 = vld [vmem:[#allocation11 + $0x3dc] sm:$0xf]  ;;  %v11879_v19 = vor.u32 %v13924_v59, %v11878_v35  ;;  %v11846_v13 = vld [vmem:[#allocation11 + $0x358] sm:$0xf] }
 0x4ba   :  { %v15847_v7 = vpack.c.bf16 %v15843_v17, %v15843_v17  ;;  %5982 = vmatpush.bf16.msra.mxu0 %v11559_v4  ;;  %6008 = vmatpush.bf16.msrb.mxu2 %v11563_v16  ;;  %v13808_v4 = vld [vmem:[#allocation11 + $0x1c] sm:$0xf]  ;;  %v13916_v34 = vld [vmem:[#allocation11 + $0x374] sm:$0xf0]  ;;  %v12148_v35 = vld [vmem:[#allocation11 + $0x1c0] sm:$0xf] }
 0x4bb   :  { %v11432_v16 = vld [vmem:[#allocation11 + $0x38] sm:$0xf0]  ;;  %v13993_v59 = vld [vmem:[#allocation11 + $0x1dc] sm:$0xf0] }
 0x4bc   :  { %5844 = vmatmul.bf16.vlgmr.msrb.gmra.mxu1 %v15847_v7  ;;  %5870 = vmatmul.bf16.vlgmr.msra.gmra.mxu3 %v15847_v7  ;;  %v11435_v61 = vor.u32 %v13808_v4, %v11432_v16  ;;  %v11912_v53 = vld [vmem:[#allocation11 + $0x3f8] sm:$0xf0] }
 0x4bd   :  { %5940 = vmatpush.bf16.msrb.mxu1 %v11903_v55  ;;  %5966 = vmatpush.bf16.msra.mxu3 %v11907_v39  ;;  %v11776_v55 = vld [vmem:[#allocation11 + $0x2f0] sm:$0xf0]  ;;  %v11775_v39 = vor.u32 %v13899_v46, %v11774_v56  ;;  %v13912_v4 = vld [vmem:[#allocation11 + $0x35c] sm:$0xf]  ;;  %v11814_v56 = vld [vmem:[#allocation11 + $0x318] sm:$0xf] }
 0x4be   :  { %5983 = vmatpush.bf16.msra.mxu0 %v11527_v8  ;;  %6009 = vmatpush.bf16.msrb.mxu2 %v11531_v37  ;;  %v11779_v26 = vor.u32 %v13895_v27, %v11776_v55  ;;  %v13891_v8 = vld [vmem:[#allocation11 + $0x2ac] sm:$0xf0]  ;;  %v13887_v37 = vld [vmem:[#allocation11 + $0x294] sm:$0xf]  ;;  %v11848_v16 = vld [vmem:[#allocation11 + $0x378] sm:$0xf0] }
 0x4bf   :  { %v11743_v32 = vor.u32 %v13891_v8, %v11742_v54  ;;  %v11747_v42 = vor.u32 %v13887_v37, %v11744_v60  ;;  %v11816_v46 = vld [vmem:[#allocation11 + $0x338] sm:$0xf0] }
 0x4c0   :  { %v13896_v54 = vld [vmem:[#allocation11 + $0x2dc] sm:$0xf] }
 0x4c1   :  { %5941 = vmatpush.bf16.msrb.mxu1 %v11871_v24  ;;  %5967 = vmatpush.bf16.msra.mxu3 %v11875_v6  ;;  %v11712_v24 = vld [vmem:[#allocation11 + $0x270] sm:$0xf0]  ;;  %v11711_v6 = vor.u32 %v13883_v21, %v11710_v47  ;;  %v11784_v8 = vld [vmem:[#allocation11 + $0x2f8] sm:$0xf0] }
 0x4c2   :  { %5984 = vmatpush.bf16.msra.mxu0 %v11495_v31  ;;  %6010 = vmatpush.bf16.msrb.mxu2 %v11499_v49  ;;  %v11715_v15 = vor.u32 %v13879_v18, %v11712_v24  ;;  %v13875_v31 = vld [vmem:[#allocation11 + $0x22c] sm:$0xf0]  ;;  %v13871_v49 = vld [vmem:[#allocation11 + $0x214] sm:$0xf]  ;;  %v11787_v60 = vor.u32 %v13896_v54, %v11784_v8  ;;  %v13888_v47 = vld [vmem:[#allocation11 + $0x29c] sm:$0xf] }
 0x4c3   :  { %v11679_v1 = vor.u32 %v13875_v31, %v11678_v3  ;;  %v11752_v21 = vld [vmem:[#allocation11 + $0x2b8] sm:$0xf0]  ;;  %v12052_v54 = vld [vmem:[#allocation11 + $0x100] sm:$0xf] }
 0x4c4   :  { %v11755_v24 = vor.u32 %v13888_v47, %v11752_v21  ;;  %v13880_v3 = vld [vmem:[#allocation11 + $0x25c] sm:$0xf]  ;;  %v13969_v8 = vld [vmem:[#allocation11 + $0x11c] sm:$0xf0] }
 0x4c5   :  { %5942 = vmatpush.bf16.msrb.mxu1 %v11839_v30  ;;  %5968 = vmatpush.bf16.msra.mxu3 %v11843_v5  ;;  %v11683_v30 = vor.u32 %v13871_v49, %v11680_v12  ;;  %v11915_v5 = vor.u32 %v13928_v25, %v11912_v53  ;;  %v11720_v31 = vld [vmem:[#allocation11 + $0x278] sm:$0xf0]  ;;  %v12020_v21 = vld [vmem:[#allocation11 + $0xc0] sm:$0xf] }
 0x4c6   :  { %5985 = vmatpush.bf16.msra.mxu0 %v11463_v22  ;;  %6011 = vmatpush.bf16.msrb.mxu2 %v11467_v40  ;;  %v13920_v22 = vld [vmem:[#allocation11 + $0x39c] sm:$0xf]  ;;  %v11723_v12 = vor.u32 %v13880_v3, %v11720_v31 }
 0x4c7   :  { %v11880_v40 = vld [vmem:[#allocation11 + $0x3b8] sm:$0xf0] }
 0x4c8   :  { %v11883_v51 = vor.u32 %v13920_v22, %v11880_v40  ;;  %v13872_v25 = vld [vmem:[#allocation11 + $0x21c] sm:$0xf]  ;;  %v13989_v22 = vld [vmem:[#allocation11 + $0x1c4] sm:$0xf]  ;;  %v12149_v40 = vor.u32 %v13993_v59, %v12148_v35  ;;  %v13945_v35 = vld [vmem:[#allocation11 + $0x5c] sm:$0xf0] }
 0x4c9   :  { %5943 = vmatpush.bf16.msrb.mxu1 %v11807_v2  ;;  %5969 = vmatpush.bf16.msra.mxu3 %v11811_v36  ;;  %v11847_v2 = vor.u32 %v13916_v34, %v11846_v13  ;;  %v11851_v36 = vor.u32 %v13912_v4, %v11848_v16  ;;  %v11688_v53 = vld [vmem:[#allocation11 + $0x238] sm:$0xf0]  ;;  %v12116_v34 = vld [vmem:[#allocation11 + $0x180] sm:$0xf]  ;;  %v13981_v16 = vld [vmem:[#allocation11 + $0x184] sm:$0xf] }
 0x4ca   :  { %5986 = vmatpush.bf16.msra.mxu0 %v11431_v0  ;;  %6012 = vmatpush.bf16.msrb.mxu2 %v11435_v61  ;;  %v13908_v0 = vld [vmem:[#allocation11 + $0x334] sm:$0xf0]  ;;  %v13904_v61 = vld [vmem:[#allocation11 + $0x31c] sm:$0xf]  ;;  %v13985_v4 = vld [vmem:[#allocation11 + $0x19c] sm:$0xf0] }
 0x4cb   :  { %v11815_v27 = vor.u32 %v13908_v0, %v11814_v56  ;;  %v11819_v55 = vor.u32 %v13904_v61, %v11816_v46  ;;  %v12084_v0 = vld [vmem:[#allocation11 + $0x140] sm:$0xf]  ;;  %v13973_v46 = vld [vmem:[#allocation11 + $0x144] sm:$0xf] }
 0x4cc   :  { %5896 = vmatmul.bf16.vlgmr.msra.gmra.mxu1 %v15847_v7  ;;  %5922 = vmatmul.bf16.vlgmr.msrb.gmra.mxu3 %v15847_v7  ;;  %v13977_v61 = vld [vmem:[#allocation11 + $0x15c] sm:$0xf0]  ;;  %v13941_v59 = vld [vmem:[#allocation11 + $0x44] sm:$0xf] }
 0x4cd   :  { %5944 = vmatpush.bf16.msrb.mxu1 %v11775_v39  ;;  %5970 = vmatpush.bf16.msra.mxu3 %v11779_v26  ;;  %v11782_v39 = vld [vmem:[#allocation11 + $0x2d8] sm:$0xf] }
 0x4ce   :  { %5987 = vmatmul.bf16.vlgmr.msra.gmra.mxu0 %v15779_v9  ;;  %6013 = vmatmul.bf16.vlgmr.msrb.gmra.mxu2 %v15779_v9  ;;  %v11911_v9 = vor.u32 %v13932_v43, %v11910_v41  ;;  %v13900_v26 = vld [vmem:[#allocation11 + $0x2f4] sm:$0xf0] }
 0x4cf   :  { %v11783_v37 = vor.u32 %v13900_v26, %v11782_v39  ;;  %v11686_v41 = vld [vmem:[#allocation11 + $0x218] sm:$0xf]  ;;  %6954 = vmatpush.bf16.msrb.mxu0 %v12149_v40  ;;  %v11958_v40 = vld [vmem:[#allocation11 + $0x60] sm:$0xf0] }
 0x4d0   :  { %v13876_v43 = vld [vmem:[#allocation11 + $0x234] sm:$0xf0] }
 0x4d1   :  { %5945 = vmatpush.bf16.msrb.mxu1 %v11743_v32  ;;  %5971 = vmatpush.bf16.msra.mxu3 %v11747_v42  ;;  %v11750_v32 = vld [vmem:[#allocation11 + $0x298] sm:$0xf] }
 0x4d2   :  { %v13892_v42 = vld [vmem:[#allocation11 + $0x2b4] sm:$0xf0] }
 0x4d3   :  { %v11751_v18 = vor.u32 %v13892_v42, %v11750_v32  ;;  %v12054_v32 = vld [vmem:[#allocation11 + $0x120] sm:$0xf0] }
 0x4d5   :  { %5946 = vmatpush.bf16.msrb.mxu1 %v11711_v6  ;;  %5972 = vmatpush.bf16.msra.mxu3 %v11715_v15  ;;  %v11718_v6 = vld [vmem:[#allocation11 + $0x258] sm:$0xf] }
 0x4d6   :  { %v13884_v15 = vld [vmem:[#allocation11 + $0x274] sm:$0xf0] }
 0x4d7   :  { %v11719_v49 = vor.u32 %v13884_v15, %v11718_v6  ;;  %v12022_v15 = vld [vmem:[#allocation11 + $0xe0] sm:$0xf0] }
 0x4d9   :  { %5947 = vmatpush.bf16.msrb.mxu1 %v11679_v1  ;;  %5973 = vmatpush.bf16.msra.mxu3 %v11683_v30  ;;  %v11687_v1 = vor.u32 %v13876_v43, %v11686_v41  ;;  %v11691_v30 = vor.u32 %v13872_v25, %v11688_v53  ;;  %v13949_v41 = vld [vmem:[#allocation11 + $0x84] sm:$0xf] }
 0x4da   :  { %v11990_v25 = vld [vmem:[#allocation11 + $0xa0] sm:$0xf0] }
 0x4db   :  { %v11993_v53 = vor.u32 %v13949_v41, %v11990_v25  ;;  %v12060_v25 = vld [vmem:[#allocation11 + $0x108] sm:$0xf] }
 0x4dc   :  { %5948 = vmatmul.bf16.vlgmr.msrb.gmra.mxu1 %v15847_v7  ;;  %5974 = vmatmul.bf16.vlgmr.msra.gmra.mxu3 %v15847_v7 }
 0x4dd   :  { %5992 = vmatpush.bf16.msra.mxu1 %v11911_v9  ;;  %6018 = vmatpush.bf16.msrb.mxu3 %v11915_v5 }
 0x4e1   :  { %5993 = vmatpush.bf16.msra.mxu1 %v11879_v19  ;;  %6019 = vmatpush.bf16.msrb.mxu3 %v11883_v51  ;;  %v12150_v19 = vld [vmem:[#allocation11 + $0x1e0] sm:$0xf0] }
 0x4e2   :  { %v12153_v13 = vor.u32 %v13989_v22, %v12150_v19 }
 0x4e4   :  { %6980 = vmatpush.bf16.msra.mxu2 %v12153_v13  ;;  %v11924_v13 = vld [vmem:[#allocation11] sm:$0xf] }
 0x4e5   :  { %5994 = vmatpush.bf16.msra.mxu1 %v11847_v2  ;;  %6020 = vmatpush.bf16.msrb.mxu3 %v11851_v36  ;;  %v12117_v2 = vor.u32 %v13985_v4, %v12116_v34  ;;  %v12118_v36 = vld [vmem:[#allocation11 + $0x1a0] sm:$0xf0]  ;;  %v13937_v34 = vld [vmem:[#allocation11 + $0x1c] sm:$0xf0] }
 0x4e6   :  { %v12121_v56 = vor.u32 %v13981_v16, %v12118_v36  ;;  %v13933_v4 = vld [vmem:[#allocation11 + $0x4] sm:$0xf]  ;;  %v11925_v16 = vor.u32 %v13937_v34, %v11924_v13  ;;  %v12156_v36 = vld [vmem:[#allocation11 + $0x1c8] sm:$0xf] }
 0x4e7   :  { %6955 = vmatpush.bf16.msrb.mxu0 %v12117_v2  ;;  %v11926_v2 = vld [vmem:[#allocation11 + $0x20] sm:$0xf0] }
 0x4e8   :  { %6981 = vmatpush.bf16.msra.mxu2 %v12121_v56  ;;  %v13994_v56 = vld [vmem:[#allocation11 + $0x1e4] sm:$0xf0] }
 0x4e9   :  { %5995 = vmatpush.bf16.msra.mxu1 %v11815_v27  ;;  %6021 = vmatpush.bf16.msrb.mxu3 %v11819_v55  ;;  %v12085_v27 = vor.u32 %v13977_v61, %v12084_v0  ;;  %v12086_v55 = vld [vmem:[#allocation11 + $0x160] sm:$0xf0]  ;;  %v12157_v0 = vor.u32 %v13994_v56, %v12156_v36  ;;  %v13990_v61 = vld [vmem:[#allocation11 + $0x1cc] sm:$0xf]  ;;  %v12028_v36 = vld [vmem:[#allocation11 + $0xc8] sm:$0xf] }
 0x4ea   :  { %v12089_v26 = vor.u32 %v13973_v46, %v12086_v55  ;;  %v12158_v46 = vld [vmem:[#allocation11 + $0x1e8] sm:$0xf0]  ;;  %v13962_v56 = vld [vmem:[#allocation11 + $0xe4] sm:$0xf0] }
 0x4eb   :  { %6956 = vmatpush.bf16.msrb.mxu0 %v12085_v27  ;;  %v12161_v27 = vor.u32 %v13990_v61, %v12158_v46  ;;  %v12029_v61 = vor.u32 %v13962_v56, %v12028_v36  ;;  %v12030_v46 = vld [vmem:[#allocation11 + $0xe8] sm:$0xf0]  ;;  %v12310_v56 = vld [vmem:[#allocation11 + $0x320] sm:$0xf0] }
 0x4ec   :  { %6982 = vmatpush.bf16.msra.mxu2 %v12089_v26  ;;  %v12124_v26 = vld [vmem:[#allocation11 + $0x188] sm:$0xf] }
 0x4ed   :  { %5996 = vmatpush.bf16.msra.mxu1 %v11783_v37  ;;  %6022 = vmatpush.bf16.msrb.mxu3 %v11787_v60  ;;  %v13965_v37 = vld [vmem:[#allocation11 + $0x104] sm:$0xf]  ;;  %v12053_v60 = vor.u32 %v13969_v8, %v12052_v54  ;;  %v13986_v54 = vld [vmem:[#allocation11 + $0x1a4] sm:$0xf0]  ;;  %v13982_v8 = vld [vmem:[#allocation11 + $0x18c] sm:$0xf] }
 0x4ee   :  { %v12057_v42 = vor.u32 %v13965_v37, %v12054_v32  ;;  %v12126_v32 = vld [vmem:[#allocation11 + $0x1a8] sm:$0xf0] }
 0x4ef   :  { %6957 = vmatpush.bf16.msrb.mxu0 %v12053_v60  ;;  %v12125_v60 = vor.u32 %v13986_v54, %v12124_v26  ;;  %v12372_v54 = vld [vmem:[#allocation11 + $0x380] sm:$0xf] }
 0x4f0   :  { %6983 = vmatpush.bf16.msra.mxu2 %v12057_v42  ;;  %v12129_v42 = vor.u32 %v13982_v8, %v12126_v32  ;;  %v14049_v8 = vld [vmem:[#allocation11 + $0x39c] sm:$0xf0] }
 0x4f1   :  { %5997 = vmatpush.bf16.msra.mxu1 %v11751_v18  ;;  %6023 = vmatpush.bf16.msrb.mxu3 %v11755_v24  ;;  %v13961_v18 = vld [vmem:[#allocation11 + $0xdc] sm:$0xf0]  ;;  %v13957_v24 = vld [vmem:[#allocation11 + $0xc4] sm:$0xf] }
 0x4f2   :  { %v12021_v6 = vor.u32 %v13961_v18, %v12020_v21  ;;  %v12025_v31 = vor.u32 %v13957_v24, %v12022_v15  ;;  %v12092_v21 = vld [vmem:[#allocation11 + $0x148] sm:$0xf]  ;;  %v13974_v24 = vld [vmem:[#allocation11 + $0x14c] sm:$0xf] }
 0x4f3   :  { %v13978_v18 = vld [vmem:[#allocation11 + $0x164] sm:$0xf0] }
 0x4f4   :  { %6958 = vmatpush.bf16.msrb.mxu0 %v12021_v6  ;;  %6984 = vmatpush.bf16.msra.mxu2 %v12025_v31  ;;  %v12093_v15 = vor.u32 %v13978_v18, %v12092_v21  ;;  %v226_v31 = vadd.f32 %v15082_v48, %v15063_v11  ;;  %v14053_v48 = vld [vmem:[#allocation11 + $0x3c4] sm:$0xf]  ;;  %v13954_v21 = vld [vmem:[#allocation11 + $0xa4] sm:$0xf0] }
 0x4f5   :  { %5998 = vmatpush.bf16.msra.mxu1 %v11719_v49  ;;  %6024 = vmatpush.bf16.msrb.mxu3 %v11723_v12  ;;  %v11988_v49 = vld [vmem:[#allocation11 + $0x80] sm:$0xf] }
 0x4f6   :  { %v13953_v12 = vld [vmem:[#allocation11 + $0x9c] sm:$0xf0] }
 0x4f7   :  { %v11989_v43 = vor.u32 %v13953_v12, %v11988_v49 }
 0x4f8   :  { %6985 = vmatpush.bf16.msra.mxu2 %v11993_v53  ;;  %v13970_v53 = vld [vmem:[#allocation11 + $0x124] sm:$0xf0] }
 0x4f9   :  { %5999 = vmatpush.bf16.msra.mxu1 %v11687_v1  ;;  %6025 = vmatpush.bf16.msrb.mxu3 %v11691_v30  ;;  %v11956_v30 = vld [vmem:[#allocation11 + $0x40] sm:$0xf] }
 0x4fa   :  { %6959 = vmatpush.bf16.msrb.mxu0 %v11989_v43  ;;  %v11957_v22 = vor.u32 %v13945_v35, %v11956_v30  ;;  %v12061_v30 = vor.u32 %v13970_v53, %v12060_v25  ;;  %v12062_v35 = vld [vmem:[#allocation11 + $0x128] sm:$0xf0]  ;;  %v12342_v53 = vld [vmem:[#allocation11 + $0x360] sm:$0xf0] }
 0x4fc   :  { %6000 = vmatmul.bf16.vlgmr.msra.gmra.mxu1 %v15847_v7  ;;  %6026 = vmatmul.bf16.vlgmr.msrb.gmra.mxu3 %v15847_v7 }
 0x4fe   :  { %6960 = vmatpush.bf16.msrb.mxu0 %v11957_v22 }
 0x502   :  { %6961 = vmatpush.bf16.msrb.mxu0 %v11925_v16 }
 0x506   :  { %7006 = vmatpush.bf16.msra.mxu0 %v12157_v0 }
 0x50a   :  { %v15859_v9 = vpop.f32.mrf.mxu0  ;;  %7007 = vmatpush.bf16.msra.mxu0 %v12125_v60  ;;  %v12374_v60 = vld [vmem:[#allocation11 + $0x3a0] sm:$0xf0] }
 0x50e   :  { %7008 = vmatpush.bf16.msra.mxu0 %v12093_v15 }
 0x510   :  { %v15861_v5 = vpop.f32.mrf.mxu2 }
 0x512   :  { %v5834_v51 = vpop.f32.mrf.mxu0  ;;  %7009 = vmatpush.bf16.msra.mxu0 %v12061_v30  ;;  %v11964_v30 = vld [vmem:[#allocation11 + $0x48] sm:$0xf] }
 0x513   :  { %v11961_v51 = vor.u32 %v13941_v59, %v11958_v40  ;;  %v12404_v40 = vld [vmem:[#allocation11 + $0x3c0] sm:$0xf] }
 0x515   :  { %6986 = vmatpush.bf16.msra.mxu2 %v11961_v51  ;;  %v14057_v51 = vld [vmem:[#allocation11 + $0x3dc] sm:$0xf0] }
 0x516   :  { %v12405_v34 = vor.u32 %v14057_v51, %v12404_v40  ;;  %7010 = vmatpush.bf16.msra.mxu0 %v12029_v61  ;;  %v11966_v40 = vld [vmem:[#allocation11 + $0x68] sm:$0xf0]  ;;  %v284_v51 = vadd.f32 %v15144_v33, %v15124_v14 }
 0x517   :  { %v13934_v33 = vld [vmem:[#allocation11 + $0xc] sm:$0xf] }
 0x518   :  { %v5860_v7 = vpop.f32.mrf.mxu2  ;;  %6967 = vmatpush.bf16.msrb.mxu1 %v12405_v34 }
 0x519   :  { %v11929_v7 = vor.u32 %v13933_v4, %v11926_v2  ;;  %v12406_v4 = vld [vmem:[#allocation11 + $0x3e0] sm:$0xf0] }
 0x51a   :  { %v15863_v39 = vpop.f32.mrf.mxu0  ;;  %v12409_v2 = vor.u32 %v14053_v48, %v12406_v4  ;;  %v12308_v4 = vld [vmem:[#allocation11 + $0x300] sm:$0xf] }
 0x51b   :  { %6987 = vmatpush.bf16.msra.mxu2 %v11929_v7  ;;  %v13958_v7 = vld [vmem:[#allocation11 + $0xcc] sm:$0xf] }
 0x51c   :  { %6993 = vmatpush.bf16.msra.mxu3 %v12409_v2  ;;  %v12033_v26 = vor.u32 %v13958_v7, %v12030_v46  ;;  %v11932_v46 = vld [vmem:[#allocation11 + $0x8] sm:$0xf] }
 0x51f   :  { %7032 = vmatpush.bf16.msrb.mxu2 %v12161_v27 }
 0x520   :  { %v15865_v47 = vpop.f32.mrf.mxu2 }
 0x522   :  { %v5886_v3 = vpop.f32.mrf.mxu0 }
 0x523   :  { %7033 = vmatpush.bf16.msrb.mxu2 %v12129_v42  ;;  %v12094_v3 = vld [vmem:[#allocation11 + $0x168] sm:$0xf0]  ;;  %v11996_v42 = vld [vmem:[#allocation11 + $0x88] sm:$0xf] }
 0x524   :  { %v12097_v12 = vor.u32 %v13974_v24, %v12094_v3  ;;  %v11997_v18 = vor.u32 %v13954_v21, %v11996_v42  ;;  %v13950_v24 = vld [vmem:[#allocation11 + $0x8c] sm:$0xf]  ;;  %v12276_v21 = vld [vmem:[#allocation11 + $0x2c0] sm:$0xf] }
 0x526   :  { %7011 = vmatpush.bf16.msra.mxu0 %v11997_v18  ;;  %v14025_v18 = vld [vmem:[#allocation11 + $0x2dc] sm:$0xf0] }
 0x527   :  { %7034 = vmatpush.bf16.msrb.mxu2 %v12097_v12  ;;  %v14037_v12 = vld [vmem:[#allocation11 + $0x344] sm:$0xf] }
 0x528   :  { %v5912_v1 = vpop.f32.mrf.mxu2 }
 0x529   :  { %v13966_v1 = vld [vmem:[#allocation11 + $0x10c] sm:$0xf] }
 0x52a   :  { %v15867_v19 = vpop.f32.mrf.mxu0  ;;  %v12065_v22 = vor.u32 %v13966_v1, %v12062_v35  ;;  %v12345_v1 = vor.u32 %v14037_v12, %v12342_v53  ;;  %v13946_v35 = vld [vmem:[#allocation11 + $0x64] sm:$0xf0]  ;;  %v12277_v12 = vor.u32 %v14025_v18, %v12276_v21  ;;  %v12244_v53 = vld [vmem:[#allocation11 + $0x280] sm:$0xf] }
 0x52b   :  { %v11965_v34 = vor.u32 %v13946_v35, %v11964_v30 }
 0x52c   :  { %7035 = vmatpush.bf16.msrb.mxu2 %v12065_v22 }
 0x52d   :  { %7012 = vmatpush.bf16.msra.mxu0 %v11965_v34 }
 0x530   :  { %v15869_v55 = vpop.f32.mrf.mxu2  ;;  %7036 = vmatpush.bf16.msrb.mxu2 %v12033_v26 }
 0x532   :  { %v5938_v37 = vpop.f32.mrf.mxu0 }
 0x533   :  { %v14045_v37 = vld [vmem:[#allocation11 + $0x384] sm:$0xf] }
 0x538   :  { %v5964_v41 = vpop.f32.mrf.mxu2 }
 0x539   :  { %v5845_v6 = vpop.f32.mrf.mxu1 }
 0x53a   :  { %v5846_v49 = vadd.f32 %v5845_v6, %v15859_v9  ;;  %v255_v9 = vadd.f32 %v15086_v50, %v15065_v20  ;;  %v12373_v50 = vor.u32 %v14049_v8, %v12372_v54  ;;  %v11998_v6 = vld [vmem:[#allocation11 + $0xa8] sm:$0xf0] }
 0x53b   :  { %v12001_v3 = vor.u32 %v13950_v24, %v11998_v6  ;;  %v11934_v54 = vld [vmem:[#allocation11 + $0x28] sm:$0xf0]  ;;  %v14021_v24 = vld [vmem:[#allocation11 + $0x2c4] sm:$0xf] }
 0x53c   :  { %v6038_v43 = vadd.f32 %v5846_v49, %v226_v31  ;;  %6968 = vmatpush.bf16.msrb.mxu1 %v12373_v50  ;;  %v12340_v31 = vld [vmem:[#allocation11 + $0x340] sm:$0xf] }
 0x53d   :  { %v14041_v49 = vld [vmem:[#allocation11 + $0x35c] sm:$0xf0]  ;;  %7037 = vmatpush.bf16.msrb.mxu2 %v12001_v3  ;;  %v12278_v3 = vld [vmem:[#allocation11 + $0x2e0] sm:$0xf0] }
 0x53e   :  { %v11919_v59 = vmul.f32 -1.442695, %v6038_v43  ;;  %v12341_v25 = vor.u32 %v14041_v49, %v12340_v31 }
 0x53f   :  { %v5871_v13 = vpop.f32.mrf.mxu3 }
 0x540   :  { %14433 = vpow2.f32 %v11919_v59  ;;  %v5872_v16 = vadd.f32 %v5871_v13, %v15861_v5  ;;  %v12377_v5 = vor.u32 %v14045_v37, %v12374_v60  ;;  %v13942_v59 = vld [vmem:[#allocation11 + $0x4c] sm:$0xf]  ;;  %6969 = vmatpush.bf16.msrb.mxu1 %v12341_v25  ;;  %v11937_v37 = vor.u32 %v13934_v33, %v11934_v54 }
 0x541   :  { %v5847_v0 = vpop.f32.mrf.mxu1  ;;  %v11969_v48 = vor.u32 %v13942_v59, %v11966_v40  ;;  %v14013_v59 = vld [vmem:[#allocation11 + $0x284] sm:$0xf] }
 0x542   :  { %v6039_v27 = vadd.f32 %v5872_v16, %v255_v9  ;;  %6994 = vmatpush.bf16.msra.mxu3 %v12377_v5  ;;  %v14033_v9 = vld [vmem:[#allocation11 + $0x31c] sm:$0xf0]  ;;  %v14029_v16 = vld [vmem:[#allocation11 + $0x304] sm:$0xf] }
 0x543   :  { %v12309_v36 = vor.u32 %v14033_v9, %v12308_v4  ;;  %7038 = vmatpush.bf16.msrb.mxu2 %v11969_v48  ;;  %v12313_v61 = vor.u32 %v14029_v16, %v12310_v56  ;;  %v12212_v16 = vld [vmem:[#allocation11 + $0x240] sm:$0xf] }
 0x544   :  { %v11920_v32 = vmul.f32 -1.442695, %v6039_v27  ;;  %v13938_v27 = vld [vmem:[#allocation11 + $0x24] sm:$0xf0] }
 0x545   :  { %6970 = vmatpush.bf16.msrb.mxu1 %v12309_v36  ;;  %v14009_v36 = vld [vmem:[#allocation11 + $0x25c] sm:$0xf0] }
 0x546   :  { %v14434_v15 = vpop.eup %14433  ;;  %14435 = vpow2.f32 %v11920_v32  ;;  %6995 = vmatpush.bf16.msra.mxu3 %v12345_v1  ;;  %v313_v32 = vadd.f32 %v15146_v62, %v15126_v57  ;;  %v15900_v62 = vld [vmem:[%s16352_s4] sm:$0xf]  ;;  %v14017_v1 = vld [vmem:[#allocation11 + $0x29c] sm:$0xf0] }
 0x547   :  { %v15877_v41 = vadd.f32 1.0, %v14434_v15  ;;  %v5873_v43 = vpop.f32.mrf.mxu3  ;;  %7039 = vmatpush.bf16.msrb.mxu2 %v11937_v37  ;;  %v12245_v35 = vor.u32 %v14017_v1, %v12244_v53  ;;  %v6044_v9 = vperm.slane %v15900_v62, 0  ;;  %v12412_v53 = vld [vmem:[#allocation11 + $0x3c8] sm:$0xf] }
 0x548   :  { %v12281_v43 = vor.u32 %v14021_v24, %v12278_v3  ;;  %v12180_v24 = vld [vmem:[#allocation11 + $0x200] sm:$0xf]  ;;  %v14058_v1 = vld [vmem:[#allocation11 + $0x3e4] sm:$0xf0] }
 0x549   :  { %14437 = vrcp.f32 %v15877_v41  ;;  %v5897_v22 = vpop.f32.mrf.mxu1  ;;  %6971 = vmatpush.bf16.msrb.mxu1 %v12277_v12  ;;  %vm6138_vm14 = vweird.f32 %v15877_v41  ;;  %v12182_v12 = vld [vmem:[#allocation11 + $0x220] sm:$0xf0] }
 0x54a   :  { %v5898_v13 = vadd.f32 %v5897_v22, %v15863_v39  ;;  %v11933_v39 = vor.u32 %v13938_v27, %v11932_v46  ;;  %6996 = vmatpush.bf16.msra.mxu3 %v12313_v61  ;;  %v12246_v22 = vld [vmem:[#allocation11 + $0x2a0] sm:$0xf0] }
 0x54b   :  { %v15883_v2 = vpop.f32.mrf.mxu0  ;;  %v14005_v46 = vld [vmem:[#allocation11 + $0x244] sm:$0xf] }
 0x54c   :  { %v14436_v7 = vpop.eup %14435  ;;  %v6040_v0 = vadd.f32 %v5898_v13, %v284_v51  ;;  %7013 = vmatpush.bf16.msra.mxu0 %v11933_v39  ;;  %v6142_v51 = vand.u32 2147483647, %v15877_v41  ;;  %v12249_v13 = vor.u32 %v14013_v59, %v12246_v22  ;;  %v12214_v27 = vld [vmem:[#allocation11 + $0x260] sm:$0xf0]  ;;  %v12213_v39 = vor.u32 %v14009_v36, %v12212_v16  ;;  %v14054_v59 = vld [vmem:[#allocation11 + $0x3cc] sm:$0xf] }
 0x54d   :  { %v15885_v26 = vadd.f32 1.0, %v14436_v7  ;;  %6972 = vmatpush.bf16.msrb.mxu1 %v12245_v35  ;;  %v12217_v54 = vor.u32 %v14005_v46, %v12214_v27  ;;  %v12413_v35 = vor.u32 %v14058_v1, %v12412_v53  ;;  %v12414_v22 = vld [vmem:[#allocation11 + $0x3e8] sm:$0xf0]  ;;  %v12380_v16 = vld [vmem:[#allocation11 + $0x388] sm:$0xf] }
 0x54e   :  { %v11921_v8 = vmul.f32 -1.442695, %v6040_v0  ;;  %6997 = vmatpush.bf16.msra.mxu3 %v12281_v43  ;;  %vm6143_vm0 = vcmp.eq.f32.partialorder %v6142_v51, 8.507059e+37  ;;  %v14050_v36 = vld [vmem:[#allocation11 + $0x3a4] sm:$0xf0] }
 0x54f   :  { %v15887_v50 = vpop.eup %14437  ;;  %14439 = vrcp.f32 %v15885_v26  ;;  %v5923_v60 = vpop.f32.mrf.mxu3  ;;  %v6157_v37 = vand.u32 2147483647, %v15885_v26  ;;  %vm6153_vm2 = vweird.f32 %v15885_v26  ;;  %v13991_v1 = vld [vmem:[#allocation11 + $0x1d4] sm:$0xf] }
 0x550   :  { %v6134_v5 = vmul.f32 %v15887_v50, %v15877_v41  ;;  %14441 = vpow2.f32 %v11921_v8  ;;  %v5924_v42 = vadd.f32 %v5923_v60, %v15865_v47  ;;  %v6144_v47 = vand.u32 2147483648, %v15877_v41 }
 0x551   :  { %v15895_v6 = vpop.f32.mrf.mxu2  ;;  %v5899_v15 = vpop.f32.mrf.mxu1  ;;  %vm6139_vm13 = vweird.f32 %v15887_v50  ;;  %v6159_v8 = vand.u32 2147483648, %v15885_v26  ;;  %6973 = vmatpush.bf16.msrb.mxu1 %v12213_v39  ;;  %vm6158_vm4 = vcmp.eq.f32.partialorder %v6157_v37, 8.507059e+37  ;;  %v14042_v37 = vld [vmem:[#allocation11 + $0x364] sm:$0xf0] }
 0x552   :  { %v6135_v31 = vsub.f32 1.0, %v6134_v5  ;;  %v6041_v49 = vadd.f32 %v5924_v42, %v313_v32  ;;  %vm15914_vm15 = vmor %vm6138_vm14, %vm6139_vm13  ;;  %v6145_v0 = vor.u32 1.1754944e-38, %v6144_v47  ;;  %6998 = vmatpush.bf16.msra.mxu3 %v12249_v13 }
 0x553   :  { %v5990_v25 = vpop.f32.mrf.mxu0  ;;  %v6160_v43 = vor.u32 1.1754944e-38, %v6159_v8 }
 0x554   :  { %v6136_v30 = vmul.f32 %v15887_v50, %v6135_v31  ;;  %14443 = vtanh.f32 %v6041_v49  ;;  %v14001_v31 = vld [vmem:[#allocation11 + $0x21c] sm:$0xf0]  ;;  %v13997_v49 = vld [vmem:[#allocation11 + $0x204] sm:$0xf] }
 0x555   :  { %v14440_v40 = vpop.eup %14439  ;;  %v12181_v47 = vor.u32 %v14001_v31, %v12180_v24  ;;  %v12185_v25 = vor.u32 %v13997_v49, %v12182_v12  ;;  %v12164_v31 = vld [vmem:[#allocation11 + $0x1d0] sm:$0xf] }
 0x556   :  { %v14442_v34 = vpop.eup %14441  ;;  %v6149_v48 = vmul.f32 %v14440_v40, %v15885_v26  ;;  %v6137_v4 = vadd.f32 %v15887_v50, %v6136_v30  ;;  %vm6154_vm1 = vweird.f32 %v14440_v40  ;;  %6999 = vmatpush.bf16.msra.mxu3 %v12217_v54  ;;  %v13995_v49 = vld [vmem:[#allocation11 + $0x1ec] sm:$0xf0] }
 0x557   :  { %v15910_v56 = vadd.f32 1.0, %v14442_v34  ;;  %v5925_v61 = vpop.f32.mrf.mxu3  ;;  %vm6155_vm3 = vmor %vm6153_vm2, %vm6154_vm1  ;;  %v6045_v34 = vperm.slane %v15900_v62, 1  ;;  %6974 = vmatpush.bf16.msrb.mxu1 %v12181_v47  ;;  %v14034_v47 = vld [vmem:[#allocation11 + $0x324] sm:$0xf0] }
 0x558   :  { %v6150_v33 = vsub.f32 1.0, %v6149_v48  ;;  %v6141_v41 = vsel %vm15914_vm15, %v15887_v50, %v6137_v4  ;;  %v12417_v48 = vor.u32 %v14054_v59, %v12414_v22  ;;  %v12382_v61 = vld [vmem:[#allocation11 + $0x3a8] sm:$0xf0] }
 0x559   :  { %14445 = vrcp.f32 %v15910_v56  ;;  %v6016_v60 = vpop.f32.mrf.mxu2  ;;  %v5949_v32 = vpop.f32.mrf.mxu1  ;;  %v6146_v21 = vsel %vm6143_vm0, %v6145_v0, %v6141_v41  ;;  %v14046_v0 = vld [vmem:[#allocation11 + $0x38c] sm:$0xf]  ;;  %v6172_v39 = vand.u32 2147483647, %v15910_v56  ;;  %vm6168_vm6 = vweird.f32 %v15910_v56 }
 0x55a   :  { %v14444_v5 = vpop.eup %14443  ;;  %v6151_v42 = vmul.f32 %v14440_v40, %v6150_v33  ;;  %v5950_v18 = vadd.f32 %v5949_v32, %v15867_v19  ;;  %7000 = vmatpush.bf16.msra.mxu3 %v12185_v25  ;;  %v12381_v33 = vor.u32 %v14050_v36, %v12380_v16  ;;  %v12385_v41 = vor.u32 %v14046_v0, %v12382_v61  ;;  %v14038_v60 = vld [vmem:[#allocation11 + $0x34c] sm:$0xf]  ;;  %v12134_v16 = vld [vmem:[#allocation11 + $0x1b0] sm:$0xf0]  ;;  %v12284_v36 = vld [vmem:[#allocation11 + $0x2c8] sm:$0xf] }
 0x55b   :  { %v6180_v50 = vmul.f32 %v14444_v5, %v6146_v21  ;;  %7019 = vmatpush.bf16.msra.mxu1 %v12413_v35  ;;  %vm6173_vm8 = vcmp.eq.f32.partialorder %v6172_v39, 8.507059e+37  ;;  %v14030_v25 = vld [vmem:[#allocation11 + $0x30c] sm:$0xf]  ;;  %v12100_v39 = vld [vmem:[#allocation11 + $0x150] sm:$0xf] }
 0x55c   :  { %v6152_v15 = vadd.f32 %v14440_v40, %v6151_v42  ;;  %v6052_v3 = vadd.f32 %v6044_v9, %v5950_v18  ;;  %v12350_v42 = vld [vmem:[#allocation11 + $0x368] sm:$0xf0] }
 0x55d   :  { %v14022_v0 = vld [vmem:[#allocation11 + $0x2cc] sm:$0xf] }
 0x55e   :  { %v6156_v30 = vsel %vm6155_vm3, %v14440_v40, %v6152_v15  ;;  %v11916_v19 = vmul.f32 -1.442695, %v6052_v3  ;;  %7045 = vmatpush.bf16.msrb.mxu3 %v12417_v48  ;;  %v13987_v48 = vld [vmem:[#allocation11 + $0x1ac] sm:$0xf0] }
 0x55f   :  { %v14446_v26 = vpop.eup %14445  ;;  %v6161_v51 = vsel %vm6158_vm4, %v6160_v43, %v6156_v30  ;;  %v5975_v13 = vpop.f32.mrf.mxu3  ;;  %7020 = vmatpush.bf16.msra.mxu1 %v12381_v33  ;;  %v12316_v43 = vld [vmem:[#allocation11 + $0x308] sm:$0xf]  ;;  %v12166_v30 = vld [vmem:[#allocation11 + $0x1f0] sm:$0xf0] }
 0x560   :  { %v6164_v4 = vmul.f32 %v14446_v26, %v15910_v56  ;;  %v6179_v9 = vmul.f32 %v6161_v51, %v15770_v29  ;;  %14447 = vpow2.f32 %v11916_v19  ;;  %v5976_v40 = vadd.f32 %v5975_v13, %v15869_v55  ;;  %v12348_v55 = vld [vmem:[#allocation11 + $0x348] sm:$0xf] }
 0x561   :  { %v5951_v7 = vpop.f32.mrf.mxu1  ;;  %v6174_v29 = vand.u32 2147483648, %v15910_v56  ;;  %vm6169_vm5 = vweird.f32 %v14446_v26  ;;  %v12349_v5 = vor.u32 %v14042_v37, %v12348_v55  ;;  %v12318_v56 = vld [vmem:[#allocation11 + $0x328] sm:$0xf0]  ;;  %v12317_v35 = vor.u32 %v14034_v47, %v12316_v43  ;;  %v12102_v55 = vld [vmem:[#allocation11 + $0x170] sm:$0xf0] }
 0x562   :  { %v6165_v46 = vsub.f32 1.0, %v6164_v4  ;;  %v15930_v27 = vadd.f32 %v6180_v50, %v6179_v9  ;;  %v6053_v54 = vadd.f32 %v6045_v34, %v5976_v40  ;;  %7046 = vmatpush.bf16.msrb.mxu3 %v12385_v41  ;;  %v12353_v50 = vor.u32 %v14038_v60, %v12350_v42  ;;  %vm6170_vm7 = vmor %vm6168_vm6, %vm6169_vm5  ;;  %v12132_v34 = vld [vmem:[#allocation11 + $0x190] sm:$0xf]  ;;  %v13983_v9 = vld [vmem:[#allocation11 + $0x194] sm:$0xf] }
 0x563   :  { %v6175_v24 = vor.u32 1.1754944e-38, %v6174_v29  ;;  %7021 = vmatpush.bf16.msra.mxu1 %v12349_v5  ;;  %v12321_v59 = vor.u32 %v14030_v25, %v12318_v56  ;;  %v12165_v51 = vor.u32 %v13995_v49, %v12164_v31  ;;  %v12169_v13 = vor.u32 %v13991_v1, %v12166_v30  ;;  %v14026_v7 = vld [vmem:[#allocation11 + $0x2e4] sm:$0xf0]  ;;  %v13979_v29 = vld [vmem:[#allocation11 + $0x16c] sm:$0xf0] }
 0x564   :  { %v6166_v8 = vmul.f32 %v14446_v26, %v6165_v46  ;;  %14449 = vtanh.f32 %v15930_v27  ;;  %v11917_v32 = vmul.f32 -1.442695, %v6053_v54  ;;  %v12285_v61 = vor.u32 %v14026_v7, %v12284_v36  ;;  %v12286_v46 = vld [vmem:[#allocation11 + $0x2e8] sm:$0xf0]  ;;  %v13975_v54 = vld [vmem:[#allocation11 + $0x154] sm:$0xf] }
 0x565   :  { %v12133_v33 = vor.u32 %v13987_v48, %v12132_v34  ;;  %v12137_v41 = vor.u32 %v13983_v9, %v12134_v16  ;;  %v12289_v37 = vor.u32 %v14022_v0, %v12286_v46  ;;  %v12252_v60 = vld [vmem:[#allocation11 + $0x288] sm:$0xf]  ;;  %v14014_v42 = vld [vmem:[#allocation11 + $0x28c] sm:$0xf]  ;;  %v12101_v49 = vor.u32 %v13979_v29, %v12100_v39  ;;  %v13967_v43 = vld [vmem:[#allocation11 + $0x114] sm:$0xf] }
 0x566   :  { %v14448_v21 = vpop.eup %14447  ;;  %v6167_v18 = vadd.f32 %v14446_v26, %v6166_v8  ;;  %14451 = vpow2.f32 %v11917_v32  ;;  %7047 = vmatpush.bf16.msrb.mxu3 %v12353_v50  ;;  %v14018_v32 = vld [vmem:[#allocation11 + $0x2a4] sm:$0xf0]  ;;  %v12068_v50 = vld [vmem:[#allocation11 + $0x110] sm:$0xf]  ;;  %v12070_v47 = vld [vmem:[#allocation11 + $0x130] sm:$0xf0] }
 0x567   :  { %v15936_v15 = vadd.f32 1.0, %v14448_v21  ;;  %v5977_v3 = vpop.f32.mrf.mxu3  ;;  %7022 = vmatpush.bf16.msra.mxu1 %v12317_v35  ;;  %v12253_v5 = vor.u32 %v14018_v32, %v12252_v60  ;;  %v12254_v21 = vld [vmem:[#allocation11 + $0x2a8] sm:$0xf0]  ;;  %v12220_v25 = vld [vmem:[#allocation11 + $0x248] sm:$0xf]  ;;  %v12073_v9 = vor.u32 %v13967_v43, %v12070_v47  ;;  %v6047_v29 = vperm.slane %v15900_v62, 3 }
 0x568   :  { %v6171_v12 = vsel %vm6170_vm7, %v14446_v26, %v6167_v18  ;;  %v6046_v18 = vperm.slane %v15900_v62, 2  ;;  %v12257_v3 = vor.u32 %v14014_v42, %v12254_v21  ;;  %v14006_v1 = vld [vmem:[#allocation11 + $0x24c] sm:$0xf]  ;;  %v13959_v16 = vld [vmem:[#allocation11 + $0xd4] sm:$0xf] }
 0x569   :  { %v6176_v53 = vsel %vm6173_vm8, %v6175_v24, %v6171_v12  ;;  %14453 = vrcp.f32 %v15936_v15  ;;  %v13971_v24 = vld [vmem:[#allocation11 + $0x12c] sm:$0xf0]  ;;  %v12105_v12 = vor.u32 %v13975_v54, %v12102_v55  ;;  %v12222_v30 = vld [vmem:[#allocation11 + $0x268] sm:$0xf0]  ;;  %v12188_v36 = vld [vmem:[#allocation11 + $0x208] sm:$0xf]  ;;  %vm6073_vm11 = vweird.f32 %v15936_v15 }
 0x56a   :  { %v14450_v19 = vpop.eup %14449  ;;  %7048 = vmatpush.bf16.msrb.mxu3 %v12321_v59  ;;  %v12225_v34 = vor.u32 %v14006_v1, %v12222_v30  ;;  %v14002_v46 = vld [vmem:[#allocation11 + $0x224] sm:$0xf0]  ;;  %v12190_v39 = vld [vmem:[#allocation11 + $0x228] sm:$0xf0]  ;;  %v13955_v42 = vld [vmem:[#allocation11 + $0xac] sm:$0xf0] }
 0x56b   :  { %v6183_v22 = vmul.f32 %v14450_v19, %v6176_v53  ;;  %7023 = vmatpush.bf16.msra.mxu1 %v12285_v61  ;;  %v14010_v53 = vld [vmem:[#allocation11 + $0x264] sm:$0xf0]  ;;  %v12038_v61 = vld [vmem:[#allocation11 + $0xf0] sm:$0xf0]  ;;  %v11972_v43 = vld [vmem:[#allocation11 + $0x50] sm:$0xf] }
 0x56c   :  { %v14452_v26 = vpop.eup %14451  ;;  %v12221_v35 = vor.u32 %v14010_v53, %v12220_v25  ;;  %v12041_v32 = vor.u32 %v13959_v16, %v12038_v61  ;;  %v13947_v47 = vld [vmem:[#allocation11 + $0x6c] sm:$0xf0]  ;;  %v6079_v53 = vand.u32 2147483648, %v15936_v15  ;;  %v13943_v1 = vld [vmem:[#allocation11 + $0x54] sm:$0xf] }
 0x56d   :  { %v15939_v4 = vpack.c.bf16 %v6183_v22, %v6183_v22  ;;  %v15941_v40 = vadd.f32 1.0, %v14452_v26  ;;  %v12069_v26 = vor.u32 %v13971_v24, %v12068_v50  ;;  %v12006_v50 = vld [vmem:[#allocation11 + $0xb0] sm:$0xf0] }
 0x56e   :  { %7049 = vmatpush.bf16.msrb.mxu3 %v12289_v37  ;;  %v11974_v30 = vld [vmem:[#allocation11 + $0x70] sm:$0xf0]  ;;  %v6080_v61 = vor.u32 1.1754944e-38, %v6079_v53 }
 0x56f   :  { %6962 = vmatmul.bf16.vlgmr.msrb.gmra.mxu0 %v15939_v4  ;;  %6988 = vmatmul.bf16.vlgmr.msra.gmra.mxu2 %v15939_v4  ;;  %14455 = vrcp.f32 %v15941_v40  ;;  %v15946_v8 = vpop.eup %14453  ;;  %v6094_v25 = vand.u32 2147483648, %v15941_v40  ;;  %vm6088_vm12 = vweird.f32 %v15941_v40  ;;  %v11977_v16 = vor.u32 %v13943_v1, %v11974_v30 }
 0x570   :  { %7058 = vmatpush.bf16.msrb.mxu0 %v12165_v51  ;;  %7084 = vmatpush.bf16.msra.mxu2 %v12169_v13  ;;  %v6069_v31 = vmul.f32 %v15946_v8, %v15936_v15  ;;  %v12036_v51 = vld [vmem:[#allocation11 + $0xd0] sm:$0xf]  ;;  %vm6074_vm9 = vweird.f32 %v15946_v8 }
 0x571   :  { %7024 = vmatpush.bf16.msra.mxu1 %v12253_v5  ;;  %v13963_v13 = vld [vmem:[#allocation11 + $0xec] sm:$0xf0]  ;;  %vm15972_vm13 = vmor %vm6073_vm11, %vm6074_vm9 }
 0x572   :  { %7050 = vmatpush.bf16.msrb.mxu3 %v12257_v3  ;;  %v6070_v48 = vsub.f32 1.0, %v6069_v31  ;;  %v12037_v54 = vor.u32 %v13963_v13, %v12036_v51  ;;  %v12004_v5 = vld [vmem:[#allocation11 + $0x90] sm:$0xf]  ;;  %v11973_v13 = vor.u32 %v13947_v47, %v11972_v43  ;;  %v12110_v43 = vld [vmem:[#allocation11 + $0x178] sm:$0xf0] }
 0x573   :  { %v12005_v31 = vor.u32 %v13955_v42, %v12004_v5  ;;  %v13988_v42 = vld [vmem:[#allocation11 + $0x1b4] sm:$0xf0] }
 0x574   :  { %7059 = vmatpush.bf16.msrb.mxu0 %v12133_v33  ;;  %7085 = vmatpush.bf16.msra.mxu2 %v12137_v41  ;;  %v12189_v33 = vor.u32 %v14002_v46, %v12188_v36  ;;  %v13998_v41 = vld [vmem:[#allocation11 + $0x20c] sm:$0xf]  ;;  %v6071_v60 = vmul.f32 %v15946_v8, %v6070_v48  ;;  %v13939_v48 = vld [vmem:[#allocation11 + $0x2c] sm:$0xf0]  ;;  %v13935_v36 = vld [vmem:[#allocation11 + $0x14] sm:$0xf] }
 0x575   :  { %v15951_v56 = vpop.eup %14455  ;;  %7025 = vmatpush.bf16.msra.mxu1 %v12221_v35  ;;  %v12193_v24 = vor.u32 %v13998_v41, %v12190_v39  ;;  %v6077_v35 = vand.u32 2147483647, %v15936_v15  ;;  %v12172_v46 = vld [vmem:[#allocation11 + $0x1d8] sm:$0xf]  ;;  %v13992_v41 = vld [vmem:[#allocation11 + $0x1dc] sm:$0xf] }
 0x576   :  { %v6084_v59 = vmul.f32 %v15951_v56, %v15941_v40  ;;  %7051 = vmatpush.bf16.msrb.mxu3 %v12225_v34  ;;  %vm6089_vm10 = vweird.f32 %v15951_v56  ;;  %v11940_v34 = vld [vmem:[#allocation11 + $0x10] sm:$0xf] }
 0x577   :  { %vm15980_vm14 = vmor %vm6088_vm12, %vm6089_vm10  ;;  %vm6078_vm15 = vcmp.eq.f32.partialorder %v6077_v35, 8.507059e+37  ;;  %v13972_v35 = vld [vmem:[#allocation11 + $0x134] sm:$0xf0] }
 0x578   :  { %7060 = vmatpush.bf16.msrb.mxu0 %v12101_v49  ;;  %7086 = vmatpush.bf16.msra.mxu2 %v12105_v12  ;;  %v6085_v7 = vsub.f32 1.0, %v6084_v59  ;;  %v6072_v49 = vadd.f32 %v15946_v8, %v6071_v60  ;;  %v6092_v59 = vand.u32 2147483647, %v15941_v40 }
 0x579   :  { %v6001_v19 = vpop.f32.mrf.mxu1  ;;  %7026 = vmatpush.bf16.msra.mxu1 %v12189_v33  ;;  %v13996_v33 = vld [vmem:[#allocation11 + $0x1f4] sm:$0xf0] }
 0x57a   :  { %v6002_v22 = vadd.f32 %v6001_v19, %v15883_v2  ;;  %v6086_v55 = vmul.f32 %v15951_v56, %v6085_v7  ;;  %7052 = vmatpush.bf16.msrb.mxu3 %v12193_v24  ;;  %v11942_v7 = vld [vmem:[#allocation11 + $0x30] sm:$0xf0]  ;;  %vm6093_vm0 = vcmp.eq.f32.partialorder %v6092_v59, 8.507059e+37  ;;  %v12076_v19 = vld [vmem:[#allocation11 + $0x118] sm:$0xf] }
 0x57b   :  { %v13968_v59 = vld [vmem:[#allocation11 + $0x11c] sm:$0xf] }
 0x57c   :  { %v6054_v0 = vadd.f32 %v6046_v18, %v6002_v22  ;;  %7061 = vmatpush.bf16.msrb.mxu0 %v12069_v26  ;;  %7087 = vmatpush.bf16.msra.mxu2 %v12073_v9  ;;  %v13951_v18 = vld [vmem:[#allocation11 + $0x94] sm:$0xf]  ;;  %v6087_v12 = vadd.f32 %v15951_v56, %v6086_v55  ;;  %v6076_v9 = vsel %vm15972_vm13, %v15946_v8, %v6072_v49  ;;  %v12174_v8 = vld [vmem:[#allocation11 + $0x1f8] sm:$0xf0]  ;;  %v12108_v49 = vld [vmem:[#allocation11 + $0x158] sm:$0xf] }
 0x57d   :  { %v11945_v55 = vor.u32 %v13935_v36, %v11942_v7  ;;  %v12177_v60 = vor.u32 %v13992_v41, %v12174_v8  ;;  %v12422_v36 = vld [vmem:[#allocation11 + $0x3f0] sm:$0xf0]  ;;  %v12044_v7 = vld [vmem:[#allocation11 + $0xd8] sm:$0xf]  ;;  %v12046_v41 = vld [vmem:[#allocation11 + $0xf8] sm:$0xf0] }
 0x57e   :  { %v11918_v2 = vmul.f32 -1.442695, %v6054_v0  ;;  %v6091_v15 = vsel %vm15980_vm14, %v15951_v56, %v6087_v12  ;;  %v6095_v0 = vor.u32 1.1754944e-38, %v6094_v25  ;;  %v13980_v12 = vld [vmem:[#allocation11 + $0x174] sm:$0xf0] }
 0x57f   :  { %v6027_v37 = vpop.f32.mrf.mxu3  ;;  %7014 = vmatmul.bf16.vlgmr.msra.gmra.mxu0 %v15939_v4  ;;  %7040 = vmatmul.bf16.vlgmr.msrb.gmra.mxu2 %v15939_v4  ;;  %v12109_v25 = vor.u32 %v13980_v12, %v12108_v49  ;;  %v14039_v12 = vld [vmem:[#allocation11 + $0x354] sm:$0xf] }
 0x580   :  { %14457 = vpow2.f32 %v11918_v2  ;;  %v6028_v21 = vadd.f32 %v6027_v37, %v15895_v6  ;;  %7062 = vmatpush.bf16.msrb.mxu0 %v12037_v54  ;;  %7088 = vmatpush.bf16.msra.mxu2 %v12041_v32  ;;  %v12009_v6 = vor.u32 %v13951_v18, %v12006_v50  ;;  %v6081_v2 = vsel %vm6078_vm15, %v6080_v61, %v6076_v9  ;;  %v12140_v32 = vld [vmem:[#allocation11 + $0x198] sm:$0xf]  ;;  %v12142_v18 = vld [vmem:[#allocation11 + $0x1b8] sm:$0xf0]  ;;  %v14055_v9 = vld [vmem:[#allocation11 + $0x3d4] sm:$0xf] }
 0x581   :  { %v6003_v62 = vpop.f32.mrf.mxu1  ;;  %v11941_v54 = vor.u32 %v13939_v48, %v11940_v34  ;;  %v12173_v37 = vor.u32 %v13996_v33, %v12172_v46  ;;  %v14059_v48 = vld [vmem:[#allocation11 + $0x3ec] sm:$0xf0]  ;;  %v13964_v46 = vld [vmem:[#allocation11 + $0xf4] sm:$0xf0]  ;;  %v13960_v33 = vld [vmem:[#allocation11 + $0xdc] sm:$0xf] }
 0x582   :  { %v6055_v3 = vadd.f32 %v6047_v29, %v6028_v21  ;;  %v6096_v29 = vsel %vm6093_vm0, %v6095_v0, %v6091_v15  ;;  %v13984_v21 = vld [vmem:[#allocation11 + $0x19c] sm:$0xf] }
 0x583   :  { %v6114_v5 = vmul.f32 %v6096_v29, %v15834_v23  ;;  %v14051_v29 = vld [vmem:[#allocation11 + $0x3ac] sm:$0xf0] }
 0x584   :  { %14459 = vtanh.f32 %v6055_v3  ;;  %7063 = vmatpush.bf16.msrb.mxu0 %v12005_v31  ;;  %7089 = vmatpush.bf16.msra.mxu2 %v12009_v6  ;;  %v12141_v3 = vor.u32 %v13988_v42, %v12140_v32  ;;  %v12145_v31 = vor.u32 %v13984_v21, %v12142_v18  ;;  %v13976_v6 = vld [vmem:[#allocation11 + $0x15c] sm:$0xf]  ;;  %v12012_v32 = vld [vmem:[#allocation11 + $0x98] sm:$0xf] }
 0x585   :  { %v12113_v30 = vor.u32 %v13976_v6, %v12110_v43  ;;  %v13952_v42 = vld [vmem:[#allocation11 + $0x9c] sm:$0xf]  ;;  %v12358_v6 = vld [vmem:[#allocation11 + $0x370] sm:$0xf0]  ;;  %v11980_v43 = vld [vmem:[#allocation11 + $0x58] sm:$0xf] }
 0x586   :  { %v14458_v22 = vpop.eup %14457  ;;  %v12014_v21 = vld [vmem:[#allocation11 + $0xb8] sm:$0xf0] }
 0x587   :  { %v15984_v26 = vadd.f32 1.0, %v14458_v22  ;;  %v6029_v40 = vpop.f32.mrf.mxu3  ;;  %v12078_v22 = vld [vmem:[#allocation11 + $0x138] sm:$0xf0]  ;;  %v12017_v49 = vor.u32 %v13952_v42, %v12014_v21 }
 0x588   :  { %7064 = vmatpush.bf16.msrb.mxu0 %v11973_v13  ;;  %7090 = vmatpush.bf16.msra.mxu2 %v11977_v16  ;;  %v12420_v13 = vld [vmem:[#allocation11 + $0x3d0] sm:$0xf]  ;;  %v12077_v40 = vor.u32 %v13972_v35, %v12076_v19  ;;  %v12081_v16 = vor.u32 %v13968_v59, %v12078_v22  ;;  %v14031_v22 = vld [vmem:[#allocation11 + $0x314] sm:$0xf] }
 0x589   :  { %14461 = vrcp.f32 %v15984_v26  ;;  %v6109_v23 = vand.u32 2147483648, %v15984_v26  ;;  %v6107_v1 = vand.u32 2147483647, %v15984_v26  ;;  %vm6103_vm2 = vweird.f32 %v15984_v26  ;;  %v14035_v19 = vld [vmem:[#allocation11 + $0x32c] sm:$0xf0] }
 0x58a   :  { %v14460_v39 = vpop.eup %14459 }
 0x58b   :  { %v6115_v56 = vmul.f32 %v14460_v39, %v6081_v2  ;;  %v6110_v34 = vor.u32 1.1754944e-38, %v6109_v23  ;;  %vm6108_vm4 = vcmp.eq.f32.partialorder %v6107_v1, 8.507059e+37  ;;  %v12425_v39 = vor.u32 %v14055_v9, %v12422_v36  ;;  %v12388_v2 = vld [vmem:[#allocation11 + $0x390] sm:$0xf]  ;;  %v13944_v23 = vld [vmem:[#allocation11 + $0x5c] sm:$0xf] }
 0x58c   :  { %7065 = vmatpush.bf16.msrb.mxu0 %v11941_v54  ;;  %7091 = vmatpush.bf16.msra.mxu2 %v11945_v55  ;;  %v12045_v54 = vor.u32 %v13964_v46, %v12044_v7  ;;  %v12049_v55 = vor.u32 %v13960_v33, %v12046_v41  ;;  %v12389_v18 = vor.u32 %v14051_v29, %v12388_v2  ;;  %v11950_v9 = vld [vmem:[#allocation11 + $0x38] sm:$0xf0]  ;;  %v12294_v46 = vld [vmem:[#allocation11 + $0x2f0] sm:$0xf0] }
 0x58d   :  { %v15994_v24 = vadd.f32 %v6115_v56, %v6114_v5  ;;  %v13956_v5 = vld [vmem:[#allocation11 + $0xb4] sm:$0xf0]  ;;  %v12361_v1 = vor.u32 %v14039_v12, %v12358_v6  ;;  %v14015_v2 = vld [vmem:[#allocation11 + $0x294] sm:$0xf]  ;;  %v14056_v12 = vld [vmem:[#allocation11 + $0x3dc] sm:$0xf] }
 0x58e   :  { %v12262_v29 = vld [vmem:[#allocation11 + $0x2b0] sm:$0xf0]  ;;  %v12430_v6 = vld [vmem:[#allocation11 + $0x3f8] sm:$0xf0] }
 0x58f   :  { %v14462_v50 = vpop.eup %14461  ;;  %7066 = vmatmul.bf16.vlgmr.msrb.gmra.mxu0 %v15939_v4  ;;  %7092 = vmatmul.bf16.vlgmr.msra.gmra.mxu2 %v15939_v4  ;;  %14463 = vtanh.f32 %v15994_v24 }
 0x590   :  { %v6099_v62 = vmul.f32 %v14462_v50, %v15984_v26  ;;  %7110 = vmatpush.bf16.msra.mxu0 %v12173_v37  ;;  %7136 = vmatpush.bf16.msrb.mxu2 %v12177_v60  ;;  %vm6104_vm1 = vweird.f32 %v14462_v50  ;;  %v12421_v26 = vor.u32 %v14059_v48, %v12420_v13  ;;  %v14047_v37 = vld [vmem:[#allocation11 + $0x394] sm:$0xf]  ;;  %v11948_v13 = vld [vmem:[#allocation11 + $0x18] sm:$0xf]  ;;  %v13936_v48 = vld [vmem:[#allocation11 + $0x1c] sm:$0xf] }
 0x591   :  { %vm6105_vm3 = vmor %vm6103_vm2, %vm6104_vm1  ;;  %v12390_v60 = vld [vmem:[#allocation11 + $0x3b0] sm:$0xf0]  ;;  %v11953_v7 = vor.u32 %v13936_v48, %v11950_v9  ;;  %v12332_v9 = vld [vmem:[#allocation11 + $0x318] sm:$0xf] }
 0x592   :  { %v6100_v47 = vsub.f32 1.0, %v6099_v62  ;;  %v12356_v62 = vld [vmem:[#allocation11 + $0x350] sm:$0xf] }
 0x594   :  { %v6101_v53 = vmul.f32 %v14462_v50, %v6100_v47  ;;  %7111 = vmatpush.bf16.msra.mxu0 %v12141_v3  ;;  %7137 = vmatpush.bf16.msrb.mxu2 %v12145_v31  ;;  %v14043_v3 = vld [vmem:[#allocation11 + $0x36c] sm:$0xf0]  ;;  %v12013_v31 = vor.u32 %v13956_v5, %v12012_v32  ;;  %v13948_v47 = vld [vmem:[#allocation11 + $0x74] sm:$0xf0]  ;;  %v14007_v32 = vld [vmem:[#allocation11 + $0x254] sm:$0xf] }
 0x595   :  { %v14464_v0 = vpop.eup %14463  ;;  %v11981_v35 = vor.u32 %v13948_v47, %v11980_v43  ;;  %v12230_v5 = vld [vmem:[#allocation11 + $0x270] sm:$0xf0] }
 0x596   :  { %v6102_v51 = vadd.f32 %v14462_v50, %v6101_v53  ;;  %v12357_v53 = vor.u32 %v14043_v3, %v12356_v62  ;;  %v12233_v21 = vor.u32 %v14007_v32, %v12230_v5  ;;  %v13999_v62 = vld [vmem:[#allocation11 + $0x214] sm:$0xf]  ;;  %v14012_v32 = vld [vmem:[#allocation11 + $0x274] sm:$0xf0]  ;;  %v14008_v5 = vld [vmem:[#allocation11 + $0x25c] sm:$0xf] }
 0x597   :  { %v12198_v3 = vld [vmem:[#allocation11 + $0x230] sm:$0xf0] }
 0x598   :  { %v6106_v15 = vsel %vm6105_vm3, %v14462_v50, %v6102_v51  ;;  %7112 = vmatpush.bf16.msra.mxu0 %v12109_v25  ;;  %7138 = vmatpush.bf16.msrb.mxu2 %v12113_v30  ;;  %v12393_v50 = vor.u32 %v14047_v37, %v12390_v60  ;;  %v11982_v25 = vld [vmem:[#allocation11 + $0x78] sm:$0xf0]  ;;  %v12324_v30 = vld [vmem:[#allocation11 + $0x310] sm:$0xf]  ;;  %v12326_v51 = vld [vmem:[#allocation11 + $0x330] sm:$0xf0]  ;;  %v12201_v47 = vor.u32 %v13999_v62, %v12198_v3 }
 0x599   :  { %v6111_v61 = vsel %vm6108_vm4, %v6110_v34, %v6106_v15  ;;  %v11985_v59 = vor.u32 %v13944_v23, %v11982_v25  ;;  %v13940_v34 = vld [vmem:[#allocation11 + $0x34] sm:$0xf0]  ;;  %v12325_v15 = vor.u32 %v14035_v19, %v12324_v30  ;;  %v12228_v37 = vld [vmem:[#allocation11 + $0x250] sm:$0xf]  ;;  %v12433_v23 = vor.u32 %v14056_v12, %v12430_v6  ;;  %v12398_v30 = vld [vmem:[#allocation11 + $0x3b8] sm:$0xf0] }
 0x59a   :  { %v16003_v8 = vmul.f32 %v14464_v0, %v6111_v61  ;;  %v11949_v36 = vor.u32 %v13940_v34, %v11948_v13  ;;  %v14027_v0 = vld [vmem:[#allocation11 + $0x2ec] sm:$0xf0]  ;;  %v14023_v61 = vld [vmem:[#allocation11 + $0x2d4] sm:$0xf]  ;;  %v12396_v25 = vld [vmem:[#allocation11 + $0x398] sm:$0xf] }
 0x59b   :  { %v12297_v41 = vor.u32 %v14023_v61, %v12294_v46  ;;  %v14011_v60 = vld [vmem:[#allocation11 + $0x26c] sm:$0xf0]  ;;  %v12366_v13 = vld [vmem:[#allocation11 + $0x378] sm:$0xf0]  ;;  %v14028_v61 = vld [vmem:[#allocation11 + $0x2f4] sm:$0xf0] }
 0x59c   :  { %v16007_v56 = vpack.c.bf16 %v16003_v8, %v16003_v8  ;;  %7113 = vmatpush.bf16.msra.mxu0 %v12077_v40  ;;  %7139 = vmatpush.bf16.msrb.mxu2 %v12081_v16  ;;  %v12329_v40 = vor.u32 %v14031_v22, %v12326_v51  ;;  %v12292_v16 = vld [vmem:[#allocation11 + $0x2d0] sm:$0xf]  ;;  %v12229_v42 = vor.u32 %v14011_v60, %v12228_v37  ;;  %v14044_v22 = vld [vmem:[#allocation11 + $0x374] sm:$0xf0]  ;;  %v14040_v51 = vld [vmem:[#allocation11 + $0x35c] sm:$0xf] }
 0x59d   :  { %v12293_v33 = vor.u32 %v14027_v0, %v12292_v16  ;;  %v12369_v48 = vor.u32 %v14040_v51, %v12366_v13  ;;  %v12334_v16 = vld [vmem:[#allocation11 + $0x338] sm:$0xf0]  ;;  %v12300_v0 = vld [vmem:[#allocation11 + $0x2d8] sm:$0xf]  ;;  %v12636_v51 = vld [vmem:[#allocation11 + $0x1a0] sm:$0xf0] }
 0x59e   :  { %6975 = vmatmul.bf16.vlgmr.msrb.gmra.mxu1 %v16007_v56  ;;  %7001 = vmatmul.bf16.vlgmr.msra.gmra.mxu3 %v16007_v56  ;;  %v14024_v46 = vld [vmem:[#allocation11 + $0x2dc] sm:$0xf]  ;;  %v12236_v60 = vld [vmem:[#allocation11 + $0x258] sm:$0xf] }
 0x59f   :  { %7071 = vmatpush.bf16.msrb.mxu1 %v12421_v26  ;;  %7097 = vmatpush.bf16.msra.mxu3 %v12425_v39  ;;  %v12260_v26 = vld [vmem:[#allocation11 + $0x290] sm:$0xf]  ;;  %v14004_v62 = vld [vmem:[#allocation11 + $0x234] sm:$0xf0]  ;;  %v14000_v3 = vld [vmem:[#allocation11 + $0x21c] sm:$0xf] }
 0x5a0   :  { %7114 = vmatpush.bf16.msra.mxu0 %v12045_v54  ;;  %7140 = vmatpush.bf16.msrb.mxu2 %v12049_v55  ;;  %v14019_v39 = vld [vmem:[#allocation11 + $0x2ac] sm:$0xf0]  ;;  %v12265_v55 = vor.u32 %v14015_v2, %v12262_v29  ;;  %v14020_v2 = vld [vmem:[#allocation11 + $0x2b4] sm:$0xf0]  ;;  %v14016_v29 = vld [vmem:[#allocation11 + $0x29c] sm:$0xf] }
 0x5a1   :  { %v12261_v54 = vor.u32 %v14019_v39, %v12260_v26  ;;  %v12268_v39 = vld [vmem:[#allocation11 + $0x298] sm:$0xf] }
 0x5a3   :  { %7072 = vmatpush.bf16.msrb.mxu1 %v12389_v18  ;;  %7098 = vmatpush.bf16.msra.mxu3 %v12393_v50  ;;  %v12196_v18 = vld [vmem:[#allocation11 + $0x210] sm:$0xf] }
 0x5a4   :  { %7115 = vmatpush.bf16.msra.mxu0 %v12013_v31  ;;  %7141 = vmatpush.bf16.msrb.mxu2 %v12017_v49  ;;  %v14003_v50 = vld [vmem:[#allocation11 + $0x22c] sm:$0xf0]  ;;  %v12428_v31 = vld [vmem:[#allocation11 + $0x3d8] sm:$0xf] }
 0x5a5   :  { %v14060_v49 = vld [vmem:[#allocation11 + $0x3f4] sm:$0xf0]  ;;  %v12197_v43 = vor.u32 %v14003_v50, %v12196_v18 }
 0x5a6   :  { %v12204_v50 = vld [vmem:[#allocation11 + $0x218] sm:$0xf] }
 0x5a7   :  { %7073 = vmatpush.bf16.msrb.mxu1 %v12357_v53  ;;  %7099 = vmatpush.bf16.msra.mxu3 %v12361_v1  ;;  %v14052_v53 = vld [vmem:[#allocation11 + $0x3b4] sm:$0xf0]  ;;  %v14048_v1 = vld [vmem:[#allocation11 + $0x39c] sm:$0xf] }
 0x5a8   :  { %7116 = vmatpush.bf16.msra.mxu0 %v11981_v35  ;;  %7142 = vmatpush.bf16.msrb.mxu2 %v11985_v59  ;;  %v12397_v19 = vor.u32 %v14052_v53, %v12396_v25  ;;  %v12401_v35 = vor.u32 %v14048_v1, %v12398_v30  ;;  %v12364_v59 = vld [vmem:[#allocation11 + $0x358] sm:$0xf]  ;;  %v12668_v53 = vld [vmem:[#allocation11 + $0x1e0] sm:$0xf0] }
 0x5a9   :  { %v12365_v34 = vor.u32 %v14044_v22, %v12364_v59  ;;  %v14109_v59 = vld [vmem:[#allocation11 + $0x184] sm:$0xf] }
 0x5aa   :  { %v12639_v13 = vor.u32 %v14109_v59, %v12636_v51  ;;  %v14122_v59 = vld [vmem:[#allocation11 + $0x1e4] sm:$0xf0] }
 0x5ab   :  { %7074 = vmatpush.bf16.msrb.mxu1 %v12325_v15  ;;  %7100 = vmatpush.bf16.msra.mxu3 %v12329_v40  ;;  %v14036_v15 = vld [vmem:[#allocation11 + $0x334] sm:$0xf0]  ;;  %v14032_v40 = vld [vmem:[#allocation11 + $0x31c] sm:$0xf] }
 0x5ac   :  { %7117 = vmatpush.bf16.msra.mxu0 %v11949_v36  ;;  %7143 = vmatpush.bf16.msrb.mxu2 %v11953_v7  ;;  %v12333_v36 = vor.u32 %v14036_v15, %v12332_v9  ;;  %v12337_v7 = vor.u32 %v14032_v40, %v12334_v16  ;;  %v14101_v9 = vld [vmem:[#allocation11 + $0x144] sm:$0xf] }
 0x5ad   :  { %v12604_v40 = vld [vmem:[#allocation11 + $0x160] sm:$0xf0] }
 0x5ae   :  { %7027 = vmatmul.bf16.vlgmr.msra.gmra.mxu1 %v16007_v56  ;;  %7053 = vmatmul.bf16.vlgmr.msrb.gmra.mxu3 %v16007_v56 }
 0x5af   :  { %7075 = vmatpush.bf16.msrb.mxu1 %v12293_v33  ;;  %7101 = vmatpush.bf16.msra.mxu3 %v12297_v41  ;;  %v12302_v33 = vld [vmem:[#allocation11 + $0x2f8] sm:$0xf0]  ;;  %v12301_v41 = vor.u32 %v14028_v61, %v12300_v0  ;;  %v14097_v0 = vld [vmem:[#allocation11 + $0x11c] sm:$0xf0]  ;;  %v14093_v61 = vld [vmem:[#allocation11 + $0x104] sm:$0xf] }
 0x5b0   :  { %7118 = vmatmul.bf16.vlgmr.msra.gmra.mxu0 %v15939_v4  ;;  %7144 = vmatmul.bf16.vlgmr.msrb.gmra.mxu2 %v15939_v4  ;;  %v12429_v4 = vor.u32 %v14060_v49, %v12428_v31  ;;  %v12305_v26 = vor.u32 %v14024_v46, %v12302_v33  ;;  %v12206_v31 = vld [vmem:[#allocation11 + $0x238] sm:$0xf0]  ;;  %v12205_v49 = vor.u32 %v14004_v62, %v12204_v50  ;;  %v12572_v33 = vld [vmem:[#allocation11 + $0x120] sm:$0xf0] }
 0x5b1   :  { %v12209_v12 = vor.u32 %v14000_v3, %v12206_v31  ;;  %v12474_v3 = vld [vmem:[#allocation11 + $0x40] sm:$0xf] }
 0x5b2   :  { %v14073_v31 = vld [vmem:[#allocation11 + $0x5c] sm:$0xf0] }
 0x5b3   :  { %7076 = vmatpush.bf16.msrb.mxu1 %v12261_v54  ;;  %7102 = vmatpush.bf16.msra.mxu3 %v12265_v55  ;;  %v12270_v54 = vld [vmem:[#allocation11 + $0x2b8] sm:$0xf0]  ;;  %v12269_v55 = vor.u32 %v14020_v2, %v12268_v39  ;;  %v12538_v39 = vld [vmem:[#allocation11 + $0xc0] sm:$0xf] }
 0x5b4   :  { %v12273_v37 = vor.u32 %v14016_v29, %v12270_v54  ;;  %v14089_v2 = vld [vmem:[#allocation11 + $0xdc] sm:$0xf0]  ;;  %v14085_v29 = vld [vmem:[#allocation11 + $0xc4] sm:$0xf] }
 0x5b5   :  { %v12539_v54 = vor.u32 %v14089_v2, %v12538_v39 }
 0x5b7   :  { %7077 = vmatpush.bf16.msrb.mxu1 %v12229_v42  ;;  %7103 = vmatpush.bf16.msra.mxu3 %v12233_v21  ;;  %v12238_v42 = vld [vmem:[#allocation11 + $0x278] sm:$0xf0]  ;;  %v12237_v21 = vor.u32 %v14012_v32, %v12236_v60  ;;  %v12506_v32 = vld [vmem:[#allocation11 + $0x80] sm:$0xf] }
 0x5b8   :  { %v12241_v18 = vor.u32 %v14008_v5, %v12238_v42  ;;  %v14081_v5 = vld [vmem:[#allocation11 + $0x9c] sm:$0xf0]  ;;  %v14077_v42 = vld [vmem:[#allocation11 + $0x84] sm:$0xf] }
 0x5bb   :  { %7078 = vmatpush.bf16.msrb.mxu1 %v12197_v43  ;;  %7104 = vmatpush.bf16.msra.mxu3 %v12201_v47  ;;  %v12666_v47 = vld [vmem:[#allocation11 + $0x1c0] sm:$0xf] }
 0x5be   :  { %7079 = vmatmul.bf16.vlgmr.msrb.gmra.mxu1 %v16007_v56  ;;  %7105 = vmatmul.bf16.vlgmr.msra.gmra.mxu3 %v16007_v56 }
 0x5bf   :  { %7123 = vmatpush.bf16.msra.mxu1 %v12429_v4  ;;  %7149 = vmatpush.bf16.msrb.mxu3 %v12433_v23  ;;  %v14121_v4 = vld [vmem:[#allocation11 + $0x1dc] sm:$0xf0]  ;;  %v14117_v23 = vld [vmem:[#allocation11 + $0x1c4] sm:$0xf] }
 0x5c0   :  { %v12667_v25 = vor.u32 %v14121_v4, %v12666_v47  ;;  %v12671_v30 = vor.u32 %v14117_v23, %v12668_v53  ;;  %v12476_v47 = vld [vmem:[#allocation11 + $0x60] sm:$0xf0]  ;;  %v14065_v53 = vld [vmem:[#allocation11 + $0x1c] sm:$0xf0] }
 0x5c2   :  { %8085 = vmatpush.bf16.msrb.mxu0 %v12667_v25  ;;  %8111 = vmatpush.bf16.msra.mxu2 %v12671_v30  ;;  %v12442_v25 = vld [vmem:[#allocation11] sm:$0xf] }
 0x5c3   :  { %7124 = vmatpush.bf16.msra.mxu1 %v12397_v19  ;;  %7150 = vmatpush.bf16.msrb.mxu3 %v12401_v35  ;;  %v12634_v19 = vld [vmem:[#allocation11 + $0x180] sm:$0xf]  ;;  %v12443_v30 = vor.u32 %v14065_v53, %v12442_v25  ;;  %v12546_v25 = vld [vmem:[#allocation11 + $0xc8] sm:$0xf] }
 0x5c4   :  { %v14113_v35 = vld [vmem:[#allocation11 + $0x19c] sm:$0xf0]  ;;  %v14090_v53 = vld [vmem:[#allocation11 + $0xe4] sm:$0xf0] }
 0x5c5   :  { %v12635_v22 = vor.u32 %v14113_v35, %v12634_v19  ;;  %v12444_v19 = vld [vmem:[#allocation11 + $0x20] sm:$0xf0]  ;;  %v12674_v35 = vld [vmem:[#allocation11 + $0x1c8] sm:$0xf] }
 0x5c6   :  { %8112 = vmatpush.bf16.msra.mxu2 %v12639_v13  ;;  %v12675_v51 = vor.u32 %v14122_v59, %v12674_v35  ;;  %v14118_v13 = vld [vmem:[#allocation11 + $0x1cc] sm:$0xf] }
 0x5c7   :  { %7125 = vmatpush.bf16.msra.mxu1 %v12365_v34  ;;  %7151 = vmatpush.bf16.msrb.mxu3 %v12369_v48  ;;  %v12602_v34 = vld [vmem:[#allocation11 + $0x140] sm:$0xf]  ;;  %v12548_v35 = vld [vmem:[#allocation11 + $0xe8] sm:$0xf0] }
 0x5c8   :  { %8086 = vmatpush.bf16.msrb.mxu0 %v12635_v22  ;;  %v14105_v48 = vld [vmem:[#allocation11 + $0x15c] sm:$0xf0] }
 0x5c9   :  { %v12603_v15 = vor.u32 %v14105_v48, %v12602_v34 }
 0x5cb   :  { %7126 = vmatpush.bf16.msra.mxu1 %v12333_v36  ;;  %7152 = vmatpush.bf16.msrb.mxu3 %v12337_v7  ;;  %v12607_v36 = vor.u32 %v14101_v9, %v12604_v40  ;;  %v12570_v7 = vld [vmem:[#allocation11 + $0x100] sm:$0xf]  ;;  %v12642_v9 = vld [vmem:[#allocation11 + $0x188] sm:$0xf]  ;;  %v14110_v40 = vld [vmem:[#allocation11 + $0x18c] sm:$0xf] }
 0x5cc   :  { %8087 = vmatpush.bf16.msrb.mxu0 %v12603_v15  ;;  %v12571_v46 = vor.u32 %v14097_v0, %v12570_v7  ;;  %v14114_v15 = vld [vmem:[#allocation11 + $0x1a4] sm:$0xf0]  ;;  %v12644_v0 = vld [vmem:[#allocation11 + $0x1a8] sm:$0xf0] }
 0x5cd   :  { %8113 = vmatpush.bf16.msra.mxu2 %v12607_v36  ;;  %v12643_v7 = vor.u32 %v14114_v15, %v12642_v9  ;;  %v12892_v9 = vld [vmem:[#allocation11 + $0x3a0] sm:$0xf0] }
 0x5cf   :  { %7127 = vmatpush.bf16.msra.mxu1 %v12301_v41  ;;  %7153 = vmatpush.bf16.msrb.mxu3 %v12305_v26  ;;  %v12575_v41 = vor.u32 %v14093_v61, %v12572_v33  ;;  %v12647_v61 = vor.u32 %v14110_v40, %v12644_v0  ;;  %v14106_v33 = vld [vmem:[#allocation11 + $0x164] sm:$0xf0]  ;;  %v14078_v0 = vld [vmem:[#allocation11 + $0x8c] sm:$0xf] }
 0x5d0   :  { %8088 = vmatpush.bf16.msrb.mxu0 %v12571_v46  ;;  %v12610_v46 = vld [vmem:[#allocation11 + $0x148] sm:$0xf] }
 0x5d1   :  { %8114 = vmatpush.bf16.msra.mxu2 %v12575_v41  ;;  %v14102_v41 = vld [vmem:[#allocation11 + $0x14c] sm:$0xf]  ;;  %v12611_v2 = vor.u32 %v14106_v33, %v12610_v46  ;;  %v12514_v40 = vld [vmem:[#allocation11 + $0x88] sm:$0xf]  ;;  %v12858_v33 = vld [vmem:[#allocation11 + $0x340] sm:$0xf] }
 0x5d3   :  { %7128 = vmatpush.bf16.msra.mxu1 %v12269_v55  ;;  %7154 = vmatpush.bf16.msrb.mxu3 %v12273_v37  ;;  %v12540_v55 = vld [vmem:[#allocation11 + $0xe0] sm:$0xf0] }
 0x5d4   :  { %v12543_v60 = vor.u32 %v14085_v29, %v12540_v55  ;;  %8089 = vmatpush.bf16.msrb.mxu0 %v12539_v54  ;;  %v12612_v29 = vld [vmem:[#allocation11 + $0x168] sm:$0xf0] }
 0x5d5   :  { %v12615_v55 = vor.u32 %v14102_v41, %v12612_v29  ;;  %v14169_v41 = vld [vmem:[#allocation11 + $0x35c] sm:$0xf0] }
 0x5d6   :  { %8115 = vmatpush.bf16.msra.mxu2 %v12543_v60 }
 0x5d7   :  { %7129 = vmatpush.bf16.msra.mxu1 %v12237_v21  ;;  %7155 = vmatpush.bf16.msrb.mxu3 %v12241_v18  ;;  %v12507_v21 = vor.u32 %v14081_v5, %v12506_v32  ;;  %v12508_v18 = vld [vmem:[#allocation11 + $0xa0] sm:$0xf0]  ;;  %v12578_v32 = vld [vmem:[#allocation11 + $0x108] sm:$0xf] }
 0x5d8   :  { %v12511_v50 = vor.u32 %v14077_v42, %v12508_v18  ;;  %v14098_v5 = vld [vmem:[#allocation11 + $0x124] sm:$0xf0]  ;;  %v14094_v42 = vld [vmem:[#allocation11 + $0x10c] sm:$0xf] }
 0x5d9   :  { %8090 = vmatpush.bf16.msrb.mxu0 %v12507_v21  ;;  %v12579_v21 = vor.u32 %v14098_v5, %v12578_v32  ;;  %v12580_v18 = vld [vmem:[#allocation11 + $0x128] sm:$0xf0]  ;;  %v14074_v32 = vld [vmem:[#allocation11 + $0x64] sm:$0xf0] }
 0x5da   :  { %8116 = vmatpush.bf16.msra.mxu2 %v12511_v50  ;;  %v14070_v5 = vld [vmem:[#allocation11 + $0x4c] sm:$0xf] }
 0x5db   :  { %7130 = vmatpush.bf16.msra.mxu1 %v12205_v49  ;;  %7156 = vmatpush.bf16.msrb.mxu3 %v12209_v12  ;;  %v14069_v49 = vld [vmem:[#allocation11 + $0x44] sm:$0xf]  ;;  %v12475_v12 = vor.u32 %v14073_v31, %v12474_v3  ;;  %v12922_v3 = vld [vmem:[#allocation11 + $0x3c0] sm:$0xf] }
 0x5dc   :  { %v12479_v23 = vor.u32 %v14069_v49, %v12476_v47  ;;  %v14185_v31 = vld [vmem:[#allocation11 + $0x3dc] sm:$0xf0]  ;;  %v14181_v47 = vld [vmem:[#allocation11 + $0x3c4] sm:$0xf] }
 0x5dd   :  { %8091 = vmatpush.bf16.msrb.mxu0 %v12475_v12  ;;  %v12923_v12 = vor.u32 %v14185_v31, %v12922_v3  ;;  %v12826_v3 = vld [vmem:[#allocation11 + $0x300] sm:$0xf] }
 0x5de   :  { %7131 = vmatmul.bf16.vlgmr.msra.gmra.mxu1 %v16007_v56  ;;  %7157 = vmatmul.bf16.vlgmr.msrb.gmra.mxu3 %v16007_v56  ;;  %v14161_v31 = vld [vmem:[#allocation11 + $0x31c] sm:$0xf0] }
 0x5df   :  { %8117 = vmatpush.bf16.msra.mxu2 %v12479_v23  ;;  %8098 = vmatpush.bf16.msrb.mxu1 %v12923_v12 }
 0x5e1   :  { %8092 = vmatpush.bf16.msrb.mxu0 %v12443_v30 }
 0x5e5   :  { %8137 = vmatpush.bf16.msra.mxu0 %v12675_v51  ;;  %v12890_v51 = vld [vmem:[#allocation11 + $0x380] sm:$0xf] }
 0x5e9   :  { %8138 = vmatpush.bf16.msra.mxu0 %v12643_v7 }
 0x5ec   :  { %v16019_v6 = vpop.f32.mrf.mxu0 }
 0x5ed   :  { %8139 = vmatpush.bf16.msra.mxu0 %v12611_v2 }
 0x5f1   :  { %8140 = vmatpush.bf16.msra.mxu0 %v12579_v21  ;;  %v12484_v21 = vld [vmem:[#allocation11 + $0x68] sm:$0xf0] }
 0x5f2   :  { %v16021_v43 = vpop.f32.mrf.mxu2 }
 0x5f4   :  { %v6965_v1 = vpop.f32.mrf.mxu0 }
 0x5f5   :  { %v14061_v1 = vld [vmem:[#allocation11 + $0x4] sm:$0xf] }
 0x5f6   :  { %v12447_v22 = vor.u32 %v14061_v1, %v12444_v19  ;;  %v14086_v1 = vld [vmem:[#allocation11 + $0xcc] sm:$0xf]  ;;  %v12547_v19 = vor.u32 %v14090_v53, %v12546_v25  ;;  %v12450_v53 = vld [vmem:[#allocation11 + $0x8] sm:$0xf] }
 0x5f8   :  { %8118 = vmatpush.bf16.msra.mxu2 %v12447_v22  ;;  %v12551_v22 = vor.u32 %v14086_v1, %v12548_v35  ;;  %8141 = vmatpush.bf16.msra.mxu0 %v12547_v19  ;;  %v14066_v1 = vld [vmem:[#allocation11 + $0x24] sm:$0xf0]  ;;  %v12452_v35 = vld [vmem:[#allocation11 + $0x28] sm:$0xf0] }
 0x5f9   :  { %v12451_v19 = vor.u32 %v14066_v1, %v12450_v53 }
 0x5fa   :  { %v6991_v56 = vpop.f32.mrf.mxu2 }
 0x5fb   :  { %v12676_v56 = vld [vmem:[#allocation11 + $0x1e8] sm:$0xf0] }
 0x5fc   :  { %v16023_v16 = vpop.f32.mrf.mxu0  ;;  %v12679_v34 = vor.u32 %v14118_v13, %v12676_v56  ;;  %v14177_v13 = vld [vmem:[#allocation11 + $0x39c] sm:$0xf0]  ;;  %v14173_v56 = vld [vmem:[#allocation11 + $0x384] sm:$0xf] }
 0x5fd   :  { %v12895_v15 = vor.u32 %v14173_v56, %v12892_v9  ;;  %v14153_v9 = vld [vmem:[#allocation11 + $0x2dc] sm:$0xf0] }
 0x5fe   :  { %8163 = vmatpush.bf16.msrb.mxu2 %v12679_v34  ;;  %v12891_v34 = vor.u32 %v14177_v13, %v12890_v51 }
 0x600   :  { %8099 = vmatpush.bf16.msrb.mxu1 %v12891_v34  ;;  %v12794_v34 = vld [vmem:[#allocation11 + $0x2c0] sm:$0xf] }
 0x602   :  { %v16025_v26 = vpop.f32.mrf.mxu2  ;;  %8164 = vmatpush.bf16.msrb.mxu2 %v12647_v61  ;;  %v12516_v61 = vld [vmem:[#allocation11 + $0xa8] sm:$0xf0] }
 0x604   :  { %v7017_v37 = vpop.f32.mrf.mxu0 }
 0x606   :  { %8165 = vmatpush.bf16.msrb.mxu2 %v12615_v55  ;;  %v12860_v55 = vld [vmem:[#allocation11 + $0x360] sm:$0xf0] }
 0x60a   :  { %v7043_v62 = vpop.f32.mrf.mxu2 }
 0x60b   :  { %v12583_v62 = vor.u32 %v14094_v42, %v12580_v18 }
 0x60c   :  { %v16027_v4 = vpop.f32.mrf.mxu0 }
 0x60d   :  { %8166 = vmatpush.bf16.msrb.mxu2 %v12583_v62  ;;  %v12487_v62 = vor.u32 %v14070_v5, %v12484_v21 }
 0x611   :  { %8167 = vmatpush.bf16.msrb.mxu2 %v12551_v22 }
 0x612   :  { %v16029_v48 = vpop.f32.mrf.mxu2 }
 0x614   :  { %v7069_v36 = vpop.f32.mrf.mxu0 }
 0x615   :  { %v14082_v36 = vld [vmem:[#allocation11 + $0xa4] sm:$0xf0] }
 0x616   :  { %v12515_v7 = vor.u32 %v14082_v36, %v12514_v40  ;;  %v12796_v36 = vld [vmem:[#allocation11 + $0x2e0] sm:$0xf0] }
 0x618   :  { %8142 = vmatpush.bf16.msra.mxu0 %v12515_v7 }
 0x61a   :  { %v7095_v37 = vpop.f32.mrf.mxu2 }
 0x61b   :  { %v6976_v39 = vpop.f32.mrf.mxu1 }
 0x61c   :  { %v6977_v54 = vadd.f32 %v6976_v39, %v16019_v6  ;;  %v12924_v6 = vld [vmem:[#allocation11 + $0x3e0] sm:$0xf0] }
 0x61d   :  { %v14165_v39 = vld [vmem:[#allocation11 + $0x344] sm:$0xf] }
 0x61e   :  { %v7169_v60 = vadd.f32 %v6977_v54, %v15099_v10  ;;  %v12927_v10 = vor.u32 %v14181_v47, %v12924_v6  ;;  %v12859_v54 = vor.u32 %v14169_v41, %v12858_v33  ;;  %v12863_v37 = vor.u32 %v14165_v39, %v12860_v55  ;;  %v12828_v6 = vld [vmem:[#allocation11 + $0x320] sm:$0xf0]  ;;  %v12762_v41 = vld [vmem:[#allocation11 + $0x280] sm:$0xf] }
 0x61f   :  { %v12827_v47 = vor.u32 %v14161_v31, %v12826_v3  ;;  %v14145_v39 = vld [vmem:[#allocation11 + $0x29c] sm:$0xf0]  ;;  %v12764_v55 = vld [vmem:[#allocation11 + $0x2a0] sm:$0xf0] }
 0x620   :  { %v12437_v50 = vmul.f32 -1.442695, %v7169_v60  ;;  %8124 = vmatpush.bf16.msra.mxu3 %v12927_v10  ;;  %v12482_v60 = vld [vmem:[#allocation11 + $0x48] sm:$0xf]  ;;  %8100 = vmatpush.bf16.msrb.mxu1 %v12859_v54  ;;  %v14141_v54 = vld [vmem:[#allocation11 + $0x284] sm:$0xf] }
 0x621   :  { %v7002_v49 = vpop.f32.mrf.mxu3 }
 0x622   :  { %14465 = vpow2.f32 %v12437_v50  ;;  %v7003_v23 = vadd.f32 %v7002_v49, %v16021_v43  ;;  %v12483_v50 = vor.u32 %v14074_v32, %v12482_v60  ;;  %v14157_v49 = vld [vmem:[#allocation11 + $0x304] sm:$0xf]  ;;  %v12767_v32 = vor.u32 %v14141_v54, %v12764_v55 }
 0x623   :  { %v6978_v30 = vpop.f32.mrf.mxu1  ;;  %v12831_v25 = vor.u32 %v14157_v49, %v12828_v6  ;;  %v14133_v6 = vld [vmem:[#allocation11 + $0x244] sm:$0xf] }
 0x624   :  { %v7170_v59 = vadd.f32 %v7003_v23, %v15102_v28  ;;  %8125 = vmatpush.bf16.msra.mxu3 %v12895_v15  ;;  %v12519_v28 = vor.u32 %v14078_v0, %v12516_v61  ;;  %8143 = vmatpush.bf16.msra.mxu0 %v12483_v50  ;;  %v14062_v30 = vld [vmem:[#allocation11 + $0xc] sm:$0xf]  ;;  %v16056_v61 = vld [vmem:[%s16352_s4] sm:$0xf]  ;;  %v12730_v50 = vld [vmem:[#allocation11 + $0x240] sm:$0xf] }
 0x625   :  { %8101 = vmatpush.bf16.msrb.mxu1 %v12827_v47  ;;  %v12455_v22 = vor.u32 %v14062_v30, %v12452_v35  ;;  %v7176_v55 = vperm.slane %v16056_v61, 1 }
 0x626   :  { %v12438_v43 = vmul.f32 -1.442695, %v7170_v59  ;;  %8168 = vmatpush.bf16.msrb.mxu2 %v12519_v28 }
 0x628   :  { %v14466_v46 = vpop.eup %14465  ;;  %14467 = vpow2.f32 %v12438_v43  ;;  %8126 = vmatpush.bf16.msra.mxu3 %v12863_v37  ;;  %8144 = vmatpush.bf16.msra.mxu0 %v12451_v19  ;;  %v14149_v43 = vld [vmem:[#allocation11 + $0x2c4] sm:$0xf] }
 0x629   :  { %v16035_v2 = vadd.f32 1.0, %v14466_v46  ;;  %v7004_v29 = vpop.f32.mrf.mxu3  ;;  %v12795_v46 = vor.u32 %v14153_v9, %v12794_v34  ;;  %v12799_v28 = vor.u32 %v14149_v43, %v12796_v36  ;;  %v14129_v43 = vld [vmem:[#allocation11 + $0x21c] sm:$0xf0]  ;;  %v12700_v36 = vld [vmem:[#allocation11 + $0x220] sm:$0xf0] }
 0x62a   :  { %8169 = vmatpush.bf16.msrb.mxu2 %v12487_v62  ;;  %v14137_v62 = vld [vmem:[#allocation11 + $0x25c] sm:$0xf0] }
 0x62b   :  { %14469 = vrcp.f32 %v16035_v2  ;;  %v7028_v42 = vpop.f32.mrf.mxu1  ;;  %8102 = vmatpush.bf16.msrb.mxu1 %v12795_v46  ;;  %v7273_v60 = vand.u32 2147483647, %v16035_v2  ;;  %vm7269_vm6 = vweird.f32 %v16035_v2 }
 0x62c   :  { %v7029_v18 = vadd.f32 %v7028_v42, %v16023_v16  ;;  %8127 = vmatpush.bf16.msra.mxu3 %v12831_v25  ;;  %v12731_v25 = vor.u32 %v14137_v62, %v12730_v50  ;;  %v14174_v50 = vld [vmem:[#allocation11 + $0x38c] sm:$0xf] }
 0x62d   :  { %v16039_v12 = vpop.f32.mrf.mxu0  ;;  %vm7274_vm8 = vcmp.eq.f32.partialorder %v7273_v60, 8.507059e+37  ;;  %v12900_v62 = vld [vmem:[#allocation11 + $0x3a8] sm:$0xf0] }
 0x62e   :  { %v14468_v23 = vpop.eup %14467  ;;  %v7171_v10 = vadd.f32 %v7029_v18, %v15149_v44  ;;  %8170 = vmatpush.bf16.msrb.mxu2 %v12455_v22  ;;  %v7175_v18 = vperm.slane %v16056_v61, 0 }
 0x62f   :  { %v16042_v16 = vadd.f32 1.0, %v14468_v23  ;;  %v12732_v23 = vld [vmem:[#allocation11 + $0x260] sm:$0xf0] }
 0x630   :  { %v12439_v59 = vmul.f32 -1.442695, %v7171_v10  ;;  %8128 = vmatpush.bf16.msra.mxu3 %v12799_v28  ;;  %v12735_v53 = vor.u32 %v14133_v6, %v12732_v23  ;;  %v12930_v28 = vld [vmem:[#allocation11 + $0x3c8] sm:$0xf]  ;;  %v12903_v6 = vor.u32 %v14174_v50, %v12900_v62 }
 0x631   :  { %v16044_v51 = vpop.eup %14469  ;;  %14471 = vrcp.f32 %v16042_v16  ;;  %v7054_v13 = vpop.f32.mrf.mxu3  ;;  %v7290_v1 = vand.u32 2147483648, %v16042_v16  ;;  %v7288_v30 = vand.u32 2147483647, %v16042_v16  ;;  %vm7284_vm10 = vweird.f32 %v16042_v16 }
 0x632   :  { %v7265_v44 = vmul.f32 %v16044_v51, %v16035_v2  ;;  %14473 = vpow2.f32 %v12439_v59  ;;  %v7055_v56 = vadd.f32 %v7054_v13, %v16025_v26  ;;  %v7275_v26 = vand.u32 2147483648, %v16035_v2 }
 0x633   :  { %v16050_v15 = vpop.f32.mrf.mxu2  ;;  %v7030_v40 = vpop.f32.mrf.mxu1  ;;  %vm7270_vm5 = vweird.f32 %v16044_v51  ;;  %vm7289_vm12 = vcmp.eq.f32.partialorder %v7288_v30, 8.507059e+37 }
 0x634   :  { %v7266_v7 = vsub.f32 1.0, %v7265_v44  ;;  %v7172_v0 = vadd.f32 %v7055_v56, %v15152_v45  ;;  %v12763_v45 = vor.u32 %v14145_v39, %v12762_v41  ;;  %vm16070_vm7 = vmor %vm7269_vm6, %vm7270_vm5  ;;  %v7276_v49 = vor.u32 1.1754944e-38, %v7275_v26  ;;  %8129 = vmatpush.bf16.msra.mxu3 %v12767_v32  ;;  %v12698_v56 = vld [vmem:[#allocation11 + $0x200] sm:$0xf]  ;;  %v14125_v40 = vld [vmem:[#allocation11 + $0x204] sm:$0xf] }
 0x635   :  { %v7121_v33 = vpop.f32.mrf.mxu0  ;;  %v12703_v46 = vor.u32 %v14125_v40, %v12700_v36  ;;  %v14186_v26 = vld [vmem:[#allocation11 + $0x3e4] sm:$0xf0]  ;;  %v14182_v39 = vld [vmem:[#allocation11 + $0x3cc] sm:$0xf] }
 0x636   :  { %v7267_v29 = vmul.f32 %v16044_v51, %v7266_v7  ;;  %14475 = vtanh.f32 %v7172_v0  ;;  %8103 = vmatpush.bf16.msrb.mxu1 %v12763_v45  ;;  %v7291_v7 = vor.u32 1.1754944e-38, %v7290_v1  ;;  %v12699_v0 = vor.u32 %v14129_v43, %v12698_v56  ;;  %v12682_v56 = vld [vmem:[#allocation11 + $0x1d0] sm:$0xf]  ;;  %v12834_v43 = vld [vmem:[#allocation11 + $0x308] sm:$0xf] }
 0x637   :  { %v14472_v37 = vpop.eup %14471  ;;  %v12931_v41 = vor.u32 %v14186_v26, %v12930_v28  ;;  %v14162_v40 = vld [vmem:[#allocation11 + $0x324] sm:$0xf0]  ;;  %v14158_v36 = vld [vmem:[#allocation11 + $0x30c] sm:$0xf] }
 0x638   :  { %v14474_v5 = vpop.eup %14473  ;;  %v7280_v42 = vmul.f32 %v14472_v37, %v16042_v16  ;;  %v7268_v21 = vadd.f32 %v16044_v51, %v7267_v29  ;;  %vm7285_vm9 = vweird.f32 %v14472_v37  ;;  %8130 = vmatpush.bf16.msra.mxu3 %v12735_v53  ;;  %v12932_v29 = vld [vmem:[#allocation11 + $0x3e8] sm:$0xf0]  ;;  %v12835_v26 = vor.u32 %v14162_v40, %v12834_v43  ;;  %v14138_v43 = vld [vmem:[#allocation11 + $0x264] sm:$0xf0] }
 0x639   :  { %v16066_v3 = vadd.f32 1.0, %v14474_v5  ;;  %v7056_v47 = vpop.f32.mrf.mxu3  ;;  %vm7286_vm11 = vmor %vm7284_vm10, %vm7285_vm9  ;;  %v12935_v60 = vor.u32 %v14182_v39, %v12932_v29  ;;  %v14166_v53 = vld [vmem:[#allocation11 + $0x34c] sm:$0xf]  ;;  %v12650_v29 = vld [vmem:[#allocation11 + $0x190] sm:$0xf] }
 0x63a   :  { %v7281_v10 = vsub.f32 1.0, %v7280_v42  ;;  %v7272_v2 = vsel %vm16070_vm7, %v16044_v51, %v7268_v21  ;;  %8104 = vmatpush.bf16.msrb.mxu1 %v12731_v25  ;;  %v12898_v42 = vld [vmem:[#allocation11 + $0x388] sm:$0xf]  ;;  %v14134_v40 = vld [vmem:[#allocation11 + $0x24c] sm:$0xf] }
 0x63b   :  { %14477 = vrcp.f32 %v16066_v3  ;;  %v7147_v19 = vpop.f32.mrf.mxu2  ;;  %v7080_v35 = vpop.f32.mrf.mxu1  ;;  %v7277_v13 = vsel %vm7274_vm8, %v7276_v49, %v7272_v2  ;;  %v14178_v21 = vld [vmem:[#allocation11 + $0x3a4] sm:$0xf0]  ;;  %v7303_v23 = vand.u32 2147483647, %v16066_v3  ;;  %vm7299_vm14 = vweird.f32 %v16066_v3 }
 0x63c   :  { %v14476_v59 = vpop.eup %14475  ;;  %v7282_v22 = vmul.f32 %v14472_v37, %v7281_v10  ;;  %v7081_v44 = vadd.f32 %v7080_v35, %v16027_v4  ;;  %8131 = vmatpush.bf16.msra.mxu3 %v12703_v46  ;;  %v12899_v47 = vor.u32 %v14178_v21, %v12898_v42  ;;  %v14170_v25 = vld [vmem:[#allocation11 + $0x364] sm:$0xf0]  ;;  %v12868_v19 = vld [vmem:[#allocation11 + $0x368] sm:$0xf0]  ;;  %v12684_v46 = vld [vmem:[#allocation11 + $0x1f0] sm:$0xf0] }
 0x63d   :  { %v7311_v51 = vmul.f32 %v14476_v59, %v7277_v13  ;;  %vm7304_vm0 = vcmp.eq.f32.partialorder %v7303_v23, 8.507059e+37  ;;  %v14154_v42 = vld [vmem:[#allocation11 + $0x2e4] sm:$0xf0]  ;;  %v14150_v21 = vld [vmem:[#allocation11 + $0x2cc] sm:$0xf] }
 0x63e   :  { %v7283_v34 = vadd.f32 %v14472_v37, %v7282_v22  ;;  %v7183_v9 = vadd.f32 %v7175_v18, %v7081_v44  ;;  %8105 = vmatpush.bf16.msrb.mxu1 %v12699_v0  ;;  %v12871_v22 = vor.u32 %v14166_v53, %v12868_v19  ;;  %v14119_v0 = vld [vmem:[#allocation11 + $0x1d4] sm:$0xf]  ;;  %v14142_v53 = vld [vmem:[#allocation11 + $0x28c] sm:$0xf]  ;;  %v12586_v19 = vld [vmem:[#allocation11 + $0x110] sm:$0xf] }
 0x63f   :  { %v12687_v39 = vor.u32 %v14119_v0, %v12684_v46 }
 0x640   :  { %v7287_v33 = vsel %vm7286_vm11, %v14472_v37, %v7283_v34  ;;  %v12434_v4 = vmul.f32 -1.442695, %v7183_v9  ;;  %8176 = vmatpush.bf16.msrb.mxu3 %v12935_v60  ;;  %v14123_v34 = vld [vmem:[#allocation11 + $0x1ec] sm:$0xf0]  ;;  %v12652_v60 = vld [vmem:[#allocation11 + $0x1b0] sm:$0xf0] }
 0x641   :  { %v14478_v16 = vpop.eup %14477  ;;  %v7292_v45 = vsel %vm7289_vm12, %v7291_v7, %v7287_v33  ;;  %v7106_v54 = vpop.f32.mrf.mxu3 }
 0x642   :  { %v7295_v32 = vmul.f32 %v14478_v16, %v16066_v3  ;;  %v7310_v5 = vmul.f32 %v7292_v45, %v15930_v27  ;;  %14479 = vpow2.f32 %v12434_v4  ;;  %v7107_v37 = vadd.f32 %v7106_v54, %v16029_v48  ;;  %8150 = vmatpush.bf16.msra.mxu1 %v12931_v41  ;;  %v12866_v48 = vld [vmem:[#allocation11 + $0x348] sm:$0xf]  ;;  %v14115_v45 = vld [vmem:[#allocation11 + $0x1ac] sm:$0xf0] }
 0x643   :  { %v7082_v18 = vpop.f32.mrf.mxu1  ;;  %v7305_v27 = vand.u32 2147483648, %v16066_v3  ;;  %vm7300_vm13 = vweird.f32 %v14478_v16  ;;  %v12867_v30 = vor.u32 %v14170_v25, %v12866_v48  ;;  %v12836_v3 = vld [vmem:[#allocation11 + $0x328] sm:$0xf0]  ;;  %v12683_v41 = vor.u32 %v14123_v34, %v12682_v56  ;;  %v14146_v48 = vld [vmem:[#allocation11 + $0x2a4] sm:$0xf0] }
 0x644   :  { %v7296_v31 = vsub.f32 1.0, %v7295_v32  ;;  %v16086_v49 = vadd.f32 %v7311_v51, %v7310_v5  ;;  %v7184_v10 = vadd.f32 %v7176_v55, %v7107_v37  ;;  %8177 = vmatpush.bf16.msrb.mxu3 %v12903_v6  ;;  %vm7301_vm15 = vmor %vm7299_vm14, %vm7300_vm13  ;;  %v12839_v33 = vor.u32 %v14158_v36, %v12836_v3  ;;  %v14111_v55 = vld [vmem:[#allocation11 + $0x194] sm:$0xf]  ;;  %v12802_v32 = vld [vmem:[#allocation11 + $0x2c8] sm:$0xf] }
 0x645   :  { %v7306_v13 = vor.u32 1.1754944e-38, %v7305_v27  ;;  %v12803_v37 = vor.u32 %v14154_v42, %v12802_v32  ;;  %v12804_v18 = vld [vmem:[#allocation11 + $0x2e8] sm:$0xf0]  ;;  %v12651_v50 = vor.u32 %v14115_v45, %v12650_v29  ;;  %v12655_v62 = vor.u32 %v14111_v55, %v12652_v60  ;;  %v14103_v6 = vld [vmem:[#allocation11 + $0x154] sm:$0xf] }
 0x646   :  { %v7297_v2 = vmul.f32 %v14478_v16, %v7296_v31  ;;  %14481 = vtanh.f32 %v16086_v49  ;;  %v12435_v1 = vmul.f32 -1.442695, %v7184_v10  ;;  %8151 = vmatpush.bf16.msra.mxu1 %v12899_v47  ;;  %v12618_v31 = vld [vmem:[#allocation11 + $0x150] sm:$0xf]  ;;  %v12620_v27 = vld [vmem:[#allocation11 + $0x170] sm:$0xf0]  ;;  %v12807_v10 = vor.u32 %v14150_v21, %v12804_v18 }
 0x647   :  { %v14107_v47 = vld [vmem:[#allocation11 + $0x16c] sm:$0xf0]  ;;  %v14095_v56 = vld [vmem:[#allocation11 + $0x114] sm:$0xf]  ;;  %v12740_v36 = vld [vmem:[#allocation11 + $0x268] sm:$0xf0] }
 0x648   :  { %v14480_v35 = vpop.eup %14479  ;;  %v7298_v59 = vadd.f32 %v14478_v16, %v7297_v2  ;;  %14483 = vpow2.f32 %v12435_v1  ;;  %8178 = vmatpush.bf16.msrb.mxu3 %v12871_v22  ;;  %v12770_v2 = vld [vmem:[#allocation11 + $0x288] sm:$0xf]  ;;  %v12772_v1 = vld [vmem:[#allocation11 + $0x2a8] sm:$0xf0]  ;;  %v12588_v34 = vld [vmem:[#allocation11 + $0x130] sm:$0xf0] }
 0x649   :  { %v16092_v44 = vadd.f32 1.0, %v14480_v35  ;;  %v7108_v51 = vpop.f32.mrf.mxu3  ;;  %v12771_v25 = vor.u32 %v14146_v48, %v12770_v2  ;;  %v14099_v35 = vld [vmem:[#allocation11 + $0x12c] sm:$0xf0]  ;;  %v12591_v29 = vor.u32 %v14095_v56, %v12588_v34  ;;  %v14087_v45 = vld [vmem:[#allocation11 + $0xd4] sm:$0xf] }
 0x64a   :  { %v7302_v9 = vsel %vm7301_vm15, %v14478_v16, %v7298_v59  ;;  %8152 = vmatpush.bf16.msra.mxu1 %v12867_v30  ;;  %v7177_v30 = vperm.slane %v16056_v61, 2  ;;  %v12775_v59 = vor.u32 %v14142_v53, %v12772_v1  ;;  %v12623_v51 = vor.u32 %v14103_v6, %v12620_v27  ;;  %v12556_v32 = vld [vmem:[#allocation11 + $0xf0] sm:$0xf0]  ;;  %v14130_v42 = vld [vmem:[#allocation11 + $0x224] sm:$0xf0] }
 0x64b   :  { %v7307_v7 = vsel %vm7304_vm0, %v7306_v13, %v7302_v9  ;;  %14485 = vrcp.f32 %v16092_v44  ;;  %v12619_v13 = vor.u32 %v14107_v47, %v12618_v31  ;;  %v12738_v9 = vld [vmem:[#allocation11 + $0x248] sm:$0xf]  ;;  %v12708_v18 = vld [vmem:[#allocation11 + $0x228] sm:$0xf0]  ;;  %v12559_v27 = vor.u32 %v14087_v45, %v12556_v32  ;;  %v14083_v2 = vld [vmem:[#allocation11 + $0xac] sm:$0xf0] }
 0x64c   :  { %v14482_v28 = vpop.eup %14481  ;;  %8179 = vmatpush.bf16.msrb.mxu3 %v12839_v33  ;;  %v12739_v46 = vor.u32 %v14138_v43, %v12738_v9  ;;  %v14091_v33 = vld [vmem:[#allocation11 + $0xec] sm:$0xf0]  ;;  %v12524_v53 = vld [vmem:[#allocation11 + $0xb0] sm:$0xf0]  ;;  %vm7204_vm3 = vweird.f32 %v16092_v44  ;;  %v7210_v56 = vand.u32 2147483648, %v16092_v44 }
 0x64d   :  { %v7314_v4 = vmul.f32 %v14482_v28, %v7307_v7  ;;  %v14071_v34 = vld [vmem:[#allocation11 + $0x54] sm:$0xf]  ;;  %v14120_v32 = vld [vmem:[#allocation11 + $0x1dc] sm:$0xf] }
 0x64e   :  { %v14484_v16 = vpop.eup %14483  ;;  %8153 = vmatpush.bf16.msra.mxu1 %v12835_v26  ;;  %v12554_v26 = vld [vmem:[#allocation11 + $0xd0] sm:$0xf]  ;;  %v12492_v9 = vld [vmem:[#allocation11 + $0x70] sm:$0xf0]  ;;  %v12596_v43 = vld [vmem:[#allocation11 + $0x138] sm:$0xf0] }
 0x64f   :  { %v16095_v54 = vpack.c.bf16 %v7314_v4, %v7314_v4  ;;  %v16097_v5 = vadd.f32 1.0, %v14484_v16  ;;  %v12743_v4 = vor.u32 %v14134_v40, %v12740_v36  ;;  %v12706_v16 = vld [vmem:[#allocation11 + $0x208] sm:$0xf]  ;;  %v7208_v40 = vand.u32 2147483647, %v16092_v44 }
 0x650   :  { %8180 = vmatpush.bf16.msrb.mxu3 %v12807_v10  ;;  %v12707_v21 = vor.u32 %v14130_v42, %v12706_v16  ;;  %v12522_v10 = vld [vmem:[#allocation11 + $0x90] sm:$0xf]  ;;  %v7211_v16 = vor.u32 1.1754944e-38, %v7210_v56  ;;  %v12594_v56 = vld [vmem:[#allocation11 + $0x118] sm:$0xf] }
 0x651   :  { %8093 = vmatmul.bf16.vlgmr.msrb.gmra.mxu0 %v16095_v54  ;;  %8119 = vmatmul.bf16.vlgmr.msra.gmra.mxu2 %v16095_v54  ;;  %14487 = vrcp.f32 %v16097_v5  ;;  %v16102_v23 = vpop.eup %14485  ;;  %vm7219_vm4 = vweird.f32 %v16097_v5  ;;  %v7223_v36 = vand.u32 2147483647, %v16097_v5  ;;  %vm7209_vm7 = vcmp.eq.f32.partialorder %v7208_v40, 8.507059e+37 }
 0x652   :  { %8189 = vmatpush.bf16.msrb.mxu0 %v12683_v41  ;;  %8215 = vmatpush.bf16.msra.mxu2 %v12687_v39  ;;  %v7200_v22 = vmul.f32 %v16102_v23, %v16092_v44  ;;  %v12587_v39 = vor.u32 %v14099_v35, %v12586_v19  ;;  %vm7205_vm1 = vweird.f32 %v16102_v23  ;;  %v12523_v19 = vor.u32 %v14083_v2, %v12522_v10  ;;  %v12660_v10 = vld [vmem:[#allocation11 + $0x1b8] sm:$0xf0] }
 0x653   :  { %8154 = vmatpush.bf16.msra.mxu1 %v12803_v37  ;;  %v14126_v37 = vld [vmem:[#allocation11 + $0x20c] sm:$0xf]  ;;  %vm16128_vm5 = vmor %vm7204_vm3, %vm7205_vm1  ;;  %vm7224_vm8 = vcmp.eq.f32.partialorder %v7223_v36, 8.507059e+37  ;;  %v12938_v36 = vld [vmem:[#allocation11 + $0x3d0] sm:$0xf] }
 0x654   :  { %8181 = vmatpush.bf16.msrb.mxu3 %v12775_v59  ;;  %v7201_v41 = vsub.f32 1.0, %v7200_v22  ;;  %v12711_v1 = vor.u32 %v14126_v37, %v12708_v18  ;;  %v12490_v22 = vld [vmem:[#allocation11 + $0x50] sm:$0xf] }
 0x656   :  { %8190 = vmatpush.bf16.msrb.mxu0 %v12651_v50  ;;  %8216 = vmatpush.bf16.msra.mxu2 %v12655_v62  ;;  %v7178_v50 = vperm.slane %v16056_v61, 3  ;;  %v12555_v62 = vor.u32 %v14091_v33, %v12554_v26  ;;  %v7202_v6 = vmul.f32 %v16102_v23, %v7201_v41  ;;  %v14067_v26 = vld [vmem:[#allocation11 + $0x2c] sm:$0xf0]  ;;  %v12495_v41 = vor.u32 %v14071_v34, %v12492_v9  ;;  %v14100_v34 = vld [vmem:[#allocation11 + $0x134] sm:$0xf0] }
 0x657   :  { %8155 = vmatpush.bf16.msra.mxu1 %v12771_v25  ;;  %v16107_v7 = vpop.eup %14487  ;;  %v14079_v25 = vld [vmem:[#allocation11 + $0x94] sm:$0xf]  ;;  %v14096_v9 = vld [vmem:[#allocation11 + $0x11c] sm:$0xf] }
 0x658   :  { %v7215_v3 = vmul.f32 %v16107_v7, %v16097_v5  ;;  %8182 = vmatpush.bf16.msrb.mxu3 %v12743_v4  ;;  %vm7220_vm2 = vweird.f32 %v16107_v7  ;;  %v7203_v35 = vadd.f32 %v16102_v23, %v7202_v6  ;;  %v14116_v6 = vld [vmem:[#allocation11 + $0x1b4] sm:$0xf0] }
 0x659   :  { %vm16136_vm6 = vmor %vm7219_vm4, %vm7220_vm2 }
 0x65a   :  { %8191 = vmatpush.bf16.msrb.mxu0 %v12619_v13  ;;  %8217 = vmatpush.bf16.msra.mxu2 %v12623_v51  ;;  %v7216_v55 = vsub.f32 1.0, %v7215_v3  ;;  %v14075_v13 = vld [vmem:[#allocation11 + $0x6c] sm:$0xf0]  ;;  %v7225_v51 = vand.u32 2147483648, %v16097_v5  ;;  %v7207_v4 = vsel %vm16128_vm5, %v16102_v23, %v7203_v35  ;;  %v12692_v23 = vld [vmem:[#allocation11 + $0x1f8] sm:$0xf0] }
 0x65b   :  { %v7132_v0 = vpop.f32.mrf.mxu1  ;;  %8156 = vmatpush.bf16.msra.mxu1 %v12739_v46  ;;  %v12491_v3 = vor.u32 %v14075_v13, %v12490_v22  ;;  %v12628_v35 = vld [vmem:[#allocation11 + $0x178] sm:$0xf0]  ;;  %v14187_v46 = vld [vmem:[#allocation11 + $0x3ec] sm:$0xf0] }
 0x65c   :  { %v7133_v28 = vadd.f32 %v7132_v0, %v16039_v12  ;;  %v7217_v31 = vmul.f32 %v16107_v7, %v7216_v55  ;;  %8183 = vmatpush.bf16.msrb.mxu3 %v12711_v1  ;;  %v7226_v45 = vor.u32 1.1754944e-38, %v7225_v51  ;;  %v12690_v55 = vld [vmem:[#allocation11 + $0x1d8] sm:$0xf] }
 0x65e   :  { %v7185_v60 = vadd.f32 %v7177_v30, %v7133_v28  ;;  %8192 = vmatpush.bf16.msrb.mxu0 %v12587_v39  ;;  %8218 = vmatpush.bf16.msra.mxu2 %v12591_v29  ;;  %v7218_v59 = vadd.f32 %v16107_v7, %v7217_v31  ;;  %v12458_v28 = vld [vmem:[#allocation11 + $0x10] sm:$0xf]  ;;  %v14063_v39 = vld [vmem:[#allocation11 + $0x14] sm:$0xf]  ;;  %v12658_v31 = vld [vmem:[#allocation11 + $0x198] sm:$0xf] }
 0x65f   :  { %8157 = vmatpush.bf16.msra.mxu1 %v12707_v21  ;;  %v12460_v29 = vld [vmem:[#allocation11 + $0x30] sm:$0xf0]  ;;  %v7212_v21 = vsel %vm7209_vm7, %v7211_v16, %v7207_v4  ;;  %v12459_v18 = vor.u32 %v14067_v26, %v12458_v28  ;;  %v12595_v26 = vor.u32 %v14100_v34, %v12594_v56  ;;  %v12599_v4 = vor.u32 %v14096_v9, %v12596_v43  ;;  %v12564_v16 = vld [vmem:[#allocation11 + $0xf8] sm:$0xf0]  ;;  %v12466_v9 = vld [vmem:[#allocation11 + $0x18] sm:$0xf] }
 0x660   :  { %v12436_v12 = vmul.f32 -1.442695, %v7185_v60  ;;  %v7222_v44 = vsel %vm16136_vm6, %v16107_v7, %v7218_v59  ;;  %v14124_v60 = vld [vmem:[#allocation11 + $0x1f4] sm:$0xf0]  ;;  %v14159_v56 = vld [vmem:[#allocation11 + $0x314] sm:$0xf] }
 0x661   :  { %v7158_v47 = vpop.f32.mrf.mxu3  ;;  %8145 = vmatmul.bf16.vlgmr.msra.gmra.mxu0 %v16095_v54  ;;  %8171 = vmatmul.bf16.vlgmr.msrb.gmra.mxu2 %v16095_v54  ;;  %v7227_v37 = vsel %vm7224_vm8, %v7226_v45, %v7222_v44  ;;  %v12940_v44 = vld [vmem:[#allocation11 + $0x3f0] sm:$0xf0]  ;;  %v14088_v45 = vld [vmem:[#allocation11 + $0xdc] sm:$0xf]  ;;  %v14068_v43 = vld [vmem:[#allocation11 + $0x34] sm:$0xf0] }
 0x662   :  { %14489 = vpow2.f32 %v12436_v12  ;;  %v7159_v48 = vadd.f32 %v7158_v47, %v16050_v15  ;;  %8193 = vmatpush.bf16.msrb.mxu0 %v12555_v62  ;;  %8219 = vmatpush.bf16.msra.mxu2 %v12559_v27  ;;  %v12527_v15 = vor.u32 %v14079_v25, %v12524_v53  ;;  %v12463_v12 = vor.u32 %v14063_v39, %v12460_v29  ;;  %v14112_v27 = vld [vmem:[#allocation11 + $0x19c] sm:$0xf]  ;;  %v14092_v29 = vld [vmem:[#allocation11 + $0xf4] sm:$0xf0]  ;;  %v12844_v34 = vld [vmem:[#allocation11 + $0x330] sm:$0xf0] }
 0x663   :  { %v7134_v61 = vpop.f32.mrf.mxu1  ;;  %v12695_v62 = vor.u32 %v14120_v32, %v12692_v23  ;;  %v7245_v47 = vmul.f32 %v7227_v37, %v15994_v24  ;;  %v12659_v53 = vor.u32 %v14116_v6, %v12658_v31  ;;  %v12663_v1 = vor.u32 %v14112_v27, %v12660_v10  ;;  %v12906_v32 = vld [vmem:[#allocation11 + $0x390] sm:$0xf]  ;;  %v12532_v31 = vld [vmem:[#allocation11 + $0xb8] sm:$0xf0] }
 0x664   :  { %v7186_v30 = vadd.f32 %v7178_v50, %v7159_v48  ;;  %v12691_v50 = vor.u32 %v14124_v60, %v12690_v55  ;;  %v12626_v61 = vld [vmem:[#allocation11 + $0x158] sm:$0xf]  ;;  %v14179_v23 = vld [vmem:[#allocation11 + $0x3ac] sm:$0xf0]  ;;  %v12567_v37 = vor.u32 %v14088_v45, %v12564_v16  ;;  %v14143_v16 = vld [vmem:[#allocation11 + $0x294] sm:$0xf] }
 0x665   :  { %v12874_v27 = vld [vmem:[#allocation11 + $0x350] sm:$0xf] }
 0x666   :  { %14491 = vtanh.f32 %v7186_v30  ;;  %8194 = vmatpush.bf16.msrb.mxu0 %v12523_v19  ;;  %8220 = vmatpush.bf16.msra.mxu2 %v12527_v15  ;;  %v14108_v30 = vld [vmem:[#allocation11 + $0x174] sm:$0xf0]  ;;  %v14104_v19 = vld [vmem:[#allocation11 + $0x15c] sm:$0xf]  ;;  %v14171_v10 = vld [vmem:[#allocation11 + $0x36c] sm:$0xf0] }
 0x667   :  { %v12627_v15 = vor.u32 %v14108_v30, %v12626_v61  ;;  %v12631_v51 = vor.u32 %v14104_v19, %v12628_v35  ;;  %v12498_v61 = vld [vmem:[#allocation11 + $0x58] sm:$0xf]  ;;  %v14072_v19 = vld [vmem:[#allocation11 + $0x5c] sm:$0xf]  ;;  %v14147_v45 = vld [vmem:[#allocation11 + $0x2ac] sm:$0xf0] }
 0x668   :  { %v14490_v0 = vpop.eup %14489  ;;  %v14076_v30 = vld [vmem:[#allocation11 + $0x74] sm:$0xf0]  ;;  %v12500_v35 = vld [vmem:[#allocation11 + $0x78] sm:$0xf0] }
 0x669   :  { %v16140_v33 = vadd.f32 1.0, %v14490_v0  ;;  %v7160_v5 = vpop.f32.mrf.mxu3 }
 0x66a   :  { %8195 = vmatpush.bf16.msrb.mxu0 %v12491_v3  ;;  %8221 = vmatpush.bf16.msra.mxu2 %v12495_v41  ;;  %v14183_v3 = vld [vmem:[#allocation11 + $0x3d4] sm:$0xf]  ;;  %v12562_v5 = vld [vmem:[#allocation11 + $0xd8] sm:$0xf] }
 0x66b   :  { %14493 = vrcp.f32 %v16140_v33  ;;  %v7240_v24 = vand.u32 2147483648, %v16140_v33  ;;  %v7238_v13 = vand.u32 2147483647, %v16140_v33  ;;  %vm7234_vm10 = vweird.f32 %v16140_v33 }
 0x66c   :  { %v14492_v42 = vpop.eup %14491  ;;  %v12943_v60 = vor.u32 %v14183_v3, %v12940_v44  ;;  %v12810_v3 = vld [vmem:[#allocation11 + $0x2d0] sm:$0xf]  ;;  %v14151_v44 = vld [vmem:[#allocation11 + $0x2d4] sm:$0xf] }
 0x66d   :  { %v7246_v7 = vmul.f32 %v14492_v42, %v7212_v21  ;;  %v7241_v0 = vor.u32 1.1754944e-38, %v7240_v24  ;;  %vm7239_vm12 = vcmp.eq.f32.partialorder %v7238_v13, 8.507059e+37  ;;  %v12563_v21 = vor.u32 %v14092_v29, %v12562_v5  ;;  %v12812_v5 = vld [vmem:[#allocation11 + $0x2f0] sm:$0xf0]  ;;  %v12778_v29 = vld [vmem:[#allocation11 + $0x290] sm:$0xf] }
 0x66e   :  { %8196 = vmatpush.bf16.msrb.mxu0 %v12459_v18  ;;  %8222 = vmatpush.bf16.msra.mxu2 %v12463_v12  ;;  %v12908_v18 = vld [vmem:[#allocation11 + $0x3b0] sm:$0xf0]  ;;  %v12530_v12 = vld [vmem:[#allocation11 + $0x98] sm:$0xf]  ;;  %v12499_v13 = vor.u32 %v14076_v30, %v12498_v61 }
 0x66f   :  { %v16150_v48 = vadd.f32 %v7246_v7, %v7245_v47  ;;  %v14175_v7 = vld [vmem:[#allocation11 + $0x394] sm:$0xf]  ;;  %v12907_v47 = vor.u32 %v14179_v23, %v12906_v32  ;;  %v12746_v23 = vld [vmem:[#allocation11 + $0x250] sm:$0xf]  ;;  %v12914_v61 = vld [vmem:[#allocation11 + $0x398] sm:$0xf] }
 0x670   :  { %v12911_v6 = vor.u32 %v14175_v7, %v12908_v18  ;;  %v12748_v7 = vld [vmem:[#allocation11 + $0x270] sm:$0xf0]  ;;  %v14180_v30 = vld [vmem:[#allocation11 + $0x3b4] sm:$0xf0] }
 0x671   :  { %v14494_v2 = vpop.eup %14493  ;;  %8197 = vmatmul.bf16.vlgmr.msrb.gmra.mxu0 %v16095_v54  ;;  %8223 = vmatmul.bf16.vlgmr.msra.gmra.mxu2 %v16095_v54  ;;  %14495 = vtanh.f32 %v16150_v48 }
 0x672   :  { %v7230_v25 = vmul.f32 %v14494_v2, %v16140_v33  ;;  %8241 = vmatpush.bf16.msra.mxu0 %v12691_v50  ;;  %8267 = vmatpush.bf16.msrb.mxu2 %v12695_v62  ;;  %vm7235_vm9 = vweird.f32 %v14494_v2  ;;  %v12939_v33 = vor.u32 %v14187_v46, %v12938_v36  ;;  %v14084_v50 = vld [vmem:[#allocation11 + $0xb4] sm:$0xf0]  ;;  %v14080_v62 = vld [vmem:[#allocation11 + $0x9c] sm:$0xf]  ;;  %v12847_v46 = vor.u32 %v14159_v56, %v12844_v34 }
 0x673   :  { %vm7236_vm11 = vmor %vm7234_vm10, %vm7235_vm9  ;;  %v12468_v36 = vld [vmem:[#allocation11 + $0x38] sm:$0xf0] }
 0x674   :  { %v7231_v59 = vsub.f32 1.0, %v7230_v25  ;;  %v12535_v25 = vor.u32 %v14080_v62, %v12532_v31  ;;  %v14131_v62 = vld [vmem:[#allocation11 + $0x22c] sm:$0xf0]  ;;  %v14127_v31 = vld [vmem:[#allocation11 + $0x214] sm:$0xf] }
 0x676   :  { %v7232_v22 = vmul.f32 %v14494_v2, %v7231_v59  ;;  %8242 = vmatpush.bf16.msra.mxu0 %v12659_v53  ;;  %8268 = vmatpush.bf16.msrb.mxu2 %v12663_v1  ;;  %v14167_v53 = vld [vmem:[#allocation11 + $0x354] sm:$0xf]  ;;  %v12875_v59 = vor.u32 %v14171_v10, %v12874_v27  ;;  %v14188_v27 = vld [vmem:[#allocation11 + $0x3f4] sm:$0xf0]  ;;  %v14184_v10 = vld [vmem:[#allocation11 + $0x3dc] sm:$0xf] }
 0x677   :  { %v14496_v41 = vpop.eup %14495  ;;  %v12876_v1 = vld [vmem:[#allocation11 + $0x370] sm:$0xf0] }
 0x678   :  { %v7233_v40 = vadd.f32 %v14494_v2, %v7232_v22  ;;  %v12879_v24 = vor.u32 %v14167_v53, %v12876_v1  ;;  %v14163_v22 = vld [vmem:[#allocation11 + $0x32c] sm:$0xf0] }
 0x67a   :  { %v7237_v28 = vsel %vm7236_vm11, %v14494_v2, %v7233_v40  ;;  %8243 = vmatpush.bf16.msra.mxu0 %v12627_v15  ;;  %8269 = vmatpush.bf16.msrb.mxu2 %v12631_v51  ;;  %v12531_v2 = vor.u32 %v14084_v50, %v12530_v12  ;;  %v12842_v15 = vld [vmem:[#allocation11 + $0x310] sm:$0xf]  ;;  %v12503_v51 = vor.u32 %v14072_v19, %v12500_v35  ;;  %v14064_v40 = vld [vmem:[#allocation11 + $0x1c] sm:$0xf] }
 0x67b   :  { %v7242_v39 = vsel %vm7239_vm12, %v7241_v0, %v7237_v28  ;;  %v12843_v0 = vor.u32 %v14163_v22, %v12842_v15  ;;  %v12467_v28 = vor.u32 %v14068_v43, %v12466_v9  ;;  %v12714_v50 = vld [vmem:[#allocation11 + $0x210] sm:$0xf]  ;;  %v14176_v19 = vld [vmem:[#allocation11 + $0x39c] sm:$0xf]  ;;  %v12882_v15 = vld [vmem:[#allocation11 + $0x358] sm:$0xf] }
 0x67c   :  { %v16159_v55 = vmul.f32 %v14496_v41, %v7242_v39  ;;  %v12815_v39 = vor.u32 %v14151_v44, %v12812_v5  ;;  %v12916_v35 = vld [vmem:[#allocation11 + $0x3b8] sm:$0xf0]  ;;  %v14172_v22 = vld [vmem:[#allocation11 + $0x374] sm:$0xf0] }
 0x67d   :  { %v12883_v56 = vor.u32 %v14172_v22, %v12882_v15  ;;  %v12850_v9 = vld [vmem:[#allocation11 + $0x318] sm:$0xf]  ;;  %v14207_v15 = vld [vmem:[#allocation11 + $0x12c] sm:$0xf0] }
 0x67e   :  { %v16163_v42 = vpack.c.bf16 %v16159_v55, %v16159_v55  ;;  %8244 = vmatpush.bf16.msra.mxu0 %v12595_v26  ;;  %8270 = vmatpush.bf16.msrb.mxu2 %v12599_v4  ;;  %v12471_v26 = vor.u32 %v14064_v40, %v12468_v36  ;;  %v14155_v4 = vld [vmem:[#allocation11 + $0x2ec] sm:$0xf0]  ;;  %v14164_v43 = vld [vmem:[#allocation11 + $0x334] sm:$0xf0]  ;;  %v14160_v40 = vld [vmem:[#allocation11 + $0x31c] sm:$0xf] }
 0x67f   :  { %v12811_v41 = vor.u32 %v14155_v4, %v12810_v3  ;;  %v12852_v36 = vld [vmem:[#allocation11 + $0x338] sm:$0xf0]  ;;  %v12818_v3 = vld [vmem:[#allocation11 + $0x2d8] sm:$0xf] }
 0x680   :  { %8106 = vmatmul.bf16.vlgmr.msrb.gmra.mxu1 %v16163_v42  ;;  %8132 = vmatmul.bf16.vlgmr.msra.gmra.mxu3 %v16163_v42  ;;  %v12820_v4 = vld [vmem:[#allocation11 + $0x2f8] sm:$0xf0] }
 0x681   :  { %8202 = vmatpush.bf16.msrb.mxu1 %v12939_v33  ;;  %8228 = vmatpush.bf16.msra.mxu3 %v12943_v60  ;;  %v12780_v33 = vld [vmem:[#allocation11 + $0x2b0] sm:$0xf0]  ;;  %v12779_v60 = vor.u32 %v14147_v45, %v12778_v29  ;;  %v14144_v29 = vld [vmem:[#allocation11 + $0x29c] sm:$0xf] }
 0x682   :  { %8245 = vmatpush.bf16.msra.mxu0 %v12563_v21  ;;  %8271 = vmatpush.bf16.msrb.mxu2 %v12567_v37  ;;  %v12783_v32 = vor.u32 %v14143_v16, %v12780_v33  ;;  %v14139_v21 = vld [vmem:[#allocation11 + $0x26c] sm:$0xf0]  ;;  %v14135_v37 = vld [vmem:[#allocation11 + $0x254] sm:$0xf]  ;;  %v12788_v45 = vld [vmem:[#allocation11 + $0x2b8] sm:$0xf0] }
 0x683   :  { %v12747_v18 = vor.u32 %v14139_v21, %v12746_v23  ;;  %v12751_v12 = vor.u32 %v14135_v37, %v12748_v7  ;;  %v12791_v33 = vor.u32 %v14144_v29, %v12788_v45  ;;  %v14136_v23 = vld [vmem:[#allocation11 + $0x25c] sm:$0xf]  ;;  %v12976_v29 = vld [vmem:[#allocation11 + $0x50] sm:$0xf] }
 0x684   :  { %v12756_v21 = vld [vmem:[#allocation11 + $0x278] sm:$0xf0]  ;;  %v14195_v45 = vld [vmem:[#allocation11 + $0x6c] sm:$0xf0] }
 0x685   :  { %8203 = vmatpush.bf16.msrb.mxu1 %v12907_v47  ;;  %8229 = vmatpush.bf16.msra.mxu3 %v12911_v6  ;;  %v12716_v47 = vld [vmem:[#allocation11 + $0x230] sm:$0xf0]  ;;  %v12946_v6 = vld [vmem:[#allocation11 + $0x3d8] sm:$0xf]  ;;  %v12759_v7 = vor.u32 %v14136_v23, %v12756_v21  ;;  %v12960_v21 = vld [vmem:[#allocation11 + $0x10] sm:$0xf] }
 0x686   :  { %8246 = vmatpush.bf16.msra.mxu0 %v12531_v2  ;;  %8272 = vmatpush.bf16.msrb.mxu2 %v12535_v25  ;;  %v12948_v2 = vld [vmem:[#allocation11 + $0x3f8] sm:$0xf0]  ;;  %v12715_v25 = vor.u32 %v14131_v62, %v12714_v50  ;;  %v12719_v53 = vor.u32 %v14127_v31, %v12716_v47 }
 0x687   :  { %v12951_v1 = vor.u32 %v14184_v10, %v12948_v2  ;;  %v14128_v50 = vld [vmem:[#allocation11 + $0x21c] sm:$0xf]  ;;  %v13072_v10 = vld [vmem:[#allocation11 + $0x1d0] sm:$0xf] }
 0x688   :  { %v12724_v62 = vld [vmem:[#allocation11 + $0x238] sm:$0xf0]  ;;  %v14219_v2 = vld [vmem:[#allocation11 + $0x1ec] sm:$0xf0] }
 0x689   :  { %8204 = vmatpush.bf16.msrb.mxu1 %v12875_v59  ;;  %8230 = vmatpush.bf16.msra.mxu3 %v12879_v24  ;;  %v12915_v59 = vor.u32 %v14180_v30, %v12914_v61  ;;  %v12919_v24 = vor.u32 %v14176_v19, %v12916_v35  ;;  %v12727_v47 = vor.u32 %v14128_v50, %v12724_v62  ;;  %v13040_v19 = vld [vmem:[#allocation11 + $0x150] sm:$0xf]  ;;  %v13080_v50 = vld [vmem:[#allocation11 + $0x1d8] sm:$0xf] }
 0x68a   :  { %8247 = vmatpush.bf16.msra.mxu0 %v12499_v13  ;;  %8273 = vmatpush.bf16.msrb.mxu2 %v12503_v51  ;;  %v14168_v13 = vld [vmem:[#allocation11 + $0x35c] sm:$0xf]  ;;  %v14211_v35 = vld [vmem:[#allocation11 + $0x16c] sm:$0xf0] }
 0x68b   :  { %v12884_v51 = vld [vmem:[#allocation11 + $0x378] sm:$0xf0] }
 0x68c   :  { %v12887_v34 = vor.u32 %v14168_v13, %v12884_v51  ;;  %v14217_v13 = vld [vmem:[#allocation11 + $0x1d4] sm:$0xf] }
 0x68d   :  { %8205 = vmatpush.bf16.msrb.mxu1 %v12843_v0  ;;  %8231 = vmatpush.bf16.msra.mxu3 %v12847_v46  ;;  %v12851_v0 = vor.u32 %v14164_v43, %v12850_v9  ;;  %v12855_v46 = vor.u32 %v14160_v40, %v12852_v36  ;;  %v13074_v51 = vld [vmem:[#allocation11 + $0x1f0] sm:$0xf0]  ;;  %v13008_v9 = vld [vmem:[#allocation11 + $0xd0] sm:$0xf] }
 0x68e   :  { %8248 = vmatpush.bf16.msra.mxu0 %v12467_v28  ;;  %8274 = vmatpush.bf16.msrb.mxu2 %v12471_v26  ;;  %v14156_v28 = vld [vmem:[#allocation11 + $0x2f4] sm:$0xf0]  ;;  %v14152_v26 = vld [vmem:[#allocation11 + $0x2dc] sm:$0xf]  ;;  %v14203_v43 = vld [vmem:[#allocation11 + $0xec] sm:$0xf0] }
 0x68f   :  { %v12819_v44 = vor.u32 %v14156_v28, %v12818_v3  ;;  %v12823_v5 = vor.u32 %v14152_v26, %v12820_v4  ;;  %v13009_v36 = vor.u32 %v14203_v43, %v13008_v9  ;;  %v12992_v28 = vld [vmem:[#allocation11 + $0x90] sm:$0xf] }
 0x690   :  { %8158 = vmatmul.bf16.vlgmr.msra.gmra.mxu1 %v16163_v42  ;;  %8184 = vmatmul.bf16.vlgmr.msrb.gmra.mxu3 %v16163_v42  ;;  %v14199_v26 = vld [vmem:[#allocation11 + $0xac] sm:$0xf0] }
 0x691   :  { %8206 = vmatpush.bf16.msrb.mxu1 %v12811_v41  ;;  %8232 = vmatpush.bf16.msra.mxu3 %v12815_v39  ;;  %v12786_v41 = vld [vmem:[#allocation11 + $0x298] sm:$0xf]  ;;  %v12993_v4 = vor.u32 %v14199_v26, %v12992_v28  ;;  %v14218_v26 = vld [vmem:[#allocation11 + $0x1dc] sm:$0xf] }
 0x692   :  { %8249 = vmatmul.bf16.vlgmr.msra.gmra.mxu0 %v16095_v54  ;;  %8275 = vmatmul.bf16.vlgmr.msrb.gmra.mxu2 %v16095_v54  ;;  %v12947_v54 = vor.u32 %v14188_v27, %v12946_v6  ;;  %v14148_v39 = vld [vmem:[#allocation11 + $0x2b4] sm:$0xf0] }
 0x693   :  { %v12787_v16 = vor.u32 %v14148_v39, %v12786_v41  ;;  %v14208_v28 = vld [vmem:[#allocation11 + $0x134] sm:$0xf0] }
 0x695   :  { %8207 = vmatpush.bf16.msrb.mxu1 %v12779_v60  ;;  %8233 = vmatpush.bf16.msra.mxu3 %v12783_v32  ;;  %v12754_v60 = vld [vmem:[#allocation11 + $0x258] sm:$0xf] }
 0x696   :  { %v14140_v32 = vld [vmem:[#allocation11 + $0x274] sm:$0xf0] }
 0x697   :  { %v12755_v37 = vor.u32 %v14140_v32, %v12754_v60  ;;  %v14205_v60 = vld [vmem:[#allocation11 + $0x114] sm:$0xf] }
 0x698   :  { %v13026_v32 = vld [vmem:[#allocation11 + $0x130] sm:$0xf0] }
 0x699   :  { %8208 = vmatpush.bf16.msrb.mxu1 %v12747_v18  ;;  %8234 = vmatpush.bf16.msra.mxu3 %v12751_v12  ;;  %v12722_v18 = vld [vmem:[#allocation11 + $0x218] sm:$0xf]  ;;  %v13029_v23 = vor.u32 %v14205_v60, %v13026_v32  ;;  %v14214_v32 = vld [vmem:[#allocation11 + $0x19c] sm:$0xf] }
 0x69a   :  { %v14132_v12 = vld [vmem:[#allocation11 + $0x234] sm:$0xf0] }
 0x69b   :  { %v12723_v31 = vor.u32 %v14132_v12, %v12722_v18  ;;  %v14201_v18 = vld [vmem:[#allocation11 + $0xd4] sm:$0xf] }
 0x69c   :  { %v13010_v12 = vld [vmem:[#allocation11 + $0xf0] sm:$0xf0] }
 0x69d   :  { %8209 = vmatpush.bf16.msrb.mxu1 %v12715_v25  ;;  %8235 = vmatpush.bf16.msra.mxu3 %v12719_v53  ;;  %v13073_v53 = vor.u32 %v14219_v2, %v13072_v10  ;;  %v13013_v62 = vor.u32 %v14201_v18, %v13010_v12  ;;  %v14200_v18 = vld [vmem:[#allocation11 + $0xb4] sm:$0xf0]  ;;  %v14210_v12 = vld [vmem:[#allocation11 + $0x15c] sm:$0xf] }
 0x69f   :  { %8832 = vmatpush.bf16.msrb.mxu0 %v13073_v53  ;;  %v12994_v53 = vld [vmem:[#allocation11 + $0xb0] sm:$0xf0] }
 0x6a0   :  { %8210 = vmatmul.bf16.vlgmr.msrb.gmra.mxu1 %v16163_v42  ;;  %8236 = vmatmul.bf16.vlgmr.msra.gmra.mxu3 %v16163_v42 }
 0x6a1   :  { %8254 = vmatpush.bf16.msra.mxu1 %v12947_v54  ;;  %8280 = vmatpush.bf16.msrb.mxu3 %v12951_v1  ;;  %v13056_v54 = vld [vmem:[#allocation11 + $0x190] sm:$0xf] }
 0x6a2   :  { %v14215_v1 = vld [vmem:[#allocation11 + $0x1ac] sm:$0xf0] }
 0x6a3   :  { %v13057_v61 = vor.u32 %v14215_v1, %v13056_v54  ;;  %v13064_v54 = vld [vmem:[#allocation11 + $0x198] sm:$0xf] }
 0x6a5   :  { %8255 = vmatpush.bf16.msra.mxu1 %v12915_v59  ;;  %8281 = vmatpush.bf16.msrb.mxu3 %v12919_v24  ;;  %v13041_v24 = vor.u32 %v14211_v35, %v13040_v19  ;;  %v14193_v35 = vld [vmem:[#allocation11 + $0x54] sm:$0xf] }
 0x6a6   :  { %8833 = vmatpush.bf16.msrb.mxu0 %v13057_v61  ;;  %v14216_v61 = vld [vmem:[#allocation11 + $0x1b4] sm:$0xf0] }
 0x6a9   :  { %8256 = vmatpush.bf16.msra.mxu1 %v12883_v56  ;;  %8282 = vmatpush.bf16.msrb.mxu3 %v12887_v34  ;;  %v13077_v56 = vor.u32 %v14217_v13, %v13074_v51  ;;  %v14212_v51 = vld [vmem:[#allocation11 + $0x174] sm:$0xf0] }
 0x6aa   :  { %8834 = vmatpush.bf16.msrb.mxu0 %v13041_v24  ;;  %v12978_v24 = vld [vmem:[#allocation11 + $0x70] sm:$0xf0] }
 0x6ab   :  { %8858 = vmatpush.bf16.msra.mxu2 %v13077_v56  ;;  %v12981_v13 = vor.u32 %v14193_v35, %v12978_v24 }
 0x6ad   :  { %8257 = vmatpush.bf16.msra.mxu1 %v12851_v0  ;;  %8283 = vmatpush.bf16.msrb.mxu3 %v12855_v46  ;;  %v14213_v0 = vld [vmem:[#allocation11 + $0x194] sm:$0xf] }
 0x6ae   :  { %v13058_v46 = vld [vmem:[#allocation11 + $0x1b0] sm:$0xf0] }
 0x6af   :  { %v13061_v3 = vor.u32 %v14213_v0, %v13058_v46  ;;  %v13032_v0 = vld [vmem:[#allocation11 + $0x118] sm:$0xf] }
 0x6b1   :  { %8258 = vmatpush.bf16.msra.mxu1 %v12819_v44  ;;  %8284 = vmatpush.bf16.msrb.mxu3 %v12823_v5  ;;  %v14209_v44 = vld [vmem:[#allocation11 + $0x154] sm:$0xf] }
 0x6b2   :  { %8859 = vmatpush.bf16.msra.mxu2 %v13061_v3  ;;  %v13042_v5 = vld [vmem:[#allocation11 + $0x170] sm:$0xf0] }
 0x6b3   :  { %v13045_v41 = vor.u32 %v14209_v44, %v13042_v5  ;;  %v13033_v44 = vor.u32 %v14208_v28, %v13032_v0  ;;  %v13082_v5 = vld [vmem:[#allocation11 + $0x1f8] sm:$0xf0]  ;;  %v14192_v0 = vld [vmem:[#allocation11 + $0x34] sm:$0xf0] }
 0x6b5   :  { %8259 = vmatpush.bf16.msra.mxu1 %v12787_v16  ;;  %8285 = vmatpush.bf16.msrb.mxu3 %v12791_v33  ;;  %v12977_v33 = vor.u32 %v14195_v45, %v12976_v29  ;;  %v13016_v29 = vld [vmem:[#allocation11 + $0xd8] sm:$0xf] }
 0x6b6   :  { %8860 = vmatpush.bf16.msra.mxu2 %v13045_v41  ;;  %v13085_v41 = vor.u32 %v14218_v26, %v13082_v5  ;;  %v14204_v45 = vld [vmem:[#allocation11 + $0xf4] sm:$0xf0]  ;;  %v13018_v26 = vld [vmem:[#allocation11 + $0xf8] sm:$0xf0] }
 0x6b7   :  { %v13017_v60 = vor.u32 %v14204_v45, %v13016_v29  ;;  %v16216_v45 = vld [vmem:[%s16352_s4] sm:$0xf] }
 0x6b9   :  { %8260 = vmatpush.bf16.msra.mxu1 %v12755_v37  ;;  %8286 = vmatpush.bf16.msrb.mxu3 %v12759_v7  ;;  %v14191_v37 = vld [vmem:[#allocation11 + $0x2c] sm:$0xf0] }
 0x6ba   :  { %8861 = vmatpush.bf16.msra.mxu2 %v13029_v23  ;;  %v12961_v7 = vor.u32 %v14191_v37, %v12960_v21  ;;  %v13066_v23 = vld [vmem:[#allocation11 + $0x1b8] sm:$0xf0] }
 0x6bb   :  { %v13069_v21 = vor.u32 %v14214_v32, %v13066_v23 }
 0x6bd   :  { %8261 = vmatpush.bf16.msra.mxu1 %v12723_v31  ;;  %8287 = vmatpush.bf16.msrb.mxu3 %v12727_v47  ;;  %v14220_v31 = vld [vmem:[#allocation11 + $0x1f4] sm:$0xf0] }
 0x6be   :  { %v13081_v10 = vor.u32 %v14220_v31, %v13080_v50  ;;  %8862 = vmatpush.bf16.msra.mxu2 %v13013_v62  ;;  %v13050_v50 = vld [vmem:[#allocation11 + $0x178] sm:$0xf0] }
 0x6c0   :  { %8262 = vmatmul.bf16.vlgmr.msra.gmra.mxu1 %v16163_v42  ;;  %8288 = vmatmul.bf16.vlgmr.msrb.gmra.mxu3 %v16163_v42  ;;  %v13024_v42 = vld [vmem:[#allocation11 + $0x110] sm:$0xf] }
 0x6c1   :  { %v13025_v22 = vor.u32 %v14207_v15, %v13024_v42  ;;  %v13048_v42 = vld [vmem:[#allocation11 + $0x158] sm:$0xf]  ;;  %v231_v15 = vadd.f32 %v15110_v38, %v15063_v11  ;;  %v16413_v11 = vld [vmem:[#allocation21_spill] sm:$0xff] }
 0x6c2   :  { %v13049_v9 = vor.u32 %v14212_v51, %v13048_v42  ;;  %v260_v38 = vadd.f32 %v16413_v11, %v15065_v20  ;;  %v14251_v51 = vld [vmem:[#allocation11 + $0x3ec] sm:$0xf0] }
 0x6c3   :  { %8835 = vmatpush.bf16.msrb.mxu0 %v13025_v22 }
 0x6c7   :  { %8836 = vmatpush.bf16.msrb.mxu0 %v13009_v36  ;;  %v12962_v36 = vld [vmem:[#allocation11 + $0x30] sm:$0xf0] }
 0x6cb   :  { %8837 = vmatpush.bf16.msrb.mxu0 %v12993_v4 }
 0x6ce   :  { %v16175_v6 = vpop.f32.mrf.mxu0 }
 0x6cf   :  { %8838 = vmatpush.bf16.msrb.mxu0 %v12977_v33 }
 0x6d3   :  { %8839 = vmatpush.bf16.msrb.mxu0 %v12961_v7  ;;  %v13000_v7 = vld [vmem:[#allocation11 + $0x98] sm:$0xf] }
 0x6d4   :  { %v16177_v27 = vpop.f32.mrf.mxu2 }
 0x6d6   :  { %v8096_v25 = vpop.f32.mrf.mxu0 }
 0x6d7   :  { %8884 = vmatpush.bf16.msra.mxu0 %v13081_v10  ;;  %v14197_v25 = vld [vmem:[#allocation11 + $0x94] sm:$0xf]  ;;  %v13053_v10 = vor.u32 %v14210_v12, %v13050_v50 }
 0x6d8   :  { %v12997_v1 = vor.u32 %v14197_v25, %v12994_v53  ;;  %v12984_v25 = vld [vmem:[#allocation11 + $0x58] sm:$0xf]  ;;  %v16414_v53 = vld [vmem:[#allocation23_spill] sm:$0xff] }
 0x6da   :  { %8863 = vmatpush.bf16.msra.mxu2 %v12997_v1 }
 0x6dc   :  { %v8122_v30 = vpop.f32.mrf.mxu2 }
 0x6dd   :  { %v13065_v30 = vor.u32 %v14216_v61, %v13064_v54  ;;  %v289_v54 = vadd.f32 %v16414_v53, %v15124_v14  ;;  %v14196_v61 = vld [vmem:[#allocation11 + $0x74] sm:$0xf0]  ;;  %v13202_v14 = vld [vmem:[#allocation11 + $0x3f0] sm:$0xf0]  ;;  %v8306_v53 = vperm.slane %v16216_v45, 0 }
 0x6de   :  { %v16179_v59 = vpop.f32.mrf.mxu0  ;;  %8864 = vmatpush.bf16.msra.mxu2 %v12981_v13  ;;  %v12985_v24 = vor.u32 %v14196_v61, %v12984_v25  ;;  %v13200_v13 = vld [vmem:[#allocation11 + $0x3d0] sm:$0xf] }
 0x6df   :  { %8885 = vmatpush.bf16.msra.mxu0 %v13065_v30  ;;  %v14206_v30 = vld [vmem:[#allocation11 + $0x11c] sm:$0xf] }
 0x6e3   :  { %8886 = vmatpush.bf16.msra.mxu0 %v13049_v9 }
 0x6e4   :  { %v16181_v34 = vpop.f32.mrf.mxu2 }
 0x6e6   :  { %v8148_v40 = vpop.f32.mrf.mxu0 }
 0x6e7   :  { %v14189_v40 = vld [vmem:[#allocation11 + $0x14] sm:$0xf]  ;;  %8887 = vmatpush.bf16.msra.mxu0 %v13033_v44 }
 0x6e8   :  { %v12965_v3 = vor.u32 %v14189_v40, %v12962_v36  ;;  %v12968_v40 = vld [vmem:[#allocation11 + $0x18] sm:$0xf] }
 0x6ea   :  { %8865 = vmatpush.bf16.msra.mxu2 %v12965_v3 }
 0x6eb   :  { %8888 = vmatpush.bf16.msra.mxu0 %v13017_v60  ;;  %v13186_v60 = vld [vmem:[#allocation11 + $0x3b0] sm:$0xf0] }
 0x6ec   :  { %v8174_v39 = vpop.f32.mrf.mxu2 }
 0x6ee   :  { %v16183_v16 = vpop.f32.mrf.mxu0  ;;  %8910 = vmatpush.bf16.msrb.mxu2 %v13085_v41  ;;  %v14245_v41 = vld [vmem:[#allocation11 + $0x394] sm:$0xf] }
 0x6f2   :  { %8911 = vmatpush.bf16.msrb.mxu2 %v13069_v21 }
 0x6f4   :  { %v16185_v47 = vpop.f32.mrf.mxu2 }
 0x6f6   :  { %v8200_v2 = vpop.f32.mrf.mxu0  ;;  %8912 = vmatpush.bf16.msrb.mxu2 %v13053_v10  ;;  %v14243_v10 = vld [vmem:[#allocation11 + $0x36c] sm:$0xf0] }
 0x6fc   :  { %v8226_v56 = vpop.f32.mrf.mxu2 }
 0x6fd   :  { %v8107_v19 = vpop.f32.mrf.mxu1  ;;  %v14249_v56 = vld [vmem:[#allocation11 + $0x3d4] sm:$0xf] }
 0x6fe   :  { %v8108_v22 = vadd.f32 %v8107_v19, %v16175_v6  ;;  %v13034_v19 = vld [vmem:[#allocation11 + $0x138] sm:$0xf0]  ;;  %v13205_v36 = vor.u32 %v14249_v56, %v13202_v14 }
 0x6ff   :  { %v13037_v42 = vor.u32 %v14206_v30, %v13034_v19 }
 0x700   :  { %v8300_v43 = vadd.f32 %v8108_v22, %v231_v15  ;;  %8871 = vmatpush.bf16.msra.mxu3 %v13205_v36 }
 0x701   :  { %8913 = vmatpush.bf16.msrb.mxu2 %v13037_v42  ;;  %v14194_v42 = vld [vmem:[#allocation11 + $0x5c] sm:$0xf] }
 0x702   :  { %v12955_v46 = vmul.f32 -1.442695, %v8300_v43  ;;  %v13201_v43 = vor.u32 %v14251_v51, %v13200_v13 }
 0x703   :  { %v8133_v4 = vpop.f32.mrf.mxu3 }
 0x704   :  { %14497 = vpow2.f32 %v12955_v46  ;;  %v8134_v6 = vadd.f32 %v8133_v4, %v16177_v27  ;;  %v13001_v27 = vor.u32 %v14200_v18, %v13000_v7  ;;  %v14202_v46 = vld [vmem:[#allocation11 + $0xdc] sm:$0xf]  ;;  %8845 = vmatpush.bf16.msrb.mxu1 %v13201_v43  ;;  %v16415_v4 = vld [vmem:[#allocation22_spill] sm:$0xff] }
 0x705   :  { %v8109_v39 = vpop.f32.mrf.mxu1  ;;  %v318_v44 = vadd.f32 %v16415_v4, %v15126_v57  ;;  %v13021_v57 = vor.u32 %v14202_v46, %v13018_v26  ;;  %v13002_v7 = vld [vmem:[#allocation11 + $0xb8] sm:$0xf0]  ;;  %v14237_v26 = vld [vmem:[#allocation11 + $0x314] sm:$0xf] }
 0x706   :  { %v8301_v33 = vadd.f32 %v8134_v6, %v260_v38  ;;  %8889 = vmatpush.bf16.msra.mxu0 %v13001_v27  ;;  %v13184_v38 = vld [vmem:[#allocation11 + $0x390] sm:$0xf]  ;;  %v13154_v4 = vld [vmem:[#allocation11 + $0x330] sm:$0xf0] }
 0x707   :  { %v14247_v6 = vld [vmem:[#allocation11 + $0x3ac] sm:$0xf0]  ;;  %8914 = vmatpush.bf16.msrb.mxu2 %v13021_v57 }
 0x708   :  { %v12956_v37 = vmul.f32 -1.442695, %v8301_v33  ;;  %v12969_v33 = vor.u32 %v14192_v0, %v12968_v40  ;;  %v13185_v21 = vor.u32 %v14247_v6, %v13184_v38  ;;  %v14190_v38 = vld [vmem:[#allocation11 + $0x1c] sm:$0xf] }
 0x709   :  { %v12970_v6 = vld [vmem:[#allocation11 + $0x38] sm:$0xf0] }
 0x70a   :  { %v14498_v20 = vpop.eup %14497  ;;  %14499 = vpow2.f32 %v12956_v37  ;;  %8890 = vmatpush.bf16.msra.mxu0 %v12985_v24  ;;  %v13189_v37 = vor.u32 %v14245_v41, %v13186_v60  ;;  %8846 = vmatpush.bf16.msrb.mxu1 %v13185_v21 }
 0x70b   :  { %v16193_v62 = vadd.f32 1.0, %v14498_v20  ;;  %v8135_v31 = vpop.f32.mrf.mxu3 }
 0x70c   :  { %8872 = vmatpush.bf16.msra.mxu3 %v13189_v37  ;;  %v13168_v31 = vld [vmem:[#allocation11 + $0x350] sm:$0xf] }
 0x70d   :  { %14501 = vrcp.f32 %v16193_v62  ;;  %v8159_v2 = vpop.f32.mrf.mxu1  ;;  %v8404_v18 = vand.u32 2147483647, %v16193_v62  ;;  %v8406_v20 = vand.u32 2147483648, %v16193_v62  ;;  %vm8400_vm14 = vweird.f32 %v16193_v62 }
 0x70e   :  { %v8160_v1 = vadd.f32 %v8159_v2, %v16179_v59  ;;  %8891 = vmatpush.bf16.msra.mxu0 %v12969_v33  ;;  %v14241_v2 = vld [vmem:[#allocation11 + $0x354] sm:$0xf]  ;;  %v12973_v33 = vor.u32 %v14190_v38, %v12970_v6  ;;  %v13208_v6 = vld [vmem:[#allocation11 + $0x3d8] sm:$0xf] }
 0x70f   :  { %v16199_v35 = vpop.f32.mrf.mxu0  ;;  %vm8405_vm0 = vcmp.eq.f32.partialorder %v8404_v18, 8.507059e+37  ;;  %v8407_v13 = vor.u32 1.1754944e-38, %v8406_v20  ;;  %v13090_v38 = vld [vmem:[#allocation11 + $0x230] sm:$0xf0] }
 0x710   :  { %v14500_v15 = vpop.eup %14499  ;;  %v8302_v22 = vadd.f32 %v8160_v1, %v289_v54  ;;  %v13169_v54 = vor.u32 %v14243_v10, %v13168_v31  ;;  %v13170_v1 = vld [vmem:[#allocation11 + $0x370] sm:$0xf0] }
 0x711   :  { %v16201_v9 = vadd.f32 1.0, %v14500_v15  ;;  %v13173_v24 = vor.u32 %v14241_v2, %v13170_v1  ;;  %v12986_v15 = vld [vmem:[#allocation11 + $0x78] sm:$0xf0]  ;;  %v14229_v1 = vld [vmem:[#allocation11 + $0x294] sm:$0xf] }
 0x712   :  { %v12957_v59 = vmul.f32 -1.442695, %v8302_v22  ;;  %v12989_v56 = vor.u32 %v14194_v42, %v12986_v15  ;;  %8847 = vmatpush.bf16.msrb.mxu1 %v13169_v54  ;;  %v14231_v54 = vld [vmem:[#allocation11 + $0x2ac] sm:$0xf0] }
 0x713   :  { %v16203_v3 = vpop.eup %14501  ;;  %14503 = vrcp.f32 %v16201_v9  ;;  %v8185_v28 = vpop.f32.mrf.mxu3  ;;  %v8421_v14 = vand.u32 2147483648, %v16201_v9  ;;  %8873 = vmatpush.bf16.msra.mxu3 %v13173_v24  ;;  %v8419_v0 = vand.u32 2147483647, %v16201_v9  ;;  %vm8415_vm2 = vweird.f32 %v16201_v9 }
 0x714   :  { %v8396_v5 = vmul.f32 %v16203_v3, %v16193_v62  ;;  %14505 = vpow2.f32 %v12957_v59  ;;  %v8186_v11 = vadd.f32 %v8185_v28, %v16181_v34  ;;  %v14198_v34 = vld [vmem:[#allocation11 + $0x9c] sm:$0xf]  ;;  %vm8401_vm13 = vweird.f32 %v16203_v3  ;;  %v13152_v62 = vld [vmem:[#allocation11 + $0x310] sm:$0xf] }
 0x715   :  { %v16211_v39 = vpop.f32.mrf.mxu2  ;;  %v8161_v29 = vpop.f32.mrf.mxu1  ;;  %v13005_v12 = vor.u32 %v14198_v34, %v13002_v7  ;;  %vm8402_vm15 = vmor %vm8400_vm14, %vm8401_vm13  ;;  %v14239_v59 = vld [vmem:[#allocation11 + $0x32c] sm:$0xf0]  ;;  %v8422_v21 = vor.u32 1.1754944e-38, %v8421_v14  ;;  %v14233_v34 = vld [vmem:[#allocation11 + $0x2d4] sm:$0xf]  ;;  %vm8420_vm4 = vcmp.eq.f32.partialorder %v8419_v0, 8.507059e+37 }
 0x716   :  { %v8397_v32 = vsub.f32 1.0, %v8396_v5  ;;  %v8303_v23 = vadd.f32 %v8186_v11, %v318_v44  ;;  %v13153_v11 = vor.u32 %v14239_v59, %v13152_v62  ;;  %v13157_v29 = vor.u32 %v14237_v26, %v13154_v4  ;;  %v13138_v7 = vld [vmem:[#allocation11 + $0x2f0] sm:$0xf0] }
 0x717   :  { %v8252_v27 = vpop.f32.mrf.mxu0  ;;  %8915 = vmatpush.bf16.msrb.mxu2 %v13005_v12  ;;  %v13141_v20 = vor.u32 %v14233_v34, %v13138_v7  ;;  %v13106_v62 = vld [vmem:[#allocation11 + $0x270] sm:$0xf0] }
 0x718   :  { %v8398_v50 = vmul.f32 %v16203_v3, %v8397_v32  ;;  %14507 = vtanh.f32 %v8303_v23  ;;  %8848 = vmatpush.bf16.msrb.mxu1 %v13153_v11  ;;  %v13136_v32 = vld [vmem:[#allocation11 + $0x2d0] sm:$0xf]  ;;  %8874 = vmatpush.bf16.msra.mxu3 %v13157_v29 }
 0x719   :  { %v16222_v25 = vpop.eup %14503  ;;  %v14235_v23 = vld [vmem:[#allocation11 + $0x2ec] sm:$0xf0] }
 0x71a   :  { %v14506_v61 = vpop.eup %14505  ;;  %v8411_v30 = vmul.f32 %v16222_v25, %v16201_v9  ;;  %v8399_v19 = vadd.f32 %v16203_v3, %v8398_v50  ;;  %vm8416_vm1 = vweird.f32 %v16222_v25  ;;  %v13137_v37 = vor.u32 %v14235_v23, %v13136_v32  ;;  %v13210_v23 = vld [vmem:[#allocation11 + $0x3f8] sm:$0xf0] }
 0x71b   :  { %v16229_v22 = vadd.f32 1.0, %v14506_v61  ;;  %v8187_v51 = vpop.f32.mrf.mxu3  ;;  %8916 = vmatpush.bf16.msrb.mxu2 %v12989_v56  ;;  %vm8417_vm3 = vmor %vm8415_vm2, %vm8416_vm1 }
 0x71c   :  { %v8412_v43 = vsub.f32 1.0, %v8411_v30  ;;  %v8403_v40 = vsel %vm8402_vm15, %v16203_v3, %v8399_v19  ;;  %8849 = vmatpush.bf16.msrb.mxu1 %v13137_v37  ;;  %8875 = vmatpush.bf16.msra.mxu3 %v13141_v20  ;;  %v13122_v30 = vld [vmem:[#allocation11 + $0x2b0] sm:$0xf0] }
 0x71d   :  { %14509 = vrcp.f32 %v16229_v22  ;;  %v8408_v36 = vsel %vm8405_vm0, %v8407_v13, %v8403_v40  ;;  %v8278_v46 = vpop.f32.mrf.mxu2  ;;  %v8211_v28 = vpop.f32.mrf.mxu1  ;;  %v13125_v15 = vor.u32 %v14229_v1, %v13122_v30  ;;  %v8436_v13 = vand.u32 2147483648, %v16229_v22  ;;  %v14225_v40 = vld [vmem:[#allocation11 + $0x254] sm:$0xf]  ;;  %v14242_v1 = vld [vmem:[#allocation11 + $0x35c] sm:$0xf] }
 0x71e   :  { %v14508_v44 = vpop.eup %14507  ;;  %v8413_v5 = vmul.f32 %v16222_v25, %v8412_v43  ;;  %v8212_v3 = vadd.f32 %v8211_v28, %v16183_v16  ;;  %v8307_v16 = vperm.slane %v16216_v45, 1  ;;  %v8434_v51 = vand.u32 2147483647, %v16229_v22  ;;  %v14227_v43 = vld [vmem:[#allocation11 + $0x26c] sm:$0xf0] }
 0x71f   :  { %v8442_v41 = vmul.f32 %v14508_v44, %v8408_v36  ;;  %8917 = vmatpush.bf16.msrb.mxu2 %v12973_v33  ;;  %vm8430_vm6 = vweird.f32 %v16229_v22  ;;  %v13109_v0 = vor.u32 %v14225_v40, %v13106_v62  ;;  %v8437_v26 = vor.u32 1.1754944e-38, %v8436_v13  ;;  %v13088_v44 = vld [vmem:[#allocation11 + $0x210] sm:$0xf]  ;;  %v14252_v33 = vld [vmem:[#allocation11 + $0x3f4] sm:$0xf0] }
 0x720   :  { %v8414_v57 = vadd.f32 %v16222_v25, %v8413_v5  ;;  %v8314_v60 = vadd.f32 %v8306_v53, %v8212_v3  ;;  %v13120_v53 = vld [vmem:[#allocation11 + $0x290] sm:$0xf]  ;;  %8876 = vmatpush.bf16.msra.mxu3 %v13125_v15  ;;  %vm8435_vm8 = vcmp.eq.f32.partialorder %v8434_v51, 8.507059e+37  ;;  %v14221_v3 = vld [vmem:[#allocation11 + $0x214] sm:$0xf]  ;;  %v13209_v32 = vor.u32 %v14252_v33, %v13208_v6  ;;  %v14258_v15 = vld [vmem:[#allocation13 + $0x28] sm:$0xff] }
 0x721   :  { %v14223_v5 = vld [vmem:[#allocation11 + $0x22c] sm:$0xf0]  ;;  %v13093_v29 = vor.u32 %v14221_v3, %v13090_v38  ;;  %v13160_v30 = vld [vmem:[#allocation11 + $0x318] sm:$0xf]  ;;  %v13162_v13 = vld [vmem:[#allocation11 + $0x338] sm:$0xf0] }
 0x722   :  { %v8418_v18 = vsel %vm8417_vm3, %v16222_v25, %v8414_v57  ;;  %v12952_v9 = vmul.f32 -1.442695, %v8314_v60  ;;  %v13121_v25 = vor.u32 %v14231_v54, %v13120_v53  ;;  %v14250_v57 = vld [vmem:[#allocation11 + $0x3dc] sm:$0xf]  ;;  %v14244_v53 = vld [vmem:[#allocation11 + $0x374] sm:$0xf0] }
 0x723   :  { %v14510_v27 = vpop.eup %14509  ;;  %v8423_v12 = vsel %vm8420_vm4, %v8422_v21, %v8418_v18  ;;  %v8237_v50 = vpop.f32.mrf.mxu3  ;;  %v13213_v37 = vor.u32 %v14250_v57, %v13210_v23  ;;  %v13192_v18 = vld [vmem:[#allocation11 + $0x398] sm:$0xf]  ;;  %v13146_v3 = vld [vmem:[#allocation11 + $0x2f8] sm:$0xf0] }
 0x724   :  { %v8426_v31 = vmul.f32 %v14510_v27, %v16229_v22  ;;  %v8441_v10 = vmul.f32 %v8423_v12, %v16086_v49  ;;  %14511 = vpow2.f32 %v12952_v9  ;;  %v8238_v2 = vadd.f32 %v8237_v50, %v16185_v47  ;;  %8850 = vmatpush.bf16.msrb.mxu1 %v13121_v25  ;;  %v13104_v47 = vld [vmem:[#allocation11 + $0x250] sm:$0xf]  ;;  %8877 = vmatpush.bf16.msra.mxu3 %v13109_v0  ;;  %v14248_v9 = vld [vmem:[#allocation11 + $0x3b4] sm:$0xf0]  ;;  %v13194_v12 = vld [vmem:[#allocation11 + $0x3b8] sm:$0xf0] }
 0x725   :  { %v8213_v61 = vpop.f32.mrf.mxu1  ;;  %vm8431_vm5 = vweird.f32 %v14510_v27  ;;  %v13105_v14 = vor.u32 %v14227_v43, %v13104_v47  ;;  %v13193_v20 = vor.u32 %v14248_v9, %v13192_v18  ;;  %v14259_v50 = vld [vmem:[#allocation13 + $0x30] sm:$0xff]  ;;  %v13128_v6 = vld [vmem:[#allocation11 + $0x298] sm:$0xf]  ;;  %v14230_v57 = vld [vmem:[#allocation11 + $0x29c] sm:$0xf] }
 0x726   :  { %v8427_v19 = vsub.f32 1.0, %v8426_v31  ;;  %v8443_v24 = vadd.f32 %v8442_v41, %v8441_v10  ;;  %v8315_v42 = vadd.f32 %v8307_v16, %v8238_v2  ;;  %vm8432_vm7 = vmor %vm8430_vm6, %vm8431_vm5  ;;  %v13089_v41 = vor.u32 %v14223_v5, %v13088_v44  ;;  %v14260_v16 = vld [vmem:[#allocation13 + $0x38] sm:$0xff] }
 0x727   :  { %v13176_v2 = vld [vmem:[#allocation11 + $0x358] sm:$0xf]  ;;  %v13178_v61 = vld [vmem:[#allocation11 + $0x378] sm:$0xf0]  ;;  %v8309_v44 = vperm.slane %v16216_v45, 3 }
 0x728   :  { %v8428_v49 = vmul.f32 %v14510_v27, %v8427_v19  ;;  %14513 = vtanh.f32 %v8443_v24  ;;  %v12953_v56 = vmul.f32 -1.442695, %v8315_v42  ;;  %8851 = vmatpush.bf16.msrb.mxu1 %v13105_v14  ;;  %8878 = vmatpush.bf16.msra.mxu3 %v13093_v29  ;;  %v13177_v54 = vor.u32 %v14244_v53, %v13176_v2  ;;  %v14240_v19 = vld [vmem:[#allocation11 + $0x334] sm:$0xf0]  ;;  %v14238_v24 = vld [vmem:[#allocation11 + $0x31c] sm:$0xf] }
 0x729   :  { %v13181_v25 = vor.u32 %v14242_v1, %v13178_v61  ;;  %v13165_v14 = vor.u32 %v14238_v24, %v13162_v13  ;;  %v14256_v33 = vld [vmem:[#allocation13 + $0x18] sm:$0xff] }
 0x72a   :  { %v14512_v59 = vpop.eup %14511  ;;  %14515 = vpow2.f32 %v12953_v56  ;;  %v8429_v36 = vadd.f32 %v14510_v27, %v8428_v49  ;;  %v8308_v49 = vperm.slane %v16216_v45, 2  ;;  %v13161_v56 = vor.u32 %v14240_v19, %v13160_v30  ;;  %v14228_v18 = vld [vmem:[#allocation11 + $0x274] sm:$0xf0]  ;;  %v14226_v9 = vld [vmem:[#allocation11 + $0x25c] sm:$0xf] }
 0x72b   :  { %v16252_v46 = vadd.f32 1.0, %v14512_v59  ;;  %v8239_v28 = vpop.f32.mrf.mxu3  ;;  %v13096_v61 = vld [vmem:[#allocation11 + $0x218] sm:$0xf]  ;;  %v14222_v24 = vld [vmem:[#allocation11 + $0x21c] sm:$0xf] }
 0x72c   :  { %v8433_v4 = vsel %vm8432_vm7, %v14510_v27, %v8429_v36  ;;  %8852 = vmatpush.bf16.msrb.mxu1 %v13089_v41  ;;  %8923 = vmatpush.bf16.msrb.mxu3 %v13213_v37  ;;  %v14246_v27 = vld [vmem:[#allocation11 + $0x39c] sm:$0xf]  ;;  %v14257_v36 = vld [vmem:[#allocation13 + $0x20] sm:$0xff]  ;;  %v13144_v28 = vld [vmem:[#allocation11 + $0x2d8] sm:$0xf] }
 0x72d   :  { %v8438_v11 = vsel %vm8435_vm8, %v8437_v26, %v8433_v4  ;;  %14517 = vrcp.f32 %v16252_v46  ;;  %v13197_v31 = vor.u32 %v14246_v27, %v13194_v12  ;;  %v14236_v26 = vld [vmem:[#allocation11 + $0x2f4] sm:$0xf0]  ;;  %v14234_v4 = vld [vmem:[#allocation11 + $0x2dc] sm:$0xf]  ;;  %vm8335_vm9 = vweird.f32 %v16252_v46  ;;  %v14255_v12 = vld [vmem:[#allocation13 + $0x10] sm:$0xff] }
 0x72e   :  { %v14514_v22 = vpop.eup %14513  ;;  %v13145_v5 = vor.u32 %v14236_v26, %v13144_v28  ;;  %v13149_v38 = vor.u32 %v14234_v4, %v13146_v3  ;;  %v13112_v37 = vld [vmem:[#allocation11 + $0x258] sm:$0xf]  ;;  %v8341_v2 = vand.u32 2147483648, %v16252_v46  ;;  %v9027_v4 = vpack.c.bf16 %v15527_v63, %v15371_v52 }
 0x72f   :  { %v8445_v60 = vmul.f32 %v14514_v22, %v8438_v11  ;;  %v14232_v22 = vld [vmem:[#allocation11 + $0x2b4] sm:$0xf0]  ;;  %v9028_v63 = vpack.c.bf16 %v15843_v17, %v15687_v58  ;;  %v14262_v58 = vld [vmem:[#allocation14 + $0x8] sm:$0xff] }
 0x730   :  { %v14516_v21 = vpop.eup %14515  ;;  %8897 = vmatpush.bf16.msra.mxu1 %v13209_v32  ;;  %8924 = vmatpush.bf16.msrb.mxu3 %v13197_v31  ;;  %v13129_v45 = vor.u32 %v14232_v22, %v13128_v6 }
 0x731   :  { %v16256_v34 = vadd.f32 1.0, %v14516_v21  ;;  %v16258_v7 = vpack.c.bf16 %v8445_v60, %v8445_v60  ;;  %v13130_v60 = vld [vmem:[#allocation11 + $0x2b8] sm:$0xf0] }
 0x732   :  { %v13133_v21 = vor.u32 %v14230_v57, %v13130_v60  ;;  %v14267_v57 = vld [vmem:[#allocation14 + $0x30] sm:$0xff]  ;;  %v14266_v60 = vld [vmem:[#allocation14 + $0x28] sm:$0xff] }
 0x733   :  { %14519 = vrcp.f32 %v16256_v34  ;;  %8840 = vmatmul.bf16.vlgmr.msrb.gmra.mxu0 %v16258_v7  ;;  %9015 = vst [vmem:[#allocation2] sm:$0xf] %v16258_v7  ;;  %8866 = vmatmul.bf16.vlgmr.msra.gmra.mxu2 %v16258_v7  ;;  %v16264_v10 = vpop.eup %14517  ;;  %v8356_v31 = vand.u32 2147483648, %v16256_v34  ;;  %vm8350_vm12 = vweird.f32 %v16256_v34 }
 0x734   :  { %9099 = vmatpush.bf16.msrb.mxu0 %v14260_v16  ;;  %8898 = vmatpush.bf16.msra.mxu1 %v13193_v20  ;;  %v8331_v42 = vmul.f32 %v16264_v10, %v16252_v46  ;;  %vm8336_vm10 = vweird.f32 %v16264_v10  ;;  %v8339_v20 = vand.u32 2147483647, %v16252_v46 }
 0x735   :  { %8925 = vmatpush.bf16.msrb.mxu3 %v13181_v25  ;;  %vm16293_vm13 = vmor %vm8335_vm9, %vm8336_vm10  ;;  %v14224_v25 = vld [vmem:[#allocation11 + $0x234] sm:$0xf0] }
 0x736   :  { %v8332_v62 = vsub.f32 1.0, %v8331_v42  ;;  %v13098_v42 = vld [vmem:[#allocation11 + $0x238] sm:$0xf0]  ;;  %vm8340_vm15 = vcmp.eq.f32.partialorder %v8339_v20, 8.507059e+37 }
 0x738   :  { %9100 = vmatpush.bf16.msrb.mxu0 %v14259_v50  ;;  %8899 = vmatpush.bf16.msra.mxu1 %v13177_v54  ;;  %v8333_v29 = vmul.f32 %v16264_v10, %v8332_v62  ;;  %v13114_v50 = vld [vmem:[#allocation11 + $0x278] sm:$0xf0]  ;;  %v8354_v54 = vand.u32 2147483647, %v16256_v34 }
 0x739   :  { %v16268_v51 = vpop.eup %14519  ;;  %8926 = vmatpush.bf16.msrb.mxu3 %v13165_v14  ;;  %v13117_v1 = vor.u32 %v14226_v9, %v13114_v50  ;;  %v13101_v14 = vor.u32 %v14222_v24, %v13098_v42  ;;  %v8936_v50 = vld [vmem:[%s16352_s4] sm:$0xf] }
 0x73a   :  { %v8346_v47 = vmul.f32 %v16268_v51, %v16256_v34  ;;  %vm8351_vm11 = vweird.f32 %v16268_v51  ;;  %vm8355_vm0 = vcmp.eq.f32.partialorder %v8354_v54, 8.507059e+37  ;;  %v8938_v53 = vperm.slane %v8936_v50, 0 }
 0x73b   :  { %vm16300_vm14 = vmor %vm8350_vm12, %vm8351_vm11  ;;  %v8939_v19 = vperm.slane %v8936_v50, 1 }
 0x73c   :  { %v8347_v59 = vsub.f32 1.0, %v8346_v47  ;;  %9101 = vmatpush.bf16.msrb.mxu0 %v14258_v15  ;;  %8900 = vmatpush.bf16.msra.mxu1 %v13161_v56  ;;  %v8357_v56 = vor.u32 1.1754944e-38, %v8356_v31  ;;  %v8342_v47 = vor.u32 1.1754944e-38, %v8341_v2 }
 0x73d   :  { %v8263_v43 = vpop.f32.mrf.mxu1  ;;  %8927 = vmatpush.bf16.msrb.mxu3 %v13149_v38 }
 0x73e   :  { %v8264_v40 = vadd.f32 %v8263_v43, %v16199_v35  ;;  %v8348_v35 = vmul.f32 %v16268_v51, %v8347_v59  ;;  %v13097_v43 = vor.u32 %v14224_v25, %v13096_v61 }
 0x740   :  { %v8316_v0 = vadd.f32 %v8308_v49, %v8264_v40  ;;  %9102 = vmatpush.bf16.msrb.mxu0 %v14257_v36  ;;  %8901 = vmatpush.bf16.msra.mxu1 %v13145_v5  ;;  %v8349_v27 = vadd.f32 %v16268_v51, %v8348_v35  ;;  %v14254_v49 = vld [vmem:[#allocation13 + $0x8] sm:$0xff]  ;;  %v14253_v36 = vld [vmem:[#allocation13] sm:$0xff] }
 0x741   :  { %8928 = vmatpush.bf16.msrb.mxu3 %v13133_v21  ;;  %v14263_v21 = vld [vmem:[#allocation14 + $0x10] sm:$0xff] }
 0x742   :  { %v12954_v11 = vmul.f32 -1.442695, %v8316_v0  ;;  %v8353_v34 = vsel %vm16300_vm14, %v16268_v51, %v8349_v27  ;;  %v16327_v27 = vld [vmem:[%s16354_s6] ss:$0 sm:$0xff] }
 0x743   :  { %v8289_v41 = vpop.f32.mrf.mxu3  ;;  %8892 = vmatmul.bf16.vlgmr.msra.gmra.mxu0 %v16258_v7  ;;  %8918 = vmatmul.bf16.vlgmr.msrb.gmra.mxu2 %v16258_v7  ;;  %v13113_v7 = vor.u32 %v14228_v18, %v13112_v37  ;;  %v8358_v59 = vsel %vm8355_vm0, %v8357_v56, %v8353_v34  ;;  %v14261_v37 = vld [vmem:[#allocation14] sm:$0xff] }
 0x744   :  { %14521 = vpow2.f32 %v12954_v11  ;;  %v8290_v32 = vadd.f32 %v8289_v41, %v16211_v39  ;;  %v8334_v39 = vadd.f32 %v16264_v10, %v8333_v29  ;;  %9103 = vmatpush.bf16.msrb.mxu0 %v14256_v33  ;;  %8902 = vmatpush.bf16.msra.mxu1 %v13129_v45  ;;  %v8376_v51 = vmul.f32 %v8358_v59, %v16150_v48  ;;  %v14268_v33 = vld [vmem:[#allocation14 + $0x38] sm:$0xff] }
 0x745   :  { %v8265_v23 = vpop.f32.mrf.mxu1  ;;  %8929 = vmatpush.bf16.msrb.mxu3 %v13117_v1  ;;  %v9029_v29 = vpack.c.bf16 %v16159_v55, %v16003_v8  ;;  %v14264_v45 = vld [vmem:[#allocation14 + $0x18] sm:$0xff] }
 0x746   :  { %v8317_v16 = vadd.f32 %v8309_v44, %v8290_v32  ;;  %v8338_v15 = vsel %vm16293_vm13, %v16264_v10, %v8334_v39  ;;  %v14265_v32 = vld [vmem:[#allocation14 + $0x20] sm:$0xff] }
 0x747   :  { %v8343_v62 = vsel %vm8340_vm15, %v8342_v47, %v8338_v15 }
 0x748   :  { %14523 = vtanh.f32 %v8317_v16  ;;  %9104 = vmatpush.bf16.msrb.mxu0 %v14255_v12  ;;  %8903 = vmatpush.bf16.msra.mxu1 %v13113_v7 }
 0x749   :  { %8930 = vmatpush.bf16.msrb.mxu3 %v13101_v14 }
 0x74a   :  { %v14522_v30 = vpop.eup %14521 }
 0x74b   :  { %v8329_v46 = vadd.f32 1.0, %v14522_v30  ;;  %v8291_v13 = vpop.f32.mrf.mxu3 }
 0x74c   :  { %9105 = vmatpush.bf16.msrb.mxu0 %v14254_v49  ;;  %8904 = vmatpush.bf16.msra.mxu1 %v13097_v43 }
 0x74d   :  { %14525 = vrcp.f32 %v8329_v46  ;;  %v8371_v5 = vand.u32 2147483648, %v8329_v46  ;;  %v8369_v11 = vand.u32 2147483647, %v8329_v46  ;;  %vm8365_vm2 = vweird.f32 %v8329_v46 }
 0x74e   :  { %v14524_v40 = vpop.eup %14523 }
 0x74f   :  { %v8377_v10 = vmul.f32 %v14524_v40, %v8343_v62  ;;  %v8372_v48 = vor.u32 1.1754944e-38, %v8371_v5  ;;  %vm8370_vm4 = vcmp.eq.f32.partialorder %v8369_v11, 8.507059e+37  ;;  %v8940_v62 = vperm.slane %v8936_v50, 2 }
 0x750   :  { %9106 = vmatpush.bf16.msrb.mxu0 %v14253_v36 }
 0x751   :  { %v16311_v28 = vadd.f32 %v8377_v10, %v8376_v51 }
 0x753   :  { %v14526_v0 = vpop.eup %14525  ;;  %9107 = vmatmul.bf16.vlgmr.msrb.gmra.mxu0 %v9027_v4  ;;  %14527 = vtanh.f32 %v16311_v28 }
 0x754   :  { %v8361_v26 = vmul.f32 %v14526_v0, %v8329_v46  ;;  %vm8366_vm1 = vweird.f32 %v14526_v0 }
 0x755   :  { %vm8367_vm3 = vmor %vm8365_vm2, %vm8366_vm1 }
 0x756   :  { %v8362_v44 = vsub.f32 1.0, %v8361_v26 }
 0x758   :  { %v8363_v3 = vmul.f32 %v14526_v0, %v8362_v44 }
 0x759   :  { %v14528_v22 = vpop.eup %14527 }
 0x75a   :  { %v8364_v38 = vadd.f32 %v14526_v0, %v8363_v3  ;;  %v8941_v3 = vperm.slane %v8936_v50, 3 }
 0x75c   :  { %v8368_v6 = vsel %vm8367_vm3, %v14526_v0, %v8364_v38 }
 0x75d   :  { %v8373_v35 = vsel %vm8370_vm4, %v8372_v48, %v8368_v6 }
 0x75e   :  { %v16316_v41 = vmul.f32 %v14528_v22, %v8373_v35 }
 0x760   :  { %v8447_v52 = vpack.c.bf16 %v16316_v41, %v16316_v41 }
 0x762   :  { %8853 = vmatmul.bf16.vlgmr.msrb.gmra.mxu1 %v8447_v52  ;;  %8879 = vmatmul.bf16.vlgmr.msra.gmra.mxu3 %v8447_v52 }
 0x763   :  { %9112 = vmatmul.bf16.gmra.mxu0 %v9028_v63  ;;  %9200 = vmatpush.bf16.msrb.mxu1 %v14268_v33 }
 0x767   :  { %9201 = vmatpush.bf16.msrb.mxu1 %v14267_v57 }
 0x76b   :  { %9202 = vmatpush.bf16.msrb.mxu1 %v14266_v60 }
 0x76f   :  { %9203 = vmatpush.bf16.msrb.mxu1 %v14265_v32 }
 0x772   :  { %8905 = vmatmul.bf16.vlgmr.msra.gmra.mxu1 %v8447_v52  ;;  %8931 = vmatmul.bf16.vlgmr.msrb.gmra.mxu3 %v8447_v52 }
 0x773   :  { %9117 = vmatmul.bf16.gmra.mxu0 %v9029_v29  ;;  %9204 = vmatpush.bf16.msrb.mxu1 %v14264_v45 }
 0x777   :  { %9205 = vmatpush.bf16.msrb.mxu1 %v14263_v21 }
 0x77b   :  { %9206 = vmatpush.bf16.msrb.mxu1 %v14262_v58 }
 0x77f   :  { %9207 = vmatpush.bf16.msrb.mxu1 %v14261_v37 }
 0x7b0   :  { %v8841_v23 = vpop.f32.mrf.mxu0 }
 0x7b6   :  { %v8867_v17 = vpop.f32.mrf.mxu2 }
 0x7b8   :  { %v8843_v16 = vpop.f32.mrf.mxu0 }
 0x7be   :  { %v8869_v8 = vpop.f32.mrf.mxu2 }
 0x7c0   :  { %v8893_v55 = vpop.f32.mrf.mxu0 }
 0x7c6   :  { %v8919_v18 = vpop.f32.mrf.mxu2 }
 0x7c8   :  { %v8895_v9 = vpop.f32.mrf.mxu0 }
 0x7ce   :  { %v8921_v39 = vpop.f32.mrf.mxu2 }
 0x7d0   :  { %v9108_v20 = vpop.f32.mrf.mxu0 }
 0x7d1   :  { %v9109_v31 = vadd.f32 %v16327_v27, %v9108_v20 }
 0x7d8   :  { %v9110_v12 = vpop.f32.mrf.mxu0 }
 0x7d9   :  { %v9111_v2 = vadd.f32 %v16327_v27, %v9110_v12 }
 0x7db   :  { %v9128_v7 = vpack.c.bf16 %v9111_v2, %v9109_v31 }
 0x7dd   :  { %9208 = vmatmul.bf16.vlgmr.msrb.gmra.mxu1 %v9128_v7 }
 0x7df   :  { %v8854_v54 = vpop.f32.mrf.mxu1 }
 0x7e0   :  { %v8855_v1 = vadd.f32 %v8854_v54, %v8841_v23  ;;  %v9113_v25 = vpop.f32.mrf.mxu0 }
 0x7e1   :  { %v9114_v56 = vadd.f32 %v16327_v27, %v9113_v25 }
 0x7e2   :  { %v8946_v61 = vadd.f32 %v8938_v53, %v8855_v1 }
 0x7e4   :  { %v13214_v30 = vmul.f32 -1.442695, %v8946_v61 }
 0x7e5   :  { %v8880_v24 = vpop.f32.mrf.mxu3 }
 0x7e6   :  { %14529 = vpow2.f32 %v13214_v30  ;;  %v8881_v42 = vadd.f32 %v8880_v24, %v8867_v17 }
 0x7e7   :  { %v8856_v46 = vpop.f32.mrf.mxu1 }
 0x7e8   :  { %v8947_v15 = vadd.f32 %v8939_v19, %v8881_v42  ;;  %v9115_v13 = vpop.f32.mrf.mxu0 }
 0x7e9   :  { %v9116_v47 = vadd.f32 %v16327_v27, %v9115_v13 }
 0x7ea   :  { %v13215_v34 = vmul.f32 -1.442695, %v8947_v15 }
 0x7eb   :  { %v9129_v40 = vpack.c.bf16 %v9116_v47, %v9114_v56  ;;  %v14288_v47 = vld [vmem:[%s16356_s8] ss:$0 sm:$0xff]  ;;  %s14685_s8 = smov [#allocation16]  }
 0x7ec   :  { %v14530_v49 = vpop.eup %14529  ;;  %14531 = vpow2.f32 %v13215_v34  ;;  %s9241_s7 = sshll.u32 %s14685_s8, 4  ;;  %s9242_s7 = int_to_ptr.vmem [resolvable:$true] %s9241_s7 }
 0x7ed   :  { %v8959_v43 = vadd.f32 1.0, %v14530_v49  ;;  %v8882_v14 = vpop.f32.mrf.mxu3  ;;  %9213 = vmatmul.bf16.gmra.mxu1 %v9129_v40 }
 0x7ef   :  { %14533 = vrcp.f32 %v8959_v43  ;;  %v8906_v59 = vpop.f32.mrf.mxu1  ;;  %v8973_v23 = vand.u32 2147483648, %v8959_v43  ;;  %vm8967_vm6 = vweird.f32 %v8959_v43  ;;  %v8971_v17 = vand.u32 2147483647, %v8959_v43 }
 0x7f0   :  { %v8907_v10 = vadd.f32 %v8906_v59, %v8893_v55  ;;  %v9118_v26 = vpop.f32.mrf.mxu0 }
 0x7f1   :  { %v9119_v63 = vadd.f32 %v16327_v27, %v9118_v26  ;;  %v8974_v9 = vor.u32 1.1754944e-38, %v8973_v23  ;;  %vm8972_vm10 = vcmp.eq.f32.partialorder %v8971_v17, 8.507059e+37 }
 0x7f2   :  { %v14532_v36 = vpop.eup %14531  ;;  %v8948_v51 = vadd.f32 %v8940_v62, %v8907_v10 }
 0x7f3   :  { %v8960_v0 = vadd.f32 1.0, %v14532_v36 }
 0x7f4   :  { %v13216_v4 = vmul.f32 -1.442695, %v8948_v51 }
 0x7f5   :  { %v14534_v44 = vpop.eup %14533  ;;  %14535 = vrcp.f32 %v8960_v0  ;;  %v8932_v5 = vpop.f32.mrf.mxu3  ;;  %v8988_v37 = vand.u32 2147483648, %v8960_v0  ;;  %vm8982_vm9 = vweird.f32 %v8960_v0 }
 0x7f6   :  { %v8963_v11 = vmul.f32 %v14534_v44, %v8959_v43  ;;  %14537 = vpow2.f32 %v13216_v4  ;;  %v8933_v38 = vadd.f32 %v8932_v5, %v8919_v18  ;;  %vm8968_vm5 = vweird.f32 %v14534_v44 }
 0x7f7   :  { %v8908_v48 = vpop.f32.mrf.mxu1  ;;  %vm8969_vm7 = vmor %vm8967_vm6, %vm8968_vm5  ;;  %v8986_v18 = vand.u32 2147483647, %v8960_v0  ;;  %v8989_v12 = vor.u32 1.1754944e-38, %v8988_v37 }
 0x7f8   :  { %v8964_v6 = vsub.f32 1.0, %v8963_v11  ;;  %v8949_v22 = vadd.f32 %v8941_v3, %v8933_v38  ;;  %v9120_v29 = vpop.f32.mrf.mxu0 }
 0x7f9   :  { %v9121_v32 = vadd.f32 %v16327_v27, %v9120_v29  ;;  %vm8987_vm12 = vcmp.eq.f32.partialorder %v8986_v18, 8.507059e+37 }
 0x7fa   :  { %v8965_v35 = vmul.f32 %v14534_v44, %v8964_v6  ;;  %14539 = vtanh.f32 %v8949_v22 }
 0x7fb   :  { %v14536_v52 = vpop.eup %14535  ;;  %v9130_v16 = vpack.c.bf16 %v9121_v32, %v9119_v63 }
 0x7fc   :  { %v14538_v33 = vpop.eup %14537  ;;  %v8978_v57 = vmul.f32 %v14536_v52, %v8960_v0  ;;  %v8966_v60 = vadd.f32 %v14534_v44, %v8965_v35  ;;  %vm8983_vm8 = vweird.f32 %v14536_v52 }
 0x7fd   :  { %v8961_v45 = vadd.f32 1.0, %v14538_v33  ;;  %v8934_v21 = vpop.f32.mrf.mxu3  ;;  %9218 = vmatmul.bf16.gmra.mxu1 %v9130_v16  ;;  %vm8984_vm11 = vmor %vm8982_vm9, %vm8983_vm8 }
 0x7fe   :  { %v8979_v58 = vsub.f32 1.0, %v8978_v57  ;;  %v8970_v55 = vsel %vm8969_vm7, %v14534_v44, %v8966_v60 }
 0x7ff   :  { %14541 = vrcp.f32 %v8961_v45  ;;  %v8975_v50 = vsel %vm8972_vm10, %v8974_v9, %v8970_v55  ;;  %v9003_v30 = vand.u32 2147483648, %v8961_v45  ;;  %v9001_v24 = vand.u32 2147483647, %v8961_v45 }
 0x800   :  { %v8980_v8 = vmul.f32 %v14536_v52, %v8979_v58  ;;  %v14540_v20 = vpop.eup %14539  ;;  %vm8997_vm14 = vweird.f32 %v8961_v45 }
 0x801   :  { %v9009_v1 = vmul.f32 %v14540_v20, %v8975_v50  ;;  %v9004_v46 = vor.u32 1.1754944e-38, %v9003_v30  ;;  %vm9002_vm0 = vcmp.eq.f32.partialorder %v9001_v24, 8.507059e+37 }
 0x802   :  { %v8981_v39 = vadd.f32 %v14536_v52, %v8980_v8 }
 0x804   :  { %v8985_v31 = vsel %vm8984_vm11, %v14536_v52, %v8981_v39 }
 0x805   :  { %v14542_v2 = vpop.eup %14541  ;;  %v8990_v7 = vsel %vm8987_vm12, %v8989_v12, %v8985_v31 }
 0x806   :  { %v8993_v53 = vmul.f32 %v14542_v2, %v8961_v45  ;;  %v9008_v54 = vmul.f32 %v8990_v7, %v16311_v28  ;;  %vm8998_vm13 = vweird.f32 %v14542_v2 }
 0x807   :  { %vm8999_vm15 = vmor %vm8997_vm14, %vm8998_vm13 }
 0x808   :  { %v9010_v61 = vadd.f32 %v9009_v1, %v9008_v54  ;;  %v8994_v25 = vsub.f32 1.0, %v8993_v53 }
 0x80a   :  { %14543 = vtanh.f32 %v9010_v61  ;;  %v8995_v19 = vmul.f32 %v14542_v2, %v8994_v25 }
 0x80c   :  { %v8996_v42 = vadd.f32 %v14542_v2, %v8995_v19 }
 0x80e   :  { %v9000_v15 = vsel %vm8999_vm15, %v14542_v2, %v8996_v42 }
 0x80f   :  { %v9005_v34 = vsel %vm9002_vm0, %v9004_v46, %v9000_v15 }
 0x810   :  { %v14544_v13 = vpop.eup %14543 }
 0x811   :  { %v9012_v49 = vmul.f32 %v14544_v13, %v9005_v34 }
 0x813   :  { %v9014_v56 = vpack.c.bf16 %v9012_v49, %v9012_v49  ;;  %v9030_v28 = vpack.c.bf16 %v9012_v49, %v16316_v41 }
 0x815   :  { %9017 = vst [vmem:[#allocation4] sm:$0xf] %v9014_v56  ;;  %9122 = vmatmul.bf16.gmra.mxu0 %v9030_v28 }
 0x85a   :  { %v9209_v43 = vpop.f32.mrf.mxu1 }
 0x85b   :  { %v9210_v14 = vadd.f32 %v14288_v47, %v9209_v43 }
 0x85d   :  { %9229 = vst [vmem:[#allocation16] sm:$0xff] %v9210_v14 }
 0x862   :  { %v9211_v40 = vpop.f32.mrf.mxu1 }
 0x863   :  { %v9212_v62 = vadd.f32 %v14288_v47, %v9211_v40 }
 0x865   :  { %9230 = vst [vmem:[#allocation16 + $0x8] sm:$0xff] %v9212_v62 }
 0x86a   :  { %v9214_v59 = vpop.f32.mrf.mxu1 }
 0x86b   :  { %v9215_v10 = vadd.f32 %v14288_v47, %v9214_v59 }
 0x86d   :  { %9231 = vst [vmem:[#allocation16 + $0x10] sm:$0xff] %v9215_v10 }
 0x872   :  { %v9216_v36 = vpop.f32.mrf.mxu1 }
 0x873   :  { %v9217_v51 = vadd.f32 %v14288_v47, %v9216_v36 }
 0x875   :  { %9232 = vst [vmem:[#allocation16 + $0x18] sm:$0xff] %v9217_v51 }
 0x87a   :  { %v9219_v0 = vpop.f32.mrf.mxu1 }
 0x87b   :  { %v9220_v41 = vadd.f32 %v14288_v47, %v9219_v0 }
 0x87d   :  { %9233 = vst [vmem:[#allocation16 + $0x20] sm:$0xff] %v9220_v41 }
 0x882   :  { %v9221_v26 = vpop.f32.mrf.mxu1 }
 0x883   :  { %v9222_v4 = vadd.f32 %v14288_v47, %v9221_v26 }
 0x885   :  { %9234 = vst [vmem:[#allocation16 + $0x28] sm:$0xff] %v9222_v4 }
 0x892   :  { %v9123_v44 = vpop.f32.mrf.mxu0 }
 0x893   :  { %v9124_v3 = vadd.f32 %v16327_v27, %v9123_v44 }
 0x89a   :  { %v9125_v5 = vpop.f32.mrf.mxu0 }
 0x89b   :  { %v9126_v11 = vadd.f32 %v16327_v27, %v9125_v5 }
 0x89d   :  { %v9131_v38 = vpack.c.bf16 %v9126_v11, %v9124_v3 }
 0x89f   :  { %9223 = vmatmul.bf16.gmra.mxu1 %v9131_v38 }
 0x91c   :  { %v9224_v48 = vpop.f32.mrf.mxu1 }
 0x91d   :  { %v9225_v6 = vadd.f32 %v14288_v47, %v9224_v48 }
 0x91f   :  { %9235 = vst [vmem:[#allocation16 + $0x30] sm:$0xff] %v9225_v6 }
 0x924   :  { %v9226_v22 = vpop.f32.mrf.mxu1 }
 0x925   :  { %v9227_v35 = vadd.f32 %v14288_v47, %v9226_v22 }
 0x927   :  { %9236 = vst [vmem:[#allocation16 + $0x38] sm:$0xff] %v9227_v35 }
 0x928   :  { %9249 = dma.vmem_to_hbm [thread:$0]  %s9242_s7, 1024, %s9244_s14, [#allocation10], %s14686_s15, %s14686_s15, %s14687_s16  }
 0x929   :  { %14672 = dma.done.wait [#allocation10], 1024  }
 0x92a   :  { %14673 = vsyncadd [#allocation10], 4294966272 }
 0x92b   :  { %9254 = vsyncpa [#allocation9], 1 }
 0x92c   :  { %9255 = vsyncpa [#allocation12], 1 }
 0x92d   :  { %9256 = vsyncpa [#allocation15], 1 }
 0x92e   :  { %9257 = vsyncpa [#allocation10], 1 }

</bundles_post_ra>
